<compile_context>
chip_gen: v6e
topology: v6e:2x2x1
jax: 0.10.0
libtpu: 0.0.40
codegen_flags: <defaults>
</compile_context>

<pallas_src>
import numpy as np
import jax
import jax.numpy as jnp
from jax.experimental import pallas as pl
from jax.experimental.pallas import tpu as pltpu


HP = 128    # padded per-gate hidden width (one full 128-lane vreg)
IN1P = 8    # padded width of the raw input features (n_features=1 -> 8)
FP = 128    # padded width of the final linear output (n_features=1 -> 128)

# torch LSTM gate order is (i, f, g, o); kernel uses (i, f, o, g) so the three
# sigmoid gates form one contiguous (1, 3*HP) slice.
GATE_ORDER = (0, 1, 3, 2)


# ----------------------------- Pallas kernel -------------------------------


def _ae_kernel(x_ref,
               wih1_ref, whh1_ref, b1_ref,
               w2s_ref, b2_ref,
               wih3_ref, whh3_ref, b3_ref,
               w4s_ref, b4_ref,
               lw_ref, lb_ref,
               out_ref):
    """Whole autoencoder forward: enc1 -> enc2 -> dec1 -> dec2 -> linear."""
    T = x_ref.shape[0]
    f32 = jnp.float32
    bf16 = jnp.bfloat16

    def cell(g, c):
        # gate layout (i, f, o, g): one transcendental for all three sigmoids
        # (sigmoid(x) == 0.5*tanh(0.5*x) + 0.5, single EUP push) + one tanh.
        s = 0.5 * jnp.tanh(0.5 * g[:, :3 * HP]) + 0.5
        i_g = s[:, 0 * HP:1 * HP]
        f_g = s[:, 1 * HP:2 * HP]
        o_g = s[:, 2 * HP:3 * HP]
        g_g = jnp.tanh(g[:, 3 * HP:4 * HP])
        c = f_g * c + i_g * g_g
        h = o_g * jnp.tanh(c)
        return h, c

    zeros = jnp.zeros((1, HP), f32)

    # ------------------- Encoder: enc1 + enc2 wavefront -------------------
    # enc1 input projection hoisted (raw x is fully known up front).
    proj1 = (jnp.dot(x_ref[...], wih1_ref[...], preferred_element_type=f32)
             + b1_ref[...])                                    # (T, 4*HP)
    whh1 = whh1_ref[...]                                       # bf16 (HP, 4HP)
    w2s = w2s_ref[...]                                         # bf16 (2HP, 4HP)
    b2 = b2_ref[...]

    h1, c1 = zeros, zeros
    h2, c2 = zeros, zeros
    for t in range(T):                       # static -> fully unrolled
        # enc1 step t
        g1 = proj1[t:t + 1, :] + jnp.dot(h1.astype(bf16), whh1,
                                         preferred_element_type=f32)
        h1, c1 = cell(g1, c1)
        # enc2 step t consumes h1 of step t directly (no layer barrier):
        # one stacked matmul on concat([x_t, h2]).
        x2 = jnp.concatenate([h1, h2], axis=1).astype(bf16)    # (1, 2*HP)
        g2 = jnp.dot(x2, w2s, preferred_element_type=f32) + b2
        h2, c2 = cell(g2, c2)
    latent = h2                                                # (1, HP)

    # ----------- Decoder: dec1 + dec2 wavefront + per-step linear -----------
    # dec1's input is the latent tiled over time -> shared projection (1, 4HP).
    proj3 = (jnp.dot(latent.astype(bf16), wih3_ref[...],
                     preferred_element_type=f32) + b3_ref[...])
    whh3 = whh3_ref[...]
    w4s = w4s_ref[...]
    b4 = b4_ref[...]
    lw = lw_ref[...]
    lb = lb_ref[...]

    h3, c3 = zeros, zeros
    h4, c4 = zeros, zeros
    for t in range(T):
        # dec1 step t
        g3 = proj3 + jnp.dot(h3.astype(bf16), whh3, preferred_element_type=f32)
        h3, c3 = cell(g3, c3)
        # dec2 step t (stacked matmul on concat([h3, h4]))
        x4 = jnp.concatenate([h3, h4], axis=1).astype(bf16)
        g4 = jnp.dot(x4, w4s, preferred_element_type=f32) + b4
        h4, c4 = cell(g4, c4)
        # per-step output Linear: lane-dense (1, FP) row store
        out_ref[t:t + 1, :] = (jnp.dot(h4.astype(bf16), lw,
                                       preferred_element_type=f32) + lb)


# --------------------------- Parameter handling -----------------------------


def init_lstm(key, in_dim, hidden):
    """torch.nn.LSTM-style params, per-gate format (i, f, g, o)."""
    k = 1.0 / np.sqrt(hidden)
    k1, k2, k3, k4 = jax.random.split(key, 4)
    w_ih = jax.random.uniform(k1, (4, in_dim, hidden), jnp.float32, -k, k)
    w_hh = jax.random.uniform(k2, (4, hidden, hidden), jnp.float32, -k, k)
    b_ih = jax.random.uniform(k3, (4, 1, hidden), jnp.float32, -k, k)
    b_hh = jax.random.uniform(k4, (4, 1, hidden), jnp.float32, -k, k)
    return w_ih, w_hh, b_ih + b_hh


def init_params(key, seq_len, n_features, embedding_dim):
    hid = 2 * embedding_dim
    keys = jax.random.split(key, 5)
    params = {
        # Encoder: LSTM(n_features -> 2*emb), LSTM(2*emb -> emb)
        "enc1": init_lstm(keys[0], n_features, hid),
        "enc2": init_lstm(keys[1], hid, embedding_dim),
        # Decoder: LSTM(emb -> emb), LSTM(emb -> 2*emb), Linear(2*emb -> n_features)
        "dec1": init_lstm(keys[2], embedding_dim, embedding_dim),
        "dec2": init_lstm(keys[3], embedding_dim, hid),
    }
    klw, klb = jax.random.split(keys[4])
    k = 1.0 / np.sqrt(hid)
    params["lin_w"] = jax.random.uniform(klw, (hid, n_features), jnp.float32, -k, k)
    params["lin_b"] = jax.random.uniform(klb, (1, n_features), jnp.float32, -k, k)
    return params


def _pad_fuse(w_ih, w_hh, b, in_pad):
    """(4,in,H)/(4,H,H)/(4,1,H) -> fused, zero-padded, gate order (i,f,o,g)."""
    in_dim, H = w_ih.shape[1], w_ih.shape[2]
    wih_p = jnp.zeros((in_pad, 4 * HP), jnp.float32)
    whh_p = jnp.zeros((HP, 4 * HP), jnp.float32)
    b_p = jnp.zeros((1, 4 * HP), jnp.float32)
    for slot, k in enumerate(GATE_ORDER):
        wih_p = wih_p.at[:in_dim, slot * HP:slot * HP + H].set(w_ih[k])
        whh_p = whh_p.at[:H, slot * HP:slot * HP + H].set(w_hh[k])
        b_p = b_p.at[:, slot * HP:slot * HP + H].set(b[k])
    return wih_p, whh_p, b_p


def prep_kernel_params(params):
    """One-time (init-time) gate fusion, zero padding and bf16 weight casts."""
    bf16 = jnp.bfloat16
    # enc1: input projection is hoisted over raw x -> keep its (tiny) wih in f32
    wih1, whh1, b1 = _pad_fuse(*params["enc1"], in_pad=IN1P)
    # enc2: stacked [Wih; Whh] so each step is one concat([x_t, h]) matmul
    wih2, whh2, b2 = _pad_fuse(*params["enc2"], in_pad=HP)
    w2s = jnp.concatenate([wih2, whh2], axis=0)                 # (2*HP, 4*HP)
    # dec1: shared latent input -> keep wih/whh separate (projection hoisted)
    wih3, whh3, b3 = _pad_fuse(*params["dec1"], in_pad=HP)
    # dec2: stacked like enc2
    wih4, whh4, b4 = _pad_fuse(*params["dec2"], in_pad=HP)
    w4s = jnp.concatenate([wih4, whh4], axis=0)
    hid, nf = params["lin_w"].shape
    lw = jnp.zeros((HP, FP), jnp.float32).at[:hid, :nf].set(params["lin_w"])
    lb = jnp.zeros((1, FP), jnp.float32).at[:, :nf].set(params["lin_b"])
    kp = (wih1,                 whh1.astype(bf16), b1,
          w2s.astype(bf16),     b2,
          wih3.astype(bf16),    whh3.astype(bf16), b3,
          w4s.astype(bf16),     b4,
          lw.astype(bf16),      lb)
    return jax.tree_util.tree_map(jnp.asarray, kp)


# ------------------------------ Full forward --------------------------------


@jax.jit
def recurrent_autoencoder(kernel_params, x):
    """x: (seq_len, n_features) -> (seq_len, n_features). Params pre-fused."""
    T, nf = x.shape
    # The torch module's reshapes are only consistent for n_features == 1.
    assert nf == 1, "module semantics require n_features == 1"

    x_p = jnp.zeros((T, IN1P), jnp.float32).at[:, :nf].set(x.astype(jnp.float32))
    args = (x_p,) + tuple(kernel_params)

    vmem = pl.BlockSpec(memory_space=pltpu.MemorySpace.VMEM)
    out = pl.pallas_call(
        _ae_kernel,
        out_shape=jax.ShapeDtypeStruct((T, FP), jnp.float32),
        in_specs=[vmem] * len(args),
        out_specs=vmem,
    )(*args)

    return out[:, :nf]


# ---------------------- Pure-JAX reference (for checking) -------------------


def _lstm_ref(x, w_ih, w_hh, b):
    T = x.shape[0]
    H = w_hh.shape[-1]
    hp = jax.lax.Precision.HIGHEST
    h = jnp.zeros((1, H), jnp.float32)
    c = jnp.zeros((1, H), jnp.float32)
    ys = []
    for t in range(T):
        x_t = x[t:t + 1]
        g = [jnp.dot(x_t, w_ih[k], precision=hp)
             + jnp.dot(h, w_hh[k], precision=hp) + b[k] for k in range(4)]
        i_g, f_g = jax.nn.sigmoid(g[0]), jax.nn.sigmoid(g[1])
        g_g, o_g = jnp.tanh(g[2]), jax.nn.sigmoid(g[3])
        c = f_g * c + i_g * g_g
        h = o_g * jnp.tanh(c)
        ys.append(h)
    return jnp.concatenate(ys, 0), h


def reference(params, x, seq_len, n_features, embedding_dim):
    hp = jax.lax.Precision.HIGHEST
    xe = x.reshape(seq_len, n_features).astype(jnp.float32)
    ys1, _ = _lstm_ref(xe, *params["enc1"])
    _, h_n = _lstm_ref(ys1, *params["enc2"])
    latent = h_n.reshape(n_features, embedding_dim)
    xd = jnp.tile(latent, (seq_len, 1))
    ys3, _ = _lstm_ref(xd, *params["dec1"])
    ys4, _ = _lstm_ref(ys3, *params["dec2"])
    return jnp.dot(ys4, params["lin_w"], precision=hp) + params["lin_b"]


# ---------------------------------- Main -------------------------------------


if __name__ == "__main__":
    seq_len, n_features, embedding_dim = 8, 1, 32

    key = jax.random.PRNGKey(0)
    kp_key, kx = jax.random.split(key)
    params = init_params(kp_key, seq_len, n_features, embedding_dim)
    kernel_params = prep_kernel_params(params)          # once, at init time
    x = jax.random.normal(kx, (seq_len, n_features), jnp.float32)

    out = recurrent_autoencoder(kernel_params, x)
    out = jax.block_until_ready(out)
    assert out.shape == (seq_len, n_features), out.shape

    ref = jax.block_until_ready(
        reference(params, x, seq_len, n_features, embedding_dim))
    # Kernel intentionally runs single-pass bf16 MXU dots (per perf review);
    # reference is f32 Precision.HIGHEST, so use a bf16-appropriate tolerance.
    if not np.allclose(np.asarray(out), np.asarray(ref), atol=2e-2, rtol=2e-2):
        raise AssertionError("Pallas kernel output mismatch vs JAX reference")

    print("KERNEL_OK")
</pallas_src>

<mosaic_0001>
module attributes {stable_mosaic.version = 11 : i64} {
  func.func @_ae_kernel(%arg0: memref<8x8xf32, #tpu.memory_space<vmem>>, %arg1: memref<8x512xf32, #tpu.memory_space<vmem>>, %arg2: memref<128x512xbf16, #tpu.memory_space<vmem>>, %arg3: memref<1x512xf32, #tpu.memory_space<vmem>>, %arg4: memref<256x512xbf16, #tpu.memory_space<vmem>>, %arg5: memref<1x512xf32, #tpu.memory_space<vmem>>, %arg6: memref<128x512xbf16, #tpu.memory_space<vmem>>, %arg7: memref<128x512xbf16, #tpu.memory_space<vmem>>, %arg8: memref<1x512xf32, #tpu.memory_space<vmem>>, %arg9: memref<256x512xbf16, #tpu.memory_space<vmem>>, %arg10: memref<1x512xf32, #tpu.memory_space<vmem>>, %arg11: memref<128x128xbf16, #tpu.memory_space<vmem>>, %arg12: memref<1x128xf32, #tpu.memory_space<vmem>>, %arg13: memref<8x128xf32, #tpu.memory_space<vmem>>) attributes {dimension_semantics = [], scalar_prefetch = 0 : i64, scratch_operands = 0 : i64, tpu.core_type = #tpu.core_type<tc>} {
    %cst = arith.constant 0.000000e+00 : f32
    %0 = vector.broadcast %cst : f32 to vector<1x128xf32>
    %c0 = arith.constant 0 : index
    %c0_0 = arith.constant 0 : index
    %1 = vector.load %arg0[%c0, %c0_0] : memref<8x8xf32, #tpu.memory_space<vmem>>, vector<8x8xf32>
    %c0_1 = arith.constant 0 : index
    %c0_2 = arith.constant 0 : index
    %2 = vector.load %arg1[%c0_1, %c0_2] : memref<8x512xf32, #tpu.memory_space<vmem>>, vector<8x512xf32>
    %cst_3 = arith.constant dense<0.000000e+00> : vector<8x512xf32>
    %3 = tpu.matmul %1, %2, %cst_3 {dimension_numbers = #tpu.dot_dimension_numbers<[1], [0], [0], [1], [0, 0, 1, 1], [], []>} : vector<8x8xf32>, vector<8x512xf32>, vector<8x512xf32> -> vector<8x512xf32>
    %c0_4 = arith.constant 0 : index
    %c0_5 = arith.constant 0 : index
    %4 = vector.load %arg3[%c0_4, %c0_5] : memref<1x512xf32, #tpu.memory_space<vmem>>, vector<1x512xf32>
    %5 = vector.broadcast %4 : vector<1x512xf32> to vector<8x512xf32>
    %6 = arith.addf %3, %5 : vector<8x512xf32>
    %c0_6 = arith.constant 0 : index
    %c0_7 = arith.constant 0 : index
    %7 = vector.load %arg2[%c0_6, %c0_7] : memref<128x512xbf16, #tpu.memory_space<vmem>>, vector<128x512xbf16>
    %c0_8 = arith.constant 0 : index
    %c0_9 = arith.constant 0 : index
    %8 = vector.load %arg4[%c0_8, %c0_9] : memref<256x512xbf16, #tpu.memory_space<vmem>>, vector<256x512xbf16>
    %c0_10 = arith.constant 0 : index
    %c0_11 = arith.constant 0 : index
    %9 = vector.load %arg5[%c0_10, %c0_11] : memref<1x512xf32, #tpu.memory_space<vmem>>, vector<1x512xf32>
    %10 = vector.extract_strided_slice %6 {offsets = [0, 0], sizes = [1, 512], strides = [1, 1]} : vector<8x512xf32> to vector<1x512xf32>
    %11 = arith.truncf %0 : vector<1x128xf32> to vector<1x128xbf16>
    %cst_12 = arith.constant dense<0.000000e+00> : vector<1x512xf32>
    %12 = tpu.matmul %11, %7, %cst_12 {dimension_numbers = #tpu.dot_dimension_numbers<[1], [0], [0], [1], [0, 0, 1, 1], [], []>} : vector<1x128xbf16>, vector<128x512xbf16>, vector<1x512xf32> -> vector<1x512xf32>
    %13 = arith.addf %10, %12 : vector<1x512xf32>
    %14 = vector.extract_strided_slice %13 {offsets = [0, 0], sizes = [1, 384], strides = [1, 1]} : vector<1x512xf32> to vector<1x384xf32>
    %cst_13 = arith.constant 5.000000e-01 : f32
    %15 = vector.broadcast %cst_13 : f32 to vector<1x384xf32>
    %16 = arith.mulf %15, %14 : vector<1x384xf32>
    %17 = math.tanh %16 : vector<1x384xf32>
    %cst_14 = arith.constant 5.000000e-01 : f32
    %18 = vector.broadcast %cst_14 : f32 to vector<1x384xf32>
    %19 = arith.mulf %18, %17 : vector<1x384xf32>
    %cst_15 = arith.constant 5.000000e-01 : f32
    %20 = vector.broadcast %cst_15 : f32 to vector<1x384xf32>
    %21 = arith.addf %19, %20 : vector<1x384xf32>
    %22 = vector.extract_strided_slice %21 {offsets = [0, 0], sizes = [1, 128], strides = [1, 1]} : vector<1x384xf32> to vector<1x128xf32>
    %23 = vector.extract_strided_slice %21 {offsets = [0, 128], sizes = [1, 128], strides = [1, 1]} : vector<1x384xf32> to vector<1x128xf32>
    %24 = vector.extract_strided_slice %21 {offsets = [0, 256], sizes = [1, 128], strides = [1, 1]} : vector<1x384xf32> to vector<1x128xf32>
    %25 = vector.extract_strided_slice %13 {offsets = [0, 384], sizes = [1, 128], strides = [1, 1]} : vector<1x512xf32> to vector<1x128xf32>
    %26 = math.tanh %25 : vector<1x128xf32>
    %27 = arith.mulf %23, %0 : vector<1x128xf32>
    %28 = arith.mulf %22, %26 : vector<1x128xf32>
    %29 = arith.addf %27, %28 : vector<1x128xf32>
    %30 = math.tanh %29 : vector<1x128xf32>
    %31 = arith.mulf %24, %30 : vector<1x128xf32>
    %32 = tpu.concatenate %31, %0 in 1 : vector<1x128xf32>, vector<1x128xf32> -> vector<1x256xf32>
    %33 = arith.truncf %32 : vector<1x256xf32> to vector<1x256xbf16>
    %cst_16 = arith.constant dense<0.000000e+00> : vector<1x512xf32>
    %34 = tpu.matmul %33, %8, %cst_16 {dimension_numbers = #tpu.dot_dimension_numbers<[1], [0], [0], [1], [0, 0, 1, 1], [], []>} : vector<1x256xbf16>, vector<256x512xbf16>, vector<1x512xf32> -> vector<1x512xf32>
    %35 = arith.addf %34, %9 : vector<1x512xf32>
    %36 = vector.extract_strided_slice %35 {offsets = [0, 0], sizes = [1, 384], strides = [1, 1]} : vector<1x512xf32> to vector<1x384xf32>
    %cst_17 = arith.constant 5.000000e-01 : f32
    %37 = vector.broadcast %cst_17 : f32 to vector<1x384xf32>
    %38 = arith.mulf %37, %36 : vector<1x384xf32>
    %39 = math.tanh %38 : vector<1x384xf32>
    %cst_18 = arith.constant 5.000000e-01 : f32
    %40 = vector.broadcast %cst_18 : f32 to vector<1x384xf32>
    %41 = arith.mulf %40, %39 : vector<1x384xf32>
    %cst_19 = arith.constant 5.000000e-01 : f32
    %42 = vector.broadcast %cst_19 : f32 to vector<1x384xf32>
    %43 = arith.addf %41, %42 : vector<1x384xf32>
    %44 = vector.extract_strided_slice %43 {offsets = [0, 0], sizes = [1, 128], strides = [1, 1]} : vector<1x384xf32> to vector<1x128xf32>
    %45 = vector.extract_strided_slice %43 {offsets = [0, 128], sizes = [1, 128], strides = [1, 1]} : vector<1x384xf32> to vector<1x128xf32>
    %46 = vector.extract_strided_slice %43 {offsets = [0, 256], sizes = [1, 128], strides = [1, 1]} : vector<1x384xf32> to vector<1x128xf32>
    %47 = vector.extract_strided_slice %35 {offsets = [0, 384], sizes = [1, 128], strides = [1, 1]} : vector<1x512xf32> to vector<1x128xf32>
    %48 = math.tanh %47 : vector<1x128xf32>
    %49 = arith.mulf %45, %0 : vector<1x128xf32>
    %50 = arith.mulf %44, %48 : vector<1x128xf32>
    %51 = arith.addf %49, %50 : vector<1x128xf32>
    %52 = math.tanh %51 : vector<1x128xf32>
    %53 = arith.mulf %46, %52 : vector<1x128xf32>
    %54 = vector.extract_strided_slice %6 {offsets = [1, 0], sizes = [1, 512], strides = [1, 1]} : vector<8x512xf32> to vector<1x512xf32>
    %55 = arith.truncf %31 : vector<1x128xf32> to vector<1x128xbf16>
    %cst_20 = arith.constant dense<0.000000e+00> : vector<1x512xf32>
    %56 = tpu.matmul %55, %7, %cst_20 {dimension_numbers = #tpu.dot_dimension_numbers<[1], [0], [0], [1], [0, 0, 1, 1], [], []>} : vector<1x128xbf16>, vector<128x512xbf16>, vector<1x512xf32> -> vector<1x512xf32>
    %57 = arith.addf %54, %56 : vector<1x512xf32>
    %58 = vector.extract_strided_slice %57 {offsets = [0, 0], sizes = [1, 384], strides = [1, 1]} : vector<1x512xf32> to vector<1x384xf32>
    %cst_21 = arith.constant 5.000000e-01 : f32
    %59 = vector.broadcast %cst_21 : f32 to vector<1x384xf32>
    %60 = arith.mulf %59, %58 : vector<1x384xf32>
    %61 = math.tanh %60 : vector<1x384xf32>
    %cst_22 = arith.constant 5.000000e-01 : f32
    %62 = vector.broadcast %cst_22 : f32 to vector<1x384xf32>
    %63 = arith.mulf %62, %61 : vector<1x384xf32>
    %cst_23 = arith.constant 5.000000e-01 : f32
    %64 = vector.broadcast %cst_23 : f32 to vector<1x384xf32>
    %65 = arith.addf %63, %64 : vector<1x384xf32>
    %66 = vector.extract_strided_slice %65 {offsets = [0, 0], sizes = [1, 128], strides = [1, 1]} : vector<1x384xf32> to vector<1x128xf32>
    %67 = vector.extract_strided_slice %65 {offsets = [0, 128], sizes = [1, 128], strides = [1, 1]} : vector<1x384xf32> to vector<1x128xf32>
    %68 = vector.extract_strided_slice %65 {offsets = [0, 256], sizes = [1, 128], strides = [1, 1]} : vector<1x384xf32> to vector<1x128xf32>
    %69 = vector.extract_strided_slice %57 {offsets = [0, 384], sizes = [1, 128], strides = [1, 1]} : vector<1x512xf32> to vector<1x128xf32>
    %70 = math.tanh %69 : vector<1x128xf32>
    %71 = arith.mulf %67, %29 : vector<1x128xf32>
    %72 = arith.mulf %66, %70 : vector<1x128xf32>
    %73 = arith.addf %71, %72 : vector<1x128xf32>
    %74 = math.tanh %73 : vector<1x128xf32>
    %75 = arith.mulf %68, %74 : vector<1x128xf32>
    %76 = tpu.concatenate %75, %53 in 1 : vector<1x128xf32>, vector<1x128xf32> -> vector<1x256xf32>
    %77 = arith.truncf %76 : vector<1x256xf32> to vector<1x256xbf16>
    %cst_24 = arith.constant dense<0.000000e+00> : vector<1x512xf32>
    %78 = tpu.matmul %77, %8, %cst_24 {dimension_numbers = #tpu.dot_dimension_numbers<[1], [0], [0], [1], [0, 0, 1, 1], [], []>} : vector<1x256xbf16>, vector<256x512xbf16>, vector<1x512xf32> -> vector<1x512xf32>
    %79 = arith.addf %78, %9 : vector<1x512xf32>
    %80 = vector.extract_strided_slice %79 {offsets = [0, 0], sizes = [1, 384], strides = [1, 1]} : vector<1x512xf32> to vector<1x384xf32>
    %cst_25 = arith.constant 5.000000e-01 : f32
    %81 = vector.broadcast %cst_25 : f32 to vector<1x384xf32>
    %82 = arith.mulf %81, %80 : vector<1x384xf32>
    %83 = math.tanh %82 : vector<1x384xf32>
    %cst_26 = arith.constant 5.000000e-01 : f32
    %84 = vector.broadcast %cst_26 : f32 to vector<1x384xf32>
    %85 = arith.mulf %84, %83 : vector<1x384xf32>
    %cst_27 = arith.constant 5.000000e-01 : f32
    %86 = vector.broadcast %cst_27 : f32 to vector<1x384xf32>
    %87 = arith.addf %85, %86 : vector<1x384xf32>
    %88 = vector.extract_strided_slice %87 {offsets = [0, 0], sizes = [1, 128], strides = [1, 1]} : vector<1x384xf32> to vector<1x128xf32>
    %89 = vector.extract_strided_slice %87 {offsets = [0, 128], sizes = [1, 128], strides = [1, 1]} : vector<1x384xf32> to vector<1x128xf32>
    %90 = vector.extract_strided_slice %87 {offsets = [0, 256], sizes = [1, 128], strides = [1, 1]} : vector<1x384xf32> to vector<1x128xf32>
    %91 = vector.extract_strided_slice %79 {offsets = [0, 384], sizes = [1, 128], strides = [1, 1]} : vector<1x512xf32> to vector<1x128xf32>
    %92 = math.tanh %91 : vector<1x128xf32>
    %93 = arith.mulf %89, %51 : vector<1x128xf32>
    %94 = arith.mulf %88, %92 : vector<1x128xf32>
    %95 = arith.addf %93, %94 : vector<1x128xf32>
    %96 = math.tanh %95 : vector<1x128xf32>
    %97 = arith.mulf %90, %96 : vector<1x128xf32>
    %98 = vector.extract_strided_slice %6 {offsets = [2, 0], sizes = [1, 512], strides = [1, 1]} : vector<8x512xf32> to vector<1x512xf32>
    %99 = arith.truncf %75 : vector<1x128xf32> to vector<1x128xbf16>
    %cst_28 = arith.constant dense<0.000000e+00> : vector<1x512xf32>
    %100 = tpu.matmul %99, %7, %cst_28 {dimension_numbers = #tpu.dot_dimension_numbers<[1], [0], [0], [1], [0, 0, 1, 1], [], []>} : vector<1x128xbf16>, vector<128x512xbf16>, vector<1x512xf32> -> vector<1x512xf32>
    %101 = arith.addf %98, %100 : vector<1x512xf32>
    %102 = vector.extract_strided_slice %101 {offsets = [0, 0], sizes = [1, 384], strides = [1, 1]} : vector<1x512xf32> to vector<1x384xf32>
    %cst_29 = arith.constant 5.000000e-01 : f32
    %103 = vector.broadcast %cst_29 : f32 to vector<1x384xf32>
    %104 = arith.mulf %103, %102 : vector<1x384xf32>
    %105 = math.tanh %104 : vector<1x384xf32>
    %cst_30 = arith.constant 5.000000e-01 : f32
    %106 = vector.broadcast %cst_30 : f32 to vector<1x384xf32>
    %107 = arith.mulf %106, %105 : vector<1x384xf32>
    %cst_31 = arith.constant 5.000000e-01 : f32
    %108 = vector.broadcast %cst_31 : f32 to vector<1x384xf32>
    %109 = arith.addf %107, %108 : vector<1x384xf32>
    %110 = vector.extract_strided_slice %109 {offsets = [0, 0], sizes = [1, 128], strides = [1, 1]} : vector<1x384xf32> to vector<1x128xf32>
    %111 = vector.extract_strided_slice %109 {offsets = [0, 128], sizes = [1, 128], strides = [1, 1]} : vector<1x384xf32> to vector<1x128xf32>
    %112 = vector.extract_strided_slice %109 {offsets = [0, 256], sizes = [1, 128], strides = [1, 1]} : vector<1x384xf32> to vector<1x128xf32>
    %113 = vector.extract_strided_slice %101 {offsets = [0, 384], sizes = [1, 128], strides = [1, 1]} : vector<1x512xf32> to vector<1x128xf32>
    %114 = math.tanh %113 : vector<1x128xf32>
    %115 = arith.mulf %111, %73 : vector<1x128xf32>
    %116 = arith.mulf %110, %114 : vector<1x128xf32>
    %117 = arith.addf %115, %116 : vector<1x128xf32>
    %118 = math.tanh %117 : vector<1x128xf32>
    %119 = arith.mulf %112, %118 : vector<1x128xf32>
    %120 = tpu.concatenate %119, %97 in 1 : vector<1x128xf32>, vector<1x128xf32> -> vector<1x256xf32>
    %121 = arith.truncf %120 : vector<1x256xf32> to vector<1x256xbf16>
    %cst_32 = arith.constant dense<0.000000e+00> : vector<1x512xf32>
    %122 = tpu.matmul %121, %8, %cst_32 {dimension_numbers = #tpu.dot_dimension_numbers<[1], [0], [0], [1], [0, 0, 1, 1], [], []>} : vector<1x256xbf16>, vector<256x512xbf16>, vector<1x512xf32> -> vector<1x512xf32>
    %123 = arith.addf %122, %9 : vector<1x512xf32>
    %124 = vector.extract_strided_slice %123 {offsets = [0, 0], sizes = [1, 384], strides = [1, 1]} : vector<1x512xf32> to vector<1x384xf32>
    %cst_33 = arith.constant 5.000000e-01 : f32
    %125 = vector.broadcast %cst_33 : f32 to vector<1x384xf32>
    %126 = arith.mulf %125, %124 : vector<1x384xf32>
    %127 = math.tanh %126 : vector<1x384xf32>
    %cst_34 = arith.constant 5.000000e-01 : f32
    %128 = vector.broadcast %cst_34 : f32 to vector<1x384xf32>
    %129 = arith.mulf %128, %127 : vector<1x384xf32>
    %cst_35 = arith.constant 5.000000e-01 : f32
    %130 = vector.broadcast %cst_35 : f32 to vector<1x384xf32>
    %131 = arith.addf %129, %130 : vector<1x384xf32>
    %132 = vector.extract_strided_slice %131 {offsets = [0, 0], sizes = [1, 128], strides = [1, 1]} : vector<1x384xf32> to vector<1x128xf32>
    %133 = vector.extract_strided_slice %131 {offsets = [0, 128], sizes = [1, 128], strides = [1, 1]} : vector<1x384xf32> to vector<1x128xf32>
    %134 = vector.extract_strided_slice %131 {offsets = [0, 256], sizes = [1, 128], strides = [1, 1]} : vector<1x384xf32> to vector<1x128xf32>
    %135 = vector.extract_strided_slice %123 {offsets = [0, 384], sizes = [1, 128], strides = [1, 1]} : vector<1x512xf32> to vector<1x128xf32>
    %136 = math.tanh %135 : vector<1x128xf32>
    %137 = arith.mulf %133, %95 : vector<1x128xf32>
    %138 = arith.mulf %132, %136 : vector<1x128xf32>
    %139 = arith.addf %137, %138 : vector<1x128xf32>
    %140 = math.tanh %139 : vector<1x128xf32>
    %141 = arith.mulf %134, %140 : vector<1x128xf32>
    %142 = vector.extract_strided_slice %6 {offsets = [3, 0], sizes = [1, 512], strides = [1, 1]} : vector<8x512xf32> to vector<1x512xf32>
    %143 = arith.truncf %119 : vector<1x128xf32> to vector<1x128xbf16>
    %cst_36 = arith.constant dense<0.000000e+00> : vector<1x512xf32>
    %144 = tpu.matmul %143, %7, %cst_36 {dimension_numbers = #tpu.dot_dimension_numbers<[1], [0], [0], [1], [0, 0, 1, 1], [], []>} : vector<1x128xbf16>, vector<128x512xbf16>, vector<1x512xf32> -> vector<1x512xf32>
    %145 = arith.addf %142, %144 : vector<1x512xf32>
    %146 = vector.extract_strided_slice %145 {offsets = [0, 0], sizes = [1, 384], strides = [1, 1]} : vector<1x512xf32> to vector<1x384xf32>
    %cst_37 = arith.constant 5.000000e-01 : f32
    %147 = vector.broadcast %cst_37 : f32 to vector<1x384xf32>
    %148 = arith.mulf %147, %146 : vector<1x384xf32>
    %149 = math.tanh %148 : vector<1x384xf32>
    %cst_38 = arith.constant 5.000000e-01 : f32
    %150 = vector.broadcast %cst_38 : f32 to vector<1x384xf32>
    %151 = arith.mulf %150, %149 : vector<1x384xf32>
    %cst_39 = arith.constant 5.000000e-01 : f32
    %152 = vector.broadcast %cst_39 : f32 to vector<1x384xf32>
    %153 = arith.addf %151, %152 : vector<1x384xf32>
    %154 = vector.extract_strided_slice %153 {offsets = [0, 0], sizes = [1, 128], strides = [1, 1]} : vector<1x384xf32> to vector<1x128xf32>
    %155 = vector.extract_strided_slice %153 {offsets = [0, 128], sizes = [1, 128], strides = [1, 1]} : vector<1x384xf32> to vector<1x128xf32>
    %156 = vector.extract_strided_slice %153 {offsets = [0, 256], sizes = [1, 128], strides = [1, 1]} : vector<1x384xf32> to vector<1x128xf32>
    %157 = vector.extract_strided_slice %145 {offsets = [0, 384], sizes = [1, 128], strides = [1, 1]} : vector<1x512xf32> to vector<1x128xf32>
    %158 = math.tanh %157 : vector<1x128xf32>
    %159 = arith.mulf %155, %117 : vector<1x128xf32>
    %160 = arith.mulf %154, %158 : vector<1x128xf32>
    %161 = arith.addf %159, %160 : vector<1x128xf32>
    %162 = math.tanh %161 : vector<1x128xf32>
    %163 = arith.mulf %156, %162 : vector<1x128xf32>
    %164 = tpu.concatenate %163, %141 in 1 : vector<1x128xf32>, vector<1x128xf32> -> vector<1x256xf32>
    %165 = arith.truncf %164 : vector<1x256xf32> to vector<1x256xbf16>
    %cst_40 = arith.constant dense<0.000000e+00> : vector<1x512xf32>
    %166 = tpu.matmul %165, %8, %cst_40 {dimension_numbers = #tpu.dot_dimension_numbers<[1], [0], [0], [1], [0, 0, 1, 1], [], []>} : vector<1x256xbf16>, vector<256x512xbf16>, vector<1x512xf32> -> vector<1x512xf32>
    %167 = arith.addf %166, %9 : vector<1x512xf32>
    %168 = vector.extract_strided_slice %167 {offsets = [0, 0], sizes = [1, 384], strides = [1, 1]} : vector<1x512xf32> to vector<1x384xf32>
    %cst_41 = arith.constant 5.000000e-01 : f32
    %169 = vector.broadcast %cst_41 : f32 to vector<1x384xf32>
    %170 = arith.mulf %169, %168 : vector<1x384xf32>
    %171 = math.tanh %170 : vector<1x384xf32>
    %cst_42 = arith.constant 5.000000e-01 : f32
    %172 = vector.broadcast %cst_42 : f32 to vector<1x384xf32>
    %173 = arith.mulf %172, %171 : vector<1x384xf32>
    %cst_43 = arith.constant 5.000000e-01 : f32
    %174 = vector.broadcast %cst_43 : f32 to vector<1x384xf32>
    %175 = arith.addf %173, %174 : vector<1x384xf32>
    %176 = vector.extract_strided_slice %175 {offsets = [0, 0], sizes = [1, 128], strides = [1, 1]} : vector<1x384xf32> to vector<1x128xf32>
    %177 = vector.extract_strided_slice %175 {offsets = [0, 128], sizes = [1, 128], strides = [1, 1]} : vector<1x384xf32> to vector<1x128xf32>
    %178 = vector.extract_strided_slice %175 {offsets = [0, 256], sizes = [1, 128], strides = [1, 1]} : vector<1x384xf32> to vector<1x128xf32>
    %179 = vector.extract_strided_slice %167 {offsets = [0, 384], sizes = [1, 128], strides = [1, 1]} : vector<1x512xf32> to vector<1x128xf32>
    %180 = math.tanh %179 : vector<1x128xf32>
    %181 = arith.mulf %177, %139 : vector<1x128xf32>
    %182 = arith.mulf %176, %180 : vector<1x128xf32>
    %183 = arith.addf %181, %182 : vector<1x128xf32>
    %184 = math.tanh %183 : vector<1x128xf32>
    %185 = arith.mulf %178, %184 : vector<1x128xf32>
    %186 = vector.extract_strided_slice %6 {offsets = [4, 0], sizes = [1, 512], strides = [1, 1]} : vector<8x512xf32> to vector<1x512xf32>
    %187 = arith.truncf %163 : vector<1x128xf32> to vector<1x128xbf16>
    %cst_44 = arith.constant dense<0.000000e+00> : vector<1x512xf32>
    %188 = tpu.matmul %187, %7, %cst_44 {dimension_numbers = #tpu.dot_dimension_numbers<[1], [0], [0], [1], [0, 0, 1, 1], [], []>} : vector<1x128xbf16>, vector<128x512xbf16>, vector<1x512xf32> -> vector<1x512xf32>
    %189 = arith.addf %186, %188 : vector<1x512xf32>
    %190 = vector.extract_strided_slice %189 {offsets = [0, 0], sizes = [1, 384], strides = [1, 1]} : vector<1x512xf32> to vector<1x384xf32>
    %cst_45 = arith.constant 5.000000e-01 : f32
    %191 = vector.broadcast %cst_45 : f32 to vector<1x384xf32>
    %192 = arith.mulf %191, %190 : vector<1x384xf32>
    %193 = math.tanh %192 : vector<1x384xf32>
    %cst_46 = arith.constant 5.000000e-01 : f32
    %194 = vector.broadcast %cst_46 : f32 to vector<1x384xf32>
    %195 = arith.mulf %194, %193 : vector<1x384xf32>
    %cst_47 = arith.constant 5.000000e-01 : f32
    %196 = vector.broadcast %cst_47 : f32 to vector<1x384xf32>
    %197 = arith.addf %195, %196 : vector<1x384xf32>
    %198 = vector.extract_strided_slice %197 {offsets = [0, 0], sizes = [1, 128], strides = [1, 1]} : vector<1x384xf32> to vector<1x128xf32>
    %199 = vector.extract_strided_slice %197 {offsets = [0, 128], sizes = [1, 128], strides = [1, 1]} : vector<1x384xf32> to vector<1x128xf32>
    %200 = vector.extract_strided_slice %197 {offsets = [0, 256], sizes = [1, 128], strides = [1, 1]} : vector<1x384xf32> to vector<1x128xf32>
    %201 = vector.extract_strided_slice %189 {offsets = [0, 384], sizes = [1, 128], strides = [1, 1]} : vector<1x512xf32> to vector<1x128xf32>
    %202 = math.tanh %201 : vector<1x128xf32>
    %203 = arith.mulf %199, %161 : vector<1x128xf32>
    %204 = arith.mulf %198, %202 : vector<1x128xf32>
    %205 = arith.addf %203, %204 : vector<1x128xf32>
    %206 = math.tanh %205 : vector<1x128xf32>
    %207 = arith.mulf %200, %206 : vector<1x128xf32>
    %208 = tpu.concatenate %207, %185 in 1 : vector<1x128xf32>, vector<1x128xf32> -> vector<1x256xf32>
    %209 = arith.truncf %208 : vector<1x256xf32> to vector<1x256xbf16>
    %cst_48 = arith.constant dense<0.000000e+00> : vector<1x512xf32>
    %210 = tpu.matmul %209, %8, %cst_48 {dimension_numbers = #tpu.dot_dimension_numbers<[1], [0], [0], [1], [0, 0, 1, 1], [], []>} : vector<1x256xbf16>, vector<256x512xbf16>, vector<1x512xf32> -> vector<1x512xf32>
    %211 = arith.addf %210, %9 : vector<1x512xf32>
    %212 = vector.extract_strided_slice %211 {offsets = [0, 0], sizes = [1, 384], strides = [1, 1]} : vector<1x512xf32> to vector<1x384xf32>
    %cst_49 = arith.constant 5.000000e-01 : f32
    %213 = vector.broadcast %cst_49 : f32 to vector<1x384xf32>
    %214 = arith.mulf %213, %212 : vector<1x384xf32>
    %215 = math.tanh %214 : vector<1x384xf32>
    %cst_50 = arith.constant 5.000000e-01 : f32
    %216 = vector.broadcast %cst_50 : f32 to vector<1x384xf32>
    %217 = arith.mulf %216, %215 : vector<1x384xf32>
    %cst_51 = arith.constant 5.000000e-01 : f32
    %218 = vector.broadcast %cst_51 : f32 to vector<1x384xf32>
    %219 = arith.addf %217, %218 : vector<1x384xf32>
    %220 = vector.extract_strided_slice %219 {offsets = [0, 0], sizes = [1, 128], strides = [1, 1]} : vector<1x384xf32> to vector<1x128xf32>
    %221 = vector.extract_strided_slice %219 {offsets = [0, 128], sizes = [1, 128], strides = [1, 1]} : vector<1x384xf32> to vector<1x128xf32>
    %222 = vector.extract_strided_slice %219 {offsets = [0, 256], sizes = [1, 128], strides = [1, 1]} : vector<1x384xf32> to vector<1x128xf32>
    %223 = vector.extract_strided_slice %211 {offsets = [0, 384], sizes = [1, 128], strides = [1, 1]} : vector<1x512xf32> to vector<1x128xf32>
    %224 = math.tanh %223 : vector<1x128xf32>
    %225 = arith.mulf %221, %183 : vector<1x128xf32>
    %226 = arith.mulf %220, %224 : vector<1x128xf32>
    %227 = arith.addf %225, %226 : vector<1x128xf32>
    %228 = math.tanh %227 : vector<1x128xf32>
    %229 = arith.mulf %222, %228 : vector<1x128xf32>
    %230 = vector.extract_strided_slice %6 {offsets = [5, 0], sizes = [1, 512], strides = [1, 1]} : vector<8x512xf32> to vector<1x512xf32>
    %231 = arith.truncf %207 : vector<1x128xf32> to vector<1x128xbf16>
    %cst_52 = arith.constant dense<0.000000e+00> : vector<1x512xf32>
    %232 = tpu.matmul %231, %7, %cst_52 {dimension_numbers = #tpu.dot_dimension_numbers<[1], [0], [0], [1], [0, 0, 1, 1], [], []>} : vector<1x128xbf16>, vector<128x512xbf16>, vector<1x512xf32> -> vector<1x512xf32>
    %233 = arith.addf %230, %232 : vector<1x512xf32>
    %234 = vector.extract_strided_slice %233 {offsets = [0, 0], sizes = [1, 384], strides = [1, 1]} : vector<1x512xf32> to vector<1x384xf32>
    %cst_53 = arith.constant 5.000000e-01 : f32
    %235 = vector.broadcast %cst_53 : f32 to vector<1x384xf32>
    %236 = arith.mulf %235, %234 : vector<1x384xf32>
    %237 = math.tanh %236 : vector<1x384xf32>
    %cst_54 = arith.constant 5.000000e-01 : f32
    %238 = vector.broadcast %cst_54 : f32 to vector<1x384xf32>
    %239 = arith.mulf %238, %237 : vector<1x384xf32>
    %cst_55 = arith.constant 5.000000e-01 : f32
    %240 = vector.broadcast %cst_55 : f32 to vector<1x384xf32>
    %241 = arith.addf %239, %240 : vector<1x384xf32>
    %242 = vector.extract_strided_slice %241 {offsets = [0, 0], sizes = [1, 128], strides = [1, 1]} : vector<1x384xf32> to vector<1x128xf32>
    %243 = vector.extract_strided_slice %241 {offsets = [0, 128], sizes = [1, 128], strides = [1, 1]} : vector<1x384xf32> to vector<1x128xf32>
    %244 = vector.extract_strided_slice %241 {offsets = [0, 256], sizes = [1, 128], strides = [1, 1]} : vector<1x384xf32> to vector<1x128xf32>
    %245 = vector.extract_strided_slice %233 {offsets = [0, 384], sizes = [1, 128], strides = [1, 1]} : vector<1x512xf32> to vector<1x128xf32>
    %246 = math.tanh %245 : vector<1x128xf32>
    %247 = arith.mulf %243, %205 : vector<1x128xf32>
    %248 = arith.mulf %242, %246 : vector<1x128xf32>
    %249 = arith.addf %247, %248 : vector<1x128xf32>
    %250 = math.tanh %249 : vector<1x128xf32>
    %251 = arith.mulf %244, %250 : vector<1x128xf32>
    %252 = tpu.concatenate %251, %229 in 1 : vector<1x128xf32>, vector<1x128xf32> -> vector<1x256xf32>
    %253 = arith.truncf %252 : vector<1x256xf32> to vector<1x256xbf16>
    %cst_56 = arith.constant dense<0.000000e+00> : vector<1x512xf32>
    %254 = tpu.matmul %253, %8, %cst_56 {dimension_numbers = #tpu.dot_dimension_numbers<[1], [0], [0], [1], [0, 0, 1, 1], [], []>} : vector<1x256xbf16>, vector<256x512xbf16>, vector<1x512xf32> -> vector<1x512xf32>
    %255 = arith.addf %254, %9 : vector<1x512xf32>
    %256 = vector.extract_strided_slice %255 {offsets = [0, 0], sizes = [1, 384], strides = [1, 1]} : vector<1x512xf32> to vector<1x384xf32>
    %cst_57 = arith.constant 5.000000e-01 : f32
    %257 = vector.broadcast %cst_57 : f32 to vector<1x384xf32>
    %258 = arith.mulf %257, %256 : vector<1x384xf32>
    %259 = math.tanh %258 : vector<1x384xf32>
    %cst_58 = arith.constant 5.000000e-01 : f32
    %260 = vector.broadcast %cst_58 : f32 to vector<1x384xf32>
    %261 = arith.mulf %260, %259 : vector<1x384xf32>
    %cst_59 = arith.constant 5.000000e-01 : f32
    %262 = vector.broadcast %cst_59 : f32 to vector<1x384xf32>
    %263 = arith.addf %261, %262 : vector<1x384xf32>
    %264 = vector.extract_strided_slice %263 {offsets = [0, 0], sizes = [1, 128], strides = [1, 1]} : vector<1x384xf32> to vector<1x128xf32>
    %265 = vector.extract_strided_slice %263 {offsets = [0, 128], sizes = [1, 128], strides = [1, 1]} : vector<1x384xf32> to vector<1x128xf32>
    %266 = vector.extract_strided_slice %263 {offsets = [0, 256], sizes = [1, 128], strides = [1, 1]} : vector<1x384xf32> to vector<1x128xf32>
    %267 = vector.extract_strided_slice %255 {offsets = [0, 384], sizes = [1, 128], strides = [1, 1]} : vector<1x512xf32> to vector<1x128xf32>
    %268 = math.tanh %267 : vector<1x128xf32>
    %269 = arith.mulf %265, %227 : vector<1x128xf32>
    %270 = arith.mulf %264, %268 : vector<1x128xf32>
    %271 = arith.addf %269, %270 : vector<1x128xf32>
    %272 = math.tanh %271 : vector<1x128xf32>
    %273 = arith.mulf %266, %272 : vector<1x128xf32>
    %274 = vector.extract_strided_slice %6 {offsets = [6, 0], sizes = [1, 512], strides = [1, 1]} : vector<8x512xf32> to vector<1x512xf32>
    %275 = arith.truncf %251 : vector<1x128xf32> to vector<1x128xbf16>
    %cst_60 = arith.constant dense<0.000000e+00> : vector<1x512xf32>
    %276 = tpu.matmul %275, %7, %cst_60 {dimension_numbers = #tpu.dot_dimension_numbers<[1], [0], [0], [1], [0, 0, 1, 1], [], []>} : vector<1x128xbf16>, vector<128x512xbf16>, vector<1x512xf32> -> vector<1x512xf32>
    %277 = arith.addf %274, %276 : vector<1x512xf32>
    %278 = vector.extract_strided_slice %277 {offsets = [0, 0], sizes = [1, 384], strides = [1, 1]} : vector<1x512xf32> to vector<1x384xf32>
    %cst_61 = arith.constant 5.000000e-01 : f32
    %279 = vector.broadcast %cst_61 : f32 to vector<1x384xf32>
    %280 = arith.mulf %279, %278 : vector<1x384xf32>
    %281 = math.tanh %280 : vector<1x384xf32>
    %cst_62 = arith.constant 5.000000e-01 : f32
    %282 = vector.broadcast %cst_62 : f32 to vector<1x384xf32>
    %283 = arith.mulf %282, %281 : vector<1x384xf32>
    %cst_63 = arith.constant 5.000000e-01 : f32
    %284 = vector.broadcast %cst_63 : f32 to vector<1x384xf32>
    %285 = arith.addf %283, %284 : vector<1x384xf32>
    %286 = vector.extract_strided_slice %285 {offsets = [0, 0], sizes = [1, 128], strides = [1, 1]} : vector<1x384xf32> to vector<1x128xf32>
    %287 = vector.extract_strided_slice %285 {offsets = [0, 128], sizes = [1, 128], strides = [1, 1]} : vector<1x384xf32> to vector<1x128xf32>
    %288 = vector.extract_strided_slice %285 {offsets = [0, 256], sizes = [1, 128], strides = [1, 1]} : vector<1x384xf32> to vector<1x128xf32>
    %289 = vector.extract_strided_slice %277 {offsets = [0, 384], sizes = [1, 128], strides = [1, 1]} : vector<1x512xf32> to vector<1x128xf32>
    %290 = math.tanh %289 : vector<1x128xf32>
    %291 = arith.mulf %287, %249 : vector<1x128xf32>
    %292 = arith.mulf %286, %290 : vector<1x128xf32>
    %293 = arith.addf %291, %292 : vector<1x128xf32>
    %294 = math.tanh %293 : vector<1x128xf32>
    %295 = arith.mulf %288, %294 : vector<1x128xf32>
    %296 = tpu.concatenate %295, %273 in 1 : vector<1x128xf32>, vector<1x128xf32> -> vector<1x256xf32>
    %297 = arith.truncf %296 : vector<1x256xf32> to vector<1x256xbf16>
    %cst_64 = arith.constant dense<0.000000e+00> : vector<1x512xf32>
    %298 = tpu.matmul %297, %8, %cst_64 {dimension_numbers = #tpu.dot_dimension_numbers<[1], [0], [0], [1], [0, 0, 1, 1], [], []>} : vector<1x256xbf16>, vector<256x512xbf16>, vector<1x512xf32> -> vector<1x512xf32>
    %299 = arith.addf %298, %9 : vector<1x512xf32>
    %300 = vector.extract_strided_slice %299 {offsets = [0, 0], sizes = [1, 384], strides = [1, 1]} : vector<1x512xf32> to vector<1x384xf32>
    %cst_65 = arith.constant 5.000000e-01 : f32
    %301 = vector.broadcast %cst_65 : f32 to vector<1x384xf32>
    %302 = arith.mulf %301, %300 : vector<1x384xf32>
    %303 = math.tanh %302 : vector<1x384xf32>
    %cst_66 = arith.constant 5.000000e-01 : f32
    %304 = vector.broadcast %cst_66 : f32 to vector<1x384xf32>
    %305 = arith.mulf %304, %303 : vector<1x384xf32>
    %cst_67 = arith.constant 5.000000e-01 : f32
    %306 = vector.broadcast %cst_67 : f32 to vector<1x384xf32>
    %307 = arith.addf %305, %306 : vector<1x384xf32>
    %308 = vector.extract_strided_slice %307 {offsets = [0, 0], sizes = [1, 128], strides = [1, 1]} : vector<1x384xf32> to vector<1x128xf32>
    %309 = vector.extract_strided_slice %307 {offsets = [0, 128], sizes = [1, 128], strides = [1, 1]} : vector<1x384xf32> to vector<1x128xf32>
    %310 = vector.extract_strided_slice %307 {offsets = [0, 256], sizes = [1, 128], strides = [1, 1]} : vector<1x384xf32> to vector<1x128xf32>
    %311 = vector.extract_strided_slice %299 {offsets = [0, 384], sizes = [1, 128], strides = [1, 1]} : vector<1x512xf32> to vector<1x128xf32>
    %312 = math.tanh %311 : vector<1x128xf32>
    %313 = arith.mulf %309, %271 : vector<1x128xf32>
    %314 = arith.mulf %308, %312 : vector<1x128xf32>
    %315 = arith.addf %313, %314 : vector<1x128xf32>
    %316 = math.tanh %315 : vector<1x128xf32>
    %317 = arith.mulf %310, %316 : vector<1x128xf32>
    %318 = vector.extract_strided_slice %6 {offsets = [7, 0], sizes = [1, 512], strides = [1, 1]} : vector<8x512xf32> to vector<1x512xf32>
    %319 = arith.truncf %295 : vector<1x128xf32> to vector<1x128xbf16>
    %cst_68 = arith.constant dense<0.000000e+00> : vector<1x512xf32>
    %320 = tpu.matmul %319, %7, %cst_68 {dimension_numbers = #tpu.dot_dimension_numbers<[1], [0], [0], [1], [0, 0, 1, 1], [], []>} : vector<1x128xbf16>, vector<128x512xbf16>, vector<1x512xf32> -> vector<1x512xf32>
    %321 = arith.addf %318, %320 : vector<1x512xf32>
    %322 = vector.extract_strided_slice %321 {offsets = [0, 0], sizes = [1, 384], strides = [1, 1]} : vector<1x512xf32> to vector<1x384xf32>
    %cst_69 = arith.constant 5.000000e-01 : f32
    %323 = vector.broadcast %cst_69 : f32 to vector<1x384xf32>
    %324 = arith.mulf %323, %322 : vector<1x384xf32>
    %325 = math.tanh %324 : vector<1x384xf32>
    %cst_70 = arith.constant 5.000000e-01 : f32
    %326 = vector.broadcast %cst_70 : f32 to vector<1x384xf32>
    %327 = arith.mulf %326, %325 : vector<1x384xf32>
    %cst_71 = arith.constant 5.000000e-01 : f32
    %328 = vector.broadcast %cst_71 : f32 to vector<1x384xf32>
    %329 = arith.addf %327, %328 : vector<1x384xf32>
    %330 = vector.extract_strided_slice %329 {offsets = [0, 0], sizes = [1, 128], strides = [1, 1]} : vector<1x384xf32> to vector<1x128xf32>
    %331 = vector.extract_strided_slice %329 {offsets = [0, 128], sizes = [1, 128], strides = [1, 1]} : vector<1x384xf32> to vector<1x128xf32>
    %332 = vector.extract_strided_slice %329 {offsets = [0, 256], sizes = [1, 128], strides = [1, 1]} : vector<1x384xf32> to vector<1x128xf32>
    %333 = vector.extract_strided_slice %321 {offsets = [0, 384], sizes = [1, 128], strides = [1, 1]} : vector<1x512xf32> to vector<1x128xf32>
    %334 = math.tanh %333 : vector<1x128xf32>
    %335 = arith.mulf %331, %293 : vector<1x128xf32>
    %336 = arith.mulf %330, %334 : vector<1x128xf32>
    %337 = arith.addf %335, %336 : vector<1x128xf32>
    %338 = math.tanh %337 : vector<1x128xf32>
    %339 = arith.mulf %332, %338 : vector<1x128xf32>
    %340 = tpu.concatenate %339, %317 in 1 : vector<1x128xf32>, vector<1x128xf32> -> vector<1x256xf32>
    %341 = arith.truncf %340 : vector<1x256xf32> to vector<1x256xbf16>
    %cst_72 = arith.constant dense<0.000000e+00> : vector<1x512xf32>
    %342 = tpu.matmul %341, %8, %cst_72 {dimension_numbers = #tpu.dot_dimension_numbers<[1], [0], [0], [1], [0, 0, 1, 1], [], []>} : vector<1x256xbf16>, vector<256x512xbf16>, vector<1x512xf32> -> vector<1x512xf32>
    %343 = arith.addf %342, %9 : vector<1x512xf32>
    %344 = vector.extract_strided_slice %343 {offsets = [0, 0], sizes = [1, 384], strides = [1, 1]} : vector<1x512xf32> to vector<1x384xf32>
    %cst_73 = arith.constant 5.000000e-01 : f32
    %345 = vector.broadcast %cst_73 : f32 to vector<1x384xf32>
    %346 = arith.mulf %345, %344 : vector<1x384xf32>
    %347 = math.tanh %346 : vector<1x384xf32>
    %cst_74 = arith.constant 5.000000e-01 : f32
    %348 = vector.broadcast %cst_74 : f32 to vector<1x384xf32>
    %349 = arith.mulf %348, %347 : vector<1x384xf32>
    %cst_75 = arith.constant 5.000000e-01 : f32
    %350 = vector.broadcast %cst_75 : f32 to vector<1x384xf32>
    %351 = arith.addf %349, %350 : vector<1x384xf32>
    %352 = vector.extract_strided_slice %351 {offsets = [0, 0], sizes = [1, 128], strides = [1, 1]} : vector<1x384xf32> to vector<1x128xf32>
    %353 = vector.extract_strided_slice %351 {offsets = [0, 128], sizes = [1, 128], strides = [1, 1]} : vector<1x384xf32> to vector<1x128xf32>
    %354 = vector.extract_strided_slice %351 {offsets = [0, 256], sizes = [1, 128], strides = [1, 1]} : vector<1x384xf32> to vector<1x128xf32>
    %355 = vector.extract_strided_slice %343 {offsets = [0, 384], sizes = [1, 128], strides = [1, 1]} : vector<1x512xf32> to vector<1x128xf32>
    %356 = math.tanh %355 : vector<1x128xf32>
    %357 = arith.mulf %353, %315 : vector<1x128xf32>
    %358 = arith.mulf %352, %356 : vector<1x128xf32>
    %359 = arith.addf %357, %358 : vector<1x128xf32>
    %360 = math.tanh %359 : vector<1x128xf32>
    %361 = arith.mulf %354, %360 : vector<1x128xf32>
    %362 = arith.truncf %361 : vector<1x128xf32> to vector<1x128xbf16>
    %c0_76 = arith.constant 0 : index
    %c0_77 = arith.constant 0 : index
    %363 = vector.load %arg6[%c0_76, %c0_77] : memref<128x512xbf16, #tpu.memory_space<vmem>>, vector<128x512xbf16>
    %cst_78 = arith.constant dense<0.000000e+00> : vector<1x512xf32>
    %364 = tpu.matmul %362, %363, %cst_78 {dimension_numbers = #tpu.dot_dimension_numbers<[1], [0], [0], [1], [0, 0, 1, 1], [], []>} : vector<1x128xbf16>, vector<128x512xbf16>, vector<1x512xf32> -> vector<1x512xf32>
    %c0_79 = arith.constant 0 : index
    %c0_80 = arith.constant 0 : index
    %365 = vector.load %arg8[%c0_79, %c0_80] : memref<1x512xf32, #tpu.memory_space<vmem>>, vector<1x512xf32>
    %366 = arith.addf %364, %365 : vector<1x512xf32>
    %c0_81 = arith.constant 0 : index
    %c0_82 = arith.constant 0 : index
    %367 = vector.load %arg7[%c0_81, %c0_82] : memref<128x512xbf16, #tpu.memory_space<vmem>>, vector<128x512xbf16>
    %c0_83 = arith.constant 0 : index
    %c0_84 = arith.constant 0 : index
    %368 = vector.load %arg9[%c0_83, %c0_84] : memref<256x512xbf16, #tpu.memory_space<vmem>>, vector<256x512xbf16>
    %c0_85 = arith.constant 0 : index
    %c0_86 = arith.constant 0 : index
    %369 = vector.load %arg10[%c0_85, %c0_86] : memref<1x512xf32, #tpu.memory_space<vmem>>, vector<1x512xf32>
    %c0_87 = arith.constant 0 : index
    %c0_88 = arith.constant 0 : index
    %370 = vector.load %arg11[%c0_87, %c0_88] : memref<128x128xbf16, #tpu.memory_space<vmem>>, vector<128x128xbf16>
    %c0_89 = arith.constant 0 : index
    %c0_90 = arith.constant 0 : index
    %371 = vector.load %arg12[%c0_89, %c0_90] : memref<1x128xf32, #tpu.memory_space<vmem>>, vector<1x128xf32>
    %372 = arith.truncf %0 : vector<1x128xf32> to vector<1x128xbf16>
    %cst_91 = arith.constant dense<0.000000e+00> : vector<1x512xf32>
    %373 = tpu.matmul %372, %367, %cst_91 {dimension_numbers = #tpu.dot_dimension_numbers<[1], [0], [0], [1], [0, 0, 1, 1], [], []>} : vector<1x128xbf16>, vector<128x512xbf16>, vector<1x512xf32> -> vector<1x512xf32>
    %374 = arith.addf %366, %373 : vector<1x512xf32>
    %375 = vector.extract_strided_slice %374 {offsets = [0, 0], sizes = [1, 384], strides = [1, 1]} : vector<1x512xf32> to vector<1x384xf32>
    %cst_92 = arith.constant 5.000000e-01 : f32
    %376 = vector.broadcast %cst_92 : f32 to vector<1x384xf32>
    %377 = arith.mulf %376, %375 : vector<1x384xf32>
    %378 = math.tanh %377 : vector<1x384xf32>
    %cst_93 = arith.constant 5.000000e-01 : f32
    %379 = vector.broadcast %cst_93 : f32 to vector<1x384xf32>
    %380 = arith.mulf %379, %378 : vector<1x384xf32>
    %cst_94 = arith.constant 5.000000e-01 : f32
    %381 = vector.broadcast %cst_94 : f32 to vector<1x384xf32>
    %382 = arith.addf %380, %381 : vector<1x384xf32>
    %383 = vector.extract_strided_slice %382 {offsets = [0, 0], sizes = [1, 128], strides = [1, 1]} : vector<1x384xf32> to vector<1x128xf32>
    %384 = vector.extract_strided_slice %382 {offsets = [0, 128], sizes = [1, 128], strides = [1, 1]} : vector<1x384xf32> to vector<1x128xf32>
    %385 = vector.extract_strided_slice %382 {offsets = [0, 256], sizes = [1, 128], strides = [1, 1]} : vector<1x384xf32> to vector<1x128xf32>
    %386 = vector.extract_strided_slice %374 {offsets = [0, 384], sizes = [1, 128], strides = [1, 1]} : vector<1x512xf32> to vector<1x128xf32>
    %387 = math.tanh %386 : vector<1x128xf32>
    %388 = arith.mulf %384, %0 : vector<1x128xf32>
    %389 = arith.mulf %383, %387 : vector<1x128xf32>
    %390 = arith.addf %388, %389 : vector<1x128xf32>
    %391 = math.tanh %390 : vector<1x128xf32>
    %392 = arith.mulf %385, %391 : vector<1x128xf32>
    %393 = tpu.concatenate %392, %0 in 1 : vector<1x128xf32>, vector<1x128xf32> -> vector<1x256xf32>
    %394 = arith.truncf %393 : vector<1x256xf32> to vector<1x256xbf16>
    %cst_95 = arith.constant dense<0.000000e+00> : vector<1x512xf32>
    %395 = tpu.matmul %394, %368, %cst_95 {dimension_numbers = #tpu.dot_dimension_numbers<[1], [0], [0], [1], [0, 0, 1, 1], [], []>} : vector<1x256xbf16>, vector<256x512xbf16>, vector<1x512xf32> -> vector<1x512xf32>
    %396 = arith.addf %395, %369 : vector<1x512xf32>
    %397 = vector.extract_strided_slice %396 {offsets = [0, 0], sizes = [1, 384], strides = [1, 1]} : vector<1x512xf32> to vector<1x384xf32>
    %cst_96 = arith.constant 5.000000e-01 : f32
    %398 = vector.broadcast %cst_96 : f32 to vector<1x384xf32>
    %399 = arith.mulf %398, %397 : vector<1x384xf32>
    %400 = math.tanh %399 : vector<1x384xf32>
    %cst_97 = arith.constant 5.000000e-01 : f32
    %401 = vector.broadcast %cst_97 : f32 to vector<1x384xf32>
    %402 = arith.mulf %401, %400 : vector<1x384xf32>
    %cst_98 = arith.constant 5.000000e-01 : f32
    %403 = vector.broadcast %cst_98 : f32 to vector<1x384xf32>
    %404 = arith.addf %402, %403 : vector<1x384xf32>
    %405 = vector.extract_strided_slice %404 {offsets = [0, 0], sizes = [1, 128], strides = [1, 1]} : vector<1x384xf32> to vector<1x128xf32>
    %406 = vector.extract_strided_slice %404 {offsets = [0, 128], sizes = [1, 128], strides = [1, 1]} : vector<1x384xf32> to vector<1x128xf32>
    %407 = vector.extract_strided_slice %404 {offsets = [0, 256], sizes = [1, 128], strides = [1, 1]} : vector<1x384xf32> to vector<1x128xf32>
    %408 = vector.extract_strided_slice %396 {offsets = [0, 384], sizes = [1, 128], strides = [1, 1]} : vector<1x512xf32> to vector<1x128xf32>
    %409 = math.tanh %408 : vector<1x128xf32>
    %410 = arith.mulf %406, %0 : vector<1x128xf32>
    %411 = arith.mulf %405, %409 : vector<1x128xf32>
    %412 = arith.addf %410, %411 : vector<1x128xf32>
    %413 = math.tanh %412 : vector<1x128xf32>
    %414 = arith.mulf %407, %413 : vector<1x128xf32>
    %415 = arith.truncf %414 : vector<1x128xf32> to vector<1x128xbf16>
    %cst_99 = arith.constant dense<0.000000e+00> : vector<1x128xf32>
    %416 = tpu.matmul %415, %370, %cst_99 {dimension_numbers = #tpu.dot_dimension_numbers<[1], [0], [0], [1], [0, 0, 1, 1], [], []>} : vector<1x128xbf16>, vector<128x128xbf16>, vector<1x128xf32> -> vector<1x128xf32>
    %417 = arith.addf %416, %371 : vector<1x128xf32>
    %c0_100 = arith.constant 0 : index
    %c0_101 = arith.constant 0 : index
    %418 = vector.load %arg13[%c0_100, %c0_101] : memref<8x128xf32, #tpu.memory_space<vmem>>, vector<1x128xf32>
    tpu.vector_store %arg13[%c0_100, %c0_101], %417 {strides = array<i32>} : memref<8x128xf32, #tpu.memory_space<vmem>>, vector<1x128xf32>,
    %419 = arith.truncf %392 : vector<1x128xf32> to vector<1x128xbf16>
    %cst_102 = arith.constant dense<0.000000e+00> : vector<1x512xf32>
    %420 = tpu.matmul %419, %367, %cst_102 {dimension_numbers = #tpu.dot_dimension_numbers<[1], [0], [0], [1], [0, 0, 1, 1], [], []>} : vector<1x128xbf16>, vector<128x512xbf16>, vector<1x512xf32> -> vector<1x512xf32>
    %421 = arith.addf %366, %420 : vector<1x512xf32>
    %422 = vector.extract_strided_slice %421 {offsets = [0, 0], sizes = [1, 384], strides = [1, 1]} : vector<1x512xf32> to vector<1x384xf32>
    %cst_103 = arith.constant 5.000000e-01 : f32
    %423 = vector.broadcast %cst_103 : f32 to vector<1x384xf32>
    %424 = arith.mulf %423, %422 : vector<1x384xf32>
    %425 = math.tanh %424 : vector<1x384xf32>
    %cst_104 = arith.constant 5.000000e-01 : f32
    %426 = vector.broadcast %cst_104 : f32 to vector<1x384xf32>
    %427 = arith.mulf %426, %425 : vector<1x384xf32>
    %cst_105 = arith.constant 5.000000e-01 : f32
    %428 = vector.broadcast %cst_105 : f32 to vector<1x384xf32>
    %429 = arith.addf %427, %428 : vector<1x384xf32>
    %430 = vector.extract_strided_slice %429 {offsets = [0, 0], sizes = [1, 128], strides = [1, 1]} : vector<1x384xf32> to vector<1x128xf32>
    %431 = vector.extract_strided_slice %429 {offsets = [0, 128], sizes = [1, 128], strides = [1, 1]} : vector<1x384xf32> to vector<1x128xf32>
    %432 = vector.extract_strided_slice %429 {offsets = [0, 256], sizes = [1, 128], strides = [1, 1]} : vector<1x384xf32> to vector<1x128xf32>
    %433 = vector.extract_strided_slice %421 {offsets = [0, 384], sizes = [1, 128], strides = [1, 1]} : vector<1x512xf32> to vector<1x128xf32>
    %434 = math.tanh %433 : vector<1x128xf32>
    %435 = arith.mulf %431, %390 : vector<1x128xf32>
    %436 = arith.mulf %430, %434 : vector<1x128xf32>
    %437 = arith.addf %435, %436 : vector<1x128xf32>
    %438 = math.tanh %437 : vector<1x128xf32>
    %439 = arith.mulf %432, %438 : vector<1x128xf32>
    %440 = tpu.concatenate %439, %414 in 1 : vector<1x128xf32>, vector<1x128xf32> -> vector<1x256xf32>
    %441 = arith.truncf %440 : vector<1x256xf32> to vector<1x256xbf16>
    %cst_106 = arith.constant dense<0.000000e+00> : vector<1x512xf32>
    %442 = tpu.matmul %441, %368, %cst_106 {dimension_numbers = #tpu.dot_dimension_numbers<[1], [0], [0], [1], [0, 0, 1, 1], [], []>} : vector<1x256xbf16>, vector<256x512xbf16>, vector<1x512xf32> -> vector<1x512xf32>
    %443 = arith.addf %442, %369 : vector<1x512xf32>
    %444 = vector.extract_strided_slice %443 {offsets = [0, 0], sizes = [1, 384], strides = [1, 1]} : vector<1x512xf32> to vector<1x384xf32>
    %cst_107 = arith.constant 5.000000e-01 : f32
    %445 = vector.broadcast %cst_107 : f32 to vector<1x384xf32>
    %446 = arith.mulf %445, %444 : vector<1x384xf32>
    %447 = math.tanh %446 : vector<1x384xf32>
    %cst_108 = arith.constant 5.000000e-01 : f32
    %448 = vector.broadcast %cst_108 : f32 to vector<1x384xf32>
    %449 = arith.mulf %448, %447 : vector<1x384xf32>
    %cst_109 = arith.constant 5.000000e-01 : f32
    %450 = vector.broadcast %cst_109 : f32 to vector<1x384xf32>
    %451 = arith.addf %449, %450 : vector<1x384xf32>
    %452 = vector.extract_strided_slice %451 {offsets = [0, 0], sizes = [1, 128], strides = [1, 1]} : vector<1x384xf32> to vector<1x128xf32>
    %453 = vector.extract_strided_slice %451 {offsets = [0, 128], sizes = [1, 128], strides = [1, 1]} : vector<1x384xf32> to vector<1x128xf32>
    %454 = vector.extract_strided_slice %451 {offsets = [0, 256], sizes = [1, 128], strides = [1, 1]} : vector<1x384xf32> to vector<1x128xf32>
    %455 = vector.extract_strided_slice %443 {offsets = [0, 384], sizes = [1, 128], strides = [1, 1]} : vector<1x512xf32> to vector<1x128xf32>
    %456 = math.tanh %455 : vector<1x128xf32>
    %457 = arith.mulf %453, %412 : vector<1x128xf32>
    %458 = arith.mulf %452, %456 : vector<1x128xf32>
    %459 = arith.addf %457, %458 : vector<1x128xf32>
    %460 = math.tanh %459 : vector<1x128xf32>
    %461 = arith.mulf %454, %460 : vector<1x128xf32>
    %462 = arith.truncf %461 : vector<1x128xf32> to vector<1x128xbf16>
    %cst_110 = arith.constant dense<0.000000e+00> : vector<1x128xf32>
    %463 = tpu.matmul %462, %370, %cst_110 {dimension_numbers = #tpu.dot_dimension_numbers<[1], [0], [0], [1], [0, 0, 1, 1], [], []>} : vector<1x128xbf16>, vector<128x128xbf16>, vector<1x128xf32> -> vector<1x128xf32>
    %464 = arith.addf %463, %371 : vector<1x128xf32>
    %c1 = arith.constant 1 : index
    %c0_111 = arith.constant 0 : index
    %465 = vector.load %arg13[%c1, %c0_111] : memref<8x128xf32, #tpu.memory_space<vmem>>, vector<1x128xf32>
    tpu.vector_store %arg13[%c1, %c0_111], %464 {strides = array<i32>} : memref<8x128xf32, #tpu.memory_space<vmem>>, vector<1x128xf32>,
    %466 = arith.truncf %439 : vector<1x128xf32> to vector<1x128xbf16>
    %cst_112 = arith.constant dense<0.000000e+00> : vector<1x512xf32>
    %467 = tpu.matmul %466, %367, %cst_112 {dimension_numbers = #tpu.dot_dimension_numbers<[1], [0], [0], [1], [0, 0, 1, 1], [], []>} : vector<1x128xbf16>, vector<128x512xbf16>, vector<1x512xf32> -> vector<1x512xf32>
    %468 = arith.addf %366, %467 : vector<1x512xf32>
    %469 = vector.extract_strided_slice %468 {offsets = [0, 0], sizes = [1, 384], strides = [1, 1]} : vector<1x512xf32> to vector<1x384xf32>
    %cst_113 = arith.constant 5.000000e-01 : f32
    %470 = vector.broadcast %cst_113 : f32 to vector<1x384xf32>
    %471 = arith.mulf %470, %469 : vector<1x384xf32>
    %472 = math.tanh %471 : vector<1x384xf32>
    %cst_114 = arith.constant 5.000000e-01 : f32
    %473 = vector.broadcast %cst_114 : f32 to vector<1x384xf32>
    %474 = arith.mulf %473, %472 : vector<1x384xf32>
    %cst_115 = arith.constant 5.000000e-01 : f32
    %475 = vector.broadcast %cst_115 : f32 to vector<1x384xf32>
    %476 = arith.addf %474, %475 : vector<1x384xf32>
    %477 = vector.extract_strided_slice %476 {offsets = [0, 0], sizes = [1, 128], strides = [1, 1]} : vector<1x384xf32> to vector<1x128xf32>
    %478 = vector.extract_strided_slice %476 {offsets = [0, 128], sizes = [1, 128], strides = [1, 1]} : vector<1x384xf32> to vector<1x128xf32>
    %479 = vector.extract_strided_slice %476 {offsets = [0, 256], sizes = [1, 128], strides = [1, 1]} : vector<1x384xf32> to vector<1x128xf32>
    %480 = vector.extract_strided_slice %468 {offsets = [0, 384], sizes = [1, 128], strides = [1, 1]} : vector<1x512xf32> to vector<1x128xf32>
    %481 = math.tanh %480 : vector<1x128xf32>
    %482 = arith.mulf %478, %437 : vector<1x128xf32>
    %483 = arith.mulf %477, %481 : vector<1x128xf32>
    %484 = arith.addf %482, %483 : vector<1x128xf32>
    %485 = math.tanh %484 : vector<1x128xf32>
    %486 = arith.mulf %479, %485 : vector<1x128xf32>
    %487 = tpu.concatenate %486, %461 in 1 : vector<1x128xf32>, vector<1x128xf32> -> vector<1x256xf32>
    %488 = arith.truncf %487 : vector<1x256xf32> to vector<1x256xbf16>
    %cst_116 = arith.constant dense<0.000000e+00> : vector<1x512xf32>
    %489 = tpu.matmul %488, %368, %cst_116 {dimension_numbers = #tpu.dot_dimension_numbers<[1], [0], [0], [1], [0, 0, 1, 1], [], []>} : vector<1x256xbf16>, vector<256x512xbf16>, vector<1x512xf32> -> vector<1x512xf32>
    %490 = arith.addf %489, %369 : vector<1x512xf32>
    %491 = vector.extract_strided_slice %490 {offsets = [0, 0], sizes = [1, 384], strides = [1, 1]} : vector<1x512xf32> to vector<1x384xf32>
    %cst_117 = arith.constant 5.000000e-01 : f32
    %492 = vector.broadcast %cst_117 : f32 to vector<1x384xf32>
    %493 = arith.mulf %492, %491 : vector<1x384xf32>
    %494 = math.tanh %493 : vector<1x384xf32>
    %cst_118 = arith.constant 5.000000e-01 : f32
    %495 = vector.broadcast %cst_118 : f32 to vector<1x384xf32>
    %496 = arith.mulf %495, %494 : vector<1x384xf32>
    %cst_119 = arith.constant 5.000000e-01 : f32
    %497 = vector.broadcast %cst_119 : f32 to vector<1x384xf32>
    %498 = arith.addf %496, %497 : vector<1x384xf32>
    %499 = vector.extract_strided_slice %498 {offsets = [0, 0], sizes = [1, 128], strides = [1, 1]} : vector<1x384xf32> to vector<1x128xf32>
    %500 = vector.extract_strided_slice %498 {offsets = [0, 128], sizes = [1, 128], strides = [1, 1]} : vector<1x384xf32> to vector<1x128xf32>
    %501 = vector.extract_strided_slice %498 {offsets = [0, 256], sizes = [1, 128], strides = [1, 1]} : vector<1x384xf32> to vector<1x128xf32>
    %502 = vector.extract_strided_slice %490 {offsets = [0, 384], sizes = [1, 128], strides = [1, 1]} : vector<1x512xf32> to vector<1x128xf32>
    %503 = math.tanh %502 : vector<1x128xf32>
    %504 = arith.mulf %500, %459 : vector<1x128xf32>
    %505 = arith.mulf %499, %503 : vector<1x128xf32>
    %506 = arith.addf %504, %505 : vector<1x128xf32>
    %507 = math.tanh %506 : vector<1x128xf32>
    %508 = arith.mulf %501, %507 : vector<1x128xf32>
    %509 = arith.truncf %508 : vector<1x128xf32> to vector<1x128xbf16>
    %cst_120 = arith.constant dense<0.000000e+00> : vector<1x128xf32>
    %510 = tpu.matmul %509, %370, %cst_120 {dimension_numbers = #tpu.dot_dimension_numbers<[1], [0], [0], [1], [0, 0, 1, 1], [], []>} : vector<1x128xbf16>, vector<128x128xbf16>, vector<1x128xf32> -> vector<1x128xf32>
    %511 = arith.addf %510, %371 : vector<1x128xf32>
    %c2 = arith.constant 2 : index
    %c0_121 = arith.constant 0 : index
    %512 = vector.load %arg13[%c2, %c0_121] : memref<8x128xf32, #tpu.memory_space<vmem>>, vector<1x128xf32>
    tpu.vector_store %arg13[%c2, %c0_121], %511 {strides = array<i32>} : memref<8x128xf32, #tpu.memory_space<vmem>>, vector<1x128xf32>,
    %513 = arith.truncf %486 : vector<1x128xf32> to vector<1x128xbf16>
    %cst_122 = arith.constant dense<0.000000e+00> : vector<1x512xf32>
    %514 = tpu.matmul %513, %367, %cst_122 {dimension_numbers = #tpu.dot_dimension_numbers<[1], [0], [0], [1], [0, 0, 1, 1], [], []>} : vector<1x128xbf16>, vector<128x512xbf16>, vector<1x512xf32> -> vector<1x512xf32>
    %515 = arith.addf %366, %514 : vector<1x512xf32>
    %516 = vector.extract_strided_slice %515 {offsets = [0, 0], sizes = [1, 384], strides = [1, 1]} : vector<1x512xf32> to vector<1x384xf32>
    %cst_123 = arith.constant 5.000000e-01 : f32
    %517 = vector.broadcast %cst_123 : f32 to vector<1x384xf32>
    %518 = arith.mulf %517, %516 : vector<1x384xf32>
    %519 = math.tanh %518 : vector<1x384xf32>
    %cst_124 = arith.constant 5.000000e-01 : f32
    %520 = vector.broadcast %cst_124 : f32 to vector<1x384xf32>
    %521 = arith.mulf %520, %519 : vector<1x384xf32>
    %cst_125 = arith.constant 5.000000e-01 : f32
    %522 = vector.broadcast %cst_125 : f32 to vector<1x384xf32>
    %523 = arith.addf %521, %522 : vector<1x384xf32>
    %524 = vector.extract_strided_slice %523 {offsets = [0, 0], sizes = [1, 128], strides = [1, 1]} : vector<1x384xf32> to vector<1x128xf32>
    %525 = vector.extract_strided_slice %523 {offsets = [0, 128], sizes = [1, 128], strides = [1, 1]} : vector<1x384xf32> to vector<1x128xf32>
    %526 = vector.extract_strided_slice %523 {offsets = [0, 256], sizes = [1, 128], strides = [1, 1]} : vector<1x384xf32> to vector<1x128xf32>
    %527 = vector.extract_strided_slice %515 {offsets = [0, 384], sizes = [1, 128], strides = [1, 1]} : vector<1x512xf32> to vector<1x128xf32>
    %528 = math.tanh %527 : vector<1x128xf32>
    %529 = arith.mulf %525, %484 : vector<1x128xf32>
    %530 = arith.mulf %524, %528 : vector<1x128xf32>
    %531 = arith.addf %529, %530 : vector<1x128xf32>
    %532 = math.tanh %531 : vector<1x128xf32>
    %533 = arith.mulf %526, %532 : vector<1x128xf32>
    %534 = tpu.concatenate %533, %508 in 1 : vector<1x128xf32>, vector<1x128xf32> -> vector<1x256xf32>
    %535 = arith.truncf %534 : vector<1x256xf32> to vector<1x256xbf16>
    %cst_126 = arith.constant dense<0.000000e+00> : vector<1x512xf32>
    %536 = tpu.matmul %535, %368, %cst_126 {dimension_numbers = #tpu.dot_dimension_numbers<[1], [0], [0], [1], [0, 0, 1, 1], [], []>} : vector<1x256xbf16>, vector<256x512xbf16>, vector<1x512xf32> -> vector<1x512xf32>
    %537 = arith.addf %536, %369 : vector<1x512xf32>
    %538 = vector.extract_strided_slice %537 {offsets = [0, 0], sizes = [1, 384], strides = [1, 1]} : vector<1x512xf32> to vector<1x384xf32>
    %cst_127 = arith.constant 5.000000e-01 : f32
    %539 = vector.broadcast %cst_127 : f32 to vector<1x384xf32>
    %540 = arith.mulf %539, %538 : vector<1x384xf32>
    %541 = math.tanh %540 : vector<1x384xf32>
    %cst_128 = arith.constant 5.000000e-01 : f32
    %542 = vector.broadcast %cst_128 : f32 to vector<1x384xf32>
    %543 = arith.mulf %542, %541 : vector<1x384xf32>
    %cst_129 = arith.constant 5.000000e-01 : f32
    %544 = vector.broadcast %cst_129 : f32 to vector<1x384xf32>
    %545 = arith.addf %543, %544 : vector<1x384xf32>
    %546 = vector.extract_strided_slice %545 {offsets = [0, 0], sizes = [1, 128], strides = [1, 1]} : vector<1x384xf32> to vector<1x128xf32>
    %547 = vector.extract_strided_slice %545 {offsets = [0, 128], sizes = [1, 128], strides = [1, 1]} : vector<1x384xf32> to vector<1x128xf32>
    %548 = vector.extract_strided_slice %545 {offsets = [0, 256], sizes = [1, 128], strides = [1, 1]} : vector<1x384xf32> to vector<1x128xf32>
    %549 = vector.extract_strided_slice %537 {offsets = [0, 384], sizes = [1, 128], strides = [1, 1]} : vector<1x512xf32> to vector<1x128xf32>
    %550 = math.tanh %549 : vector<1x128xf32>
    %551 = arith.mulf %547, %506 : vector<1x128xf32>
    %552 = arith.mulf %546, %550 : vector<1x128xf32>
    %553 = arith.addf %551, %552 : vector<1x128xf32>
    %554 = math.tanh %553 : vector<1x128xf32>
    %555 = arith.mulf %548, %554 : vector<1x128xf32>
    %556 = arith.truncf %555 : vector<1x128xf32> to vector<1x128xbf16>
    %cst_130 = arith.constant dense<0.000000e+00> : vector<1x128xf32>
    %557 = tpu.matmul %556, %370, %cst_130 {dimension_numbers = #tpu.dot_dimension_numbers<[1], [0], [0], [1], [0, 0, 1, 1], [], []>} : vector<1x128xbf16>, vector<128x128xbf16>, vector<1x128xf32> -> vector<1x128xf32>
    %558 = arith.addf %557, %371 : vector<1x128xf32>
    %c3 = arith.constant 3 : index
    %c0_131 = arith.constant 0 : index
    %559 = vector.load %arg13[%c3, %c0_131] : memref<8x128xf32, #tpu.memory_space<vmem>>, vector<1x128xf32>
    tpu.vector_store %arg13[%c3, %c0_131], %558 {strides = array<i32>} : memref<8x128xf32, #tpu.memory_space<vmem>>, vector<1x128xf32>,
    %560 = arith.truncf %533 : vector<1x128xf32> to vector<1x128xbf16>
    %cst_132 = arith.constant dense<0.000000e+00> : vector<1x512xf32>
    %561 = tpu.matmul %560, %367, %cst_132 {dimension_numbers = #tpu.dot_dimension_numbers<[1], [0], [0], [1], [0, 0, 1, 1], [], []>} : vector<1x128xbf16>, vector<128x512xbf16>, vector<1x512xf32> -> vector<1x512xf32>
    %562 = arith.addf %366, %561 : vector<1x512xf32>
    %563 = vector.extract_strided_slice %562 {offsets = [0, 0], sizes = [1, 384], strides = [1, 1]} : vector<1x512xf32> to vector<1x384xf32>
    %cst_133 = arith.constant 5.000000e-01 : f32
    %564 = vector.broadcast %cst_133 : f32 to vector<1x384xf32>
    %565 = arith.mulf %564, %563 : vector<1x384xf32>
    %566 = math.tanh %565 : vector<1x384xf32>
    %cst_134 = arith.constant 5.000000e-01 : f32
    %567 = vector.broadcast %cst_134 : f32 to vector<1x384xf32>
    %568 = arith.mulf %567, %566 : vector<1x384xf32>
    %cst_135 = arith.constant 5.000000e-01 : f32
    %569 = vector.broadcast %cst_135 : f32 to vector<1x384xf32>
    %570 = arith.addf %568, %569 : vector<1x384xf32>
    %571 = vector.extract_strided_slice %570 {offsets = [0, 0], sizes = [1, 128], strides = [1, 1]} : vector<1x384xf32> to vector<1x128xf32>
    %572 = vector.extract_strided_slice %570 {offsets = [0, 128], sizes = [1, 128], strides = [1, 1]} : vector<1x384xf32> to vector<1x128xf32>
    %573 = vector.extract_strided_slice %570 {offsets = [0, 256], sizes = [1, 128], strides = [1, 1]} : vector<1x384xf32> to vector<1x128xf32>
    %574 = vector.extract_strided_slice %562 {offsets = [0, 384], sizes = [1, 128], strides = [1, 1]} : vector<1x512xf32> to vector<1x128xf32>
    %575 = math.tanh %574 : vector<1x128xf32>
    %576 = arith.mulf %572, %531 : vector<1x128xf32>
    %577 = arith.mulf %571, %575 : vector<1x128xf32>
    %578 = arith.addf %576, %577 : vector<1x128xf32>
    %579 = math.tanh %578 : vector<1x128xf32>
    %580 = arith.mulf %573, %579 : vector<1x128xf32>
    %581 = tpu.concatenate %580, %555 in 1 : vector<1x128xf32>, vector<1x128xf32> -> vector<1x256xf32>
    %582 = arith.truncf %581 : vector<1x256xf32> to vector<1x256xbf16>
    %cst_136 = arith.constant dense<0.000000e+00> : vector<1x512xf32>
    %583 = tpu.matmul %582, %368, %cst_136 {dimension_numbers = #tpu.dot_dimension_numbers<[1], [0], [0], [1], [0, 0, 1, 1], [], []>} : vector<1x256xbf16>, vector<256x512xbf16>, vector<1x512xf32> -> vector<1x512xf32>
    %584 = arith.addf %583, %369 : vector<1x512xf32>
    %585 = vector.extract_strided_slice %584 {offsets = [0, 0], sizes = [1, 384], strides = [1, 1]} : vector<1x512xf32> to vector<1x384xf32>
    %cst_137 = arith.constant 5.000000e-01 : f32
    %586 = vector.broadcast %cst_137 : f32 to vector<1x384xf32>
    %587 = arith.mulf %586, %585 : vector<1x384xf32>
    %588 = math.tanh %587 : vector<1x384xf32>
    %cst_138 = arith.constant 5.000000e-01 : f32
    %589 = vector.broadcast %cst_138 : f32 to vector<1x384xf32>
    %590 = arith.mulf %589, %588 : vector<1x384xf32>
    %cst_139 = arith.constant 5.000000e-01 : f32
    %591 = vector.broadcast %cst_139 : f32 to vector<1x384xf32>
    %592 = arith.addf %590, %591 : vector<1x384xf32>
    %593 = vector.extract_strided_slice %592 {offsets = [0, 0], sizes = [1, 128], strides = [1, 1]} : vector<1x384xf32> to vector<1x128xf32>
    %594 = vector.extract_strided_slice %592 {offsets = [0, 128], sizes = [1, 128], strides = [1, 1]} : vector<1x384xf32> to vector<1x128xf32>
    %595 = vector.extract_strided_slice %592 {offsets = [0, 256], sizes = [1, 128], strides = [1, 1]} : vector<1x384xf32> to vector<1x128xf32>
    %596 = vector.extract_strided_slice %584 {offsets = [0, 384], sizes = [1, 128], strides = [1, 1]} : vector<1x512xf32> to vector<1x128xf32>
    %597 = math.tanh %596 : vector<1x128xf32>
    %598 = arith.mulf %594, %553 : vector<1x128xf32>
    %599 = arith.mulf %593, %597 : vector<1x128xf32>
    %600 = arith.addf %598, %599 : vector<1x128xf32>
    %601 = math.tanh %600 : vector<1x128xf32>
    %602 = arith.mulf %595, %601 : vector<1x128xf32>
    %603 = arith.truncf %602 : vector<1x128xf32> to vector<1x128xbf16>
    %cst_140 = arith.constant dense<0.000000e+00> : vector<1x128xf32>
    %604 = tpu.matmul %603, %370, %cst_140 {dimension_numbers = #tpu.dot_dimension_numbers<[1], [0], [0], [1], [0, 0, 1, 1], [], []>} : vector<1x128xbf16>, vector<128x128xbf16>, vector<1x128xf32> -> vector<1x128xf32>
    %605 = arith.addf %604, %371 : vector<1x128xf32>
    %c4 = arith.constant 4 : index
    %c0_141 = arith.constant 0 : index
    %606 = vector.load %arg13[%c4, %c0_141] : memref<8x128xf32, #tpu.memory_space<vmem>>, vector<1x128xf32>
    tpu.vector_store %arg13[%c4, %c0_141], %605 {strides = array<i32>} : memref<8x128xf32, #tpu.memory_space<vmem>>, vector<1x128xf32>,
    %607 = arith.truncf %580 : vector<1x128xf32> to vector<1x128xbf16>
    %cst_142 = arith.constant dense<0.000000e+00> : vector<1x512xf32>
    %608 = tpu.matmul %607, %367, %cst_142 {dimension_numbers = #tpu.dot_dimension_numbers<[1], [0], [0], [1], [0, 0, 1, 1], [], []>} : vector<1x128xbf16>, vector<128x512xbf16>, vector<1x512xf32> -> vector<1x512xf32>
    %609 = arith.addf %366, %608 : vector<1x512xf32>
    %610 = vector.extract_strided_slice %609 {offsets = [0, 0], sizes = [1, 384], strides = [1, 1]} : vector<1x512xf32> to vector<1x384xf32>
    %cst_143 = arith.constant 5.000000e-01 : f32
    %611 = vector.broadcast %cst_143 : f32 to vector<1x384xf32>
    %612 = arith.mulf %611, %610 : vector<1x384xf32>
    %613 = math.tanh %612 : vector<1x384xf32>
    %cst_144 = arith.constant 5.000000e-01 : f32
    %614 = vector.broadcast %cst_144 : f32 to vector<1x384xf32>
    %615 = arith.mulf %614, %613 : vector<1x384xf32>
    %cst_145 = arith.constant 5.000000e-01 : f32
    %616 = vector.broadcast %cst_145 : f32 to vector<1x384xf32>
    %617 = arith.addf %615, %616 : vector<1x384xf32>
    %618 = vector.extract_strided_slice %617 {offsets = [0, 0], sizes = [1, 128], strides = [1, 1]} : vector<1x384xf32> to vector<1x128xf32>
    %619 = vector.extract_strided_slice %617 {offsets = [0, 128], sizes = [1, 128], strides = [1, 1]} : vector<1x384xf32> to vector<1x128xf32>
    %620 = vector.extract_strided_slice %617 {offsets = [0, 256], sizes = [1, 128], strides = [1, 1]} : vector<1x384xf32> to vector<1x128xf32>
    %621 = vector.extract_strided_slice %609 {offsets = [0, 384], sizes = [1, 128], strides = [1, 1]} : vector<1x512xf32> to vector<1x128xf32>
    %622 = math.tanh %621 : vector<1x128xf32>
    %623 = arith.mulf %619, %578 : vector<1x128xf32>
    %624 = arith.mulf %618, %622 : vector<1x128xf32>
    %625 = arith.addf %623, %624 : vector<1x128xf32>
    %626 = math.tanh %625 : vector<1x128xf32>
    %627 = arith.mulf %620, %626 : vector<1x128xf32>
    %628 = tpu.concatenate %627, %602 in 1 : vector<1x128xf32>, vector<1x128xf32> -> vector<1x256xf32>
    %629 = arith.truncf %628 : vector<1x256xf32> to vector<1x256xbf16>
    %cst_146 = arith.constant dense<0.000000e+00> : vector<1x512xf32>
    %630 = tpu.matmul %629, %368, %cst_146 {dimension_numbers = #tpu.dot_dimension_numbers<[1], [0], [0], [1], [0, 0, 1, 1], [], []>} : vector<1x256xbf16>, vector<256x512xbf16>, vector<1x512xf32> -> vector<1x512xf32>
    %631 = arith.addf %630, %369 : vector<1x512xf32>
    %632 = vector.extract_strided_slice %631 {offsets = [0, 0], sizes = [1, 384], strides = [1, 1]} : vector<1x512xf32> to vector<1x384xf32>
    %cst_147 = arith.constant 5.000000e-01 : f32
    %633 = vector.broadcast %cst_147 : f32 to vector<1x384xf32>
    %634 = arith.mulf %633, %632 : vector<1x384xf32>
    %635 = math.tanh %634 : vector<1x384xf32>
    %cst_148 = arith.constant 5.000000e-01 : f32
    %636 = vector.broadcast %cst_148 : f32 to vector<1x384xf32>
    %637 = arith.mulf %636, %635 : vector<1x384xf32>
    %cst_149 = arith.constant 5.000000e-01 : f32
    %638 = vector.broadcast %cst_149 : f32 to vector<1x384xf32>
    %639 = arith.addf %637, %638 : vector<1x384xf32>
    %640 = vector.extract_strided_slice %639 {offsets = [0, 0], sizes = [1, 128], strides = [1, 1]} : vector<1x384xf32> to vector<1x128xf32>
    %641 = vector.extract_strided_slice %639 {offsets = [0, 128], sizes = [1, 128], strides = [1, 1]} : vector<1x384xf32> to vector<1x128xf32>
    %642 = vector.extract_strided_slice %639 {offsets = [0, 256], sizes = [1, 128], strides = [1, 1]} : vector<1x384xf32> to vector<1x128xf32>
    %643 = vector.extract_strided_slice %631 {offsets = [0, 384], sizes = [1, 128], strides = [1, 1]} : vector<1x512xf32> to vector<1x128xf32>
    %644 = math.tanh %643 : vector<1x128xf32>
    %645 = arith.mulf %641, %600 : vector<1x128xf32>
    %646 = arith.mulf %640, %644 : vector<1x128xf32>
    %647 = arith.addf %645, %646 : vector<1x128xf32>
    %648 = math.tanh %647 : vector<1x128xf32>
    %649 = arith.mulf %642, %648 : vector<1x128xf32>
    %650 = arith.truncf %649 : vector<1x128xf32> to vector<1x128xbf16>
    %cst_150 = arith.constant dense<0.000000e+00> : vector<1x128xf32>
    %651 = tpu.matmul %650, %370, %cst_150 {dimension_numbers = #tpu.dot_dimension_numbers<[1], [0], [0], [1], [0, 0, 1, 1], [], []>} : vector<1x128xbf16>, vector<128x128xbf16>, vector<1x128xf32> -> vector<1x128xf32>
    %652 = arith.addf %651, %371 : vector<1x128xf32>
    %c5 = arith.constant 5 : index
    %c0_151 = arith.constant 0 : index
    %653 = vector.load %arg13[%c5, %c0_151] : memref<8x128xf32, #tpu.memory_space<vmem>>, vector<1x128xf32>
    tpu.vector_store %arg13[%c5, %c0_151], %652 {strides = array<i32>} : memref<8x128xf32, #tpu.memory_space<vmem>>, vector<1x128xf32>,
    %654 = arith.truncf %627 : vector<1x128xf32> to vector<1x128xbf16>
    %cst_152 = arith.constant dense<0.000000e+00> : vector<1x512xf32>
    %655 = tpu.matmul %654, %367, %cst_152 {dimension_numbers = #tpu.dot_dimension_numbers<[1], [0], [0], [1], [0, 0, 1, 1], [], []>} : vector<1x128xbf16>, vector<128x512xbf16>, vector<1x512xf32> -> vector<1x512xf32>
    %656 = arith.addf %366, %655 : vector<1x512xf32>
    %657 = vector.extract_strided_slice %656 {offsets = [0, 0], sizes = [1, 384], strides = [1, 1]} : vector<1x512xf32> to vector<1x384xf32>
    %cst_153 = arith.constant 5.000000e-01 : f32
    %658 = vector.broadcast %cst_153 : f32 to vector<1x384xf32>
    %659 = arith.mulf %658, %657 : vector<1x384xf32>
    %660 = math.tanh %659 : vector<1x384xf32>
    %cst_154 = arith.constant 5.000000e-01 : f32
    %661 = vector.broadcast %cst_154 : f32 to vector<1x384xf32>
    %662 = arith.mulf %661, %660 : vector<1x384xf32>
    %cst_155 = arith.constant 5.000000e-01 : f32
    %663 = vector.broadcast %cst_155 : f32 to vector<1x384xf32>
    %664 = arith.addf %662, %663 : vector<1x384xf32>
    %665 = vector.extract_strided_slice %664 {offsets = [0, 0], sizes = [1, 128], strides = [1, 1]} : vector<1x384xf32> to vector<1x128xf32>
    %666 = vector.extract_strided_slice %664 {offsets = [0, 128], sizes = [1, 128], strides = [1, 1]} : vector<1x384xf32> to vector<1x128xf32>
    %667 = vector.extract_strided_slice %664 {offsets = [0, 256], sizes = [1, 128], strides = [1, 1]} : vector<1x384xf32> to vector<1x128xf32>
    %668 = vector.extract_strided_slice %656 {offsets = [0, 384], sizes = [1, 128], strides = [1, 1]} : vector<1x512xf32> to vector<1x128xf32>
    %669 = math.tanh %668 : vector<1x128xf32>
    %670 = arith.mulf %666, %625 : vector<1x128xf32>
    %671 = arith.mulf %665, %669 : vector<1x128xf32>
    %672 = arith.addf %670, %671 : vector<1x128xf32>
    %673 = math.tanh %672 : vector<1x128xf32>
    %674 = arith.mulf %667, %673 : vector<1x128xf32>
    %675 = tpu.concatenate %674, %649 in 1 : vector<1x128xf32>, vector<1x128xf32> -> vector<1x256xf32>
    %676 = arith.truncf %675 : vector<1x256xf32> to vector<1x256xbf16>
    %cst_156 = arith.constant dense<0.000000e+00> : vector<1x512xf32>
    %677 = tpu.matmul %676, %368, %cst_156 {dimension_numbers = #tpu.dot_dimension_numbers<[1], [0], [0], [1], [0, 0, 1, 1], [], []>} : vector<1x256xbf16>, vector<256x512xbf16>, vector<1x512xf32> -> vector<1x512xf32>
    %678 = arith.addf %677, %369 : vector<1x512xf32>
    %679 = vector.extract_strided_slice %678 {offsets = [0, 0], sizes = [1, 384], strides = [1, 1]} : vector<1x512xf32> to vector<1x384xf32>
    %cst_157 = arith.constant 5.000000e-01 : f32
    %680 = vector.broadcast %cst_157 : f32 to vector<1x384xf32>
    %681 = arith.mulf %680, %679 : vector<1x384xf32>
    %682 = math.tanh %681 : vector<1x384xf32>
    %cst_158 = arith.constant 5.000000e-01 : f32
    %683 = vector.broadcast %cst_158 : f32 to vector<1x384xf32>
    %684 = arith.mulf %683, %682 : vector<1x384xf32>
    %cst_159 = arith.constant 5.000000e-01 : f32
    %685 = vector.broadcast %cst_159 : f32 to vector<1x384xf32>
    %686 = arith.addf %684, %685 : vector<1x384xf32>
    %687 = vector.extract_strided_slice %686 {offsets = [0, 0], sizes = [1, 128], strides = [1, 1]} : vector<1x384xf32> to vector<1x128xf32>
    %688 = vector.extract_strided_slice %686 {offsets = [0, 128], sizes = [1, 128], strides = [1, 1]} : vector<1x384xf32> to vector<1x128xf32>
    %689 = vector.extract_strided_slice %686 {offsets = [0, 256], sizes = [1, 128], strides = [1, 1]} : vector<1x384xf32> to vector<1x128xf32>
    %690 = vector.extract_strided_slice %678 {offsets = [0, 384], sizes = [1, 128], strides = [1, 1]} : vector<1x512xf32> to vector<1x128xf32>
    %691 = math.tanh %690 : vector<1x128xf32>
    %692 = arith.mulf %688, %647 : vector<1x128xf32>
    %693 = arith.mulf %687, %691 : vector<1x128xf32>
    %694 = arith.addf %692, %693 : vector<1x128xf32>
    %695 = math.tanh %694 : vector<1x128xf32>
    %696 = arith.mulf %689, %695 : vector<1x128xf32>
    %697 = arith.truncf %696 : vector<1x128xf32> to vector<1x128xbf16>
    %cst_160 = arith.constant dense<0.000000e+00> : vector<1x128xf32>
    %698 = tpu.matmul %697, %370, %cst_160 {dimension_numbers = #tpu.dot_dimension_numbers<[1], [0], [0], [1], [0, 0, 1, 1], [], []>} : vector<1x128xbf16>, vector<128x128xbf16>, vector<1x128xf32> -> vector<1x128xf32>
    %699 = arith.addf %698, %371 : vector<1x128xf32>
    %c6 = arith.constant 6 : index
    %c0_161 = arith.constant 0 : index
    %700 = vector.load %arg13[%c6, %c0_161] : memref<8x128xf32, #tpu.memory_space<vmem>>, vector<1x128xf32>
    tpu.vector_store %arg13[%c6, %c0_161], %699 {strides = array<i32>} : memref<8x128xf32, #tpu.memory_space<vmem>>, vector<1x128xf32>,
    %701 = arith.truncf %674 : vector<1x128xf32> to vector<1x128xbf16>
    %cst_162 = arith.constant dense<0.000000e+00> : vector<1x512xf32>
    %702 = tpu.matmul %701, %367, %cst_162 {dimension_numbers = #tpu.dot_dimension_numbers<[1], [0], [0], [1], [0, 0, 1, 1], [], []>} : vector<1x128xbf16>, vector<128x512xbf16>, vector<1x512xf32> -> vector<1x512xf32>
    %703 = arith.addf %366, %702 : vector<1x512xf32>
    %704 = vector.extract_strided_slice %703 {offsets = [0, 0], sizes = [1, 384], strides = [1, 1]} : vector<1x512xf32> to vector<1x384xf32>
    %cst_163 = arith.constant 5.000000e-01 : f32
    %705 = vector.broadcast %cst_163 : f32 to vector<1x384xf32>
    %706 = arith.mulf %705, %704 : vector<1x384xf32>
    %707 = math.tanh %706 : vector<1x384xf32>
    %cst_164 = arith.constant 5.000000e-01 : f32
    %708 = vector.broadcast %cst_164 : f32 to vector<1x384xf32>
    %709 = arith.mulf %708, %707 : vector<1x384xf32>
    %cst_165 = arith.constant 5.000000e-01 : f32
    %710 = vector.broadcast %cst_165 : f32 to vector<1x384xf32>
    %711 = arith.addf %709, %710 : vector<1x384xf32>
    %712 = vector.extract_strided_slice %711 {offsets = [0, 0], sizes = [1, 128], strides = [1, 1]} : vector<1x384xf32> to vector<1x128xf32>
    %713 = vector.extract_strided_slice %711 {offsets = [0, 128], sizes = [1, 128], strides = [1, 1]} : vector<1x384xf32> to vector<1x128xf32>
    %714 = vector.extract_strided_slice %711 {offsets = [0, 256], sizes = [1, 128], strides = [1, 1]} : vector<1x384xf32> to vector<1x128xf32>
    %715 = vector.extract_strided_slice %703 {offsets = [0, 384], sizes = [1, 128], strides = [1, 1]} : vector<1x512xf32> to vector<1x128xf32>
    %716 = math.tanh %715 : vector<1x128xf32>
    %717 = arith.mulf %713, %672 : vector<1x128xf32>
    %718 = arith.mulf %712, %716 : vector<1x128xf32>
    %719 = arith.addf %717, %718 : vector<1x128xf32>
    %720 = math.tanh %719 : vector<1x128xf32>
    %721 = arith.mulf %714, %720 : vector<1x128xf32>
    %722 = tpu.concatenate %721, %696 in 1 : vector<1x128xf32>, vector<1x128xf32> -> vector<1x256xf32>
    %723 = arith.truncf %722 : vector<1x256xf32> to vector<1x256xbf16>
    %cst_166 = arith.constant dense<0.000000e+00> : vector<1x512xf32>
    %724 = tpu.matmul %723, %368, %cst_166 {dimension_numbers = #tpu.dot_dimension_numbers<[1], [0], [0], [1], [0, 0, 1, 1], [], []>} : vector<1x256xbf16>, vector<256x512xbf16>, vector<1x512xf32> -> vector<1x512xf32>
    %725 = arith.addf %724, %369 : vector<1x512xf32>
    %726 = vector.extract_strided_slice %725 {offsets = [0, 0], sizes = [1, 384], strides = [1, 1]} : vector<1x512xf32> to vector<1x384xf32>
    %cst_167 = arith.constant 5.000000e-01 : f32
    %727 = vector.broadcast %cst_167 : f32 to vector<1x384xf32>
    %728 = arith.mulf %727, %726 : vector<1x384xf32>
    %729 = math.tanh %728 : vector<1x384xf32>
    %cst_168 = arith.constant 5.000000e-01 : f32
    %730 = vector.broadcast %cst_168 : f32 to vector<1x384xf32>
    %731 = arith.mulf %730, %729 : vector<1x384xf32>
    %cst_169 = arith.constant 5.000000e-01 : f32
    %732 = vector.broadcast %cst_169 : f32 to vector<1x384xf32>
    %733 = arith.addf %731, %732 : vector<1x384xf32>
    %734 = vector.extract_strided_slice %733 {offsets = [0, 0], sizes = [1, 128], strides = [1, 1]} : vector<1x384xf32> to vector<1x128xf32>
    %735 = vector.extract_strided_slice %733 {offsets = [0, 128], sizes = [1, 128], strides = [1, 1]} : vector<1x384xf32> to vector<1x128xf32>
    %736 = vector.extract_strided_slice %733 {offsets = [0, 256], sizes = [1, 128], strides = [1, 1]} : vector<1x384xf32> to vector<1x128xf32>
    %737 = vector.extract_strided_slice %725 {offsets = [0, 384], sizes = [1, 128], strides = [1, 1]} : vector<1x512xf32> to vector<1x128xf32>
    %738 = math.tanh %737 : vector<1x128xf32>
    %739 = arith.mulf %735, %694 : vector<1x128xf32>
    %740 = arith.mulf %734, %738 : vector<1x128xf32>
    %741 = arith.addf %739, %740 : vector<1x128xf32>
    %742 = math.tanh %741 : vector<1x128xf32>
    %743 = arith.mulf %736, %742 : vector<1x128xf32>
    %744 = arith.truncf %743 : vector<1x128xf32> to vector<1x128xbf16>
    %cst_170 = arith.constant dense<0.000000e+00> : vector<1x128xf32>
    %745 = tpu.matmul %744, %370, %cst_170 {dimension_numbers = #tpu.dot_dimension_numbers<[1], [0], [0], [1], [0, 0, 1, 1], [], []>} : vector<1x128xbf16>, vector<128x128xbf16>, vector<1x128xf32> -> vector<1x128xf32>
    %746 = arith.addf %745, %371 : vector<1x128xf32>
    %c7 = arith.constant 7 : index
    %c0_171 = arith.constant 0 : index
    %747 = vector.load %arg13[%c7, %c0_171] : memref<8x128xf32, #tpu.memory_space<vmem>>, vector<1x128xf32>
    tpu.vector_store %arg13[%c7, %c0_171], %746 {strides = array<i32>} : memref<8x128xf32, #tpu.memory_space<vmem>>, vector<1x128xf32>,
    return
  }
}

</mosaic_0001>

<bundles_post_ra>
// kernel: recurrent_autoencoder.1
= control target key start
LH: loop header
LB: loop body
LE: loop exit
PB: predicated region body
PF: predicated region fallthrough
CT: control target
= control target key end

     0   :  { %18 = vsyncpa [#allocation3], 0  ;;  %s10853_s0 = inlined_call_operand.vmem [shape: f32[8,8], index: 0, kind: input, shape index: {}]   ;;  %s10854_s1 = inlined_call_operand.vmem [shape: f32[8,512], index: 1, kind: input, shape index: {}]   ;;  %s10855_s2 = inlined_call_operand.hbm [shape: bf16[128,512], index: 2, kind: input, shape index: {}]   ;;  %s10856_s3 = inlined_call_operand.vmem [shape: f32[1,512], index: 3, kind: input, shape index: {}]   ;;  %s10857_s4 = inlined_call_operand.hbm [shape: bf16[256,512], index: 4, kind: input, shape index: {}]   ;;  %s10858_s5 = inlined_call_operand.vmem [shape: f32[1,512], index: 5, kind: input, shape index: {}]   ;;  %s10859_s6 = inlined_call_operand.hbm [shape: bf16[128,512], index: 6, kind: input, shape index: {}]   ;;  %s10860_s7 = inlined_call_operand.hbm [shape: bf16[128,512], index: 7, kind: input, shape index: {}]   ;;  %s10861_s8 = inlined_call_operand.vmem [shape: f32[1,512], index: 8, kind: input, shape index: {}]   ;;  %s10862_s9 = inlined_call_operand.hbm [shape: bf16[256,512], index: 9, kind: input, shape index: {}]   ;;  %s10863_s10 = inlined_call_operand.vmem [shape: f32[1,512], index: 10, kind: input, shape index: {}]   ;;  %s10864_s11 = inlined_call_operand.hbm [shape: bf16[128,128], index: 11, kind: input, shape index: {}]   ;;  %s10865_s12 = inlined_call_operand.vmem [shape: f32[1,128], index: 12, kind: input, shape index: {}]   ;;  %s10866_s13 = inlined_call_operand.vmem [shape: f32[8,128], index: 13, kind: output, shape index: {}]  }
   0x1   :  { %19 = vsyncpa [#allocation5], 0 }
   0x2   :  { %20 = vsyncpa [#allocation8], 0 }
   0x3   :  { %21 = vsyncpa [#allocation11], 0  ;;  %s7346_s25 = smov [#allocation4]   ;;  %s7347_s27 = smov [#allocation7]  }
   0x4   :  { %s45_s26 = sshll.u32 %s7346_s25, 4  ;;  %s71_s28 = sshll.u32 %s7347_s27, 4  ;;  %s46_s26 = int_to_ptr.vmem [resolvable:$true] %s45_s26  ;;  %s72_s28 = int_to_ptr.vmem [resolvable:$true] %s71_s28 }
   0x5   :  { %s7226_s29 = scalar_lea.vmem %s46_s26, 8192  ;;  %p7231_p1 = scmp.lt.s32.totalorder %s46_s26, %s46_s26 }
   0x6   :  { %p7227_p0 = scmp.ne.s32.totalorder %s46_s26, %s7226_s29  ;;  %p7232_p2 = scmp.lt.s32.totalorder %s7226_s29, %s7226_s29 }
   0x8   :  { %p7233_p3 = por %p7232_p2, %p7231_p1 }
   0xa   :  { %p7234_p4 = pnand %p7233_p3, %p7227_p0 }
   0xc   :  { %7237 = shalt.err (!%p7234_p4)
}
   0xd   :  { %s7348_s30 = smov 256   ;;  %s7349_s14 = smov 16  }
   0xe   :  { %51 = dma.hbm_to_vmem [thread:$0]  %s10857_s4, 8192, %s46_s26, [#allocation5], %s7348_s30, %s7348_s30, %s7349_s14  }
   0xf   :  { %s7246_s17 = scalar_lea.vmem %s72_s28, 4096  ;;  %p7251_p6 = scmp.lt.s32.totalorder %s72_s28, %s72_s28 }
  0x10   :  { %p7247_p5 = scmp.ne.s32.totalorder %s72_s28, %s7246_s17  ;;  %p7252_p7 = scmp.lt.s32.totalorder %s7246_s17, %s7246_s17 }
  0x12   :  { %p7253_p8 = por %p7252_p7, %p7251_p6 }
  0x14   :  { %p7254_p9 = pnand %p7253_p8, %p7247_p5 }
  0x16   :  { %7257 = shalt.err (!%p7254_p9)
}
  0x17   :  { %77 = dma.hbm_to_vmem [thread:$0]  %s10860_s7, 4096, %s72_s28, [#allocation8], %s7348_s30, %s7348_s30, %s7349_s14  }
  0x18   :  { %s7350_s20 = smov [#allocation2]   ;;  %s7351_s22 = smov [#allocation6]  }
  0x19   :  { %s31_s21 = sshll.u32 %s7350_s20, 4  ;;  %s59_s23 = sshll.u32 %s7351_s22, 4  ;;  %s32_s21 = int_to_ptr.vmem [resolvable:$true] %s31_s21  ;;  %s60_s23 = int_to_ptr.vmem [resolvable:$true] %s59_s23 }
  0x1a   :  { %s7266_s4 = scalar_lea.vmem %s32_s21, 4096  ;;  %p7271_p11 = scmp.lt.s32.totalorder %s32_s21, %s32_s21 }
  0x1b   :  { %p7267_p10 = scmp.ne.s32.totalorder %s32_s21, %s7266_s4  ;;  %p7272_p12 = scmp.lt.s32.totalorder %s7266_s4, %s7266_s4 }
  0x1d   :  { %p7273_p13 = por %p7272_p12, %p7271_p11 }
  0x1f   :  { %p7274_p0 = pnand %p7273_p13, %p7267_p10 }
  0x21   :  { %7277 = shalt.err (!%p7274_p0)
}
  0x22   :  { %37 = dma.hbm_to_vmem [thread:$0]  %s10855_s2, 4096, %s32_s21, [#allocation3], %s7348_s30, %s7348_s30, %s7349_s14  }
  0x23   :  { %s7286_s7 = scalar_lea.vmem %s60_s23, 4096  ;;  %p7291_p2 = scmp.lt.s32.totalorder %s60_s23, %s60_s23 }
  0x24   :  { %p7287_p1 = scmp.ne.s32.totalorder %s60_s23, %s7286_s7  ;;  %p7292_p3 = scmp.lt.s32.totalorder %s7286_s7, %s7286_s7 }
  0x26   :  { %p7293_p4 = por %p7292_p3, %p7291_p2 }
  0x28   :  { %p7294_p5 = pnand %p7293_p4, %p7287_p1 }
  0x2a   :  { %7297 = shalt.err (!%p7294_p5)
}
  0x2b   :  { %65 = dma.hbm_to_vmem [thread:$0]  %s10859_s6, 4096, %s60_s23, [#allocation5], %s7348_s30, %s7348_s30, %s7349_s14  }
  0x2c   :  { %s7352_s28 = smov [#allocation9]   ;;  %s7353_s15 = smov [#allocation10]  }
  0x2d   :  { %s85_s29 = sshll.u32 %s7352_s28, 4  ;;  %s99_s16 = sshll.u32 %s7353_s15, 4  ;;  %s86_s29 = int_to_ptr.vmem [resolvable:$true] %s85_s29  ;;  %s100_s16 = int_to_ptr.vmem [resolvable:$true] %s99_s16 }
  0x2e   :  { %s7306_s2 = scalar_lea.vmem %s86_s29, 8192  ;;  %p7311_p7 = scmp.lt.s32.totalorder %s86_s29, %s86_s29 }
  0x2f   :  { %p7307_p6 = scmp.ne.s32.totalorder %s86_s29, %s7306_s2  ;;  %p7312_p8 = scmp.lt.s32.totalorder %s7306_s2, %s7306_s2 }
  0x31   :  { %p7313_p9 = por %p7312_p8, %p7311_p7 }
  0x33   :  { %p7314_p10 = pnand %p7313_p9, %p7307_p6 }
  0x35   :  { %7317 = shalt.err (!%p7314_p10)
}
  0x36   :  { %91 = dma.hbm_to_vmem [thread:$0]  %s10862_s9, 8192, %s86_s29, [#allocation8], %s7348_s30, %s7348_s30, %s7349_s14  }
  0x37   :  { %s7326_s6 = scalar_lea.vmem %s100_s16, 1024  ;;  %p7331_p12 = scmp.lt.s32.totalorder %s100_s16, %s100_s16 }
  0x38   :  { %p7327_p11 = scmp.ne.s32.totalorder %s100_s16, %s7326_s6  ;;  %p7332_p13 = scmp.lt.s32.totalorder %s7326_s6, %s7326_s6 }
  0x3a   :  { %p7333_p0 = por %p7332_p13, %p7331_p12 }
  0x3c   :  { %p7334_p1 = pnand %p7333_p0, %p7327_p11 }
  0x3e   :  { %7337 = shalt.err (!%p7334_p1)
}
  0x3f   :  { %s7354_s19 = smov 64   ;;  %s7355_s20 = smov 4  }
  0x40   :  { %105 = dma.hbm_to_vmem [thread:$0]  %s10864_s11, 1024, %s100_s16, [#allocation11], %s7354_s19, %s7354_s19, %s7355_s20  }
  0x41   :  { %7338 = dma.done.wait [#allocation3], 4096  }
  0x42   :  { %7339 = vsyncadd [#allocation3], 4294963200 }
  0x43   :  { %7340 = dma.done.wait [#allocation5], 12288  }
  0x44   :  { %7341 = vsyncadd [#allocation5], 4294955008 }
  0x45   :  { %7342 = dma.done.wait [#allocation8], 12288  }
  0x46   :  { %7343 = vsyncadd [#allocation8], 4294955008 }
  0x47   :  { %7344 = dma.done.wait [#allocation11], 1024  }
  0x48   :  { %7345 = vsyncadd [#allocation11], 4294966272  ;;  %v10867_v0 = vmov 0.0   ;;  %v129_v1 = vld [vmem:[%s10854_s1 + $0x8] sm:$0xff]  ;;  %v131_v2 = vld [vmem:[%s10854_s1 + $0x18] sm:$0xff]  ;;  %vm154_vm0 = vcmask 64512  }
  0x49   :  { %222 = vmatprep.mubr.f32.mxu0 %v10867_v0  ;;  %293 = vmatprep.mubr.f32.mxu1 %v10867_v0  ;;  %v128_v3 = vld [vmem:[%s10854_s1] sm:$0xff]  ;;  %v130_v4 = vld [vmem:[%s10854_s1 + $0x10] sm:$0xff]  ;;  %v7482_v7 = vld [vmem:[#allocation2 + $0xec] ss:$16 sps:$4 sm:$0xff]   ;;  %v10869_v10 = vmov 0   ;;  %vm7359_vm1 = vmmov 0  }
  0x4a   :  { %188 = vmatprep.subr.mxu0 %v129_v1  ;;  %259 = vmatprep.subr.mxu1 %v131_v2  ;;  %v127_v5 = vld [vmem:[%s10853_s0] sm:$0xff]  ;;  %v7487_v9 = vld [vmem:[#allocation2 + $0xe8] ss:$16 sps:$4 sm:$0xff]   ;;  %v7495_v12 = vld [vmem:[#allocation2 + $0xcc] ss:$16 sps:$4 sm:$0xff]  }
  0x4b   :  { %189 = vmatpush1.msra.mxu0 %v128_v3  ;;  %260 = vmatpush1.msra.mxu1 %v130_v4  ;;  %v7480_v6 = vld [vmem:[#allocation2 + $0xe4] ss:$16 sps:$4 sm:$0xff]   ;;  %v7484_v8 = vld [vmem:[#allocation2 + $0xe0] ss:$16 sps:$4 sm:$0xff]   ;;  %v7499_v14 = vld [vmem:[#allocation2 + $0xc8] ss:$16 sps:$4 sm:$0xff]  }
  0x4c   :  { %5672 = vmatmul.mubr.msk.f32.vlgmr.msra.gmra.mxu0 %vm154_vm0, %v127_v5  ;;  %5673 = vmatmul.mubr.msk.f32.vlgmr.msra.gmra.mxu1 %vm154_vm0, %v127_v5  ;;  %v7492_v11 = vld [vmem:[#allocation2 + $0xc4] ss:$16 sps:$4 sm:$0xff]   ;;  %v7497_v13 = vld [vmem:[#allocation2 + $0xc0] ss:$16 sps:$4 sm:$0xff]   ;;  %v7506_v16 = vld [vmem:[#allocation2 + $0xac] ss:$16 sps:$4 sm:$0xff]  }
  0x4d   :  { %557 = vmatprep.subr.bf16.mxu0 %v7480_v6  ;;  %589 = vmatprep.mubr.bf16.mxu0 %v10869_v10  ;;  %v7503_v15 = vld [vmem:[#allocation2 + $0xa4] ss:$16 sps:$4 sm:$0xff]   ;;  %v7509_v17 = vld [vmem:[#allocation2 + $0xa0] ss:$16 sps:$4 sm:$0xff]   ;;  %v7511_v18 = vld [vmem:[#allocation2 + $0xa8] ss:$16 sps:$4 sm:$0xff]  }
  0x4e   :  { %598 = vmatprep.subr.bf16.mxu1 %v7482_v7  ;;  %558 = vmatpush1.bf16.msra.mxu0 %v7484_v8  ;;  %v7515_v19 = vld [vmem:[#allocation2 + $0x84] ss:$16 sps:$4 sm:$0xff]   ;;  %v7518_v20 = vld [vmem:[#allocation2 + $0x8c] ss:$16 sps:$4 sm:$0xff]   ;;  %v7521_v21 = vld [vmem:[#allocation2 + $0x80] ss:$16 sps:$4 sm:$0xff]  }
  0x4f   :  { %599 = vmatpush1.bf16.msra.mxu1 %v7487_v9  ;;  %630 = vmatprep.mubr.bf16.mxu1 %v10869_v10  ;;  %v7525_v22 = vld [vmem:[#allocation2 + $0x88] ss:$16 sps:$4 sm:$0xff]   ;;  %v7527_v23 = vld [vmem:[#allocation2 + $0x64] ss:$16 sps:$4 sm:$0xff]   ;;  %v7530_v24 = vld [vmem:[#allocation2 + $0x6c] ss:$16 sps:$4 sm:$0xff]  }
  0x50   :  { %559 = vmatprep.subr.bf16.mxu0 %v7492_v11  ;;  %600 = vmatprep.subr.bf16.mxu1 %v7495_v12  ;;  %v7533_v25 = vld [vmem:[#allocation2 + $0x60] ss:$16 sps:$4 sm:$0xff]   ;;  %v7535_v26 = vld [vmem:[#allocation2 + $0x68] ss:$16 sps:$4 sm:$0xff]   ;;  %v7539_v27 = vld [vmem:[#allocation2 + $0x44] ss:$16 sps:$4 sm:$0xff]  }
  0x51   :  { %v7542_v28 = vld [vmem:[#allocation2 + $0x4c] ss:$16 sps:$4 sm:$0xff]   ;;  %v7545_v29 = vld [vmem:[#allocation2 + $0x40] ss:$16 sps:$4 sm:$0xff]   ;;  %v7549_v30 = vld [vmem:[#allocation2 + $0x48] ss:$16 sps:$4 sm:$0xff]  }
  0x52   :  { %560 = vmatpush1.bf16.msra.mxu0 %v7497_v13  ;;  %v7551_v31 = vld [vmem:[#allocation2 + $0x24] ss:$16 sps:$4 sm:$0xff]   ;;  %v7553_v32 = vld [vmem:[#allocation2 + $0x2c] ss:$16 sps:$4 sm:$0xff]   ;;  %v7556_v33 = vld [vmem:[#allocation2 + $0x20] ss:$16 sps:$4 sm:$0xff]  }
  0x53   :  { %601 = vmatpush1.bf16.msra.mxu1 %v7499_v14  ;;  %561 = vmatprep.subr.bf16.mxu0 %v7503_v15  ;;  %v7558_v34 = vld [vmem:[#allocation2 + $0x28] ss:$16 sps:$4 sm:$0xff]   ;;  %v7560_v35 = vld [vmem:[#allocation2 + $0x4] ss:$16 sps:$4 sm:$0xff]   ;;  %v7563_v36 = vld [vmem:[#allocation2 + $0xc] ss:$16 sps:$4 sm:$0xff]  }
  0x54   :  { %602 = vmatprep.subr.bf16.mxu1 %v7506_v16  ;;  %v7568_v37 = vld [vmem:[#allocation2] ss:$16 sps:$4 sm:$0xff]   ;;  %v7570_v38 = vld [vmem:[#allocation2 + $0x8] ss:$16 sps:$4 sm:$0xff]   ;;  %v7580_v39 = vld [vmem:[#allocation4 + $0xe4] ss:$16 sps:$4 sm:$0xff]  }
  0x55   :  { %v7582_v40 = vld [vmem:[#allocation4 + $0xec] ss:$16 sps:$4 sm:$0xff]   ;;  %v7584_v41 = vld [vmem:[#allocation4 + $0xe0] ss:$16 sps:$4 sm:$0xff]   ;;  %v7586_v42 = vld [vmem:[#allocation4 + $0xe8] ss:$16 sps:$4 sm:$0xff]  }
  0x56   :  { %562 = vmatpush1.bf16.msra.mxu0 %v7509_v17  ;;  %v7590_v43 = vld [vmem:[#allocation4 + $0xc4] ss:$16 sps:$4 sm:$0xff]   ;;  %v7592_v44 = vld [vmem:[#allocation4 + $0xcc] ss:$16 sps:$4 sm:$0xff]   ;;  %v7596_v45 = vld [vmem:[#allocation4 + $0xc0] ss:$16 sps:$4 sm:$0xff]  }
  0x57   :  { %603 = vmatpush1.bf16.msra.mxu1 %v7511_v18  ;;  %563 = vmatprep.subr.bf16.mxu0 %v7515_v19  ;;  %v7598_v46 = vld [vmem:[#allocation4 + $0xc8] ss:$16 sps:$4 sm:$0xff]   ;;  %v7602_v47 = vld [vmem:[#allocation4 + $0xa4] ss:$16 sps:$4 sm:$0xff]   ;;  %v7604_v48 = vld [vmem:[#allocation4 + $0xac] ss:$16 sps:$4 sm:$0xff]  }
  0x58   :  { %604 = vmatprep.subr.bf16.mxu1 %v7518_v20  ;;  %v7606_v49 = vld [vmem:[#allocation4 + $0xa0] ss:$16 sps:$4 sm:$0xff]   ;;  %v7608_v50 = vld [vmem:[#allocation4 + $0xa8] ss:$16 sps:$4 sm:$0xff]   ;;  %v7610_v51 = vld [vmem:[#allocation4 + $0x84] ss:$16 sps:$4 sm:$0xff]  }
  0x59   :  { %11543 = vst [vmem:[#allocation16_spill] sm:$0xff] %v7610_v51  ;;  %v7614_v52 = vld [vmem:[#allocation4 + $0x8c] ss:$16 sps:$4 sm:$0xff]   ;;  %v7618_v53 = vld [vmem:[#allocation4 + $0x80] ss:$16 sps:$4 sm:$0xff]  }
  0x5a   :  { %564 = vmatpush1.bf16.msra.mxu0 %v7521_v21  ;;  %11544 = vst [vmem:[#allocation17_spill] sm:$0xff] %v7614_v52  ;;  %11545 = vst [vmem:[#allocation18_spill] sm:$0xff] %v7618_v53  ;;  %v7620_v54 = vld [vmem:[#allocation4 + $0x88] ss:$16 sps:$4 sm:$0xff]   ;;  %v7622_v55 = vld [vmem:[#allocation4 + $0x64] ss:$16 sps:$4 sm:$0xff]  }
  0x5b   :  { %605 = vmatpush1.bf16.msra.mxu1 %v7525_v22  ;;  %565 = vmatprep.subr.bf16.mxu0 %v7527_v23  ;;  %11546 = vst [vmem:[#allocation19_spill] sm:$0xff] %v7620_v54  ;;  %11547 = vst [vmem:[#allocation20_spill] sm:$0xff] %v7622_v55  ;;  %v7624_v56 = vld [vmem:[#allocation4 + $0x6c] ss:$16 sps:$4 sm:$0xff]   ;;  %v7630_v57 = vld [vmem:[#allocation4 + $0x60] ss:$16 sps:$4 sm:$0xff]  }
  0x5c   :  { %606 = vmatprep.subr.bf16.mxu1 %v7530_v24  ;;  %11548 = vst [vmem:[#allocation21_spill] sm:$0xff] %v7624_v56  ;;  %11549 = vst [vmem:[#allocation22_spill] sm:$0xff] %v7630_v57  ;;  %v7632_v58 = vld [vmem:[#allocation4 + $0x68] ss:$16 sps:$4 sm:$0xff]   ;;  %v7640_v59 = vld [vmem:[#allocation4 + $0x44] ss:$16 sps:$4 sm:$0xff]  }
  0x5d   :  { %11550 = vst [vmem:[#allocation23_spill] sm:$0xff] %v7632_v58  ;;  %11551 = vst [vmem:[#allocation24_spill] sm:$0xff] %v7640_v59  ;;  %v7642_v60 = vld [vmem:[#allocation4 + $0x4c] ss:$16 sps:$4 sm:$0xff]   ;;  %v7644_v61 = vld [vmem:[#allocation4 + $0x40] ss:$16 sps:$4 sm:$0xff]  }
  0x5e   :  { %566 = vmatpush1.bf16.msra.mxu0 %v7533_v25  ;;  %11552 = vst [vmem:[#allocation25_spill] sm:$0xff] %v7642_v60  ;;  %11553 = vst [vmem:[#allocation26_spill] sm:$0xff] %v7644_v61  ;;  %v7646_v62 = vld [vmem:[#allocation4 + $0x48] ss:$16 sps:$4 sm:$0xff]   ;;  %v7652_v63 = vld [vmem:[#allocation4 + $0x24] ss:$16 sps:$4 sm:$0xff]  }
  0x5f   :  { %607 = vmatpush1.bf16.msra.mxu1 %v7535_v26  ;;  %567 = vmatprep.subr.bf16.mxu0 %v7539_v27  ;;  %11554 = vst [vmem:[#allocation27_spill] sm:$0xff] %v7646_v62  ;;  %11555 = vst [vmem:[#allocation28_spill] sm:$0xff] %v7652_v63  ;;  %v7654_v1 = vld [vmem:[#allocation4 + $0x2c] ss:$16 sps:$4 sm:$0xff]   ;;  %v7656_v2 = vld [vmem:[#allocation4 + $0x20] ss:$16 sps:$4 sm:$0xff]  }
  0x60   :  { %608 = vmatprep.subr.bf16.mxu1 %v7542_v28  ;;  %11556 = vst [vmem:[#allocation29_spill] sm:$0xff] %v7654_v1  ;;  %11557 = vst [vmem:[#allocation30_spill] sm:$0xff] %v7656_v2  ;;  %v7658_v3 = vld [vmem:[#allocation4 + $0x28] ss:$16 sps:$4 sm:$0xff]   ;;  %v7664_v4 = vld [vmem:[#allocation4 + $0x4] ss:$16 sps:$4 sm:$0xff]  }
  0x61   :  { %11558 = vst [vmem:[#allocation31_spill] sm:$0xff] %v7658_v3  ;;  %11559 = vst [vmem:[#allocation32_spill] sm:$0xff] %v7664_v4  ;;  %v7666_v5 = vld [vmem:[#allocation4 + $0xc] ss:$16 sps:$4 sm:$0xff]   ;;  %v7668_v0 = vld [vmem:[#allocation4] ss:$16 sps:$4 sm:$0xff]  }
  0x62   :  { %568 = vmatpush1.bf16.msra.mxu0 %v7545_v29  ;;  %11560 = vst [vmem:[#allocation33_spill] sm:$0xff] %v7666_v5  ;;  %11561 = vst [vmem:[#allocation34_spill] sm:$0xff] %v7668_v0 }
  0x63   :  { %609 = vmatpush1.bf16.msra.mxu1 %v7549_v30  ;;  %569 = vmatprep.subr.bf16.mxu0 %v7551_v31 }
  0x64   :  { %610 = vmatprep.subr.bf16.mxu1 %v7553_v32 }
  0x66   :  { %570 = vmatpush1.bf16.msra.mxu0 %v7556_v33 }
  0x67   :  { %611 = vmatpush1.bf16.msra.mxu1 %v7558_v34  ;;  %571 = vmatprep.subr.bf16.mxu0 %v7560_v35 }
  0x68   :  { %612 = vmatprep.subr.bf16.mxu1 %v7563_v36 }
  0x6a   :  { %572 = vmatpush1.bf16.msra.mxu0 %v7568_v37 }
  0x6b   :  { %613 = vmatpush1.bf16.msra.mxu1 %v7570_v38  ;;  %1004 = vmatprep.subr.bf16.mxu0 %v7580_v39 }
  0x6c   :  { %1045 = vmatprep.subr.bf16.mxu1 %v7582_v40 }
  0x6d   :  { %590 = vmatmul.mubr.bf16.vlgmr.msra.gmra.mxu0 %v10869_v10 }
  0x6e   :  { %631 = vmatmul.mubr.bf16.vlgmr.msra.gmra.mxu1 %v10869_v10  ;;  %1005 = vmatpush1.bf16.msra.mxu0 %v7584_v41  ;;  %v7670_v10 = vld [vmem:[#allocation4 + $0x8] ss:$16 sps:$4 sm:$0xff]  }
  0x6f   :  { %1046 = vmatpush1.bf16.msra.mxu1 %v7586_v42  ;;  %1006 = vmatprep.subr.bf16.mxu0 %v7590_v43  ;;  %11562 = vst [vmem:[#allocation35_spill] sm:$0xff] %v7670_v10 }
  0x70   :  { %1047 = vmatprep.subr.bf16.mxu1 %v7592_v44 }
  0x72   :  { %1007 = vmatpush1.bf16.msra.mxu0 %v7596_v45 }
  0x73   :  { %1048 = vmatpush1.bf16.msra.mxu1 %v7598_v46  ;;  %1008 = vmatprep.subr.bf16.mxu0 %v7602_v47 }
  0x74   :  { %1049 = vmatprep.subr.bf16.mxu1 %v7604_v48 }
  0x76   :  { %1009 = vmatpush1.bf16.msra.mxu0 %v7606_v49 }
  0x77   :  { %1050 = vmatpush1.bf16.msra.mxu1 %v7608_v50  ;;  %1010 = vmatprep.subr.bf16.mxu0 %v7610_v51 }
  0x78   :  { %1051 = vmatprep.subr.bf16.mxu1 %v7614_v52 }
  0x7a   :  { %1011 = vmatpush1.bf16.msra.mxu0 %v7618_v53 }
  0x7b   :  { %1052 = vmatpush1.bf16.msra.mxu1 %v7620_v54  ;;  %1012 = vmatprep.subr.bf16.mxu0 %v7622_v55 }
  0x7c   :  { %1053 = vmatprep.subr.bf16.mxu1 %v7624_v56 }
  0x7e   :  { %1013 = vmatpush1.bf16.msra.mxu0 %v7630_v57 }
  0x7f   :  { %1054 = vmatpush1.bf16.msra.mxu1 %v7632_v58  ;;  %1014 = vmatprep.subr.bf16.mxu0 %v7640_v59 }
  0x80   :  { %1055 = vmatprep.subr.bf16.mxu1 %v7642_v60 }
  0x82   :  { %1015 = vmatpush1.bf16.msra.mxu0 %v7644_v61 }
  0x83   :  { %1056 = vmatpush1.bf16.msra.mxu1 %v7646_v62  ;;  %1016 = vmatprep.subr.bf16.mxu0 %v7652_v63  ;;  %v7682_v63 = vld [vmem:[#allocation4 + $0x1e8] ss:$16 sps:$4 sm:$0xff]   ;;  %v7722_v62 = vld [vmem:[#allocation4 + $0x164] ss:$16 sps:$4 sm:$0xff]  }
  0x84   :  { %1057 = vmatprep.subr.bf16.mxu1 %v7654_v1  ;;  %v7676_v1 = vld [vmem:[#allocation4 + $0x1e4] ss:$16 sps:$4 sm:$0xff]   ;;  %11566 = vst [vmem:[#allocation39_spill] sm:$0xff] %v7682_v63  ;;  %11579 = vst [vmem:[#allocation52_spill] sm:$0xff] %v7722_v62 }
  0x85   :  { %11563 = vst [vmem:[#allocation36_spill] sm:$0xff] %v7676_v1 }
  0x86   :  { %1017 = vmatpush1.bf16.msra.mxu0 %v7656_v2  ;;  %v7678_v2 = vld [vmem:[#allocation4 + $0x1ec] ss:$16 sps:$4 sm:$0xff]  }
  0x87   :  { %1058 = vmatpush1.bf16.msra.mxu1 %v7658_v3  ;;  %1018 = vmatprep.subr.bf16.mxu0 %v7664_v4  ;;  %11564 = vst [vmem:[#allocation37_spill] sm:$0xff] %v7678_v2  ;;  %v7680_v3 = vld [vmem:[#allocation4 + $0x1e0] ss:$16 sps:$4 sm:$0xff]   ;;  %v7694_v4 = vld [vmem:[#allocation4 + $0x1c8] ss:$16 sps:$4 sm:$0xff]  }
  0x88   :  { %1059 = vmatprep.subr.bf16.mxu1 %v7666_v5  ;;  %11565 = vst [vmem:[#allocation38_spill] sm:$0xff] %v7680_v3  ;;  %v7688_v5 = vld [vmem:[#allocation4 + $0x1c4] ss:$16 sps:$4 sm:$0xff]   ;;  %11570 = vst [vmem:[#allocation43_spill] sm:$0xff] %v7694_v4 }
  0x89   :  { %11567 = vst [vmem:[#allocation40_spill] sm:$0xff] %v7688_v5 }
  0x8a   :  { %1019 = vmatpush1.bf16.msra.mxu0 %v7668_v0  ;;  %v7690_v0 = vld [vmem:[#allocation4 + $0x1cc] ss:$16 sps:$4 sm:$0xff]  }
  0x8b   :  { %1060 = vmatpush1.bf16.msra.mxu1 %v7670_v10  ;;  %1020 = vmatprep.subr.bf16.mxu0 %v7676_v1  ;;  %11568 = vst [vmem:[#allocation41_spill] sm:$0xff] %v7690_v0  ;;  %v7692_v10 = vld [vmem:[#allocation4 + $0x1c0] ss:$16 sps:$4 sm:$0xff]   ;;  %v7706_v1 = vld [vmem:[#allocation4 + $0x1a8] ss:$16 sps:$4 sm:$0xff]  }
  0x8c   :  { %1061 = vmatprep.subr.bf16.mxu1 %v7678_v2  ;;  %11569 = vst [vmem:[#allocation42_spill] sm:$0xff] %v7692_v10  ;;  %v7700_v2 = vld [vmem:[#allocation4 + $0x1a4] ss:$16 sps:$4 sm:$0xff]   ;;  %11574 = vst [vmem:[#allocation47_spill] sm:$0xff] %v7706_v1 }
  0x8d   :  { %11571 = vst [vmem:[#allocation44_spill] sm:$0xff] %v7700_v2 }
  0x8e   :  { %1021 = vmatpush2.bf16.msra.mxu0 %v7680_v3  ;;  %v7702_v3 = vld [vmem:[#allocation4 + $0x1ac] ss:$16 sps:$4 sm:$0xff]  }
  0x8f   :  { %1062 = vmatpush2.bf16.msra.mxu1 %v7682_v63  ;;  %1022 = vmatprep.subr.bf16.mxu0 %v7688_v5  ;;  %11572 = vst [vmem:[#allocation45_spill] sm:$0xff] %v7702_v3  ;;  %v7704_v63 = vld [vmem:[#allocation4 + $0x1a0] ss:$16 sps:$4 sm:$0xff]   ;;  %v7718_v5 = vld [vmem:[#allocation4 + $0x188] ss:$16 sps:$4 sm:$0xff]  }
  0x90   :  { %1063 = vmatprep.subr.bf16.mxu1 %v7690_v0  ;;  %11573 = vst [vmem:[#allocation46_spill] sm:$0xff] %v7704_v63  ;;  %v7712_v0 = vld [vmem:[#allocation4 + $0x184] ss:$16 sps:$4 sm:$0xff]   ;;  %11578 = vst [vmem:[#allocation51_spill] sm:$0xff] %v7718_v5 }
  0x91   :  { %11575 = vst [vmem:[#allocation48_spill] sm:$0xff] %v7712_v0 }
  0x92   :  { %1023 = vmatpush2.bf16.msra.mxu0 %v7692_v10  ;;  %v7714_v10 = vld [vmem:[#allocation4 + $0x18c] ss:$16 sps:$4 sm:$0xff]  }
  0x93   :  { %1064 = vmatpush2.bf16.msra.mxu1 %v7694_v4  ;;  %1024 = vmatprep.subr.bf16.mxu0 %v7700_v2  ;;  %11576 = vst [vmem:[#allocation49_spill] sm:$0xff] %v7714_v10  ;;  %v7716_v4 = vld [vmem:[#allocation4 + $0x180] ss:$16 sps:$4 sm:$0xff]   ;;  %v7724_v2 = vld [vmem:[#allocation4 + $0x16c] ss:$16 sps:$4 sm:$0xff]  }
  0x94   :  { %1065 = vmatprep.subr.bf16.mxu1 %v7702_v3  ;;  %11577 = vst [vmem:[#allocation50_spill] sm:$0xff] %v7716_v4  ;;  %11580 = vst [vmem:[#allocation53_spill] sm:$0xff] %v7724_v2  ;;  %v7734_v3 = vld [vmem:[#allocation4 + $0x144] ss:$16 sps:$4 sm:$0xff]  }
  0x95   :  { %11583 = vst [vmem:[#allocation56_spill] sm:$0xff] %v7734_v3 }
  0x96   :  { %1025 = vmatpush2.bf16.msra.mxu0 %v7704_v63  ;;  %v7730_v63 = vld [vmem:[#allocation4 + $0x168] ss:$16 sps:$4 sm:$0xff]  }
  0x97   :  { %1066 = vmatpush2.bf16.msra.mxu1 %v7706_v1  ;;  %1026 = vmatprep.subr.bf16.mxu0 %v7712_v0  ;;  %v7728_v1 = vld [vmem:[#allocation4 + $0x160] ss:$16 sps:$4 sm:$0xff]   ;;  %11582 = vst [vmem:[#allocation55_spill] sm:$0xff] %v7730_v63  ;;  %v7736_v0 = vld [vmem:[#allocation4 + $0x14c] ss:$16 sps:$4 sm:$0xff]  }
  0x98   :  { %1067 = vmatprep.subr.bf16.mxu1 %v7714_v10  ;;  %11581 = vst [vmem:[#allocation54_spill] sm:$0xff] %v7728_v1  ;;  %11584 = vst [vmem:[#allocation57_spill] sm:$0xff] %v7736_v0  ;;  %v7740_v10 = vld [vmem:[#allocation4 + $0x140] ss:$16 sps:$4 sm:$0xff]  }
  0x99   :  { %11585 = vst [vmem:[#allocation58_spill] sm:$0xff] %v7740_v10 }
  0x9a   :  { %1027 = vmatpush2.bf16.msra.mxu0 %v7716_v4  ;;  %v7742_v4 = vld [vmem:[#allocation4 + $0x148] ss:$16 sps:$4 sm:$0xff]  }
  0x9b   :  { %1068 = vmatpush2.bf16.msra.mxu1 %v7718_v5  ;;  %1028 = vmatprep.subr.bf16.mxu0 %v7722_v62  ;;  %11586 = vst [vmem:[#allocation59_spill] sm:$0xff] %v7742_v4  ;;  %v7746_v5 = vld [vmem:[#allocation4 + $0x124] ss:$16 sps:$4 sm:$0xff]   ;;  %v7748_v62 = vld [vmem:[#allocation4 + $0x12c] ss:$16 sps:$4 sm:$0xff]  }
  0x9c   :  { %1069 = vmatprep.subr.bf16.mxu1 %v7724_v2  ;;  %11587 = vst [vmem:[#allocation60_spill] sm:$0xff] %v7746_v5  ;;  %11588 = vst [vmem:[#allocation61_spill] sm:$0xff] %v7748_v62  ;;  %v10933_v2 = vmov 0.0|0.0  }
  0x9d   :  { %1036 = vmatprep.mubr.bf16.mxu0 %v10933_v2  ;;  %1077 = vmatprep.mubr.bf16.mxu1 %v10933_v2  ;;  %v7766_v2 = vld [vmem:[#allocation4 + $0x100] ss:$16 sps:$4 sm:$0xff]  }
  0x9e   :  { %1029 = vmatpush2.bf16.msra.mxu0 %v7728_v1  ;;  %v7756_v1 = vld [vmem:[#allocation4 + $0x128] ss:$16 sps:$4 sm:$0xff]   ;;  %11593 = vst [vmem:[#allocation66_spill] sm:$0xff] %v7766_v2 }
  0x9f   :  { %1070 = vmatpush2.bf16.msra.mxu1 %v7730_v63  ;;  %1030 = vmatprep.subr.bf16.mxu0 %v7734_v3  ;;  %v7754_v63 = vld [vmem:[#allocation4 + $0x120] ss:$16 sps:$4 sm:$0xff]   ;;  %11590 = vst [vmem:[#allocation63_spill] sm:$0xff] %v7756_v1  ;;  %v7762_v3 = vld [vmem:[#allocation4 + $0x10c] ss:$16 sps:$4 sm:$0xff]  }
  0xa0   :  { %1071 = vmatprep.subr.bf16.mxu1 %v7736_v0  ;;  %11589 = vst [vmem:[#allocation62_spill] sm:$0xff] %v7754_v63  ;;  %v7760_v0 = vld [vmem:[#allocation4 + $0x104] ss:$16 sps:$4 sm:$0xff]   ;;  %11592 = vst [vmem:[#allocation65_spill] sm:$0xff] %v7762_v3 }
  0xa1   :  { %11591 = vst [vmem:[#allocation64_spill] sm:$0xff] %v7760_v0 }
  0xa2   :  { %1031 = vmatpush2.bf16.msra.mxu0 %v7740_v10  ;;  %v7768_v10 = vld [vmem:[#allocation4 + $0x108] ss:$16 sps:$4 sm:$0xff]  }
  0xa3   :  { %1072 = vmatpush2.bf16.msra.mxu1 %v7742_v4  ;;  %1032 = vmatprep.subr.bf16.mxu0 %v7746_v5  ;;  %11594 = vst [vmem:[#allocation67_spill] sm:$0xff] %v7768_v10 }
  0xa4   :  { %1073 = vmatprep.subr.bf16.mxu1 %v7748_v62  ;;  %v134_v62 = vlaneseq }
  0xa6   :  { %1033 = vmatpush2.bf16.msra.mxu0 %v7754_v63  ;;  %v135_v63 = vshrl.u32 %v134_v62, 7 }
  0xa7   :  { %1074 = vmatpush2.bf16.msra.mxu1 %v7756_v1  ;;  %1034 = vmatprep.subr.bf16.mxu0 %v7760_v0  ;;  %v132_v1 = vld [vmem:[%s10856_s3] sm:$0xf] }
  0xa8   :  { %1075 = vmatprep.subr.bf16.mxu1 %v7762_v3  ;;  %v7776_v5 = vsub.s32 0, %v135_v63  ;;  %v7781_v4 = vsub.s32 1, %v135_v63  ;;  %v7785_v61 = vsub.s32 3, %v135_v63  ;;  %v7793_v54 = vsub.s32 2, %v135_v63 }
  0xaa   :  { %1035 = vmatpush2.bf16.msra.mxu0 %v7766_v2  ;;  %11595 = vst [vmem:[#allocation68_spill] sm:$0xff] %v7776_v5  ;;  %11596 = vst [vmem:[#allocation69_spill] sm:$0xff] %v7781_v4  ;;  %v137_v3 = vrot.slane %v132_v1, %v7776_v5  ;;  %v149_v58 = vrot.slane %v132_v1, %v7785_v61 }
  0xab   :  { %1076 = vmatpush2.bf16.msra.mxu1 %v7768_v10  ;;  %1104 = vmatprep.subr.bf16.mxu0 %v7480_v6  ;;  %v141_v10 = vrot.slane %v132_v1, %v7781_v4  ;;  %11597 = vst [vmem:[#allocation70_spill] sm:$0xff] %v7785_v61  ;;  %11599 = vst [vmem:[#allocation72_spill] sm:$0xff] %v7793_v54 }
  0xac   :  { %1145 = vmatprep.subr.bf16.mxu1 %v7482_v7 }
 0x10c   :  { %v224_v0 = vpop.f32.mrf.mxu0  ;;  %v295_v2 = vpop.f32.mrf.mxu1 }
 0x10d   :  { %v7787_v7 = vadd.f32 %v224_v0, %v137_v3 }
 0x10e   :  { %v226_v6 = vpop.f32.mrf.mxu0  ;;  %v297_v62 = vpop.f32.mrf.mxu1 }
 0x10f   :  { %11598 = vst [vmem:[#allocation71_spill] sm:$0xff] %v7787_v7  ;;  %v7789_v59 = vadd.f32 %v226_v6, %v141_v10  ;;  %v7796_v51 = vadd.f32 %v297_v62, %v149_v58  ;;  %v145_v6 = vrot.slane %v132_v1, %v7793_v54 }
 0x111   :  { %v7800_v61 = vadd.f32 %v295_v2, %v145_v6 }
 0x12d   :  { %v591_v60 = vpop.f32.mrf.mxu0 }
 0x12e   :  { %v639_v57 = vadd.f32 %v591_v60, %v7787_v7  ;;  %v632_v56 = vpop.f32.mrf.mxu1 }
 0x12f   :  { %v593_v55 = vpop.f32.mrf.mxu0 }
 0x130   :  { %v643_v5 = vmul.f32 0.5, %v639_v57  ;;  %v640_v4 = vadd.f32 %v593_v55, %v7789_v59  ;;  %v634_v53 = vpop.f32.mrf.mxu1  ;;  %v641_v57 = vadd.f32 %v632_v56, %v7800_v61 }
 0x131   :  { %v595_v52 = vpop.f32.mrf.mxu0  ;;  %v642_v60 = vadd.f32 %v634_v53, %v7796_v51 }
 0x132   :  { %6496 = vtanh.f32 %v643_v5  ;;  %v644_v0 = vmul.f32 0.5, %v640_v4  ;;  %v636_v3 = vpop.f32.mrf.mxu1  ;;  %v645_v55 = vmul.f32 0.5, %v641_v57  ;;  %v11600_v57 = vmov 0  }
 0x133   :  { %v596_v10 = vpop.f32.mrf.mxu0 }
 0x134   :  { %6498 = vtanh.f32 %v644_v0  ;;  %v637_v7 = vpop.f32.mrf.mxu1 }
 0x135   :  { %6500 = vtanh.f32 %v642_v60 }
 0x136   :  { %6502 = vtanh.f32 %v645_v55  ;;  %v11631_v55 = vld [vmem:[#allocation46_spill] sm:$0xff] }
 0x13f   :  { %v6497_v63 = vpop.eup %6496 }
 0x140   :  { %v649_v52 = vmul.f32 0.5, %v6497_v63  ;;  %v11632_v63 = vld [vmem:[#allocation47_spill] sm:$0xff] }
 0x141   :  { %v6499_v58 = vpop.eup %6498 }
 0x142   :  { %v652_v62 = vadd.f32 0.5, %v649_v52  ;;  %v650_v4 = vmul.f32 0.5, %v6499_v58  ;;  %v6501_v3 = vpop.eup %6500  ;;  %v11633_v52 = vld [vmem:[#allocation48_spill] sm:$0xff]  ;;  %v11634_v58 = vld [vmem:[#allocation49_spill] sm:$0xff] }
 0x143   :  { %v6503_v53 = vpop.eup %6502 }
 0x144   :  { %v653_v5 = vadd.f32 0.5, %v650_v4  ;;  %v657_v1 = vmul.f32 %v6501_v3, %v652_v62  ;;  %v651_v2 = vmul.f32 0.5, %v6503_v53  ;;  %v11635_v62 = vld [vmem:[#allocation50_spill] sm:$0xff]  ;;  %v11636_v4 = vld [vmem:[#allocation51_spill] sm:$0xff]  ;;  %v11638_v3 = vld [vmem:[#allocation53_spill] sm:$0xff] }
 0x145   :  { %v11641_v53 = vld [vmem:[#allocation56_spill] sm:$0xff] }
 0x146   :  { %v656_v10 = vmul.f32 0.0, %v653_v5  ;;  %v654_v7 = vadd.f32 0.5, %v651_v2  ;;  %v11637_v5 = vld [vmem:[#allocation52_spill] sm:$0xff]  ;;  %v11642_v2 = vld [vmem:[#allocation57_spill] sm:$0xff] }
 0x148   :  { %v7803_v0 = vadd.f32 %v657_v1, %v656_v10  ;;  %v11639_v10 = vld [vmem:[#allocation54_spill] sm:$0xff]  ;;  %v11640_v1 = vld [vmem:[#allocation55_spill] sm:$0xff] }
 0x14a   :  { %6504 = vtanh.f32 %v7803_v0 }
 0x157   :  { %v6505_v6 = vpop.eup %6504 }
 0x158   :  { %v660_v56 = vmul.f32 %v6505_v6, %v654_v7  ;;  %v11643_v7 = vld [vmem:[#allocation58_spill] sm:$0xff]  ;;  %v11644_v6 = vld [vmem:[#allocation59_spill] sm:$0xff] }
 0x15a   :  { %v661_v60 = vpack.c.bf16 %v660_v56, %v660_v56  ;;  %v11645_v56 = vld [vmem:[#allocation60_spill] sm:$0xff] }
 0x15c   :  { %1037 = vmatmul.mubr.bf16.vlgmr.msra.gmra.mxu0 %v661_v60  ;;  %1078 = vmatmul.mubr.bf16.vlgmr.msra.gmra.mxu1 %v661_v60 }
 0x15d   :  { %1105 = vmatpush1.bf16.msra.mxu0 %v7484_v8  ;;  %1146 = vmatpush1.bf16.msra.mxu1 %v7487_v9  ;;  %v11601_v8 = vld [vmem:[#allocation16_spill] sm:$0xff]  ;;  %v11602_v9 = vld [vmem:[#allocation17_spill] sm:$0xff] }
 0x15e   :  { %1106 = vmatprep.subr.bf16.mxu0 %v7492_v11  ;;  %1147 = vmatprep.subr.bf16.mxu1 %v7495_v12  ;;  %v11603_v11 = vld [vmem:[#allocation18_spill] sm:$0xff]  ;;  %v11604_v12 = vld [vmem:[#allocation19_spill] sm:$0xff] }
 0x15f   :  { %1136 = vmatprep.mubr.bf16.mxu0 %v11600_v57  ;;  %1177 = vmatprep.mubr.bf16.mxu1 %v11600_v57 }
 0x161   :  { %1107 = vmatpush1.bf16.msra.mxu0 %v7497_v13  ;;  %1148 = vmatpush1.bf16.msra.mxu1 %v7499_v14  ;;  %v11605_v13 = vld [vmem:[#allocation20_spill] sm:$0xff]  ;;  %v11606_v14 = vld [vmem:[#allocation21_spill] sm:$0xff] }
 0x162   :  { %1108 = vmatprep.subr.bf16.mxu0 %v7503_v15  ;;  %1149 = vmatprep.subr.bf16.mxu1 %v7506_v16  ;;  %v11607_v15 = vld [vmem:[#allocation22_spill] sm:$0xff]  ;;  %v11608_v16 = vld [vmem:[#allocation23_spill] sm:$0xff] }
 0x165   :  { %1109 = vmatpush1.bf16.msra.mxu0 %v7509_v17  ;;  %1150 = vmatpush1.bf16.msra.mxu1 %v7511_v18  ;;  %v11609_v17 = vld [vmem:[#allocation24_spill] sm:$0xff]  ;;  %v11610_v18 = vld [vmem:[#allocation25_spill] sm:$0xff] }
 0x166   :  { %1110 = vmatprep.subr.bf16.mxu0 %v7515_v19  ;;  %1151 = vmatprep.subr.bf16.mxu1 %v7518_v20  ;;  %v11611_v19 = vld [vmem:[#allocation26_spill] sm:$0xff]  ;;  %v11612_v20 = vld [vmem:[#allocation27_spill] sm:$0xff] }
 0x169   :  { %1111 = vmatpush1.bf16.msra.mxu0 %v7521_v21  ;;  %1152 = vmatpush1.bf16.msra.mxu1 %v7525_v22  ;;  %v11613_v21 = vld [vmem:[#allocation28_spill] sm:$0xff]  ;;  %v11614_v22 = vld [vmem:[#allocation29_spill] sm:$0xff] }
 0x16a   :  { %1112 = vmatprep.subr.bf16.mxu0 %v7527_v23  ;;  %1153 = vmatprep.subr.bf16.mxu1 %v7530_v24  ;;  %v11615_v23 = vld [vmem:[#allocation30_spill] sm:$0xff]  ;;  %v11616_v24 = vld [vmem:[#allocation31_spill] sm:$0xff] }
 0x16d   :  { %1113 = vmatpush1.bf16.msra.mxu0 %v7533_v25  ;;  %1154 = vmatpush1.bf16.msra.mxu1 %v7535_v26  ;;  %v11617_v25 = vld [vmem:[#allocation32_spill] sm:$0xff]  ;;  %v11618_v26 = vld [vmem:[#allocation33_spill] sm:$0xff] }
 0x16e   :  { %1114 = vmatprep.subr.bf16.mxu0 %v7539_v27  ;;  %1155 = vmatprep.subr.bf16.mxu1 %v7542_v28  ;;  %v11619_v27 = vld [vmem:[#allocation34_spill] sm:$0xff]  ;;  %v11620_v28 = vld [vmem:[#allocation35_spill] sm:$0xff] }
 0x171   :  { %1115 = vmatpush1.bf16.msra.mxu0 %v7545_v29  ;;  %1156 = vmatpush1.bf16.msra.mxu1 %v7549_v30  ;;  %v11621_v29 = vld [vmem:[#allocation36_spill] sm:$0xff]  ;;  %v11622_v30 = vld [vmem:[#allocation37_spill] sm:$0xff] }
 0x172   :  { %1116 = vmatprep.subr.bf16.mxu0 %v7551_v31  ;;  %1157 = vmatprep.subr.bf16.mxu1 %v7553_v32  ;;  %v11623_v31 = vld [vmem:[#allocation38_spill] sm:$0xff]  ;;  %v11624_v32 = vld [vmem:[#allocation39_spill] sm:$0xff] }
 0x175   :  { %1117 = vmatpush1.bf16.msra.mxu0 %v7556_v33  ;;  %1158 = vmatpush1.bf16.msra.mxu1 %v7558_v34  ;;  %v11625_v33 = vld [vmem:[#allocation40_spill] sm:$0xff]  ;;  %v11626_v34 = vld [vmem:[#allocation41_spill] sm:$0xff] }
 0x176   :  { %1118 = vmatprep.subr.bf16.mxu0 %v7560_v35  ;;  %1159 = vmatprep.subr.bf16.mxu1 %v7563_v36  ;;  %v11627_v35 = vld [vmem:[#allocation42_spill] sm:$0xff]  ;;  %v11628_v36 = vld [vmem:[#allocation43_spill] sm:$0xff] }
 0x179   :  { %1119 = vmatpush1.bf16.msra.mxu0 %v7568_v37  ;;  %1160 = vmatpush1.bf16.msra.mxu1 %v7570_v38  ;;  %v11629_v37 = vld [vmem:[#allocation44_spill] sm:$0xff]  ;;  %v11630_v38 = vld [vmem:[#allocation45_spill] sm:$0xff] }
 0x17a   :  { %1236 = vmatprep.subr.bf16.mxu0 %v7580_v39  ;;  %1277 = vmatprep.subr.bf16.mxu1 %v7582_v40 }
 0x17c   :  { %1137 = vmatmul.mubr.bf16.vlgmr.msra.gmra.mxu0 %v661_v60  ;;  %1178 = vmatmul.mubr.bf16.vlgmr.msra.gmra.mxu1 %v661_v60  ;;  %v11646_v60 = vld [vmem:[#allocation61_spill] sm:$0xff] }
 0x17d   :  { %1237 = vmatpush1.bf16.msra.mxu0 %v7584_v41  ;;  %1278 = vmatpush1.bf16.msra.mxu1 %v7586_v42 }
 0x17e   :  { %1238 = vmatprep.subr.bf16.mxu0 %v7590_v43  ;;  %1279 = vmatprep.subr.bf16.mxu1 %v7592_v44 }
 0x181   :  { %1239 = vmatpush1.bf16.msra.mxu0 %v7596_v45  ;;  %1280 = vmatpush1.bf16.msra.mxu1 %v7598_v46 }
 0x182   :  { %1240 = vmatprep.subr.bf16.mxu0 %v7602_v47  ;;  %1281 = vmatprep.subr.bf16.mxu1 %v7604_v48 }
 0x185   :  { %1241 = vmatpush1.bf16.msra.mxu0 %v7606_v49  ;;  %1282 = vmatpush1.bf16.msra.mxu1 %v7608_v50 }
 0x186   :  { %1242 = vmatprep.subr.bf16.mxu0 %v11601_v8  ;;  %1283 = vmatprep.subr.bf16.mxu1 %v11602_v9 }
 0x189   :  { %1243 = vmatpush1.bf16.msra.mxu0 %v11603_v11  ;;  %1284 = vmatpush1.bf16.msra.mxu1 %v11604_v12 }
 0x18a   :  { %1244 = vmatprep.subr.bf16.mxu0 %v11605_v13  ;;  %1285 = vmatprep.subr.bf16.mxu1 %v11606_v14 }
 0x18d   :  { %1245 = vmatpush1.bf16.msra.mxu0 %v11607_v15  ;;  %1286 = vmatpush1.bf16.msra.mxu1 %v11608_v16 }
 0x18e   :  { %1246 = vmatprep.subr.bf16.mxu0 %v11609_v17  ;;  %1287 = vmatprep.subr.bf16.mxu1 %v11610_v18 }
 0x191   :  { %1247 = vmatpush1.bf16.msra.mxu0 %v11611_v19  ;;  %1288 = vmatpush1.bf16.msra.mxu1 %v11612_v20 }
 0x192   :  { %1248 = vmatprep.subr.bf16.mxu0 %v11613_v21  ;;  %1289 = vmatprep.subr.bf16.mxu1 %v11614_v22 }
 0x195   :  { %1249 = vmatpush1.bf16.msra.mxu0 %v11615_v23  ;;  %1290 = vmatpush1.bf16.msra.mxu1 %v11616_v24 }
 0x196   :  { %1250 = vmatprep.subr.bf16.mxu0 %v11617_v25  ;;  %1291 = vmatprep.subr.bf16.mxu1 %v11618_v26 }
 0x199   :  { %1251 = vmatpush1.bf16.msra.mxu0 %v11619_v27  ;;  %1292 = vmatpush1.bf16.msra.mxu1 %v11620_v28 }
 0x19a   :  { %1252 = vmatprep.subr.bf16.mxu0 %v11621_v29  ;;  %1293 = vmatprep.subr.bf16.mxu1 %v11622_v30 }
 0x19d   :  { %1253 = vmatpush2.bf16.msra.mxu0 %v11623_v31  ;;  %1294 = vmatpush2.bf16.msra.mxu1 %v11624_v32 }
 0x19e   :  { %1254 = vmatprep.subr.bf16.mxu0 %v11625_v33  ;;  %1295 = vmatprep.subr.bf16.mxu1 %v11626_v34 }
 0x1a1   :  { %1255 = vmatpush2.bf16.msra.mxu0 %v11627_v35  ;;  %1296 = vmatpush2.bf16.msra.mxu1 %v11628_v36 }
 0x1a2   :  { %1256 = vmatprep.subr.bf16.mxu0 %v11629_v37  ;;  %1297 = vmatprep.subr.bf16.mxu1 %v11630_v38 }
 0x1a5   :  { %1257 = vmatpush2.bf16.msra.mxu0 %v11631_v55  ;;  %1298 = vmatpush2.bf16.msra.mxu1 %v11632_v63 }
 0x1a6   :  { %1258 = vmatprep.subr.bf16.mxu0 %v11633_v52  ;;  %1299 = vmatprep.subr.bf16.mxu1 %v11634_v58 }
 0x1a9   :  { %1259 = vmatpush2.bf16.msra.mxu0 %v11635_v62  ;;  %1300 = vmatpush2.bf16.msra.mxu1 %v11636_v4  ;;  %v11647_v4 = vld [vmem:[#allocation62_spill] sm:$0xff] }
 0x1aa   :  { %1260 = vmatprep.subr.bf16.mxu0 %v11637_v5  ;;  %1301 = vmatprep.subr.bf16.mxu1 %v11638_v3  ;;  %v11648_v5 = vld [vmem:[#allocation63_spill] sm:$0xff]  ;;  %v11649_v3 = vld [vmem:[#allocation64_spill] sm:$0xff]  ;;  %v11659_v62 = vld [vmem:[#allocation70_spill] sm:$0xff] }
 0x1ad   :  { %1261 = vmatpush2.bf16.msra.mxu0 %v11639_v10  ;;  %1302 = vmatpush2.bf16.msra.mxu1 %v11640_v1  ;;  %v11650_v10 = vld [vmem:[#allocation65_spill] sm:$0xff]  ;;  %v11651_v1 = vld [vmem:[#allocation66_spill] sm:$0xff] }
 0x1ae   :  { %1262 = vmatprep.subr.bf16.mxu0 %v11641_v53  ;;  %1303 = vmatprep.subr.bf16.mxu1 %v11642_v2  ;;  %v11652_v53 = vld [vmem:[#allocation67_spill] sm:$0xff]  ;;  %v7902_v2 = vld [vmem:[#allocation2 + $0xe4] ss:$16 sps:$4 sm:$0xff]  }
 0x1af   :  { %11653 = vst [vmem:[#allocation16_spill] sm:$0xff] %v7902_v2 }
 0x1b1   :  { %1263 = vmatpush2.bf16.msra.mxu0 %v11643_v7  ;;  %1304 = vmatpush2.bf16.msra.mxu1 %v11644_v6  ;;  %v7905_v6 = vld [vmem:[#allocation2 + $0xec] ss:$16 sps:$4 sm:$0xff]  }
 0x1b2   :  { %1264 = vmatprep.subr.bf16.mxu0 %v11645_v56  ;;  %1305 = vmatprep.subr.bf16.mxu1 %v11646_v60  ;;  %11654 = vst [vmem:[#allocation17_spill] sm:$0xff] %v7905_v6 }
 0x1b5   :  { %1265 = vmatpush2.bf16.msra.mxu0 %v11647_v4  ;;  %1306 = vmatpush2.bf16.msra.mxu1 %v11648_v5  ;;  %v396_v5 = vld [vmem:[%s10858_s5] sm:$0xf] }
 0x1b6   :  { %1266 = vmatprep.subr.bf16.mxu0 %v11649_v3  ;;  %1307 = vmatprep.subr.bf16.mxu1 %v11650_v10  ;;  %v11655_v4 = vld [vmem:[#allocation68_spill] sm:$0xff]  ;;  %v11657_v10 = vld [vmem:[#allocation69_spill] sm:$0xff]  ;;  %v7919_v58 = vrot.slane %v396_v5, %v11659_v62  ;;  %v7924_v36 = vrot.slane %v396_v5, %v7793_v54  ;;  %v11663_v54 = vld [vmem:[#allocation71_spill] sm:$0xff] }
 0x1b7   :  { %v7912_v3 = vrot.slane %v396_v5, %v11655_v4  ;;  %v7915_v60 = vrot.slane %v396_v5, %v11657_v10 }
 0x1b8   :  { %11660 = vst [vmem:[#allocation20_spill] sm:$0xff] %v7919_v58  ;;  %11661 = vst [vmem:[#allocation21_spill] sm:$0xff] %v7924_v36 }
 0x1b9   :  { %1267 = vmatpush2.bf16.msra.mxu0 %v11651_v1  ;;  %1308 = vmatpush2.bf16.msra.mxu1 %v11652_v53  ;;  %11656 = vst [vmem:[#allocation18_spill] sm:$0xff] %v7912_v3  ;;  %11658 = vst [vmem:[#allocation19_spill] sm:$0xff] %v7915_v60 }
 0x1ba   :  { %1336 = vmatprep.subr.bf16.mxu0 %v7902_v2  ;;  %1377 = vmatprep.subr.bf16.mxu1 %v7905_v6 }
 0x21c   :  { %v1038_v1 = vpop.f32.mrf.mxu0  ;;  %v1079_v53 = vpop.f32.mrf.mxu1 }
 0x21d   :  { %v1039_v56 = vadd.f32 %v1038_v1, %v7912_v3  ;;  %v1080_v1 = vadd.f32 %v1079_v53, %v7924_v36 }
 0x21e   :  { %v1040_v7 = vpop.f32.mrf.mxu0  ;;  %v1081_v2 = vpop.f32.mrf.mxu1 }
 0x21f   :  { %v1086_v6 = vmul.f32 0.5, %v1039_v56  ;;  %v1041_v52 = vadd.f32 %v1040_v7, %v7915_v60  ;;  %v1082_v10 = vadd.f32 %v1081_v2, %v7919_v58  ;;  %v1088_v62 = vmul.f32 0.5, %v1080_v1 }
 0x220   :  { %v1042_v63 = vpop.f32.mrf.mxu0  ;;  %v1083_v55 = vpop.f32.mrf.mxu1 }
 0x221   :  { %6506 = vtanh.f32 %v1086_v6  ;;  %v1087_v4 = vmul.f32 0.5, %v1041_v52 }
 0x222   :  { %v1043_v38 = vpop.f32.mrf.mxu0  ;;  %v1084_v37 = vpop.f32.mrf.mxu1 }
 0x223   :  { %6508 = vtanh.f32 %v1087_v4 }
 0x224   :  { %6510 = vtanh.f32 %v1082_v10 }
 0x225   :  { %6512 = vtanh.f32 %v1088_v62 }
 0x22e   :  { %v6507_v3 = vpop.eup %6506 }
 0x22f   :  { %v1092_v56 = vmul.f32 0.5, %v6507_v3 }
 0x230   :  { %v6509_v35 = vpop.eup %6508 }
 0x231   :  { %v1095_v7 = vadd.f32 0.5, %v1092_v56  ;;  %v1093_v55 = vmul.f32 0.5, %v6509_v35  ;;  %v6511_v52 = vpop.eup %6510 }
 0x232   :  { %v6513_v6 = vpop.eup %6512 }
 0x233   :  { %v1096_v63 = vadd.f32 0.5, %v1093_v55  ;;  %v1100_v37 = vmul.f32 %v6511_v52, %v1095_v7  ;;  %v1094_v35 = vmul.f32 0.5, %v6513_v6 }
 0x235   :  { %v1099_v38 = vmul.f32 0.0, %v1096_v63 }
 0x237   :  { %v7927_v4 = vadd.f32 %v1100_v37, %v1099_v38 }
 0x239   :  { %11662 = vst [vmem:[#allocation22_spill] sm:$0xff] %v7927_v4  ;;  %6514 = vtanh.f32 %v7927_v4  ;;  %v1097_v4 = vadd.f32 0.5, %v1094_v35 }
 0x23c   :  { %v1138_v5 = vpop.f32.mrf.mxu0  ;;  %v1179_v2 = vpop.f32.mrf.mxu1 }
 0x23d   :  { %v1190_v10 = vrot.slane %v1138_v5, 7  ;;  %v1192_v60 = vrot.slane %v1179_v2, 7 }
 0x23e   :  { %v1140_v53 = vpop.f32.mrf.mxu0  ;;  %v1181_v1 = vpop.f32.mrf.mxu1 }
 0x23f   :  { %v1198_v3 = vadd.f32 %v1190_v10, %v11663_v54  ;;  %v1191_v36 = vrot.slane %v1140_v53, 7  ;;  %v1193_v7 = vrot.slane %v1181_v1, 7  ;;  %v1200_v53 = vadd.f32 %v1192_v60, %v7800_v61 }
 0x240   :  { %v1142_v56 = vpop.f32.mrf.mxu0  ;;  %v1183_v62 = vpop.f32.mrf.mxu1 }
 0x241   :  { %v1202_v55 = vmul.f32 0.5, %v1198_v3  ;;  %v1199_v63 = vadd.f32 %v1191_v36, %v7789_v59  ;;  %v1201_v5 = vadd.f32 %v1193_v7, %v7796_v51  ;;  %v1204_v56 = vmul.f32 0.5, %v1200_v53 }
 0x242   :  { %v1143_v52 = vpop.f32.mrf.mxu0  ;;  %v1184_v38 = vpop.f32.mrf.mxu1  ;;  %v1216_v7 = vrot.slane %v7803_v0, 7  ;;  %v7942_v0 = vld [vmem:[#allocation2 + $0xe0] ss:$16 sps:$4 sm:$0xff]  }
 0x243   :  { %6516 = vtanh.f32 %v1202_v55  ;;  %v1203_v37 = vmul.f32 0.5, %v1199_v63 }
 0x245   :  { %6518 = vtanh.f32 %v1203_v37 }
 0x246   :  { %v6515_v58 = vpop.eup %6514  ;;  %6520 = vtanh.f32 %v1201_v5 }
 0x247   :  { %v1103_v34 = vmul.f32 %v6515_v58, %v1097_v4  ;;  %6522 = vtanh.f32 %v1204_v56  ;;  %v7951_v56 = vld [vmem:[#allocation2 + $0xcc] ss:$16 sps:$4 sm:$0xff]  }
 0x249   :  { %v1224_v10 = vrot.slane %v1103_v34, 7 }
 0x24b   :  { %v1227_v6 = vpack.c.bf16 %v1224_v10, %v1224_v10 }
 0x24d   :  { %v1232_v3 = vshrl.u32 %v1227_v6, 16  ;;  %v7945_v6 = vld [vmem:[#allocation2 + $0xe8] ss:$16 sps:$4 sm:$0xff]  }
 0x24f   :  { %1268 = vmatprep.mubr.bf16.mxu0 %v1232_v3  ;;  %1309 = vmatprep.mubr.bf16.mxu1 %v1232_v3  ;;  %v7948_v3 = vld [vmem:[#allocation2 + $0xc4] ss:$16 sps:$4 sm:$0xff]  }
 0x250   :  { %v6517_v36 = vpop.eup %6516 }
 0x251   :  { %v1208_v1 = vmul.f32 0.5, %v6517_v36  ;;  %v7956_v36 = vld [vmem:[#allocation2 + $0xc0] ss:$16 sps:$4 sm:$0xff]  }
 0x252   :  { %v6519_v62 = vpop.eup %6518 }
 0x253   :  { %v1211_v55 = vadd.f32 0.5, %v1208_v1  ;;  %v1209_v35 = vmul.f32 0.5, %v6519_v62  ;;  %v6521_v2 = vpop.eup %6520  ;;  %v7959_v1 = vld [vmem:[#allocation2 + $0xc8] ss:$16 sps:$4 sm:$0xff]   ;;  %v7962_v62 = vld [vmem:[#allocation2 + $0xa4] ss:$16 sps:$4 sm:$0xff]  }
 0x254   :  { %v6523_v60 = vpop.eup %6522 }
 0x255   :  { %v1212_v63 = vadd.f32 0.5, %v1209_v35  ;;  %v1219_v4 = vmul.f32 %v6521_v2, %v1211_v55  ;;  %v1210_v52 = vmul.f32 0.5, %v6523_v60  ;;  %v7965_v55 = vld [vmem:[#allocation2 + $0xac] ss:$16 sps:$4 sm:$0xff]   ;;  %v7968_v35 = vld [vmem:[#allocation2 + $0xa0] ss:$16 sps:$4 sm:$0xff]  }
 0x256   :  { %v7977_v2 = vld [vmem:[#allocation2 + $0x8c] ss:$16 sps:$4 sm:$0xff]   ;;  %v7986_v60 = vld [vmem:[#allocation2 + $0x64] ss:$16 sps:$4 sm:$0xff]  }
 0x257   :  { %v1218_v58 = vmul.f32 %v1216_v7, %v1212_v63  ;;  %v1213_v38 = vadd.f32 0.5, %v1210_v52  ;;  %v7971_v63 = vld [vmem:[#allocation2 + $0xa8] ss:$16 sps:$4 sm:$0xff]   ;;  %v7974_v7 = vld [vmem:[#allocation2 + $0x84] ss:$16 sps:$4 sm:$0xff]   ;;  %11664 = vst [vmem:[#allocation23_spill] sm:$0xff] %v7986_v60 }
 0x258   :  { %v7989_v52 = vld [vmem:[#allocation2 + $0x6c] ss:$16 sps:$4 sm:$0xff]  }
 0x259   :  { %v7935_v34 = vadd.f32 %v1219_v4, %v1218_v58  ;;  %v7980_v58 = vld [vmem:[#allocation2 + $0x80] ss:$16 sps:$4 sm:$0xff]   ;;  %v7983_v4 = vld [vmem:[#allocation2 + $0x88] ss:$16 sps:$4 sm:$0xff]   ;;  %11665 = vst [vmem:[#allocation24_spill] sm:$0xff] %v7989_v52 }
 0x25b   :  { %6524 = vtanh.f32 %v7935_v34 }
 0x268   :  { %v6525_v37 = vpop.eup %6524 }
 0x269   :  { %v1222_v5 = vmul.f32 %v6525_v37, %v1213_v38  ;;  %v7992_v38 = vld [vmem:[#allocation2 + $0x60] ss:$16 sps:$4 sm:$0xff]   ;;  %v7995_v37 = vld [vmem:[#allocation2 + $0x68] ss:$16 sps:$4 sm:$0xff]  }
 0x26a   :  { %11666 = vst [vmem:[#allocation25_spill] sm:$0xff] %v7992_v38  ;;  %11667 = vst [vmem:[#allocation26_spill] sm:$0xff] %v7995_v37 }
 0x26b   :  { %v1226_v10 = vpack.c.bf16 %v1222_v5, %v1222_v5  ;;  %v7998_v5 = vld [vmem:[#allocation2 + $0x44] ss:$16 sps:$4 sm:$0xff]  }
 0x26c   :  { %11668 = vst [vmem:[#allocation27_spill] sm:$0xff] %v7998_v5 }
 0x26d   :  { %v7938_v53 = vshrl.u32 %v1226_v10, 16  ;;  %v8001_v10 = vld [vmem:[#allocation2 + $0x4c] ss:$16 sps:$4 sm:$0xff]  }
 0x26e   :  { %11669 = vst [vmem:[#allocation28_spill] sm:$0xff] %v8001_v10 }
 0x26f   :  { %1269 = vmatmul.mubr.bf16.vlgmr.msra.gmra.mxu0 %v7938_v53  ;;  %1310 = vmatmul.mubr.bf16.vlgmr.msra.gmra.mxu1 %v7938_v53 }
 0x270   :  { %1337 = vmatpush1.bf16.msra.mxu0 %v7942_v0  ;;  %1378 = vmatpush1.bf16.msra.mxu1 %v7945_v6 }
 0x271   :  { %1338 = vmatprep.subr.bf16.mxu0 %v7948_v3  ;;  %1379 = vmatprep.subr.bf16.mxu1 %v7951_v56 }
 0x272   :  { %1368 = vmatprep.mubr.bf16.mxu0 %v11600_v57  ;;  %1409 = vmatprep.mubr.bf16.mxu1 %v11600_v57 }
 0x274   :  { %1339 = vmatpush1.bf16.msra.mxu0 %v7956_v36  ;;  %1380 = vmatpush1.bf16.msra.mxu1 %v7959_v1 }
 0x275   :  { %1340 = vmatprep.subr.bf16.mxu0 %v7962_v62  ;;  %1381 = vmatprep.subr.bf16.mxu1 %v7965_v55 }
 0x278   :  { %1341 = vmatpush1.bf16.msra.mxu0 %v7968_v35  ;;  %1382 = vmatpush1.bf16.msra.mxu1 %v7971_v63 }
 0x279   :  { %1342 = vmatprep.subr.bf16.mxu0 %v7974_v7  ;;  %1383 = vmatprep.subr.bf16.mxu1 %v7977_v2 }
 0x27c   :  { %1343 = vmatpush1.bf16.msra.mxu0 %v7980_v58  ;;  %1384 = vmatpush1.bf16.msra.mxu1 %v7983_v4 }
 0x27d   :  { %1344 = vmatprep.subr.bf16.mxu0 %v7986_v60  ;;  %1385 = vmatprep.subr.bf16.mxu1 %v7989_v52  ;;  %v8004_v60 = vld [vmem:[#allocation2 + $0x40] ss:$16 sps:$4 sm:$0xff]   ;;  %v8007_v52 = vld [vmem:[#allocation2 + $0x48] ss:$16 sps:$4 sm:$0xff]  }
 0x27e   :  { %11670 = vst [vmem:[#allocation29_spill] sm:$0xff] %v8004_v60  ;;  %11671 = vst [vmem:[#allocation30_spill] sm:$0xff] %v8007_v52 }
 0x280   :  { %1345 = vmatpush1.bf16.msra.mxu0 %v7992_v38  ;;  %1386 = vmatpush1.bf16.msra.mxu1 %v7995_v37  ;;  %v8010_v38 = vld [vmem:[#allocation2 + $0x24] ss:$16 sps:$4 sm:$0xff]   ;;  %v8013_v37 = vld [vmem:[#allocation2 + $0x2c] ss:$16 sps:$4 sm:$0xff]  }
 0x281   :  { %1346 = vmatprep.subr.bf16.mxu0 %v7998_v5  ;;  %1387 = vmatprep.subr.bf16.mxu1 %v8001_v10  ;;  %11672 = vst [vmem:[#allocation31_spill] sm:$0xff] %v8010_v38  ;;  %11673 = vst [vmem:[#allocation32_spill] sm:$0xff] %v8013_v37  ;;  %v8016_v5 = vld [vmem:[#allocation2 + $0x20] ss:$16 sps:$4 sm:$0xff]   ;;  %v8019_v10 = vld [vmem:[#allocation2 + $0x28] ss:$16 sps:$4 sm:$0xff]  }
 0x284   :  { %1347 = vmatpush1.bf16.msra.mxu0 %v8004_v60  ;;  %1388 = vmatpush1.bf16.msra.mxu1 %v8007_v52  ;;  %v8022_v60 = vld [vmem:[#allocation2 + $0x4] ss:$16 sps:$4 sm:$0xff]   ;;  %v8025_v52 = vld [vmem:[#allocation2 + $0xc] ss:$16 sps:$4 sm:$0xff]  }
 0x285   :  { %1348 = vmatprep.subr.bf16.mxu0 %v8010_v38  ;;  %1389 = vmatprep.subr.bf16.mxu1 %v8013_v37  ;;  %v8028_v38 = vld [vmem:[#allocation2] ss:$16 sps:$4 sm:$0xff]   ;;  %v8031_v37 = vld [vmem:[#allocation2 + $0x8] ss:$16 sps:$4 sm:$0xff]  }
 0x288   :  { %1349 = vmatpush1.bf16.msra.mxu0 %v8016_v5  ;;  %1390 = vmatpush1.bf16.msra.mxu1 %v8019_v10 }
 0x289   :  { %1350 = vmatprep.subr.bf16.mxu0 %v8022_v60  ;;  %1391 = vmatprep.subr.bf16.mxu1 %v8025_v52 }
 0x28c   :  { %1351 = vmatpush1.bf16.msra.mxu0 %v8028_v38  ;;  %1392 = vmatpush1.bf16.msra.mxu1 %v8031_v37 }
 0x28d   :  { %1466 = vmatprep.subr.bf16.mxu0 %v7580_v39  ;;  %1507 = vmatprep.subr.bf16.mxu1 %v7582_v40  ;;  %v11674_v39 = vld [vmem:[#allocation41_spill] sm:$0xff]  ;;  %v11675_v40 = vld [vmem:[#allocation42_spill] sm:$0xff] }
 0x28f   :  { %1369 = vmatmul.mubr.bf16.vlgmr.msra.gmra.mxu0 %v7938_v53  ;;  %1410 = vmatmul.mubr.bf16.vlgmr.msra.gmra.mxu1 %v7938_v53 }
 0x290   :  { %1467 = vmatpush1.bf16.msra.mxu0 %v7584_v41  ;;  %1508 = vmatpush1.bf16.msra.mxu1 %v7586_v42  ;;  %v11676_v41 = vld [vmem:[#allocation43_spill] sm:$0xff]  ;;  %v11677_v42 = vld [vmem:[#allocation44_spill] sm:$0xff] }
 0x291   :  { %1468 = vmatprep.subr.bf16.mxu0 %v7590_v43  ;;  %1509 = vmatprep.subr.bf16.mxu1 %v7592_v44  ;;  %v11678_v43 = vld [vmem:[#allocation45_spill] sm:$0xff]  ;;  %v11679_v44 = vld [vmem:[#allocation46_spill] sm:$0xff] }
 0x294   :  { %1469 = vmatpush1.bf16.msra.mxu0 %v7596_v45  ;;  %1510 = vmatpush1.bf16.msra.mxu1 %v7598_v46  ;;  %v11680_v45 = vld [vmem:[#allocation47_spill] sm:$0xff]  ;;  %v11681_v46 = vld [vmem:[#allocation48_spill] sm:$0xff] }
 0x295   :  { %1470 = vmatprep.subr.bf16.mxu0 %v7602_v47  ;;  %1511 = vmatprep.subr.bf16.mxu1 %v7604_v48  ;;  %v11682_v47 = vld [vmem:[#allocation49_spill] sm:$0xff]  ;;  %v11683_v48 = vld [vmem:[#allocation50_spill] sm:$0xff] }
 0x298   :  { %1471 = vmatpush1.bf16.msra.mxu0 %v7606_v49  ;;  %1512 = vmatpush1.bf16.msra.mxu1 %v7608_v50  ;;  %v11684_v49 = vld [vmem:[#allocation51_spill] sm:$0xff]  ;;  %v11685_v50 = vld [vmem:[#allocation52_spill] sm:$0xff] }
 0x299   :  { %1472 = vmatprep.subr.bf16.mxu0 %v11601_v8  ;;  %1513 = vmatprep.subr.bf16.mxu1 %v11602_v9  ;;  %v11686_v8 = vld [vmem:[#allocation53_spill] sm:$0xff]  ;;  %v11687_v9 = vld [vmem:[#allocation54_spill] sm:$0xff] }
 0x29c   :  { %1473 = vmatpush1.bf16.msra.mxu0 %v11603_v11  ;;  %1514 = vmatpush1.bf16.msra.mxu1 %v11604_v12  ;;  %v11688_v11 = vld [vmem:[#allocation55_spill] sm:$0xff]  ;;  %v11689_v12 = vld [vmem:[#allocation56_spill] sm:$0xff] }
 0x29d   :  { %1474 = vmatprep.subr.bf16.mxu0 %v11605_v13  ;;  %1515 = vmatprep.subr.bf16.mxu1 %v11606_v14  ;;  %v11690_v13 = vld [vmem:[#allocation57_spill] sm:$0xff]  ;;  %v11691_v14 = vld [vmem:[#allocation58_spill] sm:$0xff] }
 0x2a0   :  { %1475 = vmatpush1.bf16.msra.mxu0 %v11607_v15  ;;  %1516 = vmatpush1.bf16.msra.mxu1 %v11608_v16  ;;  %v11692_v15 = vld [vmem:[#allocation59_spill] sm:$0xff]  ;;  %v11693_v16 = vld [vmem:[#allocation60_spill] sm:$0xff] }
 0x2a1   :  { %1476 = vmatprep.subr.bf16.mxu0 %v11609_v17  ;;  %1517 = vmatprep.subr.bf16.mxu1 %v11610_v18  ;;  %v11694_v17 = vld [vmem:[#allocation61_spill] sm:$0xff]  ;;  %v11695_v18 = vld [vmem:[#allocation62_spill] sm:$0xff] }
 0x2a4   :  { %1477 = vmatpush1.bf16.msra.mxu0 %v11611_v19  ;;  %1518 = vmatpush1.bf16.msra.mxu1 %v11612_v20  ;;  %v11696_v19 = vld [vmem:[#allocation63_spill] sm:$0xff]  ;;  %v11697_v20 = vld [vmem:[#allocation64_spill] sm:$0xff] }
 0x2a5   :  { %1478 = vmatprep.subr.bf16.mxu0 %v11613_v21  ;;  %1519 = vmatprep.subr.bf16.mxu1 %v11614_v22  ;;  %v11698_v21 = vld [vmem:[#allocation65_spill] sm:$0xff]  ;;  %v11699_v22 = vld [vmem:[#allocation66_spill] sm:$0xff] }
 0x2a8   :  { %1479 = vmatpush1.bf16.msra.mxu0 %v11615_v23  ;;  %1520 = vmatpush1.bf16.msra.mxu1 %v11616_v24  ;;  %v11700_v23 = vld [vmem:[#allocation67_spill] sm:$0xff]  ;;  %v11701_v24 = vld [vmem:[#allocation16_spill] sm:$0xff] }
 0x2a9   :  { %1480 = vmatprep.subr.bf16.mxu0 %v11617_v25  ;;  %1521 = vmatprep.subr.bf16.mxu1 %v11618_v26  ;;  %v11702_v25 = vld [vmem:[#allocation17_spill] sm:$0xff] }
 0x2ac   :  { %1481 = vmatpush1.bf16.msra.mxu0 %v11619_v27  ;;  %1522 = vmatpush1.bf16.msra.mxu1 %v11620_v28  ;;  %v11703_v28 = vld [vmem:[#allocation18_spill] sm:$0xff] }
 0x2ad   :  { %1482 = vmatprep.subr.bf16.mxu0 %v11621_v29  ;;  %1523 = vmatprep.subr.bf16.mxu1 %v11622_v30 }
 0x2b0   :  { %1483 = vmatpush2.bf16.msra.mxu0 %v11623_v31  ;;  %1524 = vmatpush2.bf16.msra.mxu1 %v11624_v32 }
 0x2b1   :  { %1484 = vmatprep.subr.bf16.mxu0 %v11625_v33  ;;  %1525 = vmatprep.subr.bf16.mxu1 %v11674_v39  ;;  %v11704_v33 = vld [vmem:[#allocation19_spill] sm:$0xff] }
 0x2b4   :  { %1485 = vmatpush2.bf16.msra.mxu0 %v11675_v40  ;;  %1526 = vmatpush2.bf16.msra.mxu1 %v11676_v41 }
 0x2b5   :  { %1486 = vmatprep.subr.bf16.mxu0 %v11677_v42  ;;  %1527 = vmatprep.subr.bf16.mxu1 %v11678_v43 }
 0x2b8   :  { %1487 = vmatpush2.bf16.msra.mxu0 %v11679_v44  ;;  %1528 = vmatpush2.bf16.msra.mxu1 %v11680_v45  ;;  %v11705_v44 = vld [vmem:[#allocation20_spill] sm:$0xff] }
 0x2b9   :  { %1488 = vmatprep.subr.bf16.mxu0 %v11681_v46  ;;  %1529 = vmatprep.subr.bf16.mxu1 %v11682_v47  ;;  %v11706_v46 = vld [vmem:[#allocation21_spill] sm:$0xff] }
 0x2bc   :  { %1489 = vmatpush2.bf16.msra.mxu0 %v11683_v48  ;;  %1530 = vmatpush2.bf16.msra.mxu1 %v11684_v49 }
 0x2bd   :  { %1490 = vmatprep.subr.bf16.mxu0 %v11685_v50  ;;  %1531 = vmatprep.subr.bf16.mxu1 %v11686_v8 }
 0x2c0   :  { %1491 = vmatpush2.bf16.msra.mxu0 %v11687_v9  ;;  %1532 = vmatpush2.bf16.msra.mxu1 %v11688_v11 }
 0x2c1   :  { %1492 = vmatprep.subr.bf16.mxu0 %v11689_v12  ;;  %1533 = vmatprep.subr.bf16.mxu1 %v11690_v13 }
 0x2c4   :  { %1493 = vmatpush2.bf16.msra.mxu0 %v11691_v14  ;;  %1534 = vmatpush2.bf16.msra.mxu1 %v11692_v15  ;;  %v11707_v14 = vld [vmem:[#allocation22_spill] sm:$0xff] }
 0x2c5   :  { %1494 = vmatprep.subr.bf16.mxu0 %v11693_v16  ;;  %1535 = vmatprep.subr.bf16.mxu1 %v11694_v17 }
 0x2c8   :  { %1495 = vmatpush2.bf16.msra.mxu0 %v11695_v18  ;;  %1536 = vmatpush2.bf16.msra.mxu1 %v11696_v19 }
 0x2c9   :  { %1496 = vmatprep.subr.bf16.mxu0 %v11697_v20  ;;  %1537 = vmatprep.subr.bf16.mxu1 %v11698_v21 }
 0x2cc   :  { %1497 = vmatpush2.bf16.msra.mxu0 %v11699_v22  ;;  %1538 = vmatpush2.bf16.msra.mxu1 %v11700_v23 }
 0x2cd   :  { %1566 = vmatprep.subr.bf16.mxu0 %v11701_v24  ;;  %1607 = vmatprep.subr.bf16.mxu1 %v11702_v25 }
 0x32f   :  { %v1270_v26 = vpop.f32.mrf.mxu0  ;;  %v1311_v27 = vpop.f32.mrf.mxu1 }
 0x330   :  { %v1271_v29 = vadd.f32 %v1270_v26, %v11703_v28  ;;  %v1312_v47 = vadd.f32 %v1311_v27, %v11706_v46 }
 0x331   :  { %v1272_v30 = vpop.f32.mrf.mxu0  ;;  %v1313_v31 = vpop.f32.mrf.mxu1 }
 0x332   :  { %v1318_v32 = vmul.f32 0.5, %v1271_v29  ;;  %v1273_v53 = vadd.f32 %v1272_v30, %v11704_v33  ;;  %v1314_v45 = vadd.f32 %v1313_v31, %v11705_v44  ;;  %v1320_v48 = vmul.f32 0.5, %v1312_v47 }
 0x333   :  { %v1274_v39 = vpop.f32.mrf.mxu0  ;;  %v1315_v40 = vpop.f32.mrf.mxu1 }
 0x334   :  { %6526 = vtanh.f32 %v1318_v32  ;;  %v1319_v41 = vmul.f32 0.5, %v1273_v53 }
 0x335   :  { %v1275_v42 = vpop.f32.mrf.mxu0  ;;  %v1316_v43 = vpop.f32.mrf.mxu1 }
 0x336   :  { %6528 = vtanh.f32 %v1319_v41 }
 0x337   :  { %6530 = vtanh.f32 %v1314_v45 }
 0x338   :  { %6532 = vtanh.f32 %v1320_v48 }
 0x341   :  { %v6527_v49 = vpop.eup %6526 }
 0x342   :  { %v1324_v50 = vmul.f32 0.5, %v6527_v49 }
 0x343   :  { %v6529_v8 = vpop.eup %6528 }
 0x344   :  { %v1327_v9 = vadd.f32 0.5, %v1324_v50  ;;  %v1325_v11 = vmul.f32 0.5, %v6529_v8  ;;  %v6531_v13 = vpop.eup %6530 }
 0x345   :  { %v6533_v21 = vpop.eup %6532 }
 0x346   :  { %v1328_v12 = vadd.f32 0.5, %v1325_v11  ;;  %v1332_v16 = vmul.f32 %v6531_v13, %v1327_v9  ;;  %v1326_v31 = vmul.f32 0.5, %v6533_v21  ;;  %v1448_v21 = vrot.slane %v7935_v34, 7  ;;  %v11708_v34 = vld [vmem:[#allocation23_spill] sm:$0xff] }
 0x348   :  { %v1331_v15 = vmul.f32 %v1328_v12, %v11707_v14  ;;  %v1329_v43 = vadd.f32 0.5, %v1326_v31 }
 0x34a   :  { %v8107_v17 = vadd.f32 %v1332_v16, %v1331_v15 }
 0x34c   :  { %6534 = vtanh.f32 %v8107_v17 }
 0x34f   :  { %v1370_v18 = vpop.f32.mrf.mxu0  ;;  %v1411_v19 = vpop.f32.mrf.mxu1 }
 0x350   :  { %v1422_v20 = vrot.slane %v1370_v18, 6  ;;  %v1424_v48 = vrot.slane %v1411_v19, 6 }
 0x351   :  { %v1372_v22 = vpop.f32.mrf.mxu0  ;;  %v1413_v23 = vpop.f32.mrf.mxu1 }
 0x352   :  { %v1430_v26 = vadd.f32 %v1422_v20, %v11663_v54  ;;  %v1423_v27 = vrot.slane %v1372_v22, 6  ;;  %v1425_v39 = vrot.slane %v1413_v23, 6  ;;  %v1432_v8 = vadd.f32 %v1424_v48, %v7800_v61  ;;  %v11715_v48 = vld [vmem:[#allocation30_spill] sm:$0xff] }
 0x353   :  { %v1374_v29 = vpop.f32.mrf.mxu0  ;;  %v1415_v30 = vpop.f32.mrf.mxu1 }
 0x354   :  { %v1434_v32 = vmul.f32 0.5, %v1430_v26  ;;  %v1431_v53 = vadd.f32 %v1423_v27, %v7789_v59  ;;  %v1433_v45 = vadd.f32 %v1425_v39, %v7796_v51  ;;  %v1436_v12 = vmul.f32 0.5, %v1432_v8  ;;  %v8150_v8 = vld [vmem:[#allocation4 + $0xe4] ss:$16 sps:$4 sm:$0xff]  }
 0x355   :  { %v1375_v40 = vpop.f32.mrf.mxu0  ;;  %v1416_v41 = vpop.f32.mrf.mxu1 }
 0x356   :  { %6536 = vtanh.f32 %v1434_v32  ;;  %v1435_v42 = vmul.f32 0.5, %v1431_v53  ;;  %v11709_v40 = vld [vmem:[#allocation24_spill] sm:$0xff]  ;;  %v11710_v41 = vld [vmem:[#allocation25_spill] sm:$0xff] }
 0x358   :  { %6538 = vtanh.f32 %v1435_v42  ;;  %v11711_v42 = vld [vmem:[#allocation26_spill] sm:$0xff] }
 0x359   :  { %v6535_v47 = vpop.eup %6534  ;;  %6540 = vtanh.f32 %v1433_v45  ;;  %v11713_v45 = vld [vmem:[#allocation28_spill] sm:$0xff] }
 0x35a   :  { %v1335_v49 = vmul.f32 %v6535_v47, %v1329_v43  ;;  %6542 = vtanh.f32 %v1436_v12  ;;  %v11712_v43 = vld [vmem:[#allocation27_spill] sm:$0xff]  ;;  %v11714_v47 = vld [vmem:[#allocation29_spill] sm:$0xff] }
 0x35b   :  { %v8159_v12 = vld [vmem:[#allocation4 + $0xe8] ss:$16 sps:$4 sm:$0xff]  }
 0x35c   :  { %v1456_v50 = vrot.slane %v1335_v49, 6  ;;  %v11716_v49 = vld [vmem:[#allocation31_spill] sm:$0xff] }
 0x35e   :  { %v1459_v9 = vpack.c.bf16 %v1456_v50, %v1456_v50  ;;  %v11717_v50 = vld [vmem:[#allocation32_spill] sm:$0xff] }
 0x360   :  { %v1463_v11 = vrot.slane %v1459_v9, 1  ;;  %v8153_v9 = vld [vmem:[#allocation4 + $0xec] ss:$16 sps:$4 sm:$0xff]  }
 0x362   :  { %1498 = vmatprep.mubr.bf16.mxu0 %v1463_v11  ;;  %1539 = vmatprep.mubr.bf16.mxu1 %v1463_v11  ;;  %v8156_v11 = vld [vmem:[#allocation4 + $0xe0] ss:$16 sps:$4 sm:$0xff]  }
 0x363   :  { %v6537_v13 = vpop.eup %6536 }
 0x364   :  { %v1440_v14 = vmul.f32 0.5, %v6537_v13  ;;  %v8162_v13 = vld [vmem:[#allocation4 + $0xc4] ss:$16 sps:$4 sm:$0xff]  }
 0x365   :  { %v6539_v15 = vpop.eup %6538 }
 0x366   :  { %v1443_v16 = vadd.f32 0.5, %v1440_v14  ;;  %v1441_v18 = vmul.f32 0.5, %v6539_v15  ;;  %v6541_v19 = vpop.eup %6540  ;;  %v8165_v14 = vld [vmem:[#allocation4 + $0xcc] ss:$16 sps:$4 sm:$0xff]   ;;  %v8168_v15 = vld [vmem:[#allocation4 + $0xc0] ss:$16 sps:$4 sm:$0xff]  }
 0x367   :  { %v6543_v27 = vpop.eup %6542  ;;  %11718 = vst [vmem:[#allocation33_spill] sm:$0xff] %v8168_v15 }
 0x368   :  { %v1444_v20 = vadd.f32 0.5, %v1441_v18  ;;  %v1451_v23 = vmul.f32 %v6541_v19, %v1443_v16  ;;  %v1442_v29 = vmul.f32 0.5, %v6543_v27  ;;  %v8171_v16 = vld [vmem:[#allocation4 + $0xc8] ss:$16 sps:$4 sm:$0xff]   ;;  %v8174_v18 = vld [vmem:[#allocation4 + $0xa4] ss:$16 sps:$4 sm:$0xff]  }
 0x369   :  { %11719 = vst [vmem:[#allocation34_spill] sm:$0xff] %v8171_v16  ;;  %11720 = vst [vmem:[#allocation35_spill] sm:$0xff] %v8174_v18  ;;  %v8183_v19 = vld [vmem:[#allocation4 + $0xa8] ss:$16 sps:$4 sm:$0xff]   ;;  %v8192_v27 = vld [vmem:[#allocation4 + $0x80] ss:$16 sps:$4 sm:$0xff]  }
 0x36a   :  { %v1450_v22 = vmul.f32 %v1448_v21, %v1444_v20  ;;  %v1445_v30 = vadd.f32 0.5, %v1442_v29  ;;  %v8177_v20 = vld [vmem:[#allocation4 + $0xac] ss:$16 sps:$4 sm:$0xff]   ;;  %v8180_v21 = vld [vmem:[#allocation4 + $0xa0] ss:$16 sps:$4 sm:$0xff]   ;;  %11723 = vst [vmem:[#allocation38_spill] sm:$0xff] %v8183_v19 }
 0x36b   :  { %11721 = vst [vmem:[#allocation36_spill] sm:$0xff] %v8177_v20  ;;  %11722 = vst [vmem:[#allocation37_spill] sm:$0xff] %v8180_v21  ;;  %v8195_v29 = vld [vmem:[#allocation4 + $0x88] ss:$16 sps:$4 sm:$0xff]  }
 0x36c   :  { %v8115_v26 = vadd.f32 %v1451_v23, %v1450_v22  ;;  %v8186_v22 = vld [vmem:[#allocation4 + $0x84] ss:$16 sps:$4 sm:$0xff]   ;;  %v8189_v23 = vld [vmem:[#allocation4 + $0x8c] ss:$16 sps:$4 sm:$0xff]   ;;  %11726 = vst [vmem:[#allocation71_spill] sm:$0xff] %v8192_v27  ;;  %11727 = vst [vmem:[#allocation41_spill] sm:$0xff] %v8195_v29 }
 0x36d   :  { %11724 = vst [vmem:[#allocation39_spill] sm:$0xff] %v8186_v22  ;;  %11725 = vst [vmem:[#allocation40_spill] sm:$0xff] %v8189_v23 }
 0x36e   :  { %6544 = vtanh.f32 %v8115_v26 }
 0x37b   :  { %v6545_v31 = vpop.eup %6544 }
 0x37c   :  { %v1454_v32 = vmul.f32 %v6545_v31, %v1445_v30  ;;  %v8198_v30 = vld [vmem:[#allocation4 + $0x64] ss:$16 sps:$4 sm:$0xff]   ;;  %v8201_v31 = vld [vmem:[#allocation4 + $0x6c] ss:$16 sps:$4 sm:$0xff]  }
 0x37d   :  { %11728 = vst [vmem:[#allocation42_spill] sm:$0xff] %v8198_v30  ;;  %11729 = vst [vmem:[#allocation43_spill] sm:$0xff] %v8201_v31 }
 0x37e   :  { %v1458_v53 = vpack.c.bf16 %v1454_v32, %v1454_v32  ;;  %v8204_v32 = vld [vmem:[#allocation4 + $0x60] ss:$16 sps:$4 sm:$0xff]  }
 0x37f   :  { %11730 = vst [vmem:[#allocation44_spill] sm:$0xff] %v8204_v32 }
 0x380   :  { %v1462_v39 = vrot.slane %v1458_v53, 1  ;;  %v8207_v53 = vld [vmem:[#allocation4 + $0x68] ss:$16 sps:$4 sm:$0xff]  }
 0x381   :  { %11731 = vst [vmem:[#allocation45_spill] sm:$0xff] %v8207_v53 }
 0x382   :  { %1499 = vmatmul.mubr.bf16.vlgmr.msra.gmra.mxu0 %v1462_v39  ;;  %1540 = vmatmul.mubr.bf16.vlgmr.msra.gmra.mxu1 %v1462_v39 }
 0x383   :  { %1567 = vmatpush1.bf16.msra.mxu0 %v7942_v0  ;;  %1608 = vmatpush1.bf16.msra.mxu1 %v7945_v6 }
 0x384   :  { %1568 = vmatprep.subr.bf16.mxu0 %v7948_v3  ;;  %1609 = vmatprep.subr.bf16.mxu1 %v7951_v56 }
 0x385   :  { %1598 = vmatprep.mubr.bf16.mxu0 %v11600_v57  ;;  %1639 = vmatprep.mubr.bf16.mxu1 %v11600_v57 }
 0x387   :  { %1569 = vmatpush1.bf16.msra.mxu0 %v7956_v36  ;;  %1610 = vmatpush1.bf16.msra.mxu1 %v7959_v1 }
 0x388   :  { %1570 = vmatprep.subr.bf16.mxu0 %v7962_v62  ;;  %1611 = vmatprep.subr.bf16.mxu1 %v7965_v55 }
 0x38b   :  { %1571 = vmatpush1.bf16.msra.mxu0 %v7968_v35  ;;  %1612 = vmatpush1.bf16.msra.mxu1 %v7971_v63 }
 0x38c   :  { %1572 = vmatprep.subr.bf16.mxu0 %v7974_v7  ;;  %1613 = vmatprep.subr.bf16.mxu1 %v7977_v2 }
 0x38f   :  { %1573 = vmatpush1.bf16.msra.mxu0 %v7980_v58  ;;  %1614 = vmatpush1.bf16.msra.mxu1 %v7983_v4 }
 0x390   :  { %1574 = vmatprep.subr.bf16.mxu0 %v11708_v34  ;;  %1615 = vmatprep.subr.bf16.mxu1 %v11709_v40 }
 0x393   :  { %1575 = vmatpush1.bf16.msra.mxu0 %v11710_v41  ;;  %1616 = vmatpush1.bf16.msra.mxu1 %v11711_v42 }
 0x394   :  { %1576 = vmatprep.subr.bf16.mxu0 %v11712_v43  ;;  %1617 = vmatprep.subr.bf16.mxu1 %v11713_v45 }
 0x397   :  { %1577 = vmatpush1.bf16.msra.mxu0 %v11714_v47  ;;  %1618 = vmatpush1.bf16.msra.mxu1 %v11715_v48 }
 0x398   :  { %1578 = vmatprep.subr.bf16.mxu0 %v11716_v49  ;;  %1619 = vmatprep.subr.bf16.mxu1 %v11717_v50 }
 0x39b   :  { %1579 = vmatpush1.bf16.msra.mxu0 %v8016_v5  ;;  %1620 = vmatpush1.bf16.msra.mxu1 %v8019_v10 }
 0x39c   :  { %1580 = vmatprep.subr.bf16.mxu0 %v8022_v60  ;;  %1621 = vmatprep.subr.bf16.mxu1 %v8025_v52 }
 0x39f   :  { %1581 = vmatpush1.bf16.msra.mxu0 %v8028_v38  ;;  %1622 = vmatpush1.bf16.msra.mxu1 %v8031_v37 }
 0x3a0   :  { %1700 = vmatprep.subr.bf16.mxu0 %v8150_v8  ;;  %1741 = vmatprep.subr.bf16.mxu1 %v8153_v9 }
 0x3a2   :  { %1599 = vmatmul.mubr.bf16.vlgmr.msra.gmra.mxu0 %v1462_v39  ;;  %1640 = vmatmul.mubr.bf16.vlgmr.msra.gmra.mxu1 %v1462_v39  ;;  %v8210_v39 = vld [vmem:[#allocation4 + $0x44] ss:$16 sps:$4 sm:$0xff]  }
 0x3a3   :  { %1701 = vmatpush1.bf16.msra.mxu0 %v8156_v11  ;;  %1742 = vmatpush1.bf16.msra.mxu1 %v8159_v12  ;;  %11732 = vst [vmem:[#allocation46_spill] sm:$0xff] %v8210_v39 }
 0x3a4   :  { %1702 = vmatprep.subr.bf16.mxu0 %v8162_v13  ;;  %1743 = vmatprep.subr.bf16.mxu1 %v8165_v14 }
 0x3a7   :  { %1703 = vmatpush1.bf16.msra.mxu0 %v8168_v15  ;;  %1744 = vmatpush1.bf16.msra.mxu1 %v8171_v16 }
 0x3a8   :  { %1704 = vmatprep.subr.bf16.mxu0 %v8174_v18  ;;  %1745 = vmatprep.subr.bf16.mxu1 %v8177_v20 }
 0x3ab   :  { %1705 = vmatpush1.bf16.msra.mxu0 %v8180_v21  ;;  %1746 = vmatpush1.bf16.msra.mxu1 %v8183_v19 }
 0x3ac   :  { %1706 = vmatprep.subr.bf16.mxu0 %v8186_v22  ;;  %1747 = vmatprep.subr.bf16.mxu1 %v8189_v23 }
 0x3af   :  { %1707 = vmatpush1.bf16.msra.mxu0 %v8192_v27  ;;  %1748 = vmatpush1.bf16.msra.mxu1 %v8195_v29  ;;  %v8213_v29 = vld [vmem:[#allocation4 + $0x4c] ss:$16 sps:$4 sm:$0xff]  }
 0x3b0   :  { %1708 = vmatprep.subr.bf16.mxu0 %v8198_v30  ;;  %1749 = vmatprep.subr.bf16.mxu1 %v8201_v31  ;;  %11733 = vst [vmem:[#allocation47_spill] sm:$0xff] %v8213_v29  ;;  %v8216_v30 = vld [vmem:[#allocation4 + $0x40] ss:$16 sps:$4 sm:$0xff]   ;;  %v8219_v31 = vld [vmem:[#allocation4 + $0x48] ss:$16 sps:$4 sm:$0xff]  }
 0x3b1   :  { %11734 = vst [vmem:[#allocation48_spill] sm:$0xff] %v8216_v30  ;;  %11735 = vst [vmem:[#allocation49_spill] sm:$0xff] %v8219_v31 }
 0x3b3   :  { %1709 = vmatpush1.bf16.msra.mxu0 %v8204_v32  ;;  %1750 = vmatpush1.bf16.msra.mxu1 %v8207_v53  ;;  %v8222_v32 = vld [vmem:[#allocation4 + $0x24] ss:$16 sps:$4 sm:$0xff]   ;;  %v8225_v53 = vld [vmem:[#allocation4 + $0x2c] ss:$16 sps:$4 sm:$0xff]  }
 0x3b4   :  { %1710 = vmatprep.subr.bf16.mxu0 %v8210_v39  ;;  %1751 = vmatprep.subr.bf16.mxu1 %v8213_v29  ;;  %11736 = vst [vmem:[#allocation50_spill] sm:$0xff] %v8222_v32  ;;  %11737 = vst [vmem:[#allocation51_spill] sm:$0xff] %v8225_v53  ;;  %v8228_v39 = vld [vmem:[#allocation4 + $0x20] ss:$16 sps:$4 sm:$0xff]   ;;  %v8231_v29 = vld [vmem:[#allocation4 + $0x28] ss:$16 sps:$4 sm:$0xff]  }
 0x3b5   :  { %11738 = vst [vmem:[#allocation52_spill] sm:$0xff] %v8228_v39  ;;  %11739 = vst [vmem:[#allocation53_spill] sm:$0xff] %v8231_v29 }
 0x3b7   :  { %1711 = vmatpush1.bf16.msra.mxu0 %v8216_v30  ;;  %1752 = vmatpush1.bf16.msra.mxu1 %v8219_v31  ;;  %v8234_v30 = vld [vmem:[#allocation4 + $0x4] ss:$16 sps:$4 sm:$0xff]   ;;  %v8237_v31 = vld [vmem:[#allocation4 + $0xc] ss:$16 sps:$4 sm:$0xff]  }
 0x3b8   :  { %1712 = vmatprep.subr.bf16.mxu0 %v8222_v32  ;;  %1753 = vmatprep.subr.bf16.mxu1 %v8225_v53  ;;  %11740 = vst [vmem:[#allocation54_spill] sm:$0xff] %v8234_v30  ;;  %11741 = vst [vmem:[#allocation55_spill] sm:$0xff] %v8237_v31  ;;  %v8240_v32 = vld [vmem:[#allocation4] ss:$16 sps:$4 sm:$0xff]   ;;  %v8243_v53 = vld [vmem:[#allocation4 + $0x8] ss:$16 sps:$4 sm:$0xff]  }
 0x3b9   :  { %11742 = vst [vmem:[#allocation56_spill] sm:$0xff] %v8240_v32  ;;  %11743 = vst [vmem:[#allocation57_spill] sm:$0xff] %v8243_v53 }
 0x3bb   :  { %1713 = vmatpush1.bf16.msra.mxu0 %v8228_v39  ;;  %1754 = vmatpush1.bf16.msra.mxu1 %v8231_v29  ;;  %v8246_v39 = vld [vmem:[#allocation4 + $0x1e4] ss:$16 sps:$4 sm:$0xff]   ;;  %v8249_v29 = vld [vmem:[#allocation4 + $0x1ec] ss:$16 sps:$4 sm:$0xff]  }
 0x3bc   :  { %1714 = vmatprep.subr.bf16.mxu0 %v8234_v30  ;;  %1755 = vmatprep.subr.bf16.mxu1 %v8237_v31  ;;  %11744 = vst [vmem:[#allocation58_spill] sm:$0xff] %v8246_v39  ;;  %11745 = vst [vmem:[#allocation59_spill] sm:$0xff] %v8249_v29  ;;  %v8252_v30 = vld [vmem:[#allocation4 + $0x1e0] ss:$16 sps:$4 sm:$0xff]   ;;  %v8255_v31 = vld [vmem:[#allocation4 + $0x1e8] ss:$16 sps:$4 sm:$0xff]  }
 0x3bd   :  { %11746 = vst [vmem:[#allocation60_spill] sm:$0xff] %v8252_v30  ;;  %11747 = vst [vmem:[#allocation61_spill] sm:$0xff] %v8255_v31 }
 0x3bf   :  { %1715 = vmatpush1.bf16.msra.mxu0 %v8240_v32  ;;  %1756 = vmatpush1.bf16.msra.mxu1 %v8243_v53  ;;  %v8258_v32 = vld [vmem:[#allocation4 + $0x1c4] ss:$16 sps:$4 sm:$0xff]   ;;  %v8261_v53 = vld [vmem:[#allocation4 + $0x1cc] ss:$16 sps:$4 sm:$0xff]  }
 0x3c0   :  { %1716 = vmatprep.subr.bf16.mxu0 %v8246_v39  ;;  %1757 = vmatprep.subr.bf16.mxu1 %v8249_v29  ;;  %11748 = vst [vmem:[#allocation62_spill] sm:$0xff] %v8258_v32  ;;  %11749 = vst [vmem:[#allocation63_spill] sm:$0xff] %v8261_v53  ;;  %v8264_v39 = vld [vmem:[#allocation4 + $0x1c0] ss:$16 sps:$4 sm:$0xff]   ;;  %v8267_v29 = vld [vmem:[#allocation4 + $0x1c8] ss:$16 sps:$4 sm:$0xff]  }
 0x3c1   :  { %11750 = vst [vmem:[#allocation64_spill] sm:$0xff] %v8264_v39  ;;  %11751 = vst [vmem:[#allocation65_spill] sm:$0xff] %v8267_v29 }
 0x3c3   :  { %1717 = vmatpush2.bf16.msra.mxu0 %v8252_v30  ;;  %1758 = vmatpush2.bf16.msra.mxu1 %v8255_v31  ;;  %v8270_v30 = vld [vmem:[#allocation4 + $0x1a4] ss:$16 sps:$4 sm:$0xff]   ;;  %v8273_v31 = vld [vmem:[#allocation4 + $0x1ac] ss:$16 sps:$4 sm:$0xff]  }
 0x3c4   :  { %1718 = vmatprep.subr.bf16.mxu0 %v8258_v32  ;;  %1759 = vmatprep.subr.bf16.mxu1 %v8261_v53  ;;  %11752 = vst [vmem:[#allocation66_spill] sm:$0xff] %v8270_v30  ;;  %11753 = vst [vmem:[#allocation67_spill] sm:$0xff] %v8273_v31  ;;  %v8276_v32 = vld [vmem:[#allocation4 + $0x1a0] ss:$16 sps:$4 sm:$0xff]   ;;  %v8279_v53 = vld [vmem:[#allocation4 + $0x1a8] ss:$16 sps:$4 sm:$0xff]  }
 0x3c5   :  { %11754 = vst [vmem:[#allocation16_spill] sm:$0xff] %v8276_v32  ;;  %11755 = vst [vmem:[#allocation17_spill] sm:$0xff] %v8279_v53 }
 0x3c7   :  { %1719 = vmatpush2.bf16.msra.mxu0 %v8264_v39  ;;  %1760 = vmatpush2.bf16.msra.mxu1 %v8267_v29  ;;  %v8282_v39 = vld [vmem:[#allocation4 + $0x184] ss:$16 sps:$4 sm:$0xff]   ;;  %v8285_v29 = vld [vmem:[#allocation4 + $0x18c] ss:$16 sps:$4 sm:$0xff]  }
 0x3c8   :  { %1720 = vmatprep.subr.bf16.mxu0 %v8270_v30  ;;  %1761 = vmatprep.subr.bf16.mxu1 %v8273_v31  ;;  %11756 = vst [vmem:[#allocation22_spill] sm:$0xff] %v8282_v39  ;;  %11757 = vst [vmem:[#allocation23_spill] sm:$0xff] %v8285_v29  ;;  %v8288_v30 = vld [vmem:[#allocation4 + $0x180] ss:$16 sps:$4 sm:$0xff]   ;;  %v8291_v31 = vld [vmem:[#allocation4 + $0x188] ss:$16 sps:$4 sm:$0xff]  }
 0x3c9   :  { %11758 = vst [vmem:[#allocation24_spill] sm:$0xff] %v8288_v30  ;;  %11759 = vst [vmem:[#allocation25_spill] sm:$0xff] %v8291_v31 }
 0x3cb   :  { %1721 = vmatpush2.bf16.msra.mxu0 %v8276_v32  ;;  %1762 = vmatpush2.bf16.msra.mxu1 %v8279_v53  ;;  %v8294_v32 = vld [vmem:[#allocation4 + $0x164] ss:$16 sps:$4 sm:$0xff]   ;;  %v8297_v53 = vld [vmem:[#allocation4 + $0x16c] ss:$16 sps:$4 sm:$0xff]  }
 0x3cc   :  { %1722 = vmatprep.subr.bf16.mxu0 %v8282_v39  ;;  %1763 = vmatprep.subr.bf16.mxu1 %v8285_v29  ;;  %11760 = vst [vmem:[#allocation26_spill] sm:$0xff] %v8294_v32  ;;  %11761 = vst [vmem:[#allocation27_spill] sm:$0xff] %v8297_v53  ;;  %v8300_v39 = vld [vmem:[#allocation4 + $0x160] ss:$16 sps:$4 sm:$0xff]   ;;  %v8303_v29 = vld [vmem:[#allocation4 + $0x168] ss:$16 sps:$4 sm:$0xff]  }
 0x3cd   :  { %11762 = vst [vmem:[#allocation28_spill] sm:$0xff] %v8300_v39  ;;  %11763 = vst [vmem:[#allocation29_spill] sm:$0xff] %v8303_v29 }
 0x3cf   :  { %1723 = vmatpush2.bf16.msra.mxu0 %v8288_v30  ;;  %1764 = vmatpush2.bf16.msra.mxu1 %v8291_v31  ;;  %v8306_v30 = vld [vmem:[#allocation4 + $0x144] ss:$16 sps:$4 sm:$0xff]   ;;  %v8309_v31 = vld [vmem:[#allocation4 + $0x14c] ss:$16 sps:$4 sm:$0xff]  }
 0x3d0   :  { %1724 = vmatprep.subr.bf16.mxu0 %v8294_v32  ;;  %1765 = vmatprep.subr.bf16.mxu1 %v8297_v53  ;;  %11764 = vst [vmem:[#allocation30_spill] sm:$0xff] %v8306_v30  ;;  %11765 = vst [vmem:[#allocation31_spill] sm:$0xff] %v8309_v31  ;;  %v8312_v32 = vld [vmem:[#allocation4 + $0x140] ss:$16 sps:$4 sm:$0xff]   ;;  %v8315_v53 = vld [vmem:[#allocation4 + $0x148] ss:$16 sps:$4 sm:$0xff]  }
 0x3d1   :  { %11766 = vst [vmem:[#allocation32_spill] sm:$0xff] %v8312_v32  ;;  %11767 = vst [vmem:[#allocation73_spill] sm:$0xff] %v8315_v53 }
 0x3d3   :  { %1725 = vmatpush2.bf16.msra.mxu0 %v8300_v39  ;;  %1766 = vmatpush2.bf16.msra.mxu1 %v8303_v29  ;;  %v8318_v39 = vld [vmem:[#allocation4 + $0x124] ss:$16 sps:$4 sm:$0xff]   ;;  %v8321_v29 = vld [vmem:[#allocation4 + $0x12c] ss:$16 sps:$4 sm:$0xff]  }
 0x3d4   :  { %1726 = vmatprep.subr.bf16.mxu0 %v8306_v30  ;;  %1767 = vmatprep.subr.bf16.mxu1 %v8309_v31  ;;  %11768 = vst [vmem:[#allocation74_spill] sm:$0xff] %v8318_v39  ;;  %11769 = vst [vmem:[#allocation75_spill] sm:$0xff] %v8321_v29  ;;  %v8324_v30 = vld [vmem:[#allocation4 + $0x120] ss:$16 sps:$4 sm:$0xff]   ;;  %v8327_v31 = vld [vmem:[#allocation4 + $0x128] ss:$16 sps:$4 sm:$0xff]  }
 0x3d5   :  { %11770 = vst [vmem:[#allocation76_spill] sm:$0xff] %v8324_v30  ;;  %11771 = vst [vmem:[#allocation77_spill] sm:$0xff] %v8327_v31 }
 0x3d7   :  { %1727 = vmatpush2.bf16.msra.mxu0 %v8312_v32  ;;  %1768 = vmatpush2.bf16.msra.mxu1 %v8315_v53  ;;  %v8330_v32 = vld [vmem:[#allocation4 + $0x104] ss:$16 sps:$4 sm:$0xff]   ;;  %v8333_v53 = vld [vmem:[#allocation4 + $0x10c] ss:$16 sps:$4 sm:$0xff]  }
 0x3d8   :  { %1728 = vmatprep.subr.bf16.mxu0 %v8318_v39  ;;  %1769 = vmatprep.subr.bf16.mxu1 %v8321_v29  ;;  %11772 = vst [vmem:[#allocation78_spill] sm:$0xff] %v8330_v32  ;;  %11773 = vst [vmem:[#allocation79_spill] sm:$0xff] %v8333_v53  ;;  %v8336_v39 = vld [vmem:[#allocation4 + $0x100] ss:$16 sps:$4 sm:$0xff]   ;;  %v8339_v29 = vld [vmem:[#allocation4 + $0x108] ss:$16 sps:$4 sm:$0xff]  }
 0x3d9   :  { %11774 = vst [vmem:[#allocation80_spill] sm:$0xff] %v8336_v39  ;;  %11775 = vst [vmem:[#allocation81_spill] sm:$0xff] %v8339_v29 }
 0x3db   :  { %1729 = vmatpush2.bf16.msra.mxu0 %v8324_v30  ;;  %1770 = vmatpush2.bf16.msra.mxu1 %v8327_v31 }
 0x3dc   :  { %1730 = vmatprep.subr.bf16.mxu0 %v8330_v32  ;;  %1771 = vmatprep.subr.bf16.mxu1 %v8333_v53 }
 0x3df   :  { %1731 = vmatpush2.bf16.msra.mxu0 %v8336_v39  ;;  %1772 = vmatpush2.bf16.msra.mxu1 %v8339_v29 }
 0x3e0   :  { %1800 = vmatprep.subr.bf16.mxu0 %v11701_v24  ;;  %1841 = vmatprep.subr.bf16.mxu1 %v11702_v25 }
 0x442   :  { %v1500_v31 = vpop.f32.mrf.mxu0  ;;  %v1541_v30 = vpop.f32.mrf.mxu1 }
 0x443   :  { %v1501_v32 = vadd.f32 %v1500_v31, %v11703_v28  ;;  %v1542_v25 = vadd.f32 %v1541_v30, %v11706_v46 }
 0x444   :  { %v1502_v27 = vpop.f32.mrf.mxu0  ;;  %v1543_v23 = vpop.f32.mrf.mxu1 }
 0x445   :  { %v1548_v22 = vmul.f32 0.5, %v1501_v32  ;;  %v1503_v53 = vadd.f32 %v1502_v27, %v11704_v33  ;;  %v1544_v24 = vadd.f32 %v1543_v23, %v11705_v44  ;;  %v1550_v29 = vmul.f32 0.5, %v1542_v25 }
 0x446   :  { %v1504_v19 = vpop.f32.mrf.mxu0  ;;  %v1545_v21 = vpop.f32.mrf.mxu1 }
 0x447   :  { %6546 = vtanh.f32 %v1548_v22  ;;  %v1549_v39 = vmul.f32 0.5, %v1503_v53 }
 0x448   :  { %v1505_v20 = vpop.f32.mrf.mxu0  ;;  %v1546_v18 = vpop.f32.mrf.mxu1 }
 0x449   :  { %6548 = vtanh.f32 %v1549_v39 }
 0x44a   :  { %6550 = vtanh.f32 %v1544_v24 }
 0x44b   :  { %6552 = vtanh.f32 %v1550_v29 }
 0x454   :  { %v6547_v16 = vpop.eup %6546 }
 0x455   :  { %v1554_v31 = vmul.f32 0.5, %v6547_v16 }
 0x456   :  { %v6549_v28 = vpop.eup %6548 }
 0x457   :  { %v1557_v15 = vadd.f32 0.5, %v1554_v31  ;;  %v1555_v32 = vmul.f32 0.5, %v6549_v28  ;;  %v6551_v19 = vpop.eup %6550 }
 0x458   :  { %v6553_v30 = vpop.eup %6552 }
 0x459   :  { %v1558_v27 = vadd.f32 0.5, %v1555_v32  ;;  %v1562_v22 = vmul.f32 %v6551_v19, %v1557_v15  ;;  %v1556_v31 = vmul.f32 0.5, %v6553_v30 }
 0x45b   :  { %v1561_v21 = vmul.f32 %v1558_v27, %v8107_v17 }
 0x45d   :  { %v8349_v20 = vadd.f32 %v1562_v22, %v1561_v21  ;;  %v1559_v22 = vadd.f32 0.5, %v1556_v31 }
 0x45f   :  { %11776 = vst [vmem:[#allocation82_spill] sm:$0xff] %v8349_v20  ;;  %6554 = vtanh.f32 %v8349_v20 }
 0x462   :  { %v1600_v18 = vpop.f32.mrf.mxu0  ;;  %v1641_v23 = vpop.f32.mrf.mxu1 }
 0x463   :  { %v1652_v53 = vrot.slane %v1600_v18, 5  ;;  %v1654_v46 = vrot.slane %v1641_v23, 5  ;;  %v1678_v23 = vrot.slane %v8115_v26, 7  ;;  %v11797_v26 = vld [vmem:[#allocation52_spill] sm:$0xff] }
 0x464   :  { %v1602_v39 = vpop.f32.mrf.mxu0  ;;  %v1643_v24 = vpop.f32.mrf.mxu1 }
 0x465   :  { %v1660_v16 = vadd.f32 %v1652_v53, %v11663_v54  ;;  %v1653_v25 = vrot.slane %v1602_v39, 5  ;;  %v1655_v15 = vrot.slane %v1643_v24, 5  ;;  %v1662_v39 = vadd.f32 %v1654_v46, %v7800_v61 }
 0x466   :  { %v1604_v29 = vpop.f32.mrf.mxu0  ;;  %v1645_v28 = vpop.f32.mrf.mxu1 }
 0x467   :  { %v1664_v32 = vmul.f32 0.5, %v1660_v16  ;;  %v1661_v17 = vadd.f32 %v1653_v25, %v7789_v59  ;;  %v1663_v18 = vadd.f32 %v1655_v15, %v7796_v51  ;;  %v1666_v29 = vmul.f32 0.5, %v1662_v39 }
 0x468   :  { %v1605_v27 = vpop.f32.mrf.mxu0  ;;  %v1646_v19 = vpop.f32.mrf.mxu1 }
 0x469   :  { %6556 = vtanh.f32 %v1664_v32  ;;  %v1665_v21 = vmul.f32 0.5, %v1661_v17 }
 0x46b   :  { %6558 = vtanh.f32 %v1665_v21 }
 0x46c   :  { %v6555_v20 = vpop.eup %6554  ;;  %6560 = vtanh.f32 %v1663_v18 }
 0x46d   :  { %v1565_v44 = vmul.f32 %v6555_v20, %v1559_v22  ;;  %6562 = vtanh.f32 %v1666_v29  ;;  %v11808_v29 = vld [vmem:[#allocation63_spill] sm:$0xff] }
 0x46f   :  { %v1686_v53 = vrot.slane %v1565_v44, 5 }
 0x471   :  { %v1689_v30 = vpack.c.bf16 %v1686_v53, %v1686_v53 }
 0x473   :  { %v1695_v16 = vshrl.u32 %v1689_v30, 16 }
 0x475   :  { %v1697_v25 = vrot.slane %v1695_v16, 1 }
 0x476   :  { %v6557_v24 = vpop.eup %6556 }
 0x477   :  { %v1670_v28 = vmul.f32 0.5, %v6557_v24  ;;  %1732 = vmatprep.mubr.bf16.mxu0 %v1697_v25  ;;  %1773 = vmatprep.mubr.bf16.mxu1 %v1697_v25  ;;  %v11809_v25 = vld [vmem:[#allocation64_spill] sm:$0xff]  ;;  %v11810_v24 = vld [vmem:[#allocation65_spill] sm:$0xff] }
 0x478   :  { %v6559_v32 = vpop.eup %6558 }
 0x479   :  { %v1673_v31 = vadd.f32 0.5, %v1670_v28  ;;  %v1671_v17 = vmul.f32 0.5, %v6559_v32  ;;  %v6561_v20 = vpop.eup %6560  ;;  %v11811_v28 = vld [vmem:[#allocation66_spill] sm:$0xff]  ;;  %v11812_v32 = vld [vmem:[#allocation67_spill] sm:$0xff] }
 0x47a   :  { %v6563_v46 = vpop.eup %6562 }
 0x47b   :  { %v1674_v15 = vadd.f32 0.5, %v1671_v17  ;;  %v1681_v44 = vmul.f32 %v6561_v20, %v1673_v31  ;;  %v1672_v21 = vmul.f32 0.5, %v6563_v46  ;;  %v11813_v31 = vld [vmem:[#allocation16_spill] sm:$0xff]  ;;  %v11814_v17 = vld [vmem:[#allocation17_spill] sm:$0xff]  ;;  %v11820_v46 = vld [vmem:[#allocation27_spill] sm:$0xff] }
 0x47c   :  { %v11817_v20 = vld [vmem:[#allocation24_spill] sm:$0xff] }
 0x47d   :  { %v1680_v27 = vmul.f32 %v1678_v23, %v1674_v15  ;;  %v1675_v22 = vadd.f32 0.5, %v1672_v21  ;;  %v11815_v15 = vld [vmem:[#allocation22_spill] sm:$0xff]  ;;  %v11816_v23 = vld [vmem:[#allocation23_spill] sm:$0xff]  ;;  %v11821_v21 = vld [vmem:[#allocation28_spill] sm:$0xff] }
 0x47f   :  { %v8357_v19 = vadd.f32 %v1681_v44, %v1680_v27  ;;  %v11818_v27 = vld [vmem:[#allocation25_spill] sm:$0xff]  ;;  %v11819_v44 = vld [vmem:[#allocation26_spill] sm:$0xff] }
 0x481   :  { %6564 = vtanh.f32 %v8357_v19 }
 0x48e   :  { %v6565_v18 = vpop.eup %6564 }
 0x48f   :  { %v1684_v53 = vmul.f32 %v6565_v18, %v1675_v22  ;;  %v11822_v22 = vld [vmem:[#allocation29_spill] sm:$0xff]  ;;  %v11823_v18 = vld [vmem:[#allocation30_spill] sm:$0xff] }
 0x491   :  { %v1688_v39 = vpack.c.bf16 %v1684_v53, %v1684_v53  ;;  %v11824_v53 = vld [vmem:[#allocation31_spill] sm:$0xff] }
 0x493   :  { %v1691_v30 = vshrl.u32 %v1688_v39, 16  ;;  %v11825_v39 = vld [vmem:[#allocation32_spill] sm:$0xff] }
 0x495   :  { %v1693_v16 = vrot.slane %v1691_v30, 1  ;;  %v11826_v30 = vld [vmem:[#allocation73_spill] sm:$0xff] }
 0x497   :  { %1733 = vmatmul.mubr.bf16.vlgmr.msra.gmra.mxu0 %v1693_v16  ;;  %1774 = vmatmul.mubr.bf16.vlgmr.msra.gmra.mxu1 %v1693_v16 }
 0x498   :  { %1801 = vmatpush1.bf16.msra.mxu0 %v7942_v0  ;;  %1842 = vmatpush1.bf16.msra.mxu1 %v7945_v6  ;;  %v11777_v0 = vld [vmem:[#allocation33_spill] sm:$0xff]  ;;  %v11778_v6 = vld [vmem:[#allocation34_spill] sm:$0xff] }
 0x499   :  { %1802 = vmatprep.subr.bf16.mxu0 %v7948_v3  ;;  %1843 = vmatprep.subr.bf16.mxu1 %v7951_v56  ;;  %v11779_v3 = vld [vmem:[#allocation35_spill] sm:$0xff]  ;;  %v11780_v56 = vld [vmem:[#allocation36_spill] sm:$0xff] }
 0x49a   :  { %1832 = vmatprep.mubr.bf16.mxu0 %v11600_v57  ;;  %1873 = vmatprep.mubr.bf16.mxu1 %v11600_v57 }
 0x49c   :  { %1803 = vmatpush1.bf16.msra.mxu0 %v7956_v36  ;;  %1844 = vmatpush1.bf16.msra.mxu1 %v7959_v1  ;;  %v11781_v36 = vld [vmem:[#allocation37_spill] sm:$0xff]  ;;  %v11782_v1 = vld [vmem:[#allocation38_spill] sm:$0xff] }
 0x49d   :  { %1804 = vmatprep.subr.bf16.mxu0 %v7962_v62  ;;  %1845 = vmatprep.subr.bf16.mxu1 %v7965_v55  ;;  %v11783_v62 = vld [vmem:[#allocation39_spill] sm:$0xff]  ;;  %v11784_v55 = vld [vmem:[#allocation40_spill] sm:$0xff] }
 0x4a0   :  { %1805 = vmatpush1.bf16.msra.mxu0 %v7968_v35  ;;  %1846 = vmatpush1.bf16.msra.mxu1 %v7971_v63  ;;  %v11785_v35 = vld [vmem:[#allocation71_spill] sm:$0xff]  ;;  %v11786_v63 = vld [vmem:[#allocation41_spill] sm:$0xff] }
 0x4a1   :  { %1806 = vmatprep.subr.bf16.mxu0 %v7974_v7  ;;  %1847 = vmatprep.subr.bf16.mxu1 %v7977_v2  ;;  %v11787_v7 = vld [vmem:[#allocation42_spill] sm:$0xff]  ;;  %v11788_v2 = vld [vmem:[#allocation43_spill] sm:$0xff] }
 0x4a4   :  { %1807 = vmatpush1.bf16.msra.mxu0 %v7980_v58  ;;  %1848 = vmatpush1.bf16.msra.mxu1 %v7983_v4  ;;  %v11789_v58 = vld [vmem:[#allocation44_spill] sm:$0xff]  ;;  %v11790_v4 = vld [vmem:[#allocation45_spill] sm:$0xff] }
 0x4a5   :  { %1808 = vmatprep.subr.bf16.mxu0 %v11708_v34  ;;  %1849 = vmatprep.subr.bf16.mxu1 %v11709_v40  ;;  %v11798_v34 = vld [vmem:[#allocation53_spill] sm:$0xff]  ;;  %v11799_v40 = vld [vmem:[#allocation54_spill] sm:$0xff] }
 0x4a8   :  { %1809 = vmatpush1.bf16.msra.mxu0 %v11710_v41  ;;  %1850 = vmatpush1.bf16.msra.mxu1 %v11711_v42  ;;  %v11800_v41 = vld [vmem:[#allocation55_spill] sm:$0xff]  ;;  %v11801_v42 = vld [vmem:[#allocation56_spill] sm:$0xff] }
 0x4a9   :  { %1810 = vmatprep.subr.bf16.mxu0 %v11712_v43  ;;  %1851 = vmatprep.subr.bf16.mxu1 %v11713_v45  ;;  %v11802_v43 = vld [vmem:[#allocation57_spill] sm:$0xff]  ;;  %v11803_v45 = vld [vmem:[#allocation58_spill] sm:$0xff] }
 0x4ac   :  { %1811 = vmatpush1.bf16.msra.mxu0 %v11714_v47  ;;  %1852 = vmatpush1.bf16.msra.mxu1 %v11715_v48  ;;  %v11804_v47 = vld [vmem:[#allocation59_spill] sm:$0xff]  ;;  %v11805_v48 = vld [vmem:[#allocation60_spill] sm:$0xff] }
 0x4ad   :  { %1812 = vmatprep.subr.bf16.mxu0 %v11716_v49  ;;  %1853 = vmatprep.subr.bf16.mxu1 %v11717_v50  ;;  %v11806_v49 = vld [vmem:[#allocation61_spill] sm:$0xff]  ;;  %v11807_v50 = vld [vmem:[#allocation62_spill] sm:$0xff] }
 0x4b0   :  { %1813 = vmatpush1.bf16.msra.mxu0 %v8016_v5  ;;  %1854 = vmatpush1.bf16.msra.mxu1 %v8019_v10  ;;  %v11795_v5 = vld [vmem:[#allocation50_spill] sm:$0xff]  ;;  %v11796_v10 = vld [vmem:[#allocation51_spill] sm:$0xff] }
 0x4b1   :  { %1814 = vmatprep.subr.bf16.mxu0 %v8022_v60  ;;  %1855 = vmatprep.subr.bf16.mxu1 %v8025_v52  ;;  %v11791_v60 = vld [vmem:[#allocation46_spill] sm:$0xff]  ;;  %v11792_v52 = vld [vmem:[#allocation47_spill] sm:$0xff] }
 0x4b4   :  { %1815 = vmatpush1.bf16.msra.mxu0 %v8028_v38  ;;  %1856 = vmatpush1.bf16.msra.mxu1 %v8031_v37  ;;  %v11793_v38 = vld [vmem:[#allocation48_spill] sm:$0xff]  ;;  %v11794_v37 = vld [vmem:[#allocation49_spill] sm:$0xff] }
 0x4b5   :  { %1930 = vmatprep.subr.bf16.mxu0 %v8150_v8  ;;  %1971 = vmatprep.subr.bf16.mxu1 %v8153_v9 }
 0x4b7   :  { %1833 = vmatmul.mubr.bf16.vlgmr.msra.gmra.mxu0 %v1693_v16  ;;  %1874 = vmatmul.mubr.bf16.vlgmr.msra.gmra.mxu1 %v1693_v16  ;;  %v11827_v16 = vld [vmem:[#allocation74_spill] sm:$0xff] }
 0x4b8   :  { %1931 = vmatpush1.bf16.msra.mxu0 %v8156_v11  ;;  %1972 = vmatpush1.bf16.msra.mxu1 %v8159_v12 }
 0x4b9   :  { %1932 = vmatprep.subr.bf16.mxu0 %v8162_v13  ;;  %1973 = vmatprep.subr.bf16.mxu1 %v8165_v14 }
 0x4bc   :  { %1933 = vmatpush1.bf16.msra.mxu0 %v11777_v0  ;;  %1974 = vmatpush1.bf16.msra.mxu1 %v11778_v6 }
 0x4bd   :  { %1934 = vmatprep.subr.bf16.mxu0 %v11779_v3  ;;  %1975 = vmatprep.subr.bf16.mxu1 %v11780_v56 }
 0x4c0   :  { %1935 = vmatpush1.bf16.msra.mxu0 %v11781_v36  ;;  %1976 = vmatpush1.bf16.msra.mxu1 %v11782_v1 }
 0x4c1   :  { %1936 = vmatprep.subr.bf16.mxu0 %v11783_v62  ;;  %1977 = vmatprep.subr.bf16.mxu1 %v11784_v55 }
 0x4c4   :  { %1937 = vmatpush1.bf16.msra.mxu0 %v11785_v35  ;;  %1978 = vmatpush1.bf16.msra.mxu1 %v11786_v63 }
 0x4c5   :  { %1938 = vmatprep.subr.bf16.mxu0 %v11787_v7  ;;  %1979 = vmatprep.subr.bf16.mxu1 %v11788_v2 }
 0x4c8   :  { %1939 = vmatpush1.bf16.msra.mxu0 %v11789_v58  ;;  %1980 = vmatpush1.bf16.msra.mxu1 %v11790_v4 }
 0x4c9   :  { %1940 = vmatprep.subr.bf16.mxu0 %v11791_v60  ;;  %1981 = vmatprep.subr.bf16.mxu1 %v11792_v52 }
 0x4cc   :  { %1941 = vmatpush1.bf16.msra.mxu0 %v11793_v38  ;;  %1982 = vmatpush1.bf16.msra.mxu1 %v11794_v37 }
 0x4cd   :  { %1942 = vmatprep.subr.bf16.mxu0 %v11795_v5  ;;  %1983 = vmatprep.subr.bf16.mxu1 %v11796_v10 }
 0x4d0   :  { %1943 = vmatpush1.bf16.msra.mxu0 %v11797_v26  ;;  %1984 = vmatpush1.bf16.msra.mxu1 %v11798_v34 }
 0x4d1   :  { %1944 = vmatprep.subr.bf16.mxu0 %v11799_v40  ;;  %1985 = vmatprep.subr.bf16.mxu1 %v11800_v41 }
 0x4d4   :  { %1945 = vmatpush1.bf16.msra.mxu0 %v11801_v42  ;;  %1986 = vmatpush1.bf16.msra.mxu1 %v11802_v43 }
 0x4d5   :  { %1946 = vmatprep.subr.bf16.mxu0 %v11803_v45  ;;  %1987 = vmatprep.subr.bf16.mxu1 %v11804_v47 }
 0x4d8   :  { %1947 = vmatpush2.bf16.msra.mxu0 %v11805_v48  ;;  %1988 = vmatpush2.bf16.msra.mxu1 %v11806_v49 }
 0x4d9   :  { %1948 = vmatprep.subr.bf16.mxu0 %v11807_v50  ;;  %1989 = vmatprep.subr.bf16.mxu1 %v11808_v29 }
 0x4dc   :  { %1949 = vmatpush2.bf16.msra.mxu0 %v11809_v25  ;;  %1990 = vmatpush2.bf16.msra.mxu1 %v11810_v24 }
 0x4dd   :  { %1950 = vmatprep.subr.bf16.mxu0 %v11811_v28  ;;  %1991 = vmatprep.subr.bf16.mxu1 %v11812_v32 }
 0x4e0   :  { %1951 = vmatpush2.bf16.msra.mxu0 %v11813_v31  ;;  %1992 = vmatpush2.bf16.msra.mxu1 %v11814_v17 }
 0x4e1   :  { %1952 = vmatprep.subr.bf16.mxu0 %v11815_v15  ;;  %1993 = vmatprep.subr.bf16.mxu1 %v11816_v23 }
 0x4e4   :  { %1953 = vmatpush2.bf16.msra.mxu0 %v11817_v20  ;;  %1994 = vmatpush2.bf16.msra.mxu1 %v11818_v27  ;;  %v11828_v20 = vld [vmem:[#allocation75_spill] sm:$0xff]  ;;  %v11829_v27 = vld [vmem:[#allocation76_spill] sm:$0xff] }
 0x4e5   :  { %1954 = vmatprep.subr.bf16.mxu0 %v11819_v44  ;;  %1995 = vmatprep.subr.bf16.mxu1 %v11820_v46  ;;  %v11830_v44 = vld [vmem:[#allocation77_spill] sm:$0xff]  ;;  %v11831_v46 = vld [vmem:[#allocation78_spill] sm:$0xff] }
 0x4e8   :  { %1955 = vmatpush2.bf16.msra.mxu0 %v11821_v21  ;;  %1996 = vmatpush2.bf16.msra.mxu1 %v11822_v22  ;;  %v11832_v21 = vld [vmem:[#allocation79_spill] sm:$0xff]  ;;  %v11833_v22 = vld [vmem:[#allocation80_spill] sm:$0xff] }
 0x4e9   :  { %1956 = vmatprep.subr.bf16.mxu0 %v11823_v18  ;;  %1997 = vmatprep.subr.bf16.mxu1 %v11824_v53  ;;  %v11834_v18 = vld [vmem:[#allocation81_spill] sm:$0xff]  ;;  %v8456_v53 = vld [vmem:[#allocation2 + $0xe4] ss:$16 sps:$4 sm:$0xff]  }
 0x4ea   :  { %11835 = vst [vmem:[#allocation33_spill] sm:$0xff] %v8456_v53 }
 0x4ec   :  { %1957 = vmatpush2.bf16.msra.mxu0 %v11825_v39  ;;  %1998 = vmatpush2.bf16.msra.mxu1 %v11826_v30  ;;  %v8459_v30 = vld [vmem:[#allocation2 + $0xec] ss:$16 sps:$4 sm:$0xff]  }
 0x4ed   :  { %1958 = vmatprep.subr.bf16.mxu0 %v11827_v16  ;;  %1999 = vmatprep.subr.bf16.mxu1 %v11828_v20  ;;  %11836 = vst [vmem:[#allocation34_spill] sm:$0xff] %v8459_v30  ;;  %v11837_v16 = vld [vmem:[#allocation18_spill] sm:$0xff] }
 0x4f0   :  { %1959 = vmatpush2.bf16.msra.mxu0 %v11829_v27  ;;  %2000 = vmatpush2.bf16.msra.mxu1 %v11830_v44 }
 0x4f1   :  { %1960 = vmatprep.subr.bf16.mxu0 %v11831_v46  ;;  %2001 = vmatprep.subr.bf16.mxu1 %v11832_v21 }
 0x4f4   :  { %1961 = vmatpush2.bf16.msra.mxu0 %v11833_v22  ;;  %2002 = vmatpush2.bf16.msra.mxu1 %v11834_v18 }
 0x4f5   :  { %2030 = vmatprep.subr.bf16.mxu0 %v8456_v53  ;;  %2071 = vmatprep.subr.bf16.mxu1 %v8459_v30  ;;  %v11838_v53 = vld [vmem:[#allocation20_spill] sm:$0xff]  ;;  %v11839_v30 = vld [vmem:[#allocation21_spill] sm:$0xff] }
 0x557   :  { %v1734_v20 = vpop.f32.mrf.mxu0  ;;  %v1775_v27 = vpop.f32.mrf.mxu1 }
 0x558   :  { %v1735_v44 = vadd.f32 %v1734_v20, %v11837_v16  ;;  %v1776_v28 = vadd.f32 %v1775_v27, %v11839_v30 }
 0x559   :  { %v1736_v39 = vpop.f32.mrf.mxu0  ;;  %v1777_v46 = vpop.f32.mrf.mxu1 }
 0x55a   :  { %v1782_v23 = vmul.f32 0.5, %v1735_v44  ;;  %v1737_v21 = vadd.f32 %v1736_v39, %v11704_v33  ;;  %v1778_v32 = vadd.f32 %v1777_v46, %v11838_v53  ;;  %v1784_v24 = vmul.f32 0.5, %v1776_v28 }
 0x55b   :  { %v1738_v22 = vpop.f32.mrf.mxu0  ;;  %v1779_v15 = vpop.f32.mrf.mxu1 }
 0x55c   :  { %6566 = vtanh.f32 %v1782_v23  ;;  %v1783_v18 = vmul.f32 0.5, %v1737_v21  ;;  %v11840_v15 = vld [vmem:[#allocation82_spill] sm:$0xff] }
 0x55d   :  { %v1739_v17 = vpop.f32.mrf.mxu0  ;;  %v1780_v31 = vpop.f32.mrf.mxu1 }
 0x55e   :  { %6568 = vtanh.f32 %v1783_v18 }
 0x55f   :  { %6570 = vtanh.f32 %v1778_v32 }
 0x560   :  { %6572 = vtanh.f32 %v1784_v24 }
 0x569   :  { %v6567_v25 = vpop.eup %6566 }
 0x56a   :  { %v1788_v20 = vmul.f32 0.5, %v6567_v25 }
 0x56b   :  { %v6569_v16 = vpop.eup %6568 }
 0x56c   :  { %v1791_v29 = vadd.f32 0.5, %v1788_v20  ;;  %v1789_v44 = vmul.f32 0.5, %v6569_v16  ;;  %v6571_v22 = vpop.eup %6570 }
 0x56d   :  { %v6573_v27 = vpop.eup %6572 }
 0x56e   :  { %v1792_v39 = vadd.f32 0.5, %v1789_v44  ;;  %v1796_v21 = vmul.f32 %v6571_v22, %v1791_v29  ;;  %v1790_v44 = vmul.f32 0.5, %v6573_v27 }
 0x570   :  { %v1795_v23 = vmul.f32 %v1792_v39, %v11840_v15 }
 0x572   :  { %v8467_v17 = vadd.f32 %v1796_v21, %v1795_v23  ;;  %v1793_v21 = vadd.f32 0.5, %v1790_v44 }
 0x574   :  { %11841 = vst [vmem:[#allocation35_spill] sm:$0xff] %v8467_v17  ;;  %6574 = vtanh.f32 %v8467_v17 }
 0x577   :  { %v1834_v31 = vpop.f32.mrf.mxu0  ;;  %v1875_v32 = vpop.f32.mrf.mxu1 }
 0x578   :  { %v1886_v46 = vrot.slane %v1834_v31, 4  ;;  %v1888_v53 = vrot.slane %v1875_v32, 4 }
 0x579   :  { %v1836_v28 = vpop.f32.mrf.mxu0  ;;  %v1877_v18 = vpop.f32.mrf.mxu1 }
 0x57a   :  { %v1894_v25 = vadd.f32 %v1886_v46, %v11663_v54  ;;  %v1887_v20 = vrot.slane %v1836_v28, 4  ;;  %v1889_v29 = vrot.slane %v1877_v18, 4  ;;  %v1896_v28 = vadd.f32 %v1888_v53, %v7800_v61 }
 0x57b   :  { %v1838_v24 = vpop.f32.mrf.mxu0  ;;  %v1879_v16 = vpop.f32.mrf.mxu1 }
 0x57c   :  { %v1898_v30 = vmul.f32 0.5, %v1894_v25  ;;  %v1895_v39 = vadd.f32 %v1887_v20, %v7789_v59  ;;  %v1897_v31 = vadd.f32 %v1889_v29, %v7796_v51  ;;  %v1900_v24 = vmul.f32 0.5, %v1896_v28 }
 0x57d   :  { %v1839_v22 = vpop.f32.mrf.mxu0  ;;  %v1880_v15 = vpop.f32.mrf.mxu1  ;;  %v1912_v29 = vrot.slane %v8357_v19, 7  ;;  %v8482_v19 = vld [vmem:[#allocation2 + $0xe0] ss:$16 sps:$4 sm:$0xff]  }
 0x57e   :  { %6576 = vtanh.f32 %v1898_v30  ;;  %v1899_v23 = vmul.f32 0.5, %v1895_v39 }
 0x580   :  { %6578 = vtanh.f32 %v1899_v23 }
 0x581   :  { %v6575_v17 = vpop.eup %6574  ;;  %6580 = vtanh.f32 %v1897_v31 }
 0x582   :  { %v1799_v33 = vmul.f32 %v6575_v17, %v1793_v21  ;;  %6582 = vtanh.f32 %v1900_v24  ;;  %v8491_v24 = vld [vmem:[#allocation2 + $0xcc] ss:$16 sps:$4 sm:$0xff]  }
 0x584   :  { %v1920_v46 = vrot.slane %v1799_v33, 4 }
 0x586   :  { %v1923_v27 = vpack.c.bf16 %v1920_v46, %v1920_v46 }
 0x588   :  { %v1927_v25 = vrot.slane %v1923_v27, 2  ;;  %v8485_v27 = vld [vmem:[#allocation2 + $0xe8] ss:$16 sps:$4 sm:$0xff]  }
 0x58a   :  { %1962 = vmatprep.mubr.bf16.mxu0 %v1927_v25  ;;  %2003 = vmatprep.mubr.bf16.mxu1 %v1927_v25  ;;  %v8488_v25 = vld [vmem:[#allocation2 + $0xc4] ss:$16 sps:$4 sm:$0xff]  }
 0x58b   :  { %v6577_v18 = vpop.eup %6576 }
 0x58c   :  { %v1904_v20 = vmul.f32 0.5, %v6577_v18  ;;  %v8496_v18 = vld [vmem:[#allocation2 + $0xc0] ss:$16 sps:$4 sm:$0xff]  }
 0x58d   :  { %v6579_v30 = vpop.eup %6578 }
 0x58e   :  { %v1907_v16 = vadd.f32 0.5, %v1904_v20  ;;  %v1905_v44 = vmul.f32 0.5, %v6579_v30  ;;  %v6581_v32 = vpop.eup %6580  ;;  %v8499_v20 = vld [vmem:[#allocation2 + $0xc8] ss:$16 sps:$4 sm:$0xff]   ;;  %v8502_v30 = vld [vmem:[#allocation2 + $0xa4] ss:$16 sps:$4 sm:$0xff]  }
 0x58f   :  { %v6583_v53 = vpop.eup %6582 }
 0x590   :  { %v1908_v39 = vadd.f32 0.5, %v1905_v44  ;;  %v1915_v22 = vmul.f32 %v6581_v32, %v1907_v16  ;;  %v1906_v15 = vmul.f32 0.5, %v6583_v53  ;;  %v8505_v16 = vld [vmem:[#allocation2 + $0xac] ss:$16 sps:$4 sm:$0xff]   ;;  %v8508_v44 = vld [vmem:[#allocation2 + $0xa0] ss:$16 sps:$4 sm:$0xff]  }
 0x591   :  { %v8517_v32 = vld [vmem:[#allocation2 + $0x8c] ss:$16 sps:$4 sm:$0xff]   ;;  %v8526_v53 = vld [vmem:[#allocation2 + $0x64] ss:$16 sps:$4 sm:$0xff]  }
 0x592   :  { %v1914_v17 = vmul.f32 %v1912_v29, %v1908_v39  ;;  %v1909_v23 = vadd.f32 0.5, %v1906_v15  ;;  %v8511_v39 = vld [vmem:[#allocation2 + $0xa8] ss:$16 sps:$4 sm:$0xff]   ;;  %v8514_v29 = vld [vmem:[#allocation2 + $0x84] ss:$16 sps:$4 sm:$0xff]   ;;  %11842 = vst [vmem:[#allocation36_spill] sm:$0xff] %v8526_v53 }
 0x593   :  { %v8529_v15 = vld [vmem:[#allocation2 + $0x6c] ss:$16 sps:$4 sm:$0xff]  }
 0x594   :  { %v8475_v33 = vadd.f32 %v1915_v22, %v1914_v17  ;;  %v8520_v17 = vld [vmem:[#allocation2 + $0x80] ss:$16 sps:$4 sm:$0xff]   ;;  %v8523_v22 = vld [vmem:[#allocation2 + $0x88] ss:$16 sps:$4 sm:$0xff]   ;;  %11843 = vst [vmem:[#allocation37_spill] sm:$0xff] %v8529_v15 }
 0x596   :  { %6584 = vtanh.f32 %v8475_v33 }
 0x5a3   :  { %v6585_v21 = vpop.eup %6584 }
 0x5a4   :  { %v1918_v31 = vmul.f32 %v6585_v21, %v1909_v23  ;;  %v8532_v23 = vld [vmem:[#allocation2 + $0x60] ss:$16 sps:$4 sm:$0xff]   ;;  %v8535_v21 = vld [vmem:[#allocation2 + $0x68] ss:$16 sps:$4 sm:$0xff]  }
 0x5a5   :  { %11844 = vst [vmem:[#allocation38_spill] sm:$0xff] %v8532_v23  ;;  %11845 = vst [vmem:[#allocation39_spill] sm:$0xff] %v8535_v21 }
 0x5a6   :  { %v1922_v46 = vpack.c.bf16 %v1918_v31, %v1918_v31  ;;  %v8538_v31 = vld [vmem:[#allocation2 + $0x44] ss:$16 sps:$4 sm:$0xff]  }
 0x5a7   :  { %11846 = vst [vmem:[#allocation40_spill] sm:$0xff] %v8538_v31 }
 0x5a8   :  { %v8478_v28 = vrot.slane %v1922_v46, 2  ;;  %v8541_v46 = vld [vmem:[#allocation2 + $0x4c] ss:$16 sps:$4 sm:$0xff]  }
 0x5a9   :  { %11847 = vst [vmem:[#allocation71_spill] sm:$0xff] %v8541_v46 }
 0x5aa   :  { %1963 = vmatmul.mubr.bf16.vlgmr.msra.gmra.mxu0 %v8478_v28  ;;  %2004 = vmatmul.mubr.bf16.vlgmr.msra.gmra.mxu1 %v8478_v28 }
 0x5ab   :  { %2031 = vmatpush1.bf16.msra.mxu0 %v8482_v19  ;;  %2072 = vmatpush1.bf16.msra.mxu1 %v8485_v27 }
 0x5ac   :  { %2032 = vmatprep.subr.bf16.mxu0 %v8488_v25  ;;  %2073 = vmatprep.subr.bf16.mxu1 %v8491_v24 }
 0x5ad   :  { %2062 = vmatprep.mubr.bf16.mxu0 %v11600_v57  ;;  %2103 = vmatprep.mubr.bf16.mxu1 %v11600_v57 }
 0x5af   :  { %2033 = vmatpush1.bf16.msra.mxu0 %v8496_v18  ;;  %2074 = vmatpush1.bf16.msra.mxu1 %v8499_v20 }
 0x5b0   :  { %2034 = vmatprep.subr.bf16.mxu0 %v8502_v30  ;;  %2075 = vmatprep.subr.bf16.mxu1 %v8505_v16 }
 0x5b3   :  { %2035 = vmatpush1.bf16.msra.mxu0 %v8508_v44  ;;  %2076 = vmatpush1.bf16.msra.mxu1 %v8511_v39 }
 0x5b4   :  { %2036 = vmatprep.subr.bf16.mxu0 %v8514_v29  ;;  %2077 = vmatprep.subr.bf16.mxu1 %v8517_v32 }
 0x5b7   :  { %2037 = vmatpush1.bf16.msra.mxu0 %v8520_v17  ;;  %2078 = vmatpush1.bf16.msra.mxu1 %v8523_v22 }
 0x5b8   :  { %2038 = vmatprep.subr.bf16.mxu0 %v8526_v53  ;;  %2079 = vmatprep.subr.bf16.mxu1 %v8529_v15  ;;  %v8544_v53 = vld [vmem:[#allocation2 + $0x40] ss:$16 sps:$4 sm:$0xff]   ;;  %v8547_v15 = vld [vmem:[#allocation2 + $0x48] ss:$16 sps:$4 sm:$0xff]  }
 0x5b9   :  { %11848 = vst [vmem:[#allocation41_spill] sm:$0xff] %v8544_v53  ;;  %11849 = vst [vmem:[#allocation42_spill] sm:$0xff] %v8547_v15 }
 0x5bb   :  { %2039 = vmatpush1.bf16.msra.mxu0 %v8532_v23  ;;  %2080 = vmatpush1.bf16.msra.mxu1 %v8535_v21  ;;  %v8550_v23 = vld [vmem:[#allocation2 + $0x24] ss:$16 sps:$4 sm:$0xff]   ;;  %v8553_v21 = vld [vmem:[#allocation2 + $0x2c] ss:$16 sps:$4 sm:$0xff]  }
 0x5bc   :  { %2040 = vmatprep.subr.bf16.mxu0 %v8538_v31  ;;  %2081 = vmatprep.subr.bf16.mxu1 %v8541_v46  ;;  %11850 = vst [vmem:[#allocation43_spill] sm:$0xff] %v8550_v23  ;;  %11851 = vst [vmem:[#allocation44_spill] sm:$0xff] %v8553_v21  ;;  %v8556_v31 = vld [vmem:[#allocation2 + $0x20] ss:$16 sps:$4 sm:$0xff]   ;;  %v8559_v46 = vld [vmem:[#allocation2 + $0x28] ss:$16 sps:$4 sm:$0xff]  }
 0x5bf   :  { %2041 = vmatpush1.bf16.msra.mxu0 %v8544_v53  ;;  %2082 = vmatpush1.bf16.msra.mxu1 %v8547_v15  ;;  %v8562_v53 = vld [vmem:[#allocation2 + $0x4] ss:$16 sps:$4 sm:$0xff]   ;;  %v8565_v15 = vld [vmem:[#allocation2 + $0xc] ss:$16 sps:$4 sm:$0xff]  }
 0x5c0   :  { %2042 = vmatprep.subr.bf16.mxu0 %v8550_v23  ;;  %2083 = vmatprep.subr.bf16.mxu1 %v8553_v21  ;;  %v8568_v23 = vld [vmem:[#allocation2] ss:$16 sps:$4 sm:$0xff]   ;;  %v8571_v21 = vld [vmem:[#allocation2 + $0x8] ss:$16 sps:$4 sm:$0xff]  }
 0x5c3   :  { %2043 = vmatpush1.bf16.msra.mxu0 %v8556_v31  ;;  %2084 = vmatpush1.bf16.msra.mxu1 %v8559_v46 }
 0x5c4   :  { %2044 = vmatprep.subr.bf16.mxu0 %v8562_v53  ;;  %2085 = vmatprep.subr.bf16.mxu1 %v8565_v15 }
 0x5c7   :  { %2045 = vmatpush1.bf16.msra.mxu0 %v8568_v23  ;;  %2086 = vmatpush1.bf16.msra.mxu1 %v8571_v21 }
 0x5c8   :  { %2164 = vmatprep.subr.bf16.mxu0 %v8150_v8  ;;  %2205 = vmatprep.subr.bf16.mxu1 %v8153_v9  ;;  %v11852_v8 = vld [vmem:[#allocation63_spill] sm:$0xff]  ;;  %v11853_v9 = vld [vmem:[#allocation64_spill] sm:$0xff] }
 0x5ca   :  { %2063 = vmatmul.mubr.bf16.vlgmr.msra.gmra.mxu0 %v8478_v28  ;;  %2104 = vmatmul.mubr.bf16.vlgmr.msra.gmra.mxu1 %v8478_v28 }
 0x5cb   :  { %2165 = vmatpush1.bf16.msra.mxu0 %v8156_v11  ;;  %2206 = vmatpush1.bf16.msra.mxu1 %v8159_v12  ;;  %v11854_v11 = vld [vmem:[#allocation65_spill] sm:$0xff]  ;;  %v11855_v12 = vld [vmem:[#allocation66_spill] sm:$0xff] }
 0x5cc   :  { %2166 = vmatprep.subr.bf16.mxu0 %v8162_v13  ;;  %2207 = vmatprep.subr.bf16.mxu1 %v8165_v14  ;;  %v11856_v13 = vld [vmem:[#allocation67_spill] sm:$0xff]  ;;  %v11857_v14 = vld [vmem:[#allocation16_spill] sm:$0xff] }
 0x5cf   :  { %2167 = vmatpush1.bf16.msra.mxu0 %v11777_v0  ;;  %2208 = vmatpush1.bf16.msra.mxu1 %v11778_v6  ;;  %v11858_v0 = vld [vmem:[#allocation17_spill] sm:$0xff]  ;;  %v11859_v6 = vld [vmem:[#allocation22_spill] sm:$0xff] }
 0x5d0   :  { %2168 = vmatprep.subr.bf16.mxu0 %v11779_v3  ;;  %2209 = vmatprep.subr.bf16.mxu1 %v11780_v56  ;;  %v11860_v3 = vld [vmem:[#allocation23_spill] sm:$0xff]  ;;  %v11861_v56 = vld [vmem:[#allocation24_spill] sm:$0xff] }
 0x5d3   :  { %2169 = vmatpush1.bf16.msra.mxu0 %v11781_v36  ;;  %2210 = vmatpush1.bf16.msra.mxu1 %v11782_v1  ;;  %v11862_v36 = vld [vmem:[#allocation25_spill] sm:$0xff]  ;;  %v11863_v1 = vld [vmem:[#allocation26_spill] sm:$0xff] }
 0x5d4   :  { %2170 = vmatprep.subr.bf16.mxu0 %v11783_v62  ;;  %2211 = vmatprep.subr.bf16.mxu1 %v11784_v55  ;;  %v11864_v62 = vld [vmem:[#allocation27_spill] sm:$0xff]  ;;  %v11865_v55 = vld [vmem:[#allocation28_spill] sm:$0xff] }
 0x5d7   :  { %2171 = vmatpush1.bf16.msra.mxu0 %v11785_v35  ;;  %2212 = vmatpush1.bf16.msra.mxu1 %v11786_v63  ;;  %v11866_v35 = vld [vmem:[#allocation29_spill] sm:$0xff]  ;;  %v11867_v63 = vld [vmem:[#allocation30_spill] sm:$0xff] }
 0x5d8   :  { %2172 = vmatprep.subr.bf16.mxu0 %v11787_v7  ;;  %2213 = vmatprep.subr.bf16.mxu1 %v11788_v2  ;;  %v11868_v7 = vld [vmem:[#allocation31_spill] sm:$0xff]  ;;  %v11869_v2 = vld [vmem:[#allocation32_spill] sm:$0xff] }
 0x5db   :  { %2173 = vmatpush1.bf16.msra.mxu0 %v11789_v58  ;;  %2214 = vmatpush1.bf16.msra.mxu1 %v11790_v4  ;;  %v11870_v58 = vld [vmem:[#allocation73_spill] sm:$0xff]  ;;  %v11871_v4 = vld [vmem:[#allocation74_spill] sm:$0xff] }
 0x5dc   :  { %2174 = vmatprep.subr.bf16.mxu0 %v11791_v60  ;;  %2215 = vmatprep.subr.bf16.mxu1 %v11792_v52  ;;  %v11872_v60 = vld [vmem:[#allocation75_spill] sm:$0xff]  ;;  %v11873_v52 = vld [vmem:[#allocation76_spill] sm:$0xff] }
 0x5df   :  { %2175 = vmatpush1.bf16.msra.mxu0 %v11793_v38  ;;  %2216 = vmatpush1.bf16.msra.mxu1 %v11794_v37  ;;  %v11874_v38 = vld [vmem:[#allocation77_spill] sm:$0xff]  ;;  %v11875_v37 = vld [vmem:[#allocation78_spill] sm:$0xff] }
 0x5e0   :  { %2176 = vmatprep.subr.bf16.mxu0 %v11795_v5  ;;  %2217 = vmatprep.subr.bf16.mxu1 %v11796_v10  ;;  %v11876_v5 = vld [vmem:[#allocation79_spill] sm:$0xff]  ;;  %v11877_v10 = vld [vmem:[#allocation80_spill] sm:$0xff] }
 0x5e3   :  { %2177 = vmatpush1.bf16.msra.mxu0 %v11797_v26  ;;  %2218 = vmatpush1.bf16.msra.mxu1 %v11798_v34  ;;  %v11878_v26 = vld [vmem:[#allocation81_spill] sm:$0xff] }
 0x5e4   :  { %2178 = vmatprep.subr.bf16.mxu0 %v11799_v40  ;;  %2219 = vmatprep.subr.bf16.mxu1 %v11800_v41  ;;  %v11879_v34 = vld [vmem:[#allocation33_spill] sm:$0xff]  ;;  %v11880_v40 = vld [vmem:[#allocation34_spill] sm:$0xff] }
 0x5e7   :  { %2179 = vmatpush1.bf16.msra.mxu0 %v11801_v42  ;;  %2220 = vmatpush1.bf16.msra.mxu1 %v11802_v43  ;;  %v11881_v43 = vld [vmem:[#allocation18_spill] sm:$0xff] }
 0x5e8   :  { %2180 = vmatprep.subr.bf16.mxu0 %v11803_v45  ;;  %2221 = vmatprep.subr.bf16.mxu1 %v11804_v47 }
 0x5eb   :  { %2181 = vmatpush2.bf16.msra.mxu0 %v11805_v48  ;;  %2222 = vmatpush2.bf16.msra.mxu1 %v11806_v49 }
 0x5ec   :  { %2182 = vmatprep.subr.bf16.mxu0 %v11807_v50  ;;  %2223 = vmatprep.subr.bf16.mxu1 %v11852_v8  ;;  %v11882_v50 = vld [vmem:[#allocation19_spill] sm:$0xff] }
 0x5ef   :  { %2183 = vmatpush2.bf16.msra.mxu0 %v11853_v9  ;;  %2224 = vmatpush2.bf16.msra.mxu1 %v11854_v11 }
 0x5f0   :  { %2184 = vmatprep.subr.bf16.mxu0 %v11855_v12  ;;  %2225 = vmatprep.subr.bf16.mxu1 %v11856_v13 }
 0x5f3   :  { %2185 = vmatpush2.bf16.msra.mxu0 %v11857_v14  ;;  %2226 = vmatpush2.bf16.msra.mxu1 %v11858_v0  ;;  %v11883_v14 = vld [vmem:[#allocation20_spill] sm:$0xff] }
 0x5f4   :  { %2186 = vmatprep.subr.bf16.mxu0 %v11859_v6  ;;  %2227 = vmatprep.subr.bf16.mxu1 %v11860_v3  ;;  %v11884_v6 = vld [vmem:[#allocation21_spill] sm:$0xff] }
 0x5f7   :  { %2187 = vmatpush2.bf16.msra.mxu0 %v11861_v56  ;;  %2228 = vmatpush2.bf16.msra.mxu1 %v11862_v36 }
 0x5f8   :  { %2188 = vmatprep.subr.bf16.mxu0 %v11863_v1  ;;  %2229 = vmatprep.subr.bf16.mxu1 %v11864_v62 }
 0x5fb   :  { %2189 = vmatpush2.bf16.msra.mxu0 %v11865_v55  ;;  %2230 = vmatpush2.bf16.msra.mxu1 %v11866_v35 }
 0x5fc   :  { %2190 = vmatprep.subr.bf16.mxu0 %v11867_v63  ;;  %2231 = vmatprep.subr.bf16.mxu1 %v11868_v7 }
 0x5ff   :  { %2191 = vmatpush2.bf16.msra.mxu0 %v11869_v2  ;;  %2232 = vmatpush2.bf16.msra.mxu1 %v11870_v58  ;;  %v11885_v2 = vld [vmem:[#allocation35_spill] sm:$0xff] }
 0x600   :  { %2192 = vmatprep.subr.bf16.mxu0 %v11871_v4  ;;  %2233 = vmatprep.subr.bf16.mxu1 %v11872_v60 }
 0x603   :  { %2193 = vmatpush2.bf16.msra.mxu0 %v11873_v52  ;;  %2234 = vmatpush2.bf16.msra.mxu1 %v11874_v38 }
 0x604   :  { %2194 = vmatprep.subr.bf16.mxu0 %v11875_v37  ;;  %2235 = vmatprep.subr.bf16.mxu1 %v11876_v5 }
 0x607   :  { %2195 = vmatpush2.bf16.msra.mxu0 %v11877_v10  ;;  %2236 = vmatpush2.bf16.msra.mxu1 %v11878_v26 }
 0x608   :  { %2264 = vmatprep.subr.bf16.mxu0 %v11879_v34  ;;  %2305 = vmatprep.subr.bf16.mxu1 %v11880_v40 }
 0x66a   :  { %v1964_v41 = vpop.f32.mrf.mxu0  ;;  %v2005_v42 = vpop.f32.mrf.mxu1 }
 0x66b   :  { %v1965_v45 = vadd.f32 %v1964_v41, %v11881_v43  ;;  %v2006_v3 = vadd.f32 %v2005_v42, %v11884_v6 }
 0x66c   :  { %v1966_v47 = vpop.f32.mrf.mxu0  ;;  %v2007_v48 = vpop.f32.mrf.mxu1 }
 0x66d   :  { %v2012_v49 = vmul.f32 0.5, %v1965_v45  ;;  %v1967_v28 = vadd.f32 %v1966_v47, %v11882_v50  ;;  %v2008_v0 = vadd.f32 %v2007_v48, %v11883_v14  ;;  %v2014_v56 = vmul.f32 0.5, %v2006_v3 }
 0x66e   :  { %v1968_v8 = vpop.f32.mrf.mxu0  ;;  %v2009_v9 = vpop.f32.mrf.mxu1 }
 0x66f   :  { %6586 = vtanh.f32 %v2012_v49  ;;  %v2013_v11 = vmul.f32 0.5, %v1967_v28 }
 0x670   :  { %v1969_v12 = vpop.f32.mrf.mxu0  ;;  %v2010_v13 = vpop.f32.mrf.mxu1 }
 0x671   :  { %6588 = vtanh.f32 %v2013_v11 }
 0x672   :  { %6590 = vtanh.f32 %v2008_v0 }
 0x673   :  { %6592 = vtanh.f32 %v2014_v56 }
 0x67c   :  { %v6587_v36 = vpop.eup %6586 }
 0x67d   :  { %v2018_v1 = vmul.f32 0.5, %v6587_v36 }
 0x67e   :  { %v6589_v62 = vpop.eup %6588 }
 0x67f   :  { %v2021_v55 = vadd.f32 0.5, %v2018_v1  ;;  %v2019_v35 = vmul.f32 0.5, %v6589_v62  ;;  %v6591_v7 = vpop.eup %6590 }
 0x680   :  { %v6593_v5 = vpop.eup %6592 }
 0x681   :  { %v2022_v63 = vadd.f32 0.5, %v2019_v35  ;;  %v2026_v4 = vmul.f32 %v6591_v7, %v2021_v55  ;;  %v2020_v48 = vmul.f32 0.5, %v6593_v5 }
 0x683   :  { %v2025_v58 = vmul.f32 %v2022_v63, %v11885_v2  ;;  %v2023_v13 = vadd.f32 0.5, %v2020_v48 }
 0x685   :  { %v8647_v60 = vadd.f32 %v2026_v4, %v2025_v58 }
 0x687   :  { %6594 = vtanh.f32 %v8647_v60 }
 0x68a   :  { %v2064_v52 = vpop.f32.mrf.mxu0  ;;  %v2105_v38 = vpop.f32.mrf.mxu1 }
 0x68b   :  { %v2116_v37 = vrot.slane %v2064_v52, 3  ;;  %v2118_v56 = vrot.slane %v2105_v38, 3  ;;  %v2142_v38 = vrot.slane %v8475_v33, 7  ;;  %v11886_v33 = vld [vmem:[#allocation36_spill] sm:$0xff] }
 0x68c   :  { %v2066_v10 = vpop.f32.mrf.mxu0  ;;  %v2107_v26 = vpop.f32.mrf.mxu1 }
 0x68d   :  { %v2124_v41 = vadd.f32 %v2116_v37, %v11663_v54  ;;  %v2117_v42 = vrot.slane %v2066_v10, 3  ;;  %v2119_v8 = vrot.slane %v2107_v26, 3  ;;  %v2126_v62 = vadd.f32 %v2118_v56, %v7800_v61  ;;  %v11891_v56 = vld [vmem:[#allocation71_spill] sm:$0xff] }
 0x68e   :  { %v2068_v45 = vpop.f32.mrf.mxu0  ;;  %v2109_v47 = vpop.f32.mrf.mxu1 }
 0x68f   :  { %v2128_v49 = vmul.f32 0.5, %v2124_v41  ;;  %v2125_v28 = vadd.f32 %v2117_v42, %v7789_v59  ;;  %v2127_v0 = vadd.f32 %v2119_v8, %v7796_v51  ;;  %v2130_v63 = vmul.f32 0.5, %v2126_v62  ;;  %v11894_v62 = vld [vmem:[#allocation43_spill] sm:$0xff] }
 0x690   :  { %v2069_v9 = vpop.f32.mrf.mxu0  ;;  %v2110_v11 = vpop.f32.mrf.mxu1 }
 0x691   :  { %6596 = vtanh.f32 %v2128_v49  ;;  %v2129_v12 = vmul.f32 0.5, %v2125_v28 }
 0x693   :  { %6598 = vtanh.f32 %v2129_v12  ;;  %v11887_v12 = vld [vmem:[#allocation37_spill] sm:$0xff] }
 0x694   :  { %v6595_v3 = vpop.eup %6594  ;;  %6600 = vtanh.f32 %v2127_v0  ;;  %v11889_v0 = vld [vmem:[#allocation39_spill] sm:$0xff] }
 0x695   :  { %v2029_v36 = vmul.f32 %v6595_v3, %v2023_v13  ;;  %6602 = vtanh.f32 %v2130_v63  ;;  %v11888_v13 = vld [vmem:[#allocation38_spill] sm:$0xff]  ;;  %v11890_v3 = vld [vmem:[#allocation40_spill] sm:$0xff]  ;;  %v8693_v63 = vld [vmem:[#allocation4 + $0xec] ss:$16 sps:$4 sm:$0xff]  }
 0x697   :  { %v2150_v1 = vrot.slane %v2029_v36, 3  ;;  %v11892_v36 = vld [vmem:[#allocation41_spill] sm:$0xff] }
 0x699   :  { %v2153_v55 = vpack.c.bf16 %v2150_v1, %v2150_v1  ;;  %v11893_v1 = vld [vmem:[#allocation42_spill] sm:$0xff] }
 0x69b   :  { %v2159_v35 = vshrl.u32 %v2153_v55, 16  ;;  %v11895_v55 = vld [vmem:[#allocation44_spill] sm:$0xff] }
 0x69d   :  { %v2161_v7 = vrot.slane %v2159_v35, 2  ;;  %v8690_v35 = vld [vmem:[#allocation4 + $0xe4] ss:$16 sps:$4 sm:$0xff]  }
 0x69e   :  { %v6597_v2 = vpop.eup %6596 }
 0x69f   :  { %v2134_v58 = vmul.f32 0.5, %v6597_v2  ;;  %2196 = vmatprep.mubr.bf16.mxu0 %v2161_v7  ;;  %2237 = vmatprep.mubr.bf16.mxu1 %v2161_v7  ;;  %v8696_v7 = vld [vmem:[#allocation4 + $0xe0] ss:$16 sps:$4 sm:$0xff]   ;;  %v8699_v2 = vld [vmem:[#allocation4 + $0xe8] ss:$16 sps:$4 sm:$0xff]  }
 0x6a0   :  { %v6599_v4 = vpop.eup %6598 }
 0x6a1   :  { %v2137_v52 = vadd.f32 0.5, %v2134_v58  ;;  %v2135_v37 = vmul.f32 0.5, %v6599_v4  ;;  %v6601_v10 = vpop.eup %6600  ;;  %v8702_v58 = vld [vmem:[#allocation4 + $0xc4] ss:$16 sps:$4 sm:$0xff]   ;;  %v8705_v4 = vld [vmem:[#allocation4 + $0xcc] ss:$16 sps:$4 sm:$0xff]  }
 0x6a2   :  { %v6603_v45 = vpop.eup %6602 }
 0x6a3   :  { %v2138_v5 = vadd.f32 0.5, %v2135_v37  ;;  %v2145_v41 = vmul.f32 %v6601_v10, %v2137_v52  ;;  %v2136_v47 = vmul.f32 0.5, %v6603_v45  ;;  %v8708_v52 = vld [vmem:[#allocation4 + $0xc0] ss:$16 sps:$4 sm:$0xff]   ;;  %v8711_v37 = vld [vmem:[#allocation4 + $0xc8] ss:$16 sps:$4 sm:$0xff]  }
 0x6a4   :  { %11896 = vst [vmem:[#allocation45_spill] sm:$0xff] %v8708_v52  ;;  %11897 = vst [vmem:[#allocation46_spill] sm:$0xff] %v8711_v37  ;;  %v8720_v10 = vld [vmem:[#allocation4 + $0xa0] ss:$16 sps:$4 sm:$0xff]   ;;  %v8729_v45 = vld [vmem:[#allocation4 + $0x8c] ss:$16 sps:$4 sm:$0xff]  }
 0x6a5   :  { %v2144_v26 = vmul.f32 %v2142_v38, %v2138_v5  ;;  %v2139_v48 = vadd.f32 0.5, %v2136_v47  ;;  %v8714_v5 = vld [vmem:[#allocation4 + $0xa4] ss:$16 sps:$4 sm:$0xff]   ;;  %v8717_v38 = vld [vmem:[#allocation4 + $0xac] ss:$16 sps:$4 sm:$0xff]   ;;  %11900 = vst [vmem:[#allocation49_spill] sm:$0xff] %v8720_v10 }
 0x6a6   :  { %11898 = vst [vmem:[#allocation47_spill] sm:$0xff] %v8714_v5  ;;  %11899 = vst [vmem:[#allocation48_spill] sm:$0xff] %v8717_v38  ;;  %v8732_v47 = vld [vmem:[#allocation4 + $0x80] ss:$16 sps:$4 sm:$0xff]  }
 0x6a7   :  { %v8655_v42 = vadd.f32 %v2145_v41, %v2144_v26  ;;  %v8723_v26 = vld [vmem:[#allocation4 + $0xa8] ss:$16 sps:$4 sm:$0xff]   ;;  %v8726_v41 = vld [vmem:[#allocation4 + $0x84] ss:$16 sps:$4 sm:$0xff]   ;;  %11903 = vst [vmem:[#allocation52_spill] sm:$0xff] %v8729_v45  ;;  %11904 = vst [vmem:[#allocation53_spill] sm:$0xff] %v8732_v47 }
 0x6a8   :  { %11901 = vst [vmem:[#allocation50_spill] sm:$0xff] %v8723_v26  ;;  %11902 = vst [vmem:[#allocation51_spill] sm:$0xff] %v8726_v41 }
 0x6a9   :  { %6604 = vtanh.f32 %v8655_v42 }
 0x6b6   :  { %v6605_v49 = vpop.eup %6604 }
 0x6b7   :  { %v2148_v28 = vmul.f32 %v6605_v49, %v2139_v48  ;;  %v8735_v48 = vld [vmem:[#allocation4 + $0x88] ss:$16 sps:$4 sm:$0xff]   ;;  %v8738_v49 = vld [vmem:[#allocation4 + $0x64] ss:$16 sps:$4 sm:$0xff]  }
 0x6b8   :  { %11905 = vst [vmem:[#allocation54_spill] sm:$0xff] %v8735_v48  ;;  %11906 = vst [vmem:[#allocation55_spill] sm:$0xff] %v8738_v49 }
 0x6b9   :  { %v2152_v8 = vpack.c.bf16 %v2148_v28, %v2148_v28  ;;  %v8741_v28 = vld [vmem:[#allocation4 + $0x6c] ss:$16 sps:$4 sm:$0xff]  }
 0x6ba   :  { %11907 = vst [vmem:[#allocation56_spill] sm:$0xff] %v8741_v28 }
 0x6bb   :  { %v2155_v9 = vshrl.u32 %v2152_v8, 16  ;;  %v8744_v8 = vld [vmem:[#allocation4 + $0x60] ss:$16 sps:$4 sm:$0xff]  }
 0x6bc   :  { %11908 = vst [vmem:[#allocation57_spill] sm:$0xff] %v8744_v8 }
 0x6bd   :  { %v2157_v11 = vrot.slane %v2155_v9, 2  ;;  %v8747_v9 = vld [vmem:[#allocation4 + $0x68] ss:$16 sps:$4 sm:$0xff]  }
 0x6be   :  { %11909 = vst [vmem:[#allocation58_spill] sm:$0xff] %v8747_v9 }
 0x6bf   :  { %2197 = vmatmul.mubr.bf16.vlgmr.msra.gmra.mxu0 %v2157_v11  ;;  %2238 = vmatmul.mubr.bf16.vlgmr.msra.gmra.mxu1 %v2157_v11 }
 0x6c0   :  { %2265 = vmatpush1.bf16.msra.mxu0 %v8482_v19  ;;  %2306 = vmatpush1.bf16.msra.mxu1 %v8485_v27 }
 0x6c1   :  { %2266 = vmatprep.subr.bf16.mxu0 %v8488_v25  ;;  %2307 = vmatprep.subr.bf16.mxu1 %v8491_v24 }
 0x6c2   :  { %2296 = vmatprep.mubr.bf16.mxu0 %v11600_v57  ;;  %2337 = vmatprep.mubr.bf16.mxu1 %v11600_v57 }
 0x6c4   :  { %2267 = vmatpush1.bf16.msra.mxu0 %v8496_v18  ;;  %2308 = vmatpush1.bf16.msra.mxu1 %v8499_v20 }
 0x6c5   :  { %2268 = vmatprep.subr.bf16.mxu0 %v8502_v30  ;;  %2309 = vmatprep.subr.bf16.mxu1 %v8505_v16 }
 0x6c8   :  { %2269 = vmatpush1.bf16.msra.mxu0 %v8508_v44  ;;  %2310 = vmatpush1.bf16.msra.mxu1 %v8511_v39 }
 0x6c9   :  { %2270 = vmatprep.subr.bf16.mxu0 %v8514_v29  ;;  %2311 = vmatprep.subr.bf16.mxu1 %v8517_v32 }
 0x6cc   :  { %2271 = vmatpush1.bf16.msra.mxu0 %v8520_v17  ;;  %2312 = vmatpush1.bf16.msra.mxu1 %v8523_v22 }
 0x6cd   :  { %2272 = vmatprep.subr.bf16.mxu0 %v11886_v33  ;;  %2313 = vmatprep.subr.bf16.mxu1 %v11887_v12 }
 0x6d0   :  { %2273 = vmatpush1.bf16.msra.mxu0 %v11888_v13  ;;  %2314 = vmatpush1.bf16.msra.mxu1 %v11889_v0 }
 0x6d1   :  { %2274 = vmatprep.subr.bf16.mxu0 %v11890_v3  ;;  %2315 = vmatprep.subr.bf16.mxu1 %v11891_v56 }
 0x6d4   :  { %2275 = vmatpush1.bf16.msra.mxu0 %v11892_v36  ;;  %2316 = vmatpush1.bf16.msra.mxu1 %v11893_v1 }
 0x6d5   :  { %2276 = vmatprep.subr.bf16.mxu0 %v11894_v62  ;;  %2317 = vmatprep.subr.bf16.mxu1 %v11895_v55 }
 0x6d8   :  { %2277 = vmatpush1.bf16.msra.mxu0 %v8556_v31  ;;  %2318 = vmatpush1.bf16.msra.mxu1 %v8559_v46 }
 0x6d9   :  { %2278 = vmatprep.subr.bf16.mxu0 %v8562_v53  ;;  %2319 = vmatprep.subr.bf16.mxu1 %v8565_v15 }
 0x6dc   :  { %2279 = vmatpush1.bf16.msra.mxu0 %v8568_v23  ;;  %2320 = vmatpush1.bf16.msra.mxu1 %v8571_v21 }
 0x6dd   :  { %2394 = vmatprep.subr.bf16.mxu0 %v8690_v35  ;;  %2435 = vmatprep.subr.bf16.mxu1 %v8693_v63 }
 0x6df   :  { %2297 = vmatmul.mubr.bf16.vlgmr.msra.gmra.mxu0 %v2157_v11  ;;  %2338 = vmatmul.mubr.bf16.vlgmr.msra.gmra.mxu1 %v2157_v11  ;;  %v8750_v11 = vld [vmem:[#allocation4 + $0x44] ss:$16 sps:$4 sm:$0xff]  }
 0x6e0   :  { %2395 = vmatpush1.bf16.msra.mxu0 %v8696_v7  ;;  %2436 = vmatpush1.bf16.msra.mxu1 %v8699_v2  ;;  %11910 = vst [vmem:[#allocation59_spill] sm:$0xff] %v8750_v11 }
 0x6e1   :  { %2396 = vmatprep.subr.bf16.mxu0 %v8702_v58  ;;  %2437 = vmatprep.subr.bf16.mxu1 %v8705_v4 }
 0x6e4   :  { %2397 = vmatpush1.bf16.msra.mxu0 %v8708_v52  ;;  %2438 = vmatpush1.bf16.msra.mxu1 %v8711_v37 }
 0x6e5   :  { %2398 = vmatprep.subr.bf16.mxu0 %v8714_v5  ;;  %2439 = vmatprep.subr.bf16.mxu1 %v8717_v38 }
 0x6e8   :  { %2399 = vmatpush1.bf16.msra.mxu0 %v8720_v10  ;;  %2440 = vmatpush1.bf16.msra.mxu1 %v8723_v26 }
 0x6e9   :  { %2400 = vmatprep.subr.bf16.mxu0 %v8726_v41  ;;  %2441 = vmatprep.subr.bf16.mxu1 %v8729_v45 }
 0x6ec   :  { %2401 = vmatpush1.bf16.msra.mxu0 %v8732_v47  ;;  %2442 = vmatpush1.bf16.msra.mxu1 %v8735_v48  ;;  %v8753_v48 = vld [vmem:[#allocation4 + $0x4c] ss:$16 sps:$4 sm:$0xff]  }
 0x6ed   :  { %2402 = vmatprep.subr.bf16.mxu0 %v8738_v49  ;;  %2443 = vmatprep.subr.bf16.mxu1 %v8741_v28  ;;  %11911 = vst [vmem:[#allocation60_spill] sm:$0xff] %v8753_v48  ;;  %v8756_v49 = vld [vmem:[#allocation4 + $0x40] ss:$16 sps:$4 sm:$0xff]   ;;  %v8759_v28 = vld [vmem:[#allocation4 + $0x48] ss:$16 sps:$4 sm:$0xff]  }
 0x6ee   :  { %11912 = vst [vmem:[#allocation61_spill] sm:$0xff] %v8756_v49  ;;  %11913 = vst [vmem:[#allocation62_spill] sm:$0xff] %v8759_v28 }
 0x6f0   :  { %2403 = vmatpush1.bf16.msra.mxu0 %v8744_v8  ;;  %2444 = vmatpush1.bf16.msra.mxu1 %v8747_v9  ;;  %v8762_v8 = vld [vmem:[#allocation4 + $0x24] ss:$16 sps:$4 sm:$0xff]   ;;  %v8765_v9 = vld [vmem:[#allocation4 + $0x2c] ss:$16 sps:$4 sm:$0xff]  }
 0x6f1   :  { %2404 = vmatprep.subr.bf16.mxu0 %v8750_v11  ;;  %2445 = vmatprep.subr.bf16.mxu1 %v8753_v48  ;;  %11914 = vst [vmem:[#allocation82_spill] sm:$0xff] %v8762_v8  ;;  %11915 = vst [vmem:[#allocation63_spill] sm:$0xff] %v8765_v9  ;;  %v8768_v11 = vld [vmem:[#allocation4 + $0x20] ss:$16 sps:$4 sm:$0xff]   ;;  %v8771_v48 = vld [vmem:[#allocation4 + $0x28] ss:$16 sps:$4 sm:$0xff]  }
 0x6f2   :  { %11916 = vst [vmem:[#allocation64_spill] sm:$0xff] %v8768_v11  ;;  %11917 = vst [vmem:[#allocation65_spill] sm:$0xff] %v8771_v48 }
 0x6f4   :  { %2405 = vmatpush1.bf16.msra.mxu0 %v8756_v49  ;;  %2446 = vmatpush1.bf16.msra.mxu1 %v8759_v28  ;;  %v8774_v49 = vld [vmem:[#allocation4 + $0x4] ss:$16 sps:$4 sm:$0xff]   ;;  %v8777_v28 = vld [vmem:[#allocation4 + $0xc] ss:$16 sps:$4 sm:$0xff]  }
 0x6f5   :  { %2406 = vmatprep.subr.bf16.mxu0 %v8762_v8  ;;  %2447 = vmatprep.subr.bf16.mxu1 %v8765_v9  ;;  %11918 = vst [vmem:[#allocation66_spill] sm:$0xff] %v8774_v49  ;;  %11919 = vst [vmem:[#allocation67_spill] sm:$0xff] %v8777_v28  ;;  %v8780_v8 = vld [vmem:[#allocation4] ss:$16 sps:$4 sm:$0xff]   ;;  %v8783_v9 = vld [vmem:[#allocation4 + $0x8] ss:$16 sps:$4 sm:$0xff]  }
 0x6f6   :  { %11920 = vst [vmem:[#allocation16_spill] sm:$0xff] %v8780_v8  ;;  %11921 = vst [vmem:[#allocation17_spill] sm:$0xff] %v8783_v9 }
 0x6f8   :  { %2407 = vmatpush1.bf16.msra.mxu0 %v8768_v11  ;;  %2448 = vmatpush1.bf16.msra.mxu1 %v8771_v48  ;;  %v8786_v11 = vld [vmem:[#allocation4 + $0x1e4] ss:$16 sps:$4 sm:$0xff]   ;;  %v8789_v48 = vld [vmem:[#allocation4 + $0x1ec] ss:$16 sps:$4 sm:$0xff]  }
 0x6f9   :  { %2408 = vmatprep.subr.bf16.mxu0 %v8774_v49  ;;  %2449 = vmatprep.subr.bf16.mxu1 %v8777_v28  ;;  %11922 = vst [vmem:[#allocation22_spill] sm:$0xff] %v8786_v11  ;;  %11923 = vst [vmem:[#allocation23_spill] sm:$0xff] %v8789_v48  ;;  %v8792_v49 = vld [vmem:[#allocation4 + $0x1e0] ss:$16 sps:$4 sm:$0xff]   ;;  %v8795_v28 = vld [vmem:[#allocation4 + $0x1e8] ss:$16 sps:$4 sm:$0xff]  }
 0x6fa   :  { %11924 = vst [vmem:[#allocation24_spill] sm:$0xff] %v8792_v49  ;;  %11925 = vst [vmem:[#allocation25_spill] sm:$0xff] %v8795_v28 }
 0x6fc   :  { %2409 = vmatpush1.bf16.msra.mxu0 %v8780_v8  ;;  %2450 = vmatpush1.bf16.msra.mxu1 %v8783_v9  ;;  %v8798_v8 = vld [vmem:[#allocation4 + $0x1c4] ss:$16 sps:$4 sm:$0xff]   ;;  %v8801_v9 = vld [vmem:[#allocation4 + $0x1cc] ss:$16 sps:$4 sm:$0xff]  }
 0x6fd   :  { %2410 = vmatprep.subr.bf16.mxu0 %v8786_v11  ;;  %2451 = vmatprep.subr.bf16.mxu1 %v8789_v48  ;;  %11926 = vst [vmem:[#allocation26_spill] sm:$0xff] %v8798_v8  ;;  %11927 = vst [vmem:[#allocation27_spill] sm:$0xff] %v8801_v9  ;;  %v8804_v11 = vld [vmem:[#allocation4 + $0x1c0] ss:$16 sps:$4 sm:$0xff]   ;;  %v8807_v48 = vld [vmem:[#allocation4 + $0x1c8] ss:$16 sps:$4 sm:$0xff]  }
 0x6fe   :  { %11928 = vst [vmem:[#allocation28_spill] sm:$0xff] %v8804_v11  ;;  %11929 = vst [vmem:[#allocation29_spill] sm:$0xff] %v8807_v48 }
 0x700   :  { %2411 = vmatpush2.bf16.msra.mxu0 %v8792_v49  ;;  %2452 = vmatpush2.bf16.msra.mxu1 %v8795_v28  ;;  %v8810_v49 = vld [vmem:[#allocation4 + $0x1a4] ss:$16 sps:$4 sm:$0xff]   ;;  %v8813_v28 = vld [vmem:[#allocation4 + $0x1ac] ss:$16 sps:$4 sm:$0xff]  }
 0x701   :  { %2412 = vmatprep.subr.bf16.mxu0 %v8798_v8  ;;  %2453 = vmatprep.subr.bf16.mxu1 %v8801_v9  ;;  %11930 = vst [vmem:[#allocation30_spill] sm:$0xff] %v8810_v49  ;;  %11931 = vst [vmem:[#allocation31_spill] sm:$0xff] %v8813_v28  ;;  %v8816_v8 = vld [vmem:[#allocation4 + $0x1a0] ss:$16 sps:$4 sm:$0xff]   ;;  %v8819_v9 = vld [vmem:[#allocation4 + $0x1a8] ss:$16 sps:$4 sm:$0xff]  }
 0x702   :  { %11932 = vst [vmem:[#allocation32_spill] sm:$0xff] %v8816_v8  ;;  %11933 = vst [vmem:[#allocation73_spill] sm:$0xff] %v8819_v9 }
 0x704   :  { %2413 = vmatpush2.bf16.msra.mxu0 %v8804_v11  ;;  %2454 = vmatpush2.bf16.msra.mxu1 %v8807_v48  ;;  %v8822_v11 = vld [vmem:[#allocation4 + $0x184] ss:$16 sps:$4 sm:$0xff]   ;;  %v8825_v48 = vld [vmem:[#allocation4 + $0x18c] ss:$16 sps:$4 sm:$0xff]  }
 0x705   :  { %2414 = vmatprep.subr.bf16.mxu0 %v8810_v49  ;;  %2455 = vmatprep.subr.bf16.mxu1 %v8813_v28  ;;  %11934 = vst [vmem:[#allocation74_spill] sm:$0xff] %v8822_v11  ;;  %11935 = vst [vmem:[#allocation75_spill] sm:$0xff] %v8825_v48  ;;  %v8828_v49 = vld [vmem:[#allocation4 + $0x180] ss:$16 sps:$4 sm:$0xff]   ;;  %v8831_v28 = vld [vmem:[#allocation4 + $0x188] ss:$16 sps:$4 sm:$0xff]  }
 0x706   :  { %11936 = vst [vmem:[#allocation76_spill] sm:$0xff] %v8828_v49  ;;  %11937 = vst [vmem:[#allocation77_spill] sm:$0xff] %v8831_v28 }
 0x708   :  { %2415 = vmatpush2.bf16.msra.mxu0 %v8816_v8  ;;  %2456 = vmatpush2.bf16.msra.mxu1 %v8819_v9  ;;  %v8834_v8 = vld [vmem:[#allocation4 + $0x164] ss:$16 sps:$4 sm:$0xff]   ;;  %v8837_v9 = vld [vmem:[#allocation4 + $0x16c] ss:$16 sps:$4 sm:$0xff]  }
 0x709   :  { %2416 = vmatprep.subr.bf16.mxu0 %v8822_v11  ;;  %2457 = vmatprep.subr.bf16.mxu1 %v8825_v48  ;;  %11938 = vst [vmem:[#allocation78_spill] sm:$0xff] %v8834_v8  ;;  %11939 = vst [vmem:[#allocation79_spill] sm:$0xff] %v8837_v9  ;;  %v8840_v11 = vld [vmem:[#allocation4 + $0x160] ss:$16 sps:$4 sm:$0xff]   ;;  %v8843_v48 = vld [vmem:[#allocation4 + $0x168] ss:$16 sps:$4 sm:$0xff]  }
 0x70a   :  { %11940 = vst [vmem:[#allocation80_spill] sm:$0xff] %v8840_v11  ;;  %11941 = vst [vmem:[#allocation81_spill] sm:$0xff] %v8843_v48 }
 0x70c   :  { %2417 = vmatpush2.bf16.msra.mxu0 %v8828_v49  ;;  %2458 = vmatpush2.bf16.msra.mxu1 %v8831_v28  ;;  %v8846_v49 = vld [vmem:[#allocation4 + $0x144] ss:$16 sps:$4 sm:$0xff]   ;;  %v8849_v28 = vld [vmem:[#allocation4 + $0x14c] ss:$16 sps:$4 sm:$0xff]  }
 0x70d   :  { %2418 = vmatprep.subr.bf16.mxu0 %v8834_v8  ;;  %2459 = vmatprep.subr.bf16.mxu1 %v8837_v9  ;;  %11942 = vst [vmem:[#allocation33_spill] sm:$0xff] %v8846_v49  ;;  %11943 = vst [vmem:[#allocation34_spill] sm:$0xff] %v8849_v28  ;;  %v8852_v8 = vld [vmem:[#allocation4 + $0x140] ss:$16 sps:$4 sm:$0xff]   ;;  %v8855_v9 = vld [vmem:[#allocation4 + $0x148] ss:$16 sps:$4 sm:$0xff]  }
 0x70e   :  { %11944 = vst [vmem:[#allocation19_spill] sm:$0xff] %v8852_v8  ;;  %11945 = vst [vmem:[#allocation35_spill] sm:$0xff] %v8855_v9 }
 0x710   :  { %2419 = vmatpush2.bf16.msra.mxu0 %v8840_v11  ;;  %2460 = vmatpush2.bf16.msra.mxu1 %v8843_v48  ;;  %v8858_v11 = vld [vmem:[#allocation4 + $0x124] ss:$16 sps:$4 sm:$0xff]   ;;  %v8861_v48 = vld [vmem:[#allocation4 + $0x12c] ss:$16 sps:$4 sm:$0xff]  }
 0x711   :  { %2420 = vmatprep.subr.bf16.mxu0 %v8846_v49  ;;  %2461 = vmatprep.subr.bf16.mxu1 %v8849_v28  ;;  %11946 = vst [vmem:[#allocation36_spill] sm:$0xff] %v8858_v11  ;;  %11947 = vst [vmem:[#allocation37_spill] sm:$0xff] %v8861_v48  ;;  %v8864_v49 = vld [vmem:[#allocation4 + $0x120] ss:$16 sps:$4 sm:$0xff]   ;;  %v8867_v28 = vld [vmem:[#allocation4 + $0x128] ss:$16 sps:$4 sm:$0xff]  }
 0x712   :  { %11948 = vst [vmem:[#allocation38_spill] sm:$0xff] %v8864_v49  ;;  %11949 = vst [vmem:[#allocation39_spill] sm:$0xff] %v8867_v28 }
 0x714   :  { %2421 = vmatpush2.bf16.msra.mxu0 %v8852_v8  ;;  %2462 = vmatpush2.bf16.msra.mxu1 %v8855_v9  ;;  %v8870_v8 = vld [vmem:[#allocation4 + $0x104] ss:$16 sps:$4 sm:$0xff]   ;;  %v8873_v9 = vld [vmem:[#allocation4 + $0x10c] ss:$16 sps:$4 sm:$0xff]  }
 0x715   :  { %2422 = vmatprep.subr.bf16.mxu0 %v8858_v11  ;;  %2463 = vmatprep.subr.bf16.mxu1 %v8861_v48  ;;  %11950 = vst [vmem:[#allocation40_spill] sm:$0xff] %v8870_v8  ;;  %11951 = vst [vmem:[#allocation71_spill] sm:$0xff] %v8873_v9  ;;  %v8876_v11 = vld [vmem:[#allocation4 + $0x100] ss:$16 sps:$4 sm:$0xff]   ;;  %v8879_v48 = vld [vmem:[#allocation4 + $0x108] ss:$16 sps:$4 sm:$0xff]  }
 0x716   :  { %11952 = vst [vmem:[#allocation41_spill] sm:$0xff] %v8876_v11  ;;  %11953 = vst [vmem:[#allocation42_spill] sm:$0xff] %v8879_v48 }
 0x718   :  { %2423 = vmatpush2.bf16.msra.mxu0 %v8864_v49  ;;  %2464 = vmatpush2.bf16.msra.mxu1 %v8867_v28 }
 0x719   :  { %2424 = vmatprep.subr.bf16.mxu0 %v8870_v8  ;;  %2465 = vmatprep.subr.bf16.mxu1 %v8873_v9 }
 0x71c   :  { %2425 = vmatpush2.bf16.msra.mxu0 %v8876_v11  ;;  %2466 = vmatpush2.bf16.msra.mxu1 %v8879_v48 }
 0x71d   :  { %2494 = vmatprep.subr.bf16.mxu0 %v11879_v34  ;;  %2535 = vmatprep.subr.bf16.mxu1 %v11880_v40 }
 0x77f   :  { %v2198_v28 = vpop.f32.mrf.mxu0  ;;  %v2239_v49 = vpop.f32.mrf.mxu1 }
 0x780   :  { %v2199_v8 = vadd.f32 %v2198_v28, %v11881_v43  ;;  %v2240_v40 = vadd.f32 %v2239_v49, %v11884_v6 }
 0x781   :  { %v2200_v47 = vpop.f32.mrf.mxu0  ;;  %v2241_v45 = vpop.f32.mrf.mxu1 }
 0x782   :  { %v2246_v41 = vmul.f32 0.5, %v2199_v8  ;;  %v2201_v9 = vadd.f32 %v2200_v47, %v11882_v50  ;;  %v2242_v34 = vadd.f32 %v2241_v45, %v11883_v14  ;;  %v2248_v48 = vmul.f32 0.5, %v2240_v40 }
 0x783   :  { %v2202_v26 = vpop.f32.mrf.mxu0  ;;  %v2243_v10 = vpop.f32.mrf.mxu1 }
 0x784   :  { %6606 = vtanh.f32 %v2246_v41  ;;  %v2247_v11 = vmul.f32 0.5, %v2201_v9 }
 0x785   :  { %v2203_v38 = vpop.f32.mrf.mxu0  ;;  %v2244_v5 = vpop.f32.mrf.mxu1 }
 0x786   :  { %6608 = vtanh.f32 %v2247_v11 }
 0x787   :  { %6610 = vtanh.f32 %v2242_v34 }
 0x788   :  { %6612 = vtanh.f32 %v2248_v48 }
 0x791   :  { %v6607_v37 = vpop.eup %6606 }
 0x792   :  { %v2252_v28 = vmul.f32 0.5, %v6607_v37 }
 0x793   :  { %v6609_v43 = vpop.eup %6608 }
 0x794   :  { %v2255_v52 = vadd.f32 0.5, %v2252_v28  ;;  %v2253_v8 = vmul.f32 0.5, %v6609_v43  ;;  %v6611_v26 = vpop.eup %6610 }
 0x795   :  { %v6613_v49 = vpop.eup %6612 }
 0x796   :  { %v2256_v47 = vadd.f32 0.5, %v2253_v8  ;;  %v2260_v41 = vmul.f32 %v6611_v26, %v2255_v52  ;;  %v2254_v28 = vmul.f32 0.5, %v6613_v49 }
 0x798   :  { %v2259_v10 = vmul.f32 %v2256_v47, %v8647_v60 }
 0x79a   :  { %v8889_v38 = vadd.f32 %v2260_v41, %v2259_v10  ;;  %v2257_v41 = vadd.f32 0.5, %v2254_v28 }
 0x79c   :  { %11954 = vst [vmem:[#allocation43_spill] sm:$0xff] %v8889_v38  ;;  %6614 = vtanh.f32 %v8889_v38 }
 0x79f   :  { %v2298_v5 = vpop.f32.mrf.mxu0  ;;  %v2339_v45 = vpop.f32.mrf.mxu1 }
 0x7a0   :  { %v2350_v9 = vrot.slane %v2298_v5, 2  ;;  %v2352_v6 = vrot.slane %v2339_v45, 2 }
 0x7a1   :  { %v2300_v11 = vpop.f32.mrf.mxu0  ;;  %v2341_v34 = vpop.f32.mrf.mxu1 }
 0x7a2   :  { %v2358_v37 = vadd.f32 %v2350_v9, %v11663_v54  ;;  %v2351_v40 = vrot.slane %v2300_v11, 2  ;;  %v2353_v52 = vrot.slane %v2341_v34, 2  ;;  %v2360_v11 = vadd.f32 %v2352_v6, %v7800_v61 }
 0x7a3   :  { %v2302_v48 = vpop.f32.mrf.mxu0  ;;  %v2343_v43 = vpop.f32.mrf.mxu1 }
 0x7a4   :  { %v2362_v8 = vmul.f32 0.5, %v2358_v37  ;;  %v2359_v60 = vadd.f32 %v2351_v40, %v7789_v59  ;;  %v2361_v5 = vadd.f32 %v2353_v52, %v7796_v51  ;;  %v2364_v48 = vmul.f32 0.5, %v2360_v11 }
 0x7a5   :  { %v2303_v47 = vpop.f32.mrf.mxu0  ;;  %v2344_v26 = vpop.f32.mrf.mxu1  ;;  %v2376_v52 = vrot.slane %v8655_v42, 7  ;;  %v11975_v42 = vld [vmem:[#allocation64_spill] sm:$0xff] }
 0x7a6   :  { %6616 = vtanh.f32 %v2362_v8  ;;  %v2363_v10 = vmul.f32 0.5, %v2359_v60 }
 0x7a8   :  { %6618 = vtanh.f32 %v2363_v10 }
 0x7a9   :  { %v6615_v38 = vpop.eup %6614  ;;  %6620 = vtanh.f32 %v2361_v5 }
 0x7aa   :  { %v2263_v14 = vmul.f32 %v6615_v38, %v2257_v41  ;;  %6622 = vtanh.f32 %v2364_v48  ;;  %v11994_v48 = vld [vmem:[#allocation75_spill] sm:$0xff] }
 0x7ac   :  { %v2384_v9 = vrot.slane %v2263_v14, 2 }
 0x7ae   :  { %v2387_v49 = vpack.c.bf16 %v2384_v9, %v2384_v9 }
 0x7b0   :  { %v2391_v37 = vrot.slane %v2387_v49, 3  ;;  %v11992_v49 = vld [vmem:[#allocation73_spill] sm:$0xff] }
 0x7b2   :  { %2426 = vmatprep.mubr.bf16.mxu0 %v2391_v37  ;;  %2467 = vmatprep.mubr.bf16.mxu1 %v2391_v37  ;;  %v11993_v37 = vld [vmem:[#allocation74_spill] sm:$0xff] }
 0x7b3   :  { %v6617_v34 = vpop.eup %6616 }
 0x7b4   :  { %v2368_v40 = vmul.f32 0.5, %v6617_v34  ;;  %v11995_v34 = vld [vmem:[#allocation76_spill] sm:$0xff] }
 0x7b5   :  { %v6619_v43 = vpop.eup %6618 }
 0x7b6   :  { %v2371_v8 = vadd.f32 0.5, %v2368_v40  ;;  %v2369_v28 = vmul.f32 0.5, %v6619_v43  ;;  %v6621_v45 = vpop.eup %6620  ;;  %v11996_v40 = vld [vmem:[#allocation77_spill] sm:$0xff]  ;;  %v11997_v43 = vld [vmem:[#allocation78_spill] sm:$0xff] }
 0x7b7   :  { %v6623_v6 = vpop.eup %6622 }
 0x7b8   :  { %v2372_v60 = vadd.f32 0.5, %v2369_v28  ;;  %v2379_v47 = vmul.f32 %v6621_v45, %v2371_v8  ;;  %v2370_v26 = vmul.f32 0.5, %v6623_v6  ;;  %v11998_v8 = vld [vmem:[#allocation79_spill] sm:$0xff]  ;;  %v11999_v28 = vld [vmem:[#allocation80_spill] sm:$0xff]  ;;  %v12002_v45 = vld [vmem:[#allocation34_spill] sm:$0xff] }
 0x7b9   :  { %v12005_v6 = vld [vmem:[#allocation36_spill] sm:$0xff] }
 0x7ba   :  { %v2378_v38 = vmul.f32 %v2376_v52, %v2372_v60  ;;  %v2373_v10 = vadd.f32 0.5, %v2370_v26  ;;  %v12000_v60 = vld [vmem:[#allocation81_spill] sm:$0xff] }
 0x7bb   :  { %v12001_v52 = vld [vmem:[#allocation33_spill] sm:$0xff] }
 0x7bc   :  { %v8897_v14 = vadd.f32 %v2379_v47, %v2378_v38  ;;  %v12003_v38 = vld [vmem:[#allocation19_spill] sm:$0xff]  ;;  %v12006_v26 = vld [vmem:[#allocation37_spill] sm:$0xff] }
 0x7bd   :  { %v12004_v47 = vld [vmem:[#allocation35_spill] sm:$0xff] }
 0x7be   :  { %6624 = vtanh.f32 %v8897_v14 }
 0x7cb   :  { %v6625_v41 = vpop.eup %6624 }
 0x7cc   :  { %v2382_v5 = vmul.f32 %v6625_v41, %v2373_v10  ;;  %v12007_v10 = vld [vmem:[#allocation38_spill] sm:$0xff]  ;;  %v12008_v41 = vld [vmem:[#allocation39_spill] sm:$0xff] }
 0x7ce   :  { %v2386_v9 = vpack.c.bf16 %v2382_v5, %v2382_v5  ;;  %v12009_v5 = vld [vmem:[#allocation40_spill] sm:$0xff] }
 0x7d0   :  { %v2390_v11 = vrot.slane %v2386_v9, 3  ;;  %v12010_v9 = vld [vmem:[#allocation71_spill] sm:$0xff] }
 0x7d2   :  { %2427 = vmatmul.mubr.bf16.vlgmr.msra.gmra.mxu0 %v2390_v11  ;;  %2468 = vmatmul.mubr.bf16.vlgmr.msra.gmra.mxu1 %v2390_v11 }
 0x7d3   :  { %2495 = vmatpush1.bf16.msra.mxu0 %v8482_v19  ;;  %2536 = vmatpush1.bf16.msra.mxu1 %v8485_v27  ;;  %v11955_v19 = vld [vmem:[#allocation45_spill] sm:$0xff]  ;;  %v11956_v27 = vld [vmem:[#allocation46_spill] sm:$0xff] }
 0x7d4   :  { %2496 = vmatprep.subr.bf16.mxu0 %v8488_v25  ;;  %2537 = vmatprep.subr.bf16.mxu1 %v8491_v24  ;;  %v11957_v25 = vld [vmem:[#allocation47_spill] sm:$0xff]  ;;  %v11958_v24 = vld [vmem:[#allocation48_spill] sm:$0xff] }
 0x7d5   :  { %2526 = vmatprep.mubr.bf16.mxu0 %v11600_v57  ;;  %2567 = vmatprep.mubr.bf16.mxu1 %v11600_v57 }
 0x7d7   :  { %2497 = vmatpush1.bf16.msra.mxu0 %v8496_v18  ;;  %2538 = vmatpush1.bf16.msra.mxu1 %v8499_v20  ;;  %v11959_v18 = vld [vmem:[#allocation49_spill] sm:$0xff]  ;;  %v11960_v20 = vld [vmem:[#allocation50_spill] sm:$0xff] }
 0x7d8   :  { %2498 = vmatprep.subr.bf16.mxu0 %v8502_v30  ;;  %2539 = vmatprep.subr.bf16.mxu1 %v8505_v16  ;;  %v11961_v30 = vld [vmem:[#allocation51_spill] sm:$0xff]  ;;  %v11962_v16 = vld [vmem:[#allocation52_spill] sm:$0xff] }
 0x7db   :  { %2499 = vmatpush1.bf16.msra.mxu0 %v8508_v44  ;;  %2540 = vmatpush1.bf16.msra.mxu1 %v8511_v39  ;;  %v11963_v44 = vld [vmem:[#allocation53_spill] sm:$0xff]  ;;  %v11964_v39 = vld [vmem:[#allocation54_spill] sm:$0xff] }
 0x7dc   :  { %2500 = vmatprep.subr.bf16.mxu0 %v8514_v29  ;;  %2541 = vmatprep.subr.bf16.mxu1 %v8517_v32  ;;  %v11965_v29 = vld [vmem:[#allocation55_spill] sm:$0xff]  ;;  %v11966_v32 = vld [vmem:[#allocation56_spill] sm:$0xff] }
 0x7df   :  { %2501 = vmatpush1.bf16.msra.mxu0 %v8520_v17  ;;  %2542 = vmatpush1.bf16.msra.mxu1 %v8523_v22  ;;  %v11967_v17 = vld [vmem:[#allocation57_spill] sm:$0xff]  ;;  %v11968_v22 = vld [vmem:[#allocation58_spill] sm:$0xff] }
 0x7e0   :  { %2502 = vmatprep.subr.bf16.mxu0 %v11886_v33  ;;  %2543 = vmatprep.subr.bf16.mxu1 %v11887_v12  ;;  %v11976_v33 = vld [vmem:[#allocation65_spill] sm:$0xff]  ;;  %v11977_v12 = vld [vmem:[#allocation66_spill] sm:$0xff] }
 0x7e3   :  { %2503 = vmatpush1.bf16.msra.mxu0 %v11888_v13  ;;  %2544 = vmatpush1.bf16.msra.mxu1 %v11889_v0  ;;  %v11978_v13 = vld [vmem:[#allocation67_spill] sm:$0xff]  ;;  %v11979_v0 = vld [vmem:[#allocation16_spill] sm:$0xff] }
 0x7e4   :  { %2504 = vmatprep.subr.bf16.mxu0 %v11890_v3  ;;  %2545 = vmatprep.subr.bf16.mxu1 %v11891_v56  ;;  %v11980_v3 = vld [vmem:[#allocation17_spill] sm:$0xff]  ;;  %v11981_v56 = vld [vmem:[#allocation22_spill] sm:$0xff] }
 0x7e7   :  { %2505 = vmatpush1.bf16.msra.mxu0 %v11892_v36  ;;  %2546 = vmatpush1.bf16.msra.mxu1 %v11893_v1  ;;  %v11982_v36 = vld [vmem:[#allocation23_spill] sm:$0xff]  ;;  %v11983_v1 = vld [vmem:[#allocation24_spill] sm:$0xff] }
 0x7e8   :  { %2506 = vmatprep.subr.bf16.mxu0 %v11894_v62  ;;  %2547 = vmatprep.subr.bf16.mxu1 %v11895_v55  ;;  %v11984_v62 = vld [vmem:[#allocation25_spill] sm:$0xff]  ;;  %v11985_v55 = vld [vmem:[#allocation26_spill] sm:$0xff] }
 0x7eb   :  { %2507 = vmatpush1.bf16.msra.mxu0 %v8556_v31  ;;  %2548 = vmatpush1.bf16.msra.mxu1 %v8559_v46  ;;  %v11973_v31 = vld [vmem:[#allocation82_spill] sm:$0xff]  ;;  %v11974_v46 = vld [vmem:[#allocation63_spill] sm:$0xff] }
 0x7ec   :  { %2508 = vmatprep.subr.bf16.mxu0 %v8562_v53  ;;  %2549 = vmatprep.subr.bf16.mxu1 %v8565_v15  ;;  %v11969_v53 = vld [vmem:[#allocation59_spill] sm:$0xff]  ;;  %v11970_v15 = vld [vmem:[#allocation60_spill] sm:$0xff] }
 0x7ef   :  { %2509 = vmatpush1.bf16.msra.mxu0 %v8568_v23  ;;  %2550 = vmatpush1.bf16.msra.mxu1 %v8571_v21  ;;  %v11971_v23 = vld [vmem:[#allocation61_spill] sm:$0xff]  ;;  %v11972_v21 = vld [vmem:[#allocation62_spill] sm:$0xff] }
 0x7f0   :  { %2628 = vmatprep.subr.bf16.mxu0 %v8690_v35  ;;  %2669 = vmatprep.subr.bf16.mxu1 %v8693_v63  ;;  %v11986_v35 = vld [vmem:[#allocation27_spill] sm:$0xff]  ;;  %v11987_v63 = vld [vmem:[#allocation28_spill] sm:$0xff] }
 0x7f2   :  { %2527 = vmatmul.mubr.bf16.vlgmr.msra.gmra.mxu0 %v2390_v11  ;;  %2568 = vmatmul.mubr.bf16.vlgmr.msra.gmra.mxu1 %v2390_v11  ;;  %v12011_v11 = vld [vmem:[#allocation41_spill] sm:$0xff] }
 0x7f3   :  { %2629 = vmatpush1.bf16.msra.mxu0 %v8696_v7  ;;  %2670 = vmatpush1.bf16.msra.mxu1 %v8699_v2  ;;  %v11988_v7 = vld [vmem:[#allocation29_spill] sm:$0xff]  ;;  %v11989_v2 = vld [vmem:[#allocation30_spill] sm:$0xff] }
 0x7f4   :  { %2630 = vmatprep.subr.bf16.mxu0 %v8702_v58  ;;  %2671 = vmatprep.subr.bf16.mxu1 %v8705_v4  ;;  %v11990_v58 = vld [vmem:[#allocation31_spill] sm:$0xff]  ;;  %v11991_v4 = vld [vmem:[#allocation32_spill] sm:$0xff] }
 0x7f7   :  { %2631 = vmatpush1.bf16.msra.mxu0 %v11955_v19  ;;  %2672 = vmatpush1.bf16.msra.mxu1 %v11956_v27  ;;  %v12012_v19 = vld [vmem:[#allocation42_spill] sm:$0xff] }
 0x7f8   :  { %2632 = vmatprep.subr.bf16.mxu0 %v11957_v25  ;;  %2673 = vmatprep.subr.bf16.mxu1 %v11958_v24  ;;  %v12013_v24 = vld [vmem:[#allocation18_spill] sm:$0xff] }
 0x7fb   :  { %2633 = vmatpush1.bf16.msra.mxu0 %v11959_v18  ;;  %2674 = vmatpush1.bf16.msra.mxu1 %v11960_v20 }
 0x7fc   :  { %2634 = vmatprep.subr.bf16.mxu0 %v11961_v30  ;;  %2675 = vmatprep.subr.bf16.mxu1 %v11962_v16 }
 0x7ff   :  { %2635 = vmatpush1.bf16.msra.mxu0 %v11963_v44  ;;  %2676 = vmatpush1.bf16.msra.mxu1 %v11964_v39 }
 0x800   :  { %2636 = vmatprep.subr.bf16.mxu0 %v11965_v29  ;;  %2677 = vmatprep.subr.bf16.mxu1 %v11966_v32 }
 0x803   :  { %2637 = vmatpush1.bf16.msra.mxu0 %v11967_v17  ;;  %2678 = vmatpush1.bf16.msra.mxu1 %v11968_v22 }
 0x804   :  { %2638 = vmatprep.subr.bf16.mxu0 %v11969_v53  ;;  %2679 = vmatprep.subr.bf16.mxu1 %v11970_v15  ;;  %v12014_v53 = vld [vmem:[#allocation20_spill] sm:$0xff] }
 0x807   :  { %2639 = vmatpush1.bf16.msra.mxu0 %v11971_v23  ;;  %2680 = vmatpush1.bf16.msra.mxu1 %v11972_v21  ;;  %v12015_v23 = vld [vmem:[#allocation21_spill] sm:$0xff] }
 0x808   :  { %2640 = vmatprep.subr.bf16.mxu0 %v11973_v31  ;;  %2681 = vmatprep.subr.bf16.mxu1 %v11974_v46 }
 0x80b   :  { %2641 = vmatpush1.bf16.msra.mxu0 %v11975_v42  ;;  %2682 = vmatpush1.bf16.msra.mxu1 %v11976_v33 }
 0x80c   :  { %2642 = vmatprep.subr.bf16.mxu0 %v11977_v12  ;;  %2683 = vmatprep.subr.bf16.mxu1 %v11978_v13 }
 0x80f   :  { %2643 = vmatpush1.bf16.msra.mxu0 %v11979_v0  ;;  %2684 = vmatpush1.bf16.msra.mxu1 %v11980_v3 }
 0x810   :  { %2644 = vmatprep.subr.bf16.mxu0 %v11981_v56  ;;  %2685 = vmatprep.subr.bf16.mxu1 %v11982_v36  ;;  %v12016_v56 = vld [vmem:[#allocation43_spill] sm:$0xff] }
 0x813   :  { %2645 = vmatpush2.bf16.msra.mxu0 %v11983_v1  ;;  %2686 = vmatpush2.bf16.msra.mxu1 %v11984_v62 }
 0x814   :  { %2646 = vmatprep.subr.bf16.mxu0 %v11985_v55  ;;  %2687 = vmatprep.subr.bf16.mxu1 %v11986_v35 }
 0x817   :  { %2647 = vmatpush2.bf16.msra.mxu0 %v11987_v63  ;;  %2688 = vmatpush2.bf16.msra.mxu1 %v11988_v7 }
 0x818   :  { %2648 = vmatprep.subr.bf16.mxu0 %v11989_v2  ;;  %2689 = vmatprep.subr.bf16.mxu1 %v11990_v58 }
 0x81b   :  { %2649 = vmatpush2.bf16.msra.mxu0 %v11991_v4  ;;  %2690 = vmatpush2.bf16.msra.mxu1 %v11992_v49 }
 0x81c   :  { %2650 = vmatprep.subr.bf16.mxu0 %v11993_v37  ;;  %2691 = vmatprep.subr.bf16.mxu1 %v11994_v48 }
 0x81f   :  { %2651 = vmatpush2.bf16.msra.mxu0 %v11995_v34  ;;  %2692 = vmatpush2.bf16.msra.mxu1 %v11996_v40 }
 0x820   :  { %2652 = vmatprep.subr.bf16.mxu0 %v11997_v43  ;;  %2693 = vmatprep.subr.bf16.mxu1 %v11998_v8 }
 0x823   :  { %2653 = vmatpush2.bf16.msra.mxu0 %v11999_v28  ;;  %2694 = vmatpush2.bf16.msra.mxu1 %v12000_v60 }
 0x824   :  { %2654 = vmatprep.subr.bf16.mxu0 %v12001_v52  ;;  %2695 = vmatprep.subr.bf16.mxu1 %v12002_v45 }
 0x827   :  { %2655 = vmatpush2.bf16.msra.mxu0 %v12003_v38  ;;  %2696 = vmatpush2.bf16.msra.mxu1 %v12004_v47 }
 0x828   :  { %2656 = vmatprep.subr.bf16.mxu0 %v12005_v6  ;;  %2697 = vmatprep.subr.bf16.mxu1 %v12006_v26 }
 0x82b   :  { %2657 = vmatpush2.bf16.msra.mxu0 %v12007_v10  ;;  %2698 = vmatpush2.bf16.msra.mxu1 %v12008_v41 }
 0x82c   :  { %2658 = vmatprep.subr.bf16.mxu0 %v12009_v5  ;;  %2699 = vmatprep.subr.bf16.mxu1 %v12010_v9 }
 0x82f   :  { %2659 = vmatpush2.bf16.msra.mxu0 %v12011_v11  ;;  %2700 = vmatpush2.bf16.msra.mxu1 %v12012_v19 }
 0x892   :  { %v2428_v27 = vpop.f32.mrf.mxu0  ;;  %v2469_v25 = vpop.f32.mrf.mxu1 }
 0x893   :  { %v2429_v18 = vadd.f32 %v2428_v27, %v12013_v24  ;;  %v2470_v21 = vadd.f32 %v2469_v25, %v12015_v23 }
 0x894   :  { %v2430_v20 = vpop.f32.mrf.mxu0  ;;  %v2471_v30 = vpop.f32.mrf.mxu1 }
 0x895   :  { %v2476_v16 = vmul.f32 0.5, %v2429_v18  ;;  %v2431_v44 = vadd.f32 %v2430_v20, %v11882_v50  ;;  %v2472_v15 = vadd.f32 %v2471_v30, %v12014_v53  ;;  %v2478_v31 = vmul.f32 0.5, %v2470_v21 }
 0x896   :  { %v2432_v39 = vpop.f32.mrf.mxu0  ;;  %v2473_v29 = vpop.f32.mrf.mxu1  ;;  %v2606_v20 = vrot.slane %v8897_v14, 7  ;;  %v6298_v14 = vld [vmem:[#allocation6 + $0xe4] ss:$16 sps:$4 sm:$0xff]  }
 0x897   :  { %6626 = vtanh.f32 %v2476_v16  ;;  %v2477_v32 = vmul.f32 0.5, %v2431_v44  ;;  %2943 = vmatprep.subr.bf16.mxu0 %v6298_v14 }
 0x898   :  { %v2433_v17 = vpop.f32.mrf.mxu0  ;;  %v2474_v22 = vpop.f32.mrf.mxu1 }
 0x899   :  { %6628 = vtanh.f32 %v2477_v32 }
 0x89a   :  { %6630 = vtanh.f32 %v2472_v15 }
 0x89b   :  { %6632 = vtanh.f32 %v2478_v31 }
 0x8a4   :  { %v6627_v46 = vpop.eup %6626 }
 0x8a5   :  { %v2482_v42 = vmul.f32 0.5, %v6627_v46  ;;  %v6301_v46 = vld [vmem:[#allocation6 + $0xec] ss:$16 sps:$4 sm:$0xff]  }
 0x8a6   :  { %v6629_v33 = vpop.eup %6628  ;;  %2984 = vmatprep.subr.bf16.mxu1 %v6301_v46 }
 0x8a7   :  { %v2485_v12 = vadd.f32 0.5, %v2482_v42  ;;  %v2483_v13 = vmul.f32 0.5, %v6629_v33  ;;  %v6631_v3 = vpop.eup %6630  ;;  %v6296_v42 = vld [vmem:[#allocation6 + $0xe0] ss:$16 sps:$4 sm:$0xff]   ;;  %v6299_v33 = vld [vmem:[#allocation6 + $0xe8] ss:$16 sps:$4 sm:$0xff]  }
 0x8a8   :  { %v6633_v7 = vpop.eup %6632 }
 0x8a9   :  { %v2486_v0 = vadd.f32 0.5, %v2483_v13  ;;  %v2490_v1 = vmul.f32 %v6631_v3, %v2485_v12  ;;  %v2484_v34 = vmul.f32 0.5, %v6633_v7  ;;  %v6304_v12 = vld [vmem:[#allocation6 + $0xc4] ss:$16 sps:$4 sm:$0xff]   ;;  %v6307_v13 = vld [vmem:[#allocation6 + $0xcc] ss:$16 sps:$4 sm:$0xff]  }
 0x8aa   :  { %v6305_v3 = vld [vmem:[#allocation6 + $0xc8] ss:$16 sps:$4 sm:$0xff]   ;;  %v6314_v7 = vld [vmem:[#allocation6 + $0x80] ss:$16 sps:$4 sm:$0xff]  }
 0x8ab   :  { %v2489_v36 = vmul.f32 %v2486_v0, %v12016_v56  ;;  %v2487_v45 = vadd.f32 0.5, %v2484_v34  ;;  %v6302_v0 = vld [vmem:[#allocation6 + $0xc0] ss:$16 sps:$4 sm:$0xff]   ;;  %v6310_v56 = vld [vmem:[#allocation6 + $0xa4] ss:$16 sps:$4 sm:$0xff]  }
 0x8ac   :  { %v6331_v34 = vld [vmem:[#allocation6 + $0x4c] ss:$16 sps:$4 sm:$0xff]  }
 0x8ad   :  { %v9001_v62 = vadd.f32 %v2490_v1, %v2489_v36  ;;  %v6313_v36 = vld [vmem:[#allocation6 + $0xac] ss:$16 sps:$4 sm:$0xff]   ;;  %v6308_v1 = vld [vmem:[#allocation6 + $0xa0] ss:$16 sps:$4 sm:$0xff]  }
 0x8af   :  { %6634 = vtanh.f32 %v9001_v62 }
 0x8b2   :  { %v2528_v55 = vpop.f32.mrf.mxu0  ;;  %v2569_v35 = vpop.f32.mrf.mxu1 }
 0x8b3   :  { %v2580_v63 = vrot.slane %v2528_v55, 1  ;;  %v2582_v6 = vrot.slane %v2569_v35, 1  ;;  %v6311_v55 = vld [vmem:[#allocation6 + $0xa8] ss:$16 sps:$4 sm:$0xff]   ;;  %v6316_v35 = vld [vmem:[#allocation6 + $0x84] ss:$16 sps:$4 sm:$0xff]  }
 0x8b4   :  { %v2530_v2 = vpop.f32.mrf.mxu0  ;;  %v2571_v58 = vpop.f32.mrf.mxu1 }
 0x8b5   :  { %v2588_v4 = vadd.f32 %v2580_v63, %v11663_v54  ;;  %v2581_v49 = vrot.slane %v2530_v2, 1  ;;  %v2583_v8 = vrot.slane %v2571_v58, 1  ;;  %v2590_v10 = vadd.f32 %v2582_v6, %v7800_v61  ;;  %v6319_v63 = vld [vmem:[#allocation6 + $0x8c] ss:$16 sps:$4 sm:$0xff]   ;;  %v6317_v2 = vld [vmem:[#allocation6 + $0x88] ss:$16 sps:$4 sm:$0xff]  }
 0x8b6   :  { %v2532_v37 = vpop.f32.mrf.mxu0  ;;  %v2573_v48 = vpop.f32.mrf.mxu1  ;;  %v6322_v58 = vld [vmem:[#allocation6 + $0x64] ss:$16 sps:$4 sm:$0xff]   ;;  %v6341_v6 = vld [vmem:[#allocation6 + $0x8] ss:$16 sps:$4 sm:$0xff]  }
 0x8b7   :  { %v2592_v40 = vmul.f32 0.5, %v2588_v4  ;;  %v2589_v43 = vadd.f32 %v2581_v49, %v7789_v59  ;;  %v2591_v38 = vadd.f32 %v2583_v8, %v7796_v51  ;;  %v2594_v9 = vmul.f32 0.5, %v2590_v10  ;;  %v6320_v4 = vld [vmem:[#allocation6 + $0x60] ss:$16 sps:$4 sm:$0xff]   ;;  %v6323_v49 = vld [vmem:[#allocation6 + $0x68] ss:$16 sps:$4 sm:$0xff]  }
 0x8b8   :  { %v2533_v28 = vpop.f32.mrf.mxu0  ;;  %v2574_v60 = vpop.f32.mrf.mxu1  ;;  %v6325_v37 = vld [vmem:[#allocation6 + $0x6c] ss:$16 sps:$4 sm:$0xff]   ;;  %v6328_v48 = vld [vmem:[#allocation6 + $0x44] ss:$16 sps:$4 sm:$0xff]  }
 0x8b9   :  { %6636 = vtanh.f32 %v2592_v40  ;;  %v2593_v52 = vmul.f32 0.5, %v2589_v43  ;;  %v6326_v40 = vld [vmem:[#allocation6 + $0x40] ss:$16 sps:$4 sm:$0xff]   ;;  %v6329_v43 = vld [vmem:[#allocation6 + $0x48] ss:$16 sps:$4 sm:$0xff]  }
 0x8ba   :  { %v6334_v8 = vld [vmem:[#allocation6 + $0x24] ss:$16 sps:$4 sm:$0xff]   ;;  %v6337_v28 = vld [vmem:[#allocation6 + $0x2c] ss:$16 sps:$4 sm:$0xff]   ;;  %v6332_v60 = vld [vmem:[#allocation6 + $0x20] ss:$16 sps:$4 sm:$0xff]  }
 0x8bb   :  { %6638 = vtanh.f32 %v2593_v52  ;;  %v6335_v52 = vld [vmem:[#allocation6 + $0x28] ss:$16 sps:$4 sm:$0xff]  }
 0x8bc   :  { %v6635_v47 = vpop.eup %6634  ;;  %6640 = vtanh.f32 %v2591_v38  ;;  %v6343_v38 = vld [vmem:[#allocation6 + $0xc] ss:$16 sps:$4 sm:$0xff]  }
 0x8bd   :  { %v2493_v26 = vmul.f32 %v6635_v47, %v2487_v45  ;;  %6642 = vtanh.f32 %v2594_v9  ;;  %v6340_v45 = vld [vmem:[#allocation6 + $0x4] ss:$16 sps:$4 sm:$0xff]   ;;  %v6338_v47 = vld [vmem:[#allocation6] ss:$16 sps:$4 sm:$0xff]  }
 0x8bf   :  { %v2614_v54 = vrot.slane %v2493_v26, 1  ;;  %v9011_v26 = vld [vmem:[#allocation7 + $0xe4] ss:$16 sps:$4 sm:$0xff]  }
 0x8c0   :  { %12017 = vst [vmem:[#allocation44_spill] sm:$0xff] %v9011_v26 }
 0x8c1   :  { %v2617_v41 = vpack.c.bf16 %v2614_v54, %v2614_v54  ;;  %v9013_v54 = vld [vmem:[#allocation7 + $0xec] ss:$16 sps:$4 sm:$0xff]  }
 0x8c2   :  { %12018 = vst [vmem:[#allocation45_spill] sm:$0xff] %v9013_v54 }
 0x8c3   :  { %v2623_v5 = vshrl.u32 %v2617_v41, 16 }
 0x8c5   :  { %v2625_v59 = vrot.slane %v2623_v5, 3 }
 0x8c6   :  { %v6637_v11 = vpop.eup %6636 }
 0x8c7   :  { %v2598_v19 = vmul.f32 0.5, %v6637_v11  ;;  %2660 = vmatprep.mubr.bf16.mxu0 %v2625_v59  ;;  %2701 = vmatprep.mubr.bf16.mxu1 %v2625_v59 }
 0x8c8   :  { %v6639_v27 = vpop.eup %6638 }
 0x8c9   :  { %v2601_v25 = vadd.f32 0.5, %v2598_v19  ;;  %v2599_v18 = vmul.f32 0.5, %v6639_v27  ;;  %v6641_v30 = vpop.eup %6640 }
 0x8ca   :  { %v6643_v61 = vpop.eup %6642 }
 0x8cb   :  { %v2602_v51 = vadd.f32 0.5, %v2599_v18  ;;  %v2609_v44 = vmul.f32 %v6641_v30, %v2601_v25  ;;  %v2600_v29 = vmul.f32 0.5, %v6643_v61 }
 0x8cd   :  { %v2608_v16 = vmul.f32 %v2606_v20, %v2602_v51  ;;  %v2603_v32 = vadd.f32 0.5, %v2600_v29 }
 0x8cf   :  { %v2610_v39 = vadd.f32 %v2609_v44, %v2608_v16 }
 0x8d1   :  { %6644 = vtanh.f32 %v2610_v39 }
 0x8de   :  { %v6645_v17 = vpop.eup %6644 }
 0x8df   :  { %v2612_v22 = vmul.f32 %v6645_v17, %v2603_v32 }
 0x8e1   :  { %v2616_v15 = vpack.c.bf16 %v2612_v22, %v2612_v22 }
 0x8e3   :  { %v2619_v21 = vshrl.u32 %v2616_v15, 16 }
 0x8e5   :  { %v2621_v31 = vrot.slane %v2619_v21, 3 }
 0x8e7   :  { %2661 = vmatmul.mubr.bf16.vlgmr.msra.gmra.mxu0 %v2621_v31  ;;  %2702 = vmatmul.mubr.bf16.vlgmr.msra.gmra.mxu1 %v2621_v31 }
 0x8e8   :  { %2975 = vmatprep.mubr.bf16.mxu0 %v11600_v57  ;;  %3016 = vmatprep.mubr.bf16.mxu1 %v11600_v57 }
 0x8e9   :  { %2944 = vmatpush1.bf16.msra.mxu0 %v6296_v42  ;;  %2985 = vmatpush1.bf16.msra.mxu1 %v6299_v33  ;;  %v9024_v33 = vld [vmem:[#allocation7 + $0xe8] ss:$16 sps:$4 sm:$0xff]  }
 0x8ea   :  { %2945 = vmatprep.subr.bf16.mxu0 %v6304_v12  ;;  %2986 = vmatprep.subr.bf16.mxu1 %v6307_v13  ;;  %12019 = vst [vmem:[#allocation46_spill] sm:$0xff] %v9024_v33  ;;  %v9026_v13 = vld [vmem:[#allocation7 + $0xc4] ss:$16 sps:$4 sm:$0xff]  }
 0x8ed   :  { %2946 = vmatpush1.bf16.msra.mxu0 %v6302_v0  ;;  %2987 = vmatpush1.bf16.msra.mxu1 %v6305_v3  ;;  %v9028_v0 = vld [vmem:[#allocation7 + $0xcc] ss:$16 sps:$4 sm:$0xff]   ;;  %v9034_v3 = vld [vmem:[#allocation7 + $0xc8] ss:$16 sps:$4 sm:$0xff]  }
 0x8ee   :  { %2947 = vmatprep.subr.bf16.mxu0 %v6310_v56  ;;  %2988 = vmatprep.subr.bf16.mxu1 %v6313_v36  ;;  %12020 = vst [vmem:[#allocation47_spill] sm:$0xff] %v9028_v0  ;;  %12021 = vst [vmem:[#allocation48_spill] sm:$0xff] %v9034_v3  ;;  %v9038_v56 = vld [vmem:[#allocation7 + $0xa4] ss:$16 sps:$4 sm:$0xff]   ;;  %v9040_v36 = vld [vmem:[#allocation7 + $0xac] ss:$16 sps:$4 sm:$0xff]  }
 0x8ef   :  { %12022 = vst [vmem:[#allocation49_spill] sm:$0xff] %v9040_v36 }
 0x8f1   :  { %2948 = vmatpush1.bf16.msra.mxu0 %v6308_v1  ;;  %2989 = vmatpush1.bf16.msra.mxu1 %v6311_v55  ;;  %v9046_v1 = vld [vmem:[#allocation7 + $0xa0] ss:$16 sps:$4 sm:$0xff]   ;;  %v9048_v55 = vld [vmem:[#allocation7 + $0xa8] ss:$16 sps:$4 sm:$0xff]  }
 0x8f2   :  { %2949 = vmatprep.subr.bf16.mxu0 %v6316_v35  ;;  %2990 = vmatprep.subr.bf16.mxu1 %v6319_v63  ;;  %12023 = vst [vmem:[#allocation50_spill] sm:$0xff] %v9048_v55  ;;  %v9052_v35 = vld [vmem:[#allocation7 + $0x84] ss:$16 sps:$4 sm:$0xff]   ;;  %v9054_v63 = vld [vmem:[#allocation7 + $0x8c] ss:$16 sps:$4 sm:$0xff]  }
 0x8f3   :  { %12024 = vst [vmem:[#allocation51_spill] sm:$0xff] %v9054_v63 }
 0x8f5   :  { %2950 = vmatpush1.bf16.msra.mxu0 %v6314_v7  ;;  %2991 = vmatpush1.bf16.msra.mxu1 %v6317_v2  ;;  %v9058_v7 = vld [vmem:[#allocation7 + $0x80] ss:$16 sps:$4 sm:$0xff]   ;;  %v9060_v2 = vld [vmem:[#allocation7 + $0x88] ss:$16 sps:$4 sm:$0xff]  }
 0x8f6   :  { %2951 = vmatprep.subr.bf16.mxu0 %v6322_v58  ;;  %2992 = vmatprep.subr.bf16.mxu1 %v6325_v37  ;;  %12025 = vst [vmem:[#allocation52_spill] sm:$0xff] %v9060_v2  ;;  %v9064_v58 = vld [vmem:[#allocation7 + $0x64] ss:$16 sps:$4 sm:$0xff]   ;;  %v9072_v37 = vld [vmem:[#allocation7 + $0x68] ss:$16 sps:$4 sm:$0xff]  }
 0x8f7   :  { %12027 = vst [vmem:[#allocation54_spill] sm:$0xff] %v9072_v37 }
 0x8f9   :  { %2952 = vmatpush1.bf16.msra.mxu0 %v6320_v4  ;;  %2993 = vmatpush1.bf16.msra.mxu1 %v6323_v49  ;;  %v9066_v4 = vld [vmem:[#allocation7 + $0x6c] ss:$16 sps:$4 sm:$0xff]   ;;  %v9070_v49 = vld [vmem:[#allocation7 + $0x60] ss:$16 sps:$4 sm:$0xff]  }
 0x8fa   :  { %2953 = vmatprep.subr.bf16.mxu0 %v6328_v48  ;;  %2994 = vmatprep.subr.bf16.mxu1 %v6331_v34  ;;  %12026 = vst [vmem:[#allocation53_spill] sm:$0xff] %v9066_v4  ;;  %v9076_v48 = vld [vmem:[#allocation7 + $0x44] ss:$16 sps:$4 sm:$0xff]   ;;  %v9078_v34 = vld [vmem:[#allocation7 + $0x4c] ss:$16 sps:$4 sm:$0xff]  }
 0x8fb   :  { %12028 = vst [vmem:[#allocation55_spill] sm:$0xff] %v9078_v34 }
 0x8fd   :  { %2954 = vmatpush1.bf16.msra.mxu0 %v6326_v40  ;;  %2995 = vmatpush1.bf16.msra.mxu1 %v6329_v43  ;;  %v9082_v40 = vld [vmem:[#allocation7 + $0x40] ss:$16 sps:$4 sm:$0xff]   ;;  %v9084_v43 = vld [vmem:[#allocation7 + $0x48] ss:$16 sps:$4 sm:$0xff]  }
 0x8fe   :  { %2955 = vmatprep.subr.bf16.mxu0 %v6334_v8  ;;  %2996 = vmatprep.subr.bf16.mxu1 %v6337_v28  ;;  %12029 = vst [vmem:[#allocation56_spill] sm:$0xff] %v9084_v43  ;;  %v9088_v8 = vld [vmem:[#allocation7 + $0x24] ss:$16 sps:$4 sm:$0xff]   ;;  %v9090_v28 = vld [vmem:[#allocation7 + $0x2c] ss:$16 sps:$4 sm:$0xff]  }
 0x8ff   :  { %12030 = vst [vmem:[#allocation57_spill] sm:$0xff] %v9090_v28 }
 0x901   :  { %2956 = vmatpush1.bf16.msra.mxu0 %v6332_v60  ;;  %2997 = vmatpush1.bf16.msra.mxu1 %v6335_v52  ;;  %v9094_v60 = vld [vmem:[#allocation7 + $0x20] ss:$16 sps:$4 sm:$0xff]   ;;  %v9096_v52 = vld [vmem:[#allocation7 + $0x28] ss:$16 sps:$4 sm:$0xff]  }
 0x902   :  { %2957 = vmatprep.subr.bf16.mxu0 %v6340_v45  ;;  %2998 = vmatprep.subr.bf16.mxu1 %v6343_v38  ;;  %12031 = vst [vmem:[#allocation58_spill] sm:$0xff] %v9096_v52  ;;  %v9100_v45 = vld [vmem:[#allocation7 + $0x4] ss:$16 sps:$4 sm:$0xff]   ;;  %v9102_v38 = vld [vmem:[#allocation7 + $0xc] ss:$16 sps:$4 sm:$0xff]  }
 0x903   :  { %12032 = vst [vmem:[#allocation59_spill] sm:$0xff] %v9102_v38 }
 0x905   :  { %2958 = vmatpush1.bf16.msra.mxu0 %v6338_v47  ;;  %2999 = vmatpush1.bf16.msra.mxu1 %v6341_v6  ;;  %v9106_v47 = vld [vmem:[#allocation7] ss:$16 sps:$4 sm:$0xff]   ;;  %v9108_v6 = vld [vmem:[#allocation7 + $0x8] ss:$16 sps:$4 sm:$0xff]  }
 0x906   :  { %3299 = vmatprep.subr.bf16.mxu0 %v9011_v26  ;;  %3340 = vmatprep.subr.bf16.mxu1 %v9013_v54  ;;  %12033 = vst [vmem:[#allocation60_spill] sm:$0xff] %v9108_v6 }
 0x9a7   :  { %v2662_v10 = vpop.f32.mrf.mxu0  ;;  %v2703_v41 = vpop.f32.mrf.mxu1 }
 0x9a8   :  { %v2663_v5 = vadd.f32 %v2662_v10, %v12013_v24  ;;  %v2704_v16 = vadd.f32 %v2703_v41, %v12015_v23  ;;  %v9022_v23 = vld [vmem:[#allocation7 + $0xe0] ss:$16 sps:$4 sm:$0xff]   ;;  %v12034_v10 = vmov 0.0|0.0   ;;  %v9118_v41 = vld [vmem:[#allocation9 + $0xec] ss:$16 sps:$4 sm:$0xff]  }
 0x9a9   :  { %v2664_v9 = vpop.f32.mrf.mxu0  ;;  %v2705_v59 = vpop.f32.mrf.mxu1  ;;  %12035 = vst [vmem:[#allocation61_spill] sm:$0xff] %v9118_v41 }
 0x9aa   :  { %v2710_v11 = vmul.f32 0.5, %v2663_v5  ;;  %v2665_v19 = vadd.f32 %v2664_v9, %v11882_v50  ;;  %v2706_v30 = vadd.f32 %v2705_v59, %v12014_v53  ;;  %v2712_v44 = vmul.f32 0.5, %v2704_v16  ;;  %v9120_v5 = vld [vmem:[#allocation9 + $0xe4] ss:$16 sps:$4 sm:$0xff]   ;;  %v9122_v9 = vld [vmem:[#allocation9 + $0xe8] ss:$16 sps:$4 sm:$0xff]  }
 0x9ab   :  { %v2666_v27 = vpop.f32.mrf.mxu0  ;;  %v2707_v25 = vpop.f32.mrf.mxu1  ;;  %12036 = vst [vmem:[#allocation62_spill] sm:$0xff] %v9122_v9  ;;  %v9124_v59 = vld [vmem:[#allocation9 + $0xe0] ss:$16 sps:$4 sm:$0xff]   ;;  %v9152_v16 = vld [vmem:[#allocation9 + $0x8c] ss:$16 sps:$4 sm:$0xff]  }
 0x9ac   :  { %6646 = vtanh.f32 %v2710_v11  ;;  %v2711_v18 = vmul.f32 0.5, %v2665_v19  ;;  %v9126_v11 = vld [vmem:[#allocation9 + $0xcc] ss:$16 sps:$4 sm:$0xff]   ;;  %v9128_v19 = vld [vmem:[#allocation9 + $0xc4] ss:$16 sps:$4 sm:$0xff]   ;;  %12041 = vst [vmem:[#allocation66_spill] sm:$0xff] %v9152_v16 }
 0x9ad   :  { %v2667_v51 = vpop.f32.mrf.mxu0  ;;  %v2708_v20 = vpop.f32.mrf.mxu1  ;;  %12037 = vst [vmem:[#allocation82_spill] sm:$0xff] %v9126_v11  ;;  %v9134_v27 = vld [vmem:[#allocation9 + $0xc8] ss:$16 sps:$4 sm:$0xff]   ;;  %v9136_v25 = vld [vmem:[#allocation9 + $0xc0] ss:$16 sps:$4 sm:$0xff]  }
 0x9ae   :  { %6648 = vtanh.f32 %v2711_v18  ;;  %12038 = vst [vmem:[#allocation63_spill] sm:$0xff] %v9134_v27  ;;  %v9140_v18 = vld [vmem:[#allocation9 + $0xac] ss:$16 sps:$4 sm:$0xff]   ;;  %v9142_v51 = vld [vmem:[#allocation9 + $0xa4] ss:$16 sps:$4 sm:$0xff]  }
 0x9af   :  { %6650 = vtanh.f32 %v2706_v30  ;;  %12039 = vst [vmem:[#allocation64_spill] sm:$0xff] %v9140_v18  ;;  %v9146_v20 = vld [vmem:[#allocation9 + $0xa8] ss:$16 sps:$4 sm:$0xff]   ;;  %v9148_v30 = vld [vmem:[#allocation9 + $0xa0] ss:$16 sps:$4 sm:$0xff]  }
 0x9b0   :  { %6652 = vtanh.f32 %v2712_v44  ;;  %12040 = vst [vmem:[#allocation65_spill] sm:$0xff] %v9146_v20  ;;  %v9154_v44 = vld [vmem:[#allocation9 + $0x84] ss:$16 sps:$4 sm:$0xff]  }
 0x9b9   :  { %v6647_v39 = vpop.eup %6646 }
 0x9ba   :  { %v2716_v24 = vmul.f32 0.5, %v6647_v39  ;;  %v9158_v39 = vld [vmem:[#allocation9 + $0x88] ss:$16 sps:$4 sm:$0xff]  }
 0x9bb   :  { %v6649_v61 = vpop.eup %6648  ;;  %12042 = vst [vmem:[#allocation67_spill] sm:$0xff] %v9158_v39 }
 0x9bc   :  { %v2719_v29 = vadd.f32 0.5, %v2716_v24  ;;  %v2717_v32 = vmul.f32 0.5, %v6649_v61  ;;  %v6651_v17 = vpop.eup %6650  ;;  %v9160_v24 = vld [vmem:[#allocation9 + $0x80] ss:$16 sps:$4 sm:$0xff]   ;;  %v9164_v61 = vld [vmem:[#allocation9 + $0x6c] ss:$16 sps:$4 sm:$0xff]  }
 0x9bd   :  { %v6653_v31 = vpop.eup %6652  ;;  %12043 = vst [vmem:[#allocation16_spill] sm:$0xff] %v9164_v61 }
 0x9be   :  { %v2720_v50 = vadd.f32 0.5, %v2717_v32  ;;  %v2724_v15 = vmul.f32 %v6651_v17, %v2719_v29  ;;  %v2718_v14 = vmul.f32 0.5, %v6653_v31  ;;  %v9166_v29 = vld [vmem:[#allocation9 + $0x64] ss:$16 sps:$4 sm:$0xff]   ;;  %v9170_v32 = vld [vmem:[#allocation9 + $0x68] ss:$16 sps:$4 sm:$0xff]  }
 0x9bf   :  { %12044 = vst [vmem:[#allocation17_spill] sm:$0xff] %v9170_v32  ;;  %v9178_v17 = vld [vmem:[#allocation9 + $0x4c] ss:$16 sps:$4 sm:$0xff]  }
 0x9c0   :  { %v2723_v22 = vmul.f32 %v2720_v50, %v9001_v62  ;;  %v2721_v53 = vadd.f32 0.5, %v2718_v14  ;;  %v9032_v62 = vld [vmem:[#allocation7 + $0xc0] ss:$16 sps:$4 sm:$0xff]   ;;  %12045 = vst [vmem:[#allocation22_spill] sm:$0xff] %v9178_v17  ;;  %v9190_v31 = vld [vmem:[#allocation9 + $0x2c] ss:$16 sps:$4 sm:$0xff]  }
 0x9c1   :  { %v9175_v50 = vld [vmem:[#allocation9 + $0x60] ss:$16 sps:$4 sm:$0xff]   ;;  %12047 = vst [vmem:[#allocation24_spill] sm:$0xff] %v9190_v31  ;;  %v9192_v14 = vld [vmem:[#allocation9 + $0x24] ss:$16 sps:$4 sm:$0xff]  }
 0x9c2   :  { %v2725_v21 = vadd.f32 %v2724_v15, %v2723_v22  ;;  %v9180_v22 = vld [vmem:[#allocation9 + $0x44] ss:$16 sps:$4 sm:$0xff]   ;;  %v9182_v15 = vld [vmem:[#allocation9 + $0x48] ss:$16 sps:$4 sm:$0xff]   ;;  %12048 = vst [vmem:[#allocation25_spill] sm:$0xff] %v9192_v14 }
 0x9c3   :  { %12046 = vst [vmem:[#allocation23_spill] sm:$0xff] %v9182_v15 }
 0x9c4   :  { %6654 = vtanh.f32 %v2725_v21  ;;  %v9185_v21 = vld [vmem:[#allocation9 + $0x40] ss:$16 sps:$4 sm:$0xff]  }
 0x9d1   :  { %v6655_v46 = vpop.eup %6654 }
 0x9d2   :  { %v2727_v42 = vmul.f32 %v6655_v46, %v2721_v53  ;;  %v9194_v53 = vld [vmem:[#allocation9 + $0x28] ss:$16 sps:$4 sm:$0xff]   ;;  %v9197_v46 = vld [vmem:[#allocation9 + $0x20] ss:$16 sps:$4 sm:$0xff]  }
 0x9d3   :  { %12049 = vst [vmem:[#allocation26_spill] sm:$0xff] %v9194_v53  ;;  %12050 = vst [vmem:[#allocation27_spill] sm:$0xff] %v9197_v46 }
 0x9d4   :  { %v2728_v12 = vpack.c.bf16 %v2727_v42, %v2727_v42  ;;  %v9202_v42 = vld [vmem:[#allocation9 + $0xc] ss:$16 sps:$4 sm:$0xff]  }
 0x9d5   :  { %12051 = vst [vmem:[#allocation28_spill] sm:$0xff] %v9202_v42 }
 0x9d6   :  { %2976 = vmatmul.mubr.bf16.vlgmr.msra.gmra.mxu0 %v2728_v12  ;;  %3017 = vmatmul.mubr.bf16.vlgmr.msra.gmra.mxu1 %v2728_v12  ;;  %v9204_v12 = vld [vmem:[#allocation9 + $0x4] ss:$16 sps:$4 sm:$0xff]  }
 0x9d7   :  { %3300 = vmatpush1.bf16.msra.mxu0 %v9022_v23  ;;  %3341 = vmatpush1.bf16.msra.mxu1 %v9024_v33  ;;  %12052 = vst [vmem:[#allocation29_spill] sm:$0xff] %v9204_v12 }
 0x9d8   :  { %3301 = vmatprep.subr.bf16.mxu0 %v9026_v13  ;;  %3342 = vmatprep.subr.bf16.mxu1 %v9028_v0  ;;  %v12089_v0 = vld [vmem:[#allocation69_spill] sm:$0xff] }
 0x9d9   :  { %3331 = vmatprep.mubr.bf16.mxu0 %v11600_v57  ;;  %3372 = vmatprep.mubr.bf16.mxu1 %v11600_v57 }
 0x9db   :  { %3302 = vmatpush1.bf16.msra.mxu0 %v9032_v62  ;;  %3343 = vmatpush1.bf16.msra.mxu1 %v9034_v3  ;;  %v12088_v3 = vld [vmem:[#allocation68_spill] sm:$0xff] }
 0x9dc   :  { %3303 = vmatprep.subr.bf16.mxu0 %v9038_v56  ;;  %3344 = vmatprep.subr.bf16.mxu1 %v9040_v36  ;;  %v2761_v36 = vld [vmem:[%s10861_s8] sm:$0xf] }
 0x9dd   :  { %v2930_v33 = vrot.slane %v2761_v36, %v12089_v0 }
 0x9df   :  { %3304 = vmatpush1.bf16.msra.mxu0 %v9046_v1  ;;  %3345 = vmatpush1.bf16.msra.mxu1 %v9048_v55 }
 0x9e0   :  { %3305 = vmatprep.subr.bf16.mxu0 %v9052_v35  ;;  %3346 = vmatprep.subr.bf16.mxu1 %v9054_v63 }
 0x9e3   :  { %3306 = vmatpush1.bf16.msra.mxu0 %v9058_v7  ;;  %3347 = vmatpush1.bf16.msra.mxu1 %v9060_v2 }
 0x9e4   :  { %3307 = vmatprep.subr.bf16.mxu0 %v9064_v58  ;;  %3348 = vmatprep.subr.bf16.mxu1 %v9066_v4 }
 0x9e7   :  { %3308 = vmatpush1.bf16.msra.mxu0 %v9070_v49  ;;  %3349 = vmatpush1.bf16.msra.mxu1 %v9072_v37 }
 0x9e8   :  { %3309 = vmatprep.subr.bf16.mxu0 %v9076_v48  ;;  %3350 = vmatprep.subr.bf16.mxu1 %v9078_v34 }
 0x9eb   :  { %3310 = vmatpush1.bf16.msra.mxu0 %v9082_v40  ;;  %3351 = vmatpush1.bf16.msra.mxu1 %v9084_v43  ;;  %v9301_v43 = vld [vmem:[#allocation9 + $0x108] ss:$16 sps:$4 sm:$0xff]  }
 0x9ec   :  { %3311 = vmatprep.subr.bf16.mxu0 %v9088_v8  ;;  %3352 = vmatprep.subr.bf16.mxu1 %v9090_v28  ;;  %v9295_v28 = vld [vmem:[#allocation9 + $0x10c] ss:$16 sps:$4 sm:$0xff]   ;;  %12085 = vst [vmem:[#allocation87_spill] sm:$0xff] %v9301_v43 }
 0x9ed   :  { %12083 = vst [vmem:[#allocation85_spill] sm:$0xff] %v9295_v28 }
 0x9ef   :  { %3312 = vmatpush1.bf16.msra.mxu0 %v9094_v60  ;;  %3353 = vmatpush1.bf16.msra.mxu1 %v9096_v52  ;;  %v9289_v52 = vld [vmem:[#allocation9 + $0x128] ss:$16 sps:$4 sm:$0xff]  }
 0x9f0   :  { %3313 = vmatprep.subr.bf16.mxu0 %v9100_v45  ;;  %3354 = vmatprep.subr.bf16.mxu1 %v9102_v38  ;;  %v9283_v38 = vld [vmem:[#allocation9 + $0x12c] ss:$16 sps:$4 sm:$0xff]   ;;  %12081 = vst [vmem:[#allocation83_spill] sm:$0xff] %v9289_v52 }
 0x9f1   :  { %12079 = vst [vmem:[#allocation21_spill] sm:$0xff] %v9283_v38 }
 0x9f3   :  { %3314 = vmatpush1.bf16.msra.mxu0 %v9106_v47  ;;  %3355 = vmatpush1.bf16.msra.mxu1 %v9108_v6  ;;  %v9277_v6 = vld [vmem:[#allocation9 + $0x148] ss:$16 sps:$4 sm:$0xff]  }
 0x9f4   :  { %3786 = vmatprep.subr.bf16.mxu1 %v9118_v41  ;;  %3745 = vmatprep.subr.bf16.mxu0 %v9120_v5  ;;  %v9271_v41 = vld [vmem:[#allocation9 + $0x14c] ss:$16 sps:$4 sm:$0xff]   ;;  %12077 = vst [vmem:[#allocation18_spill] sm:$0xff] %v9277_v6 }
 0x9f5   :  { %12075 = vst [vmem:[#allocation41_spill] sm:$0xff] %v9271_v41 }
 0x9f6   :  { %3332 = vmatmul.mubr.bf16.vlgmr.msra.gmra.mxu0 %v11600_v57  ;;  %3373 = vmatmul.mubr.bf16.vlgmr.msra.gmra.mxu1 %v11600_v57 }
 0x9f7   :  { %3777 = vmatprep.mubr.bf16.mxu0 %v12034_v10  ;;  %3818 = vmatprep.mubr.bf16.mxu1 %v12034_v10  ;;  %v9206_v10 = vld [vmem:[#allocation9 + $0x8] ss:$16 sps:$4 sm:$0xff]  }
 0x9f8   :  { %3787 = vmatpush1.bf16.msra.mxu1 %v9122_v9  ;;  %3746 = vmatpush1.bf16.msra.mxu0 %v9124_v59  ;;  %12053 = vst [vmem:[#allocation30_spill] sm:$0xff] %v9206_v10  ;;  %v9269_v9 = vld [vmem:[#allocation9 + $0x160] ss:$16 sps:$4 sm:$0xff]  }
 0x9f9   :  { %3788 = vmatprep.subr.bf16.mxu1 %v9126_v11  ;;  %3747 = vmatprep.subr.bf16.mxu0 %v9128_v19  ;;  %v9259_v11 = vld [vmem:[#allocation9 + $0x16c] ss:$16 sps:$4 sm:$0xff]   ;;  %12074 = vst [vmem:[#allocation71_spill] sm:$0xff] %v9269_v9 }
 0x9fa   :  { %12071 = vst [vmem:[#allocation38_spill] sm:$0xff] %v9259_v11 }
 0x9fc   :  { %3789 = vmatpush1.bf16.msra.mxu1 %v9134_v27  ;;  %3748 = vmatpush1.bf16.msra.mxu0 %v9136_v25  ;;  %v9257_v27 = vld [vmem:[#allocation9 + $0x180] ss:$16 sps:$4 sm:$0xff]  }
 0x9fd   :  { %3790 = vmatprep.subr.bf16.mxu1 %v9140_v18  ;;  %3749 = vmatprep.subr.bf16.mxu0 %v9142_v51  ;;  %v9254_v18 = vld [vmem:[#allocation9 + $0x188] ss:$16 sps:$4 sm:$0xff]   ;;  %12070 = vst [vmem:[#allocation37_spill] sm:$0xff] %v9257_v27 }
 0x9fe   :  { %12069 = vst [vmem:[#allocation36_spill] sm:$0xff] %v9254_v18 }
 0xa00   :  { %3791 = vmatpush1.bf16.msra.mxu1 %v9146_v20  ;;  %3750 = vmatpush1.bf16.msra.mxu0 %v9148_v30  ;;  %v9245_v20 = vld [vmem:[#allocation9 + $0x1a0] ss:$16 sps:$4 sm:$0xff]  }
 0xa01   :  { %3792 = vmatprep.subr.bf16.mxu1 %v9152_v16  ;;  %3751 = vmatprep.subr.bf16.mxu0 %v9154_v44  ;;  %v9242_v16 = vld [vmem:[#allocation9 + $0x1a8] ss:$16 sps:$4 sm:$0xff]   ;;  %12066 = vst [vmem:[#allocation34_spill] sm:$0xff] %v9245_v20 }
 0xa02   :  { %12065 = vst [vmem:[#allocation33_spill] sm:$0xff] %v9242_v16 }
 0xa04   :  { %3793 = vmatpush1.bf16.msra.mxu1 %v9158_v39  ;;  %3752 = vmatpush1.bf16.msra.mxu0 %v9160_v24  ;;  %v9233_v39 = vld [vmem:[#allocation9 + $0x1c0] ss:$16 sps:$4 sm:$0xff]  }
 0xa05   :  { %3794 = vmatprep.subr.bf16.mxu1 %v9164_v61  ;;  %3753 = vmatprep.subr.bf16.mxu0 %v9166_v29  ;;  %v9230_v61 = vld [vmem:[#allocation9 + $0x1c8] ss:$16 sps:$4 sm:$0xff]   ;;  %12062 = vst [vmem:[#allocation79_spill] sm:$0xff] %v9233_v39 }
 0xa06   :  { %12061 = vst [vmem:[#allocation78_spill] sm:$0xff] %v9230_v61 }
 0xa08   :  { %3795 = vmatpush1.bf16.msra.mxu1 %v9170_v32  ;;  %3754 = vmatpush1.bf16.msra.mxu0 %v9175_v50  ;;  %v9221_v32 = vld [vmem:[#allocation9 + $0x1e0] ss:$16 sps:$4 sm:$0xff]  }
 0xa09   :  { %3796 = vmatprep.subr.bf16.mxu1 %v9178_v17  ;;  %3755 = vmatprep.subr.bf16.mxu0 %v9180_v22  ;;  %v9218_v17 = vld [vmem:[#allocation9 + $0x1e8] ss:$16 sps:$4 sm:$0xff]   ;;  %12058 = vst [vmem:[#allocation75_spill] sm:$0xff] %v9221_v32 }
 0xa0a   :  { %12057 = vst [vmem:[#allocation74_spill] sm:$0xff] %v9218_v17 }
 0xa0c   :  { %3797 = vmatpush1.bf16.msra.mxu1 %v9182_v15  ;;  %3756 = vmatpush1.bf16.msra.mxu0 %v9185_v21  ;;  %v9209_v15 = vld [vmem:[#allocation9] ss:$16 sps:$4 sm:$0xff]  }
 0xa0d   :  { %3798 = vmatprep.subr.bf16.mxu1 %v9190_v31  ;;  %3757 = vmatprep.subr.bf16.mxu0 %v9192_v14  ;;  %12054 = vst [vmem:[#allocation31_spill] sm:$0xff] %v9209_v15  ;;  %v9214_v31 = vld [vmem:[#allocation9 + $0x1ec] ss:$16 sps:$4 sm:$0xff]  }
 0xa0e   :  { %12055 = vst [vmem:[#allocation32_spill] sm:$0xff] %v9214_v31 }
 0xa10   :  { %3799 = vmatpush1.bf16.msra.mxu1 %v9194_v53  ;;  %3758 = vmatpush1.bf16.msra.mxu0 %v9197_v46  ;;  %v9216_v53 = vld [vmem:[#allocation9 + $0x1e4] ss:$16 sps:$4 sm:$0xff]  }
 0xa11   :  { %3800 = vmatprep.subr.bf16.mxu1 %v9202_v42  ;;  %3759 = vmatprep.subr.bf16.mxu0 %v9204_v12  ;;  %12056 = vst [vmem:[#allocation73_spill] sm:$0xff] %v9216_v53  ;;  %v9226_v42 = vld [vmem:[#allocation9 + $0x1cc] ss:$16 sps:$4 sm:$0xff]  }
 0xa12   :  { %12059 = vst [vmem:[#allocation76_spill] sm:$0xff] %v9226_v42 }
 0xa14   :  { %3801 = vmatpush1.bf16.msra.mxu1 %v9206_v10  ;;  %3760 = vmatpush1.bf16.msra.mxu0 %v9209_v15  ;;  %v9228_v10 = vld [vmem:[#allocation9 + $0x1c4] ss:$16 sps:$4 sm:$0xff]  }
 0xa15   :  { %3802 = vmatprep.subr.bf16.mxu1 %v9214_v31  ;;  %3761 = vmatprep.subr.bf16.mxu0 %v9216_v53  ;;  %12060 = vst [vmem:[#allocation77_spill] sm:$0xff] %v9228_v10  ;;  %v9238_v31 = vld [vmem:[#allocation9 + $0x1ac] ss:$16 sps:$4 sm:$0xff]  }
 0xa16   :  { %12063 = vst [vmem:[#allocation80_spill] sm:$0xff] %v9238_v31 }
 0xa18   :  { %3803 = vmatpush2.bf16.msra.mxu1 %v9218_v17  ;;  %3762 = vmatpush2.bf16.msra.mxu0 %v9221_v32  ;;  %v9240_v17 = vld [vmem:[#allocation9 + $0x1a4] ss:$16 sps:$4 sm:$0xff]  }
 0xa19   :  { %3804 = vmatprep.subr.bf16.mxu1 %v9226_v42  ;;  %3763 = vmatprep.subr.bf16.mxu0 %v9228_v10  ;;  %12064 = vst [vmem:[#allocation81_spill] sm:$0xff] %v9240_v17  ;;  %v9250_v42 = vld [vmem:[#allocation9 + $0x18c] ss:$16 sps:$4 sm:$0xff]  }
 0xa1a   :  { %12067 = vst [vmem:[#allocation19_spill] sm:$0xff] %v9250_v42 }
 0xa1c   :  { %3805 = vmatpush2.bf16.msra.mxu1 %v9230_v61  ;;  %3764 = vmatpush2.bf16.msra.mxu0 %v9233_v39  ;;  %v9252_v61 = vld [vmem:[#allocation9 + $0x184] ss:$16 sps:$4 sm:$0xff]  }
 0xa1d   :  { %3806 = vmatprep.subr.bf16.mxu1 %v9238_v31  ;;  %3765 = vmatprep.subr.bf16.mxu0 %v9240_v17  ;;  %12068 = vst [vmem:[#allocation35_spill] sm:$0xff] %v9252_v61  ;;  %v9261_v31 = vld [vmem:[#allocation9 + $0x164] ss:$16 sps:$4 sm:$0xff]  }
 0xa1e   :  { %12072 = vst [vmem:[#allocation39_spill] sm:$0xff] %v9261_v31 }
 0xa20   :  { %3807 = vmatpush2.bf16.msra.mxu1 %v9242_v16  ;;  %3766 = vmatpush2.bf16.msra.mxu0 %v9245_v20  ;;  %v9265_v16 = vld [vmem:[#allocation9 + $0x168] ss:$16 sps:$4 sm:$0xff]  }
 0xa21   :  { %3808 = vmatprep.subr.bf16.mxu1 %v9250_v42  ;;  %3767 = vmatprep.subr.bf16.mxu0 %v9252_v61  ;;  %12073 = vst [vmem:[#allocation40_spill] sm:$0xff] %v9265_v16  ;;  %v9274_v42 = vld [vmem:[#allocation9 + $0x144] ss:$16 sps:$4 sm:$0xff]  }
 0xa22   :  { %12076 = vst [vmem:[#allocation42_spill] sm:$0xff] %v9274_v42 }
 0xa24   :  { %3809 = vmatpush2.bf16.msra.mxu1 %v9254_v18  ;;  %3768 = vmatpush2.bf16.msra.mxu0 %v9257_v27  ;;  %v9281_v18 = vld [vmem:[#allocation9 + $0x140] ss:$16 sps:$4 sm:$0xff]  }
 0xa25   :  { %3810 = vmatprep.subr.bf16.mxu1 %v9259_v11  ;;  %3769 = vmatprep.subr.bf16.mxu0 %v9261_v31  ;;  %12078 = vst [vmem:[#allocation20_spill] sm:$0xff] %v9281_v18  ;;  %v9286_v11 = vld [vmem:[#allocation9 + $0x124] ss:$16 sps:$4 sm:$0xff]  }
 0xa26   :  { %12080 = vst [vmem:[#allocation43_spill] sm:$0xff] %v9286_v11 }
 0xa28   :  { %3811 = vmatpush2.bf16.msra.mxu1 %v9265_v16  ;;  %3770 = vmatpush2.bf16.msra.mxu0 %v9269_v9  ;;  %v9293_v16 = vld [vmem:[#allocation9 + $0x120] ss:$16 sps:$4 sm:$0xff]  }
 0xa29   :  { %3812 = vmatprep.subr.bf16.mxu1 %v9271_v41  ;;  %3771 = vmatprep.subr.bf16.mxu0 %v9274_v42  ;;  %12082 = vst [vmem:[#allocation84_spill] sm:$0xff] %v9293_v16  ;;  %v9298_v41 = vld [vmem:[#allocation9 + $0x104] ss:$16 sps:$4 sm:$0xff]  }
 0xa2a   :  { %12084 = vst [vmem:[#allocation86_spill] sm:$0xff] %v9298_v41  ;;  %v12092_v9 = vld [vmem:[#allocation72_spill] sm:$0xff] }
 0xa2c   :  { %3813 = vmatpush2.bf16.msra.mxu1 %v9277_v6  ;;  %3772 = vmatpush2.bf16.msra.mxu0 %v9281_v18  ;;  %v9305_v6 = vld [vmem:[#allocation9 + $0x100] ss:$16 sps:$4 sm:$0xff]  }
 0xa2d   :  { %3814 = vmatprep.subr.bf16.mxu1 %v9283_v38  ;;  %3773 = vmatprep.subr.bf16.mxu0 %v9286_v11  ;;  %12086 = vst [vmem:[#allocation88_spill] sm:$0xff] %v9305_v6  ;;  %v12087_v38 = vmov 0.0  }
 0xa30   :  { %3815 = vmatpush2.bf16.msra.mxu1 %v9289_v52  ;;  %3774 = vmatpush2.bf16.msra.mxu0 %v9293_v16  ;;  %v12091_v16 = vld [vmem:[#allocation70_spill] sm:$0xff] }
 0xa31   :  { %3816 = vmatprep.subr.bf16.mxu1 %v9295_v28  ;;  %3775 = vmatprep.subr.bf16.mxu0 %v9298_v41  ;;  %v2938_v11 = vrot.slane %v2761_v36, %v12091_v16 }
 0xa34   :  { %3817 = vmatpush2.bf16.msra.mxu1 %v9301_v43  ;;  %3776 = vmatpush2.bf16.msra.mxu0 %v9305_v6  ;;  %v2926_v43 = vrot.slane %v2761_v36, %v12088_v3 }
 0xa35   :  { %3935 = vmatprep.subr.bf16.mxu1 %v9011_v26  ;;  %5978 = vmatprep.subr.bf16.mxu0 %v12087_v38 }
 0xa96   :  { %v2977_v34 = vpop.f32.mrf.mxu0  ;;  %v3018_v52 = vpop.f32.mrf.mxu1 }
 0xa97   :  { %v9317_v54 = vadd.f32 %v2977_v34, %v2926_v43 }
 0xa98   :  { %v2979_v37 = vpop.f32.mrf.mxu0  ;;  %v3020_v4 = vpop.f32.mrf.mxu1 }
 0xa99   :  { %v9319_v41 = vadd.f32 %v2979_v37, %v2930_v33  ;;  %v9324_v3 = vadd.f32 %v3020_v4, %v2938_v11  ;;  %v2934_v33 = vrot.slane %v2761_v36, %v12092_v9 }
 0xa9a   :  { %v2981_v2 = vpop.f32.mrf.mxu0  ;;  %v3022_v63 = vpop.f32.mrf.mxu1 }
 0xa9b   :  { %12090 = vst [vmem:[#allocation89_spill] sm:$0xff] %v9319_v41  ;;  %v9328_v16 = vadd.f32 %v3018_v52, %v2934_v33 }
 0xa9c   :  { %v2982_v55 = vpop.f32.mrf.mxu0  ;;  %v3023_v28 = vpop.f32.mrf.mxu1 }
 0xa9d   :  { %12093 = vst [vmem:[#allocation72_spill] sm:$0xff] %v9328_v16 }
 0xab6   :  { %v3333_v26 = vpop.f32.mrf.mxu0  ;;  %v3374_v6 = vpop.f32.mrf.mxu1 }
 0xab7   :  { %v3381_v63 = vadd.f32 %v3333_v26, %v9317_v54  ;;  %v3383_v26 = vadd.f32 %v3374_v6, %v9328_v16 }
 0xab8   :  { %v3335_v55 = vpop.f32.mrf.mxu0  ;;  %v3376_v2 = vpop.f32.mrf.mxu1 }
 0xab9   :  { %v3385_v28 = vmul.f32 0.5, %v3381_v63  ;;  %v3382_v18 = vadd.f32 %v3335_v55, %v9319_v41  ;;  %v3384_v37 = vadd.f32 %v3376_v2, %v9324_v3  ;;  %v3387_v63 = vmul.f32 0.5, %v3383_v26  ;;  %v9380_v26 = vld [vmem:[#allocation10 + $0x38] sm:$0xff]  }
 0xaba   :  { %v3337_v38 = vpop.f32.mrf.mxu0  ;;  %v3378_v42 = vpop.f32.mrf.mxu1 }
 0xabb   :  { %6656 = vtanh.f32 %v3385_v28  ;;  %v3386_v34 = vmul.f32 0.5, %v3382_v18 }
 0xabc   :  { %v3338_v43 = vpop.f32.mrf.mxu0  ;;  %v3379_v0 = vpop.f32.mrf.mxu1 }
 0xabd   :  { %6658 = vtanh.f32 %v3386_v34 }
 0xabe   :  { %6660 = vtanh.f32 %v3384_v37 }
 0xabf   :  { %6662 = vtanh.f32 %v3387_v63  ;;  %v12094_v63 = vld [vmem:[#allocation71_spill] sm:$0xff] }
 0xac8   :  { %v6657_v55 = vpop.eup %6656 }
 0xac9   :  { %v3391_v38 = vmul.f32 0.5, %v6657_v55  ;;  %v12095_v55 = vld [vmem:[#allocation42_spill] sm:$0xff] }
 0xaca   :  { %v6659_v42 = vpop.eup %6658 }
 0xacb   :  { %v3394_v4 = vadd.f32 0.5, %v3391_v38  ;;  %v3392_v11 = vmul.f32 0.5, %v6659_v42  ;;  %v6661_v28 = vpop.eup %6660  ;;  %v12096_v38 = vmov 0.0   ;;  %v9386_v42 = vld [vmem:[#allocation10 + $0x30] sm:$0xff]  }
 0xacc   :  { %v6663_v52 = vpop.eup %6662 }
 0xacd   :  { %v3395_v18 = vadd.f32 0.5, %v3392_v11  ;;  %v3399_v43 = vmul.f32 %v6661_v28, %v3394_v4  ;;  %v3393_v2 = vmul.f32 0.5, %v6663_v52  ;;  %v12097_v4 = vld [vmem:[#allocation20_spill] sm:$0xff]  ;;  %v12098_v11 = vld [vmem:[#allocation43_spill] sm:$0xff] }
 0xace   :  { %v12099_v28 = vld [vmem:[#allocation84_spill] sm:$0xff] }
 0xacf   :  { %v3398_v0 = vmul.f32 0.0, %v3395_v18  ;;  %v3396_v34 = vadd.f32 0.5, %v3393_v2  ;;  %v9392_v18 = vld [vmem:[#allocation10 + $0x28] sm:$0xff]   ;;  %v12101_v52 = vld [vmem:[#allocation88_spill] sm:$0xff]  ;;  %v9402_v2 = vld [vmem:[#allocation10 + $0x18] sm:$0xff]  }
 0xad1   :  { %v9331_v36 = vadd.f32 %v3399_v43, %v3398_v0  ;;  %v12100_v0 = vld [vmem:[#allocation86_spill] sm:$0xff]  ;;  %v9398_v43 = vld [vmem:[#allocation10 + $0x20] sm:$0xff]  }
 0xad3   :  { %6664 = vtanh.f32 %v9331_v36 }
 0xae0   :  { %v6665_v33 = vpop.eup %6664 }
 0xae1   :  { %v3402_v6 = vmul.f32 %v6665_v33, %v3396_v34  ;;  %v9408_v34 = vld [vmem:[#allocation10 + $0x10] sm:$0xff]   ;;  %v9412_v33 = vld [vmem:[#allocation10 + $0x8] sm:$0xff]  }
 0xae3   :  { %v9334_v37 = vpack.c.bf16 %v3402_v6, %v3402_v6  ;;  %v9416_v6 = vld [vmem:[#allocation10] sm:$0xff]  }
 0xae5   :  { %3778 = vmatmul.mubr.bf16.vlgmr.msra.gmra.mxu0 %v9334_v37  ;;  %3819 = vmatmul.mubr.bf16.vlgmr.msra.gmra.mxu1 %v9334_v37 }
 0xae6   :  { %3936 = vmatpush1.bf16.msra.mxu1 %v9022_v23  ;;  %3967 = vmatprep.mubr.bf16.mxu1 %v11600_v57 }
 0xae7   :  { %3937 = vmatprep.subr.bf16.mxu1 %v9026_v13  ;;  %5979 = vmatpush3.bf16.msra.mxu0 %v9380_v26 }
 0xae8   :  { %5980 = vmatprep.subr.bf16.mxu0 %v12096_v38  ;;  %5994 = vmatprep.mubr.msk.bf16.mxu0 %vm7359_vm1, %v12096_v38 }
 0xaea   :  { %3938 = vmatpush1.bf16.msra.mxu1 %v9032_v62 }
 0xaeb   :  { %3939 = vmatprep.subr.bf16.mxu1 %v9038_v56  ;;  %5981 = vmatpush3.bf16.msra.mxu0 %v9386_v42 }
 0xaec   :  { %5982 = vmatprep.subr.bf16.mxu0 %v12096_v38 }
 0xaee   :  { %3940 = vmatpush1.bf16.msra.mxu1 %v9046_v1 }
 0xaef   :  { %3941 = vmatprep.subr.bf16.mxu1 %v9052_v35  ;;  %5983 = vmatpush3.bf16.msra.mxu0 %v9392_v18 }
 0xaf0   :  { %5984 = vmatprep.subr.bf16.mxu0 %v12096_v38 }
 0xaf2   :  { %3942 = vmatpush1.bf16.msra.mxu1 %v9058_v7 }
 0xaf3   :  { %3943 = vmatprep.subr.bf16.mxu1 %v9064_v58  ;;  %5985 = vmatpush3.bf16.msra.mxu0 %v9398_v43 }
 0xaf4   :  { %5986 = vmatprep.subr.bf16.mxu0 %v12096_v38 }
 0xaf6   :  { %3944 = vmatpush1.bf16.msra.mxu1 %v9070_v49 }
 0xaf7   :  { %3945 = vmatprep.subr.bf16.mxu1 %v9076_v48  ;;  %5987 = vmatpush3.bf16.msra.mxu0 %v9402_v2 }
 0xaf8   :  { %5988 = vmatprep.subr.bf16.mxu0 %v12096_v38 }
 0xafa   :  { %3946 = vmatpush1.bf16.msra.mxu1 %v9082_v40 }
 0xafb   :  { %3947 = vmatprep.subr.bf16.mxu1 %v9088_v8  ;;  %5989 = vmatpush3.bf16.msra.mxu0 %v9408_v34 }
 0xafc   :  { %5990 = vmatprep.subr.bf16.mxu0 %v12096_v38 }
 0xafe   :  { %3948 = vmatpush1.bf16.msra.mxu1 %v9094_v60 }
 0xaff   :  { %3949 = vmatprep.subr.bf16.mxu1 %v9100_v45  ;;  %5991 = vmatpush3.bf16.msra.mxu0 %v9412_v33 }
 0xb00   :  { %5992 = vmatprep.subr.bf16.mxu0 %v12096_v38 }
 0xb02   :  { %3950 = vmatpush1.bf16.msra.mxu1 %v9106_v47 }
 0xb03   :  { %4040 = vmatprep.subr.bf16.mxu1 %v9120_v5  ;;  %5993 = vmatpush3.bf16.msra.mxu0 %v9416_v6 }
 0xb05   :  { %3968 = vmatmul.mubr.bf16.vlgmr.msra.gmra.mxu1 %v9334_v37 }
 0xb06   :  { %4041 = vmatpush1.bf16.msra.mxu1 %v9124_v59 }
 0xb07   :  { %4042 = vmatprep.subr.bf16.mxu1 %v9128_v19 }
 0xb0a   :  { %4043 = vmatpush1.bf16.msra.mxu1 %v9136_v25 }
 0xb0b   :  { %4044 = vmatprep.subr.bf16.mxu1 %v9142_v51 }
 0xb0e   :  { %4045 = vmatpush1.bf16.msra.mxu1 %v9148_v30 }
 0xb0f   :  { %4046 = vmatprep.subr.bf16.mxu1 %v9154_v44 }
 0xb12   :  { %4047 = vmatpush1.bf16.msra.mxu1 %v9160_v24 }
 0xb13   :  { %4048 = vmatprep.subr.bf16.mxu1 %v9166_v29 }
 0xb16   :  { %4049 = vmatpush1.bf16.msra.mxu1 %v9175_v50 }
 0xb17   :  { %4050 = vmatprep.subr.bf16.mxu1 %v9180_v22 }
 0xb1a   :  { %4051 = vmatpush1.bf16.msra.mxu1 %v9185_v21 }
 0xb1b   :  { %4052 = vmatprep.subr.bf16.mxu1 %v9192_v14 }
 0xb1e   :  { %4053 = vmatpush1.bf16.msra.mxu1 %v9197_v46 }
 0xb1f   :  { %4054 = vmatprep.subr.bf16.mxu1 %v9204_v12 }
 0xb22   :  { %4055 = vmatpush1.bf16.msra.mxu1 %v9209_v15 }
 0xb23   :  { %4056 = vmatprep.subr.bf16.mxu1 %v9216_v53 }
 0xb26   :  { %4057 = vmatpush2.bf16.msra.mxu1 %v9221_v32 }
 0xb27   :  { %4058 = vmatprep.subr.bf16.mxu1 %v9228_v10 }
 0xb2a   :  { %4059 = vmatpush2.bf16.msra.mxu1 %v9233_v39 }
 0xb2b   :  { %4060 = vmatprep.subr.bf16.mxu1 %v9240_v17 }
 0xb2e   :  { %4061 = vmatpush2.bf16.msra.mxu1 %v9245_v20  ;;  %v12106_v20 = vld [vmem:[#allocation70_spill] sm:$0xff] }
 0xb2f   :  { %4062 = vmatprep.subr.bf16.mxu1 %v9252_v61 }
 0xb32   :  { %4063 = vmatpush2.bf16.msra.mxu1 %v9257_v27 }
 0xb33   :  { %4064 = vmatprep.subr.bf16.mxu1 %v9261_v31 }
 0xb36   :  { %4065 = vmatpush2.bf16.msra.mxu1 %v12094_v63 }
 0xb37   :  { %4066 = vmatprep.subr.bf16.mxu1 %v12095_v55 }
 0xb3a   :  { %4067 = vmatpush2.bf16.msra.mxu1 %v12097_v4  ;;  %v12105_v4 = vld [vmem:[#allocation69_spill] sm:$0xff] }
 0xb3b   :  { %4068 = vmatprep.subr.bf16.mxu1 %v12098_v11 }
 0xb3e   :  { %4069 = vmatpush2.bf16.msra.mxu1 %v12099_v28  ;;  %v12103_v28 = vld [vmem:[#allocation68_spill] sm:$0xff] }
 0xb3f   :  { %4070 = vmatprep.subr.bf16.mxu1 %v12100_v0  ;;  %v3121_v0 = vld [vmem:[%s10863_s10] sm:$0xf] }
 0xb40   :  { %v9426_v11 = vrot.slane %v3121_v0, %v12103_v28  ;;  %v9429_v55 = vrot.slane %v3121_v0, %v12105_v4  ;;  %v9433_v17 = vrot.slane %v3121_v0, %v12106_v20  ;;  %v9438_v46 = vrot.slane %v3121_v0, %v12092_v9 }
 0xb42   :  { %4071 = vmatpush2.bf16.msra.mxu1 %v12101_v52  ;;  %v12102_v52 = vld [vmem:[#allocation45_spill] sm:$0xff] }
 0xb43   :  { %5998 = vmatprep.subr.bf16.mxu1 %v12096_v38  ;;  %3976 = vmatprep.subr.bf16.mxu0 %v12102_v52  ;;  %12104 = vst [vmem:[#allocation45_spill] sm:$0xff] %v9426_v11 }
 0xba5   :  { %v3779_v63 = vpop.f32.mrf.mxu0  ;;  %v3820_v31 = vpop.f32.mrf.mxu1 }
 0xba6   :  { %v3780_v27 = vadd.f32 %v3779_v63, %v9426_v11  ;;  %v3821_v63 = vadd.f32 %v3820_v31, %v9438_v46 }
 0xba7   :  { %v3781_v61 = vpop.f32.mrf.mxu0  ;;  %v3822_v52 = vpop.f32.mrf.mxu1 }
 0xba8   :  { %v3827_v39 = vmul.f32 0.5, %v3780_v27  ;;  %v3782_v10 = vadd.f32 %v3781_v61, %v9429_v55  ;;  %v3823_v4 = vadd.f32 %v3822_v52, %v9433_v17  ;;  %v3829_v20 = vmul.f32 0.5, %v3821_v63 }
 0xba9   :  { %v3783_v32 = vpop.f32.mrf.mxu0  ;;  %v3824_v53 = vpop.f32.mrf.mxu1 }
 0xbaa   :  { %6666 = vtanh.f32 %v3827_v39  ;;  %v3828_v28 = vmul.f32 0.5, %v3782_v10 }
 0xbab   :  { %v3784_v15 = vpop.f32.mrf.mxu0  ;;  %v3825_v12 = vpop.f32.mrf.mxu1 }
 0xbac   :  { %6668 = vtanh.f32 %v3828_v28 }
 0xbad   :  { %6670 = vtanh.f32 %v3823_v4 }
 0xbae   :  { %6672 = vtanh.f32 %v3829_v20 }
 0xbb7   :  { %v6667_v11 = vpop.eup %6666 }
 0xbb8   :  { %v3833_v27 = vmul.f32 0.5, %v6667_v11 }
 0xbb9   :  { %v6669_v14 = vpop.eup %6668 }
 0xbba   :  { %v3836_v61 = vadd.f32 0.5, %v3833_v27  ;;  %v3834_v32 = vmul.f32 0.5, %v6669_v14  ;;  %v6671_v53 = vpop.eup %6670  ;;  %v12107_v27 = vld [vmem:[#allocation46_spill] sm:$0xff] }
 0xbbb   :  { %v6673_v0 = vpop.eup %6672 }
 0xbbc   :  { %v3837_v39 = vadd.f32 0.5, %v3834_v32  ;;  %v3841_v12 = vmul.f32 %v6671_v53, %v3836_v61  ;;  %v3835_v28 = vmul.f32 0.5, %v6673_v0  ;;  %v12108_v61 = vld [vmem:[#allocation47_spill] sm:$0xff]  ;;  %v12109_v32 = vld [vmem:[#allocation48_spill] sm:$0xff]  ;;  %v12111_v53 = vld [vmem:[#allocation50_spill] sm:$0xff] }
 0xbbd   :  { %v12114_v0 = vld [vmem:[#allocation53_spill] sm:$0xff] }
 0xbbe   :  { %v3840_v15 = vmul.f32 0.0, %v3837_v39  ;;  %v3838_v4 = vadd.f32 0.5, %v3835_v28  ;;  %v12110_v39 = vld [vmem:[#allocation49_spill] sm:$0xff]  ;;  %v12116_v28 = vld [vmem:[#allocation55_spill] sm:$0xff] }
 0xbc0   :  { %v9441_v10 = vadd.f32 %v3841_v12, %v3840_v15  ;;  %v12112_v15 = vld [vmem:[#allocation51_spill] sm:$0xff]  ;;  %v12113_v12 = vld [vmem:[#allocation52_spill] sm:$0xff] }
 0xbc2   :  { %6674 = vtanh.f32 %v9441_v10 }
 0xbc5   :  { %v9444_v9 = vpop.f32.mrf.mxu1 }
 0xbc7   :  { %v9446_v52 = vpop.f32.mrf.mxu1 }
 0xbc9   :  { %v3973_v31 = vpop.f32.mrf.mxu1 }
 0xbca   :  { %v12115_v31 = vld [vmem:[#allocation54_spill] sm:$0xff] }
 0xbcb   :  { %v3974_v11 = vpop.f32.mrf.mxu1 }
 0xbcc   :  { %v12117_v11 = vld [vmem:[#allocation56_spill] sm:$0xff] }
 0xbcf   :  { %v6675_v63 = vpop.eup %6674 }
 0xbd0   :  { %v3844_v20 = vmul.f32 %v6675_v63, %v3838_v4  ;;  %v12118_v4 = vld [vmem:[#allocation57_spill] sm:$0xff]  ;;  %v12119_v63 = vld [vmem:[#allocation58_spill] sm:$0xff] }
 0xbd2   :  { %v3845_v14 = vpack.c.bf16 %v3844_v20, %v3844_v20  ;;  %v12120_v20 = vld [vmem:[#allocation59_spill] sm:$0xff] }
 0xbd4   :  { %5995 = vmatmul.mubr.bf16.vlgmr.msra.gmra.mxu0 %v3845_v14  ;;  %4072 = vmatprep.mubr.bf16.mxu1 %v3845_v14 }
 0xbd5   :  { %3977 = vmatpush1.bf16.msra.mxu0 %v12107_v27  ;;  %4008 = vmatprep.mubr.bf16.mxu0 %v11600_v57  ;;  %v12121_v27 = vld [vmem:[#allocation60_spill] sm:$0xff] }
 0xbd6   :  { %3978 = vmatprep.subr.bf16.mxu0 %v12108_v61  ;;  %v12122_v61 = vld [vmem:[#allocation61_spill] sm:$0xff] }
 0xbd9   :  { %3979 = vmatpush1.bf16.msra.mxu0 %v12109_v32  ;;  %v12123_v32 = vld [vmem:[#allocation62_spill] sm:$0xff] }
 0xbda   :  { %3980 = vmatprep.subr.bf16.mxu0 %v12110_v39  ;;  %v12124_v39 = vld [vmem:[#allocation82_spill] sm:$0xff] }
 0xbdd   :  { %3981 = vmatpush1.bf16.msra.mxu0 %v12111_v53  ;;  %v12125_v53 = vld [vmem:[#allocation63_spill] sm:$0xff] }
 0xbde   :  { %3982 = vmatprep.subr.bf16.mxu0 %v12112_v15  ;;  %v12126_v15 = vld [vmem:[#allocation64_spill] sm:$0xff] }
 0xbe1   :  { %3983 = vmatpush1.bf16.msra.mxu0 %v12113_v12  ;;  %v12127_v12 = vld [vmem:[#allocation65_spill] sm:$0xff] }
 0xbe2   :  { %3984 = vmatprep.subr.bf16.mxu0 %v12114_v0  ;;  %v12128_v0 = vld [vmem:[#allocation66_spill] sm:$0xff] }
 0xbe5   :  { %3985 = vmatpush1.bf16.msra.mxu0 %v12115_v31  ;;  %v12129_v31 = vld [vmem:[#allocation67_spill] sm:$0xff] }
 0xbe6   :  { %3986 = vmatprep.subr.bf16.mxu0 %v12116_v28  ;;  %v12130_v28 = vld [vmem:[#allocation16_spill] sm:$0xff] }
 0xbe9   :  { %3987 = vmatpush1.bf16.msra.mxu0 %v12117_v11  ;;  %v12131_v11 = vld [vmem:[#allocation17_spill] sm:$0xff] }
 0xbea   :  { %3988 = vmatprep.subr.bf16.mxu0 %v12118_v4  ;;  %v12134_v4 = vld [vmem:[#allocation24_spill] sm:$0xff] }
 0xbed   :  { %3989 = vmatpush1.bf16.msra.mxu0 %v12119_v63  ;;  %v12135_v63 = vld [vmem:[#allocation26_spill] sm:$0xff] }
 0xbee   :  { %3990 = vmatprep.subr.bf16.mxu0 %v12120_v20  ;;  %v12136_v20 = vld [vmem:[#allocation28_spill] sm:$0xff] }
 0xbf1   :  { %3991 = vmatpush1.bf16.msra.mxu0 %v12121_v27  ;;  %v12137_v27 = vld [vmem:[#allocation30_spill] sm:$0xff] }
 0xbf2   :  { %4081 = vmatprep.subr.bf16.mxu0 %v12122_v61  ;;  %v12138_v61 = vld [vmem:[#allocation32_spill] sm:$0xff] }
 0xbf4   :  { %4009 = vmatmul.mubr.bf16.vlgmr.msra.gmra.mxu0 %v9334_v37  ;;  %v12132_v37 = vld [vmem:[#allocation22_spill] sm:$0xff] }
 0xbf5   :  { %4113 = vmatprep.mubr.bf16.mxu0 %v3845_v14  ;;  %4082 = vmatpush1.bf16.msra.mxu0 %v12123_v32  ;;  %v12133_v14 = vld [vmem:[#allocation23_spill] sm:$0xff]  ;;  %v12139_v32 = vld [vmem:[#allocation74_spill] sm:$0xff] }
 0xbf6   :  { %4083 = vmatprep.subr.bf16.mxu0 %v12124_v39  ;;  %v12140_v39 = vld [vmem:[#allocation76_spill] sm:$0xff] }
 0xbf9   :  { %4084 = vmatpush1.bf16.msra.mxu0 %v12125_v53  ;;  %v12141_v53 = vld [vmem:[#allocation78_spill] sm:$0xff] }
 0xbfa   :  { %4085 = vmatprep.subr.bf16.mxu0 %v12126_v15  ;;  %v12142_v15 = vld [vmem:[#allocation80_spill] sm:$0xff] }
 0xbfd   :  { %4086 = vmatpush1.bf16.msra.mxu0 %v12127_v12  ;;  %v12143_v12 = vld [vmem:[#allocation33_spill] sm:$0xff] }
 0xbfe   :  { %4087 = vmatprep.subr.bf16.mxu0 %v12128_v0 }
 0xc01   :  { %4088 = vmatpush1.bf16.msra.mxu0 %v12129_v31 }
 0xc02   :  { %4089 = vmatprep.subr.bf16.mxu0 %v12130_v28 }
 0xc05   :  { %4090 = vmatpush1.bf16.msra.mxu0 %v12131_v11 }
 0xc06   :  { %4091 = vmatprep.subr.bf16.mxu0 %v12132_v37 }
 0xc09   :  { %4092 = vmatpush1.bf16.msra.mxu0 %v12133_v14  ;;  %v12144_v14 = vld [vmem:[#allocation19_spill] sm:$0xff] }
 0xc0a   :  { %4093 = vmatprep.subr.bf16.mxu0 %v12134_v4  ;;  %v12145_v4 = vld [vmem:[#allocation36_spill] sm:$0xff] }
 0xc0d   :  { %4094 = vmatpush1.bf16.msra.mxu0 %v12135_v63  ;;  %v12146_v63 = vld [vmem:[#allocation38_spill] sm:$0xff] }
 0xc0e   :  { %4095 = vmatprep.subr.bf16.mxu0 %v12136_v20  ;;  %v12147_v20 = vld [vmem:[#allocation40_spill] sm:$0xff] }
 0xc11   :  { %4096 = vmatpush1.bf16.msra.mxu0 %v12137_v27  ;;  %v12148_v27 = vld [vmem:[#allocation41_spill] sm:$0xff] }
 0xc12   :  { %4097 = vmatprep.subr.bf16.mxu0 %v12138_v61  ;;  %v12149_v61 = vld [vmem:[#allocation18_spill] sm:$0xff] }
 0xc15   :  { %4098 = vmatpush2.bf16.msra.mxu0 %v12139_v32  ;;  %v12150_v32 = vld [vmem:[#allocation21_spill] sm:$0xff] }
 0xc16   :  { %4099 = vmatprep.subr.bf16.mxu0 %v12140_v39  ;;  %v12151_v39 = vld [vmem:[#allocation83_spill] sm:$0xff] }
 0xc19   :  { %4100 = vmatpush2.bf16.msra.mxu0 %v12141_v53  ;;  %v12152_v53 = vld [vmem:[#allocation85_spill] sm:$0xff] }
 0xc1a   :  { %4101 = vmatprep.subr.bf16.mxu0 %v12142_v15  ;;  %v12153_v15 = vld [vmem:[#allocation87_spill] sm:$0xff] }
 0xc1d   :  { %4102 = vmatpush2.bf16.msra.mxu0 %v12143_v12  ;;  %v12154_v12 = vld [vmem:[#allocation44_spill] sm:$0xff] }
 0xc1e   :  { %4103 = vmatprep.subr.bf16.mxu0 %v12144_v14 }
 0xc21   :  { %4104 = vmatpush2.bf16.msra.mxu0 %v12145_v4 }
 0xc22   :  { %4105 = vmatprep.subr.bf16.mxu0 %v12146_v63  ;;  %v9501_v63 = vld [vmem:[%s10865_s12] sm:$0x1] }
 0xc23   :  { %12155 = vst [vmem:[#allocation68_spill] sm:$0xff] %v9501_v63 }
 0xc25   :  { %4106 = vmatpush2.bf16.msra.mxu0 %v12147_v20 }
 0xc26   :  { %4107 = vmatprep.subr.bf16.mxu0 %v12148_v27 }
 0xc29   :  { %4108 = vmatpush2.bf16.msra.mxu0 %v12149_v61 }
 0xc2a   :  { %4109 = vmatprep.subr.bf16.mxu0 %v12150_v32 }
 0xc2d   :  { %4110 = vmatpush2.bf16.msra.mxu0 %v12151_v39 }
 0xc2e   :  { %4111 = vmatprep.subr.bf16.mxu0 %v12152_v53 }
 0xc31   :  { %4112 = vmatpush2.bf16.msra.mxu0 %v12153_v15  ;;  %v4018_v15 = vadd.f32 %v9446_v52, %v9319_v41 }
 0xc32   :  { %4182 = vmatprep.subr.bf16.mxu0 %v12154_v12  ;;  %v4017_v12 = vadd.f32 %v9444_v9, %v9317_v54 }
 0xc33   :  { %v4022_v53 = vmul.f32 0.5, %v4018_v15 }
 0xc34   :  { %v4021_v61 = vmul.f32 0.5, %v4017_v12 }
 0xc35   :  { %6676 = vtanh.f32 %v4022_v53 }
 0xc36   :  { %6678 = vtanh.f32 %v4021_v61 }
 0xc94   :  { %v3928_v20 = vpop.f32.mrf.mxu0 }
 0xc95   :  { %v3929_v27 = vadd.f32 %v3928_v20, %v9501_v63 }
 0xc96   :  { %v5996_v4 = vpop.f32.mrf.mxu0 }
 0xc97   :  { %3934 = vst [vmem:[%s10866_s13] sm:$0x1] %v3929_v27 }
 0xc98   :  { %v3931_v39 = vpop.f32.mrf.mxu0 }
 0xc9a   :  { %v5997_v32 = vpop.f32.mrf.mxu0 }
 0xc9b   :  { %v6677_v32 = vpop.eup %6676 }
 0xc9c   :  { %v6679_v39 = vpop.eup %6678  ;;  %v4028_v11 = vmul.f32 0.5, %v6677_v32 }
 0xc9d   :  { %v4027_v41 = vmul.f32 0.5, %v6679_v39 }
 0xc9e   :  { %v4031_v28 = vadd.f32 0.5, %v4028_v11 }
 0xc9f   :  { %v4030_v9 = vadd.f32 0.5, %v4027_v41  ;;  %v12171_v41 = vld [vmem:[#allocation42_spill] sm:$0xff] }
 0xca0   :  { %v4034_v61 = vmul.f32 %v4031_v28, %v9331_v36 }
 0xcb4   :  { %v4010_v14 = vpop.f32.mrf.mxu0 }
 0xcb5   :  { %v4019_v27 = vadd.f32 %v4010_v14, %v9328_v16 }
 0xcb6   :  { %v4012_v37 = vpop.f32.mrf.mxu0 }
 0xcb7   :  { %v4020_v4 = vadd.f32 %v4012_v37, %v9324_v3  ;;  %v4023_v52 = vmul.f32 0.5, %v4019_v27 }
 0xcb8   :  { %v4014_v20 = vpop.f32.mrf.mxu0 }
 0xcb9   :  { %6680 = vtanh.f32 %v4020_v4 }
 0xcba   :  { %v4015_v63 = vpop.f32.mrf.mxu0  ;;  %6682 = vtanh.f32 %v4023_v52 }
 0xcc6   :  { %v6681_v15 = vpop.eup %6680 }
 0xcc7   :  { %v4035_v53 = vmul.f32 %v6681_v15, %v4030_v9  ;;  %v6683_v37 = vpop.eup %6682 }
 0xcc8   :  { %v4029_v63 = vmul.f32 0.5, %v6683_v37 }
 0xcc9   :  { %v9514_v12 = vadd.f32 %v4035_v53, %v4034_v61 }
 0xcca   :  { %v4032_v4 = vadd.f32 0.5, %v4029_v63 }
 0xccb   :  { %6684 = vtanh.f32 %v9514_v12 }
 0xcd8   :  { %v6685_v14 = vpop.eup %6684 }
 0xcd9   :  { %v4038_v20 = vmul.f32 %v6685_v14, %v4032_v4 }
 0xcdb   :  { %v9517_v16 = vpack.c.bf16 %v4038_v20, %v4038_v20 }
 0xcdd   :  { %4073 = vmatmul.mubr.bf16.vlgmr.msra.gmra.mxu1 %v9517_v16  ;;  %4114 = vmatmul.mubr.bf16.vlgmr.msra.gmra.mxu0 %v9517_v16 }
 0xcde   :  { %4183 = vmatpush1.bf16.msra.mxu0 %v9022_v23  ;;  %4214 = vmatprep.mubr.bf16.mxu0 %v11600_v57  ;;  %v9555_v23 = vld [vmem:[#allocation7 + $0xec] ss:$16 sps:$4 sm:$0xff]  }
 0xcdf   :  { %4184 = vmatprep.subr.bf16.mxu0 %v9026_v13  ;;  %5999 = vmatpush3.bf16.msra.mxu1 %v9380_v26  ;;  %12156 = vst [vmem:[#allocation69_spill] sm:$0xff] %v9555_v23  ;;  %v12157_v13 = vld [vmem:[#allocation25_spill] sm:$0xff] }
 0xce0   :  { %6000 = vmatprep.subr.bf16.mxu1 %v12096_v38  ;;  %6014 = vmatprep.mubr.msk.bf16.mxu1 %vm7359_vm1, %v12096_v38 }
 0xce2   :  { %4185 = vmatpush1.bf16.msra.mxu0 %v9032_v62  ;;  %v12158_v62 = vld [vmem:[#allocation27_spill] sm:$0xff] }
 0xce3   :  { %4186 = vmatprep.subr.bf16.mxu0 %v9038_v56  ;;  %6001 = vmatpush3.bf16.msra.mxu1 %v9386_v42  ;;  %v12159_v56 = vld [vmem:[#allocation29_spill] sm:$0xff] }
 0xce4   :  { %6002 = vmatprep.subr.bf16.mxu1 %v12096_v38 }
 0xce6   :  { %4187 = vmatpush1.bf16.msra.mxu0 %v9046_v1  ;;  %v12160_v1 = vld [vmem:[#allocation31_spill] sm:$0xff] }
 0xce7   :  { %4188 = vmatprep.subr.bf16.mxu0 %v9052_v35  ;;  %6003 = vmatpush3.bf16.msra.mxu1 %v9392_v18  ;;  %v12161_v35 = vld [vmem:[#allocation73_spill] sm:$0xff] }
 0xce8   :  { %6004 = vmatprep.subr.bf16.mxu1 %v12096_v38 }
 0xcea   :  { %4189 = vmatpush1.bf16.msra.mxu0 %v9058_v7  ;;  %v12162_v7 = vld [vmem:[#allocation75_spill] sm:$0xff] }
 0xceb   :  { %4190 = vmatprep.subr.bf16.mxu0 %v9064_v58  ;;  %6005 = vmatpush3.bf16.msra.mxu1 %v9398_v43  ;;  %v12163_v58 = vld [vmem:[#allocation77_spill] sm:$0xff] }
 0xcec   :  { %6006 = vmatprep.subr.bf16.mxu1 %v12096_v38 }
 0xcee   :  { %4191 = vmatpush1.bf16.msra.mxu0 %v9070_v49  ;;  %v12164_v49 = vld [vmem:[#allocation79_spill] sm:$0xff] }
 0xcef   :  { %4192 = vmatprep.subr.bf16.mxu0 %v9076_v48  ;;  %6007 = vmatpush3.bf16.msra.mxu1 %v9402_v2  ;;  %v12165_v48 = vld [vmem:[#allocation81_spill] sm:$0xff] }
 0xcf0   :  { %6008 = vmatprep.subr.bf16.mxu1 %v12096_v38 }
 0xcf2   :  { %4193 = vmatpush1.bf16.msra.mxu0 %v9082_v40  ;;  %v12166_v40 = vld [vmem:[#allocation34_spill] sm:$0xff] }
 0xcf3   :  { %4194 = vmatprep.subr.bf16.mxu0 %v9088_v8  ;;  %6009 = vmatpush3.bf16.msra.mxu1 %v9408_v34  ;;  %v12167_v8 = vld [vmem:[#allocation35_spill] sm:$0xff] }
 0xcf4   :  { %6010 = vmatprep.subr.bf16.mxu1 %v12096_v38 }
 0xcf6   :  { %4195 = vmatpush1.bf16.msra.mxu0 %v9094_v60  ;;  %v12168_v60 = vld [vmem:[#allocation37_spill] sm:$0xff] }
 0xcf7   :  { %4196 = vmatprep.subr.bf16.mxu0 %v9100_v45  ;;  %6011 = vmatpush3.bf16.msra.mxu1 %v9412_v33  ;;  %v12169_v45 = vld [vmem:[#allocation39_spill] sm:$0xff] }
 0xcf8   :  { %6012 = vmatprep.subr.bf16.mxu1 %v12096_v38 }
 0xcfa   :  { %4197 = vmatpush1.bf16.msra.mxu0 %v9106_v47  ;;  %v12170_v47 = vld [vmem:[#allocation71_spill] sm:$0xff] }
 0xcfb   :  { %6013 = vmatpush3.bf16.msra.mxu1 %v9416_v6  ;;  %4287 = vmatprep.subr.bf16.mxu0 %v9120_v5  ;;  %v12172_v5 = vld [vmem:[#allocation20_spill] sm:$0xff] }
 0xcfc   :  { %4223 = vmatprep.subr.bf16.mxu1 %v9555_v23 }
 0xcfd   :  { %4215 = vmatmul.mubr.bf16.vlgmr.msra.gmra.mxu0 %v9517_v16 }
 0xcfe   :  { %4288 = vmatpush1.bf16.msra.mxu0 %v9124_v59  ;;  %v12173_v59 = vld [vmem:[#allocation43_spill] sm:$0xff] }
 0xcff   :  { %4289 = vmatprep.subr.bf16.mxu0 %v9128_v19  ;;  %v12174_v19 = vld [vmem:[#allocation84_spill] sm:$0xff] }
 0xd02   :  { %4290 = vmatpush1.bf16.msra.mxu0 %v9136_v25  ;;  %v12175_v25 = vld [vmem:[#allocation86_spill] sm:$0xff] }
 0xd03   :  { %4291 = vmatprep.subr.bf16.mxu0 %v9142_v51  ;;  %v12176_v51 = vld [vmem:[#allocation88_spill] sm:$0xff] }
 0xd06   :  { %4292 = vmatpush1.bf16.msra.mxu0 %v9148_v30 }
 0xd07   :  { %4293 = vmatprep.subr.bf16.mxu0 %v9154_v44 }
 0xd0a   :  { %4294 = vmatpush1.bf16.msra.mxu0 %v9160_v24  ;;  %v12177_v24 = vld [vmem:[#allocation45_spill] sm:$0xff] }
 0xd0b   :  { %4295 = vmatprep.subr.bf16.mxu0 %v9166_v29 }
 0xd0e   :  { %4296 = vmatpush1.bf16.msra.mxu0 %v9175_v50 }
 0xd0f   :  { %4297 = vmatprep.subr.bf16.mxu0 %v9180_v22 }
 0xd12   :  { %4298 = vmatpush1.bf16.msra.mxu0 %v9185_v21 }
 0xd13   :  { %4299 = vmatprep.subr.bf16.mxu0 %v12157_v13 }
 0xd16   :  { %4300 = vmatpush1.bf16.msra.mxu0 %v12158_v62 }
 0xd17   :  { %4301 = vmatprep.subr.bf16.mxu0 %v12159_v56 }
 0xd1a   :  { %4302 = vmatpush1.bf16.msra.mxu0 %v12160_v1 }
 0xd1b   :  { %4303 = vmatprep.subr.bf16.mxu0 %v12161_v35 }
 0xd1e   :  { %4304 = vmatpush2.bf16.msra.mxu0 %v12162_v7 }
 0xd1f   :  { %4305 = vmatprep.subr.bf16.mxu0 %v12163_v58 }
 0xd22   :  { %4306 = vmatpush2.bf16.msra.mxu0 %v12164_v49 }
 0xd23   :  { %4307 = vmatprep.subr.bf16.mxu0 %v12165_v48 }
 0xd26   :  { %4308 = vmatpush2.bf16.msra.mxu0 %v12166_v40 }
 0xd27   :  { %4309 = vmatprep.subr.bf16.mxu0 %v12167_v8 }
 0xd2a   :  { %4310 = vmatpush2.bf16.msra.mxu0 %v12168_v60 }
 0xd2b   :  { %4311 = vmatprep.subr.bf16.mxu0 %v12169_v45 }
 0xd2e   :  { %4312 = vmatpush2.bf16.msra.mxu0 %v12170_v47  ;;  %v9607_v47 = vld [vmem:[#allocation7 + $0xcc] ss:$16 sps:$4 sm:$0xff]  }
 0xd2f   :  { %4313 = vmatprep.subr.bf16.mxu0 %v12171_v41  ;;  %v9610_v41 = vld [vmem:[#allocation7 + $0xc8] ss:$16 sps:$4 sm:$0xff]  }
 0xd32   :  { %4314 = vmatpush2.bf16.msra.mxu0 %v12172_v5  ;;  %v9613_v5 = vld [vmem:[#allocation7 + $0xac] ss:$16 sps:$4 sm:$0xff]  }
 0xd33   :  { %4315 = vmatprep.subr.bf16.mxu0 %v12173_v59  ;;  %v9616_v59 = vld [vmem:[#allocation7 + $0xa8] ss:$16 sps:$4 sm:$0xff]  }
 0xd36   :  { %4316 = vmatpush2.bf16.msra.mxu0 %v12174_v19  ;;  %v9619_v19 = vld [vmem:[#allocation7 + $0x8c] ss:$16 sps:$4 sm:$0xff]  }
 0xd37   :  { %4317 = vmatprep.subr.bf16.mxu0 %v12175_v25  ;;  %v9622_v25 = vld [vmem:[#allocation7 + $0x88] ss:$16 sps:$4 sm:$0xff]  }
 0xd3a   :  { %4318 = vmatpush2.bf16.msra.mxu0 %v12176_v51  ;;  %v9625_v51 = vld [vmem:[#allocation7 + $0x6c] ss:$16 sps:$4 sm:$0xff]  }
 0xd3b   :  { %6018 = vmatprep.subr.bf16.mxu0 %v12096_v38 }
 0xd9d   :  { %v4074_v30 = vpop.f32.mrf.mxu1  ;;  %v4115_v44 = vpop.f32.mrf.mxu0 }
 0xd9e   :  { %v4075_v29 = vadd.f32 %v4074_v30, %v12177_v24  ;;  %v4116_v9 = vadd.f32 %v4115_v44, %v9438_v46  ;;  %v9628_v30 = vld [vmem:[#allocation7 + $0x68] ss:$16 sps:$4 sm:$0xff]   ;;  %v9631_v44 = vld [vmem:[#allocation7 + $0x4c] ss:$16 sps:$4 sm:$0xff]  }
 0xd9f   :  { %v4076_v50 = vpop.f32.mrf.mxu1  ;;  %v4117_v22 = vpop.f32.mrf.mxu0 }
 0xda0   :  { %v4122_v21 = vmul.f32 0.5, %v4075_v29  ;;  %v4077_v36 = vadd.f32 %v4076_v50, %v9429_v55  ;;  %v4118_v52 = vadd.f32 %v4117_v22, %v9433_v17  ;;  %v4124_v15 = vmul.f32 0.5, %v4116_v9  ;;  %v9634_v29 = vld [vmem:[#allocation7 + $0x48] ss:$16 sps:$4 sm:$0xff]   ;;  %v9637_v50 = vld [vmem:[#allocation7 + $0x2c] ss:$16 sps:$4 sm:$0xff]  }
 0xda1   :  { %v4078_v28 = vpop.f32.mrf.mxu1  ;;  %v4119_v11 = vpop.f32.mrf.mxu0  ;;  %v9640_v22 = vld [vmem:[#allocation7 + $0x28] ss:$16 sps:$4 sm:$0xff]  }
 0xda2   :  { %6686 = vtanh.f32 %v4122_v21  ;;  %v4123_v27 = vmul.f32 0.5, %v4077_v36  ;;  %v9643_v21 = vld [vmem:[#allocation7 + $0xc] ss:$16 sps:$4 sm:$0xff]   ;;  %v9646_v36 = vld [vmem:[#allocation7 + $0x8] ss:$16 sps:$4 sm:$0xff]  }
 0xda3   :  { %v4079_v32 = vpop.f32.mrf.mxu1  ;;  %v4120_v39 = vpop.f32.mrf.mxu0  ;;  %v9649_v28 = vld [vmem:[#allocation9 + $0xec] ss:$16 sps:$4 sm:$0xff]   ;;  %v9653_v11 = vld [vmem:[#allocation9 + $0xe8] ss:$16 sps:$4 sm:$0xff]  }
 0xda4   :  { %6688 = vtanh.f32 %v4123_v27  ;;  %v9656_v27 = vld [vmem:[#allocation9 + $0xcc] ss:$16 sps:$4 sm:$0xff]   ;;  %v9659_v32 = vld [vmem:[#allocation9 + $0xc8] ss:$16 sps:$4 sm:$0xff]  }
 0xda5   :  { %6690 = vtanh.f32 %v4118_v52  ;;  %v9662_v39 = vld [vmem:[#allocation9 + $0xac] ss:$16 sps:$4 sm:$0xff]   ;;  %v9665_v52 = vld [vmem:[#allocation9 + $0xa8] ss:$16 sps:$4 sm:$0xff]  }
 0xda6   :  { %6692 = vtanh.f32 %v4124_v15  ;;  %v12179_v9 = vld [vmem:[#allocation17_spill] sm:$0xff]  ;;  %v12180_v15 = vld [vmem:[#allocation22_spill] sm:$0xff] }
 0xdaf   :  { %v6687_v61 = vpop.eup %6686 }
 0xdb0   :  { %v4128_v53 = vmul.f32 0.5, %v6687_v61  ;;  %v12181_v61 = vld [vmem:[#allocation23_spill] sm:$0xff] }
 0xdb1   :  { %v6689_v37 = vpop.eup %6688 }
 0xdb2   :  { %v4131_v63 = vadd.f32 0.5, %v4128_v53  ;;  %v4129_v4 = vmul.f32 0.5, %v6689_v37  ;;  %v6691_v20 = vpop.eup %6690  ;;  %v12182_v53 = vld [vmem:[#allocation24_spill] sm:$0xff]  ;;  %v12183_v37 = vld [vmem:[#allocation26_spill] sm:$0xff] }
 0xdb3   :  { %v6693_v35 = vpop.eup %6692 }
 0xdb4   :  { %v4132_v14 = vadd.f32 0.5, %v4129_v4  ;;  %v4136_v62 = vmul.f32 %v6691_v20, %v4131_v63  ;;  %v4130_v49 = vmul.f32 0.5, %v6693_v35  ;;  %v12184_v63 = vld [vmem:[#allocation28_spill] sm:$0xff]  ;;  %v12185_v4 = vld [vmem:[#allocation30_spill] sm:$0xff]  ;;  %v12192_v35 = vld [vmem:[#allocation19_spill] sm:$0xff] }
 0xdb5   :  { %v12189_v20 = vld [vmem:[#allocation78_spill] sm:$0xff] }
 0xdb6   :  { %v4135_v13 = vmul.f32 %v4132_v14, %v9441_v10  ;;  %v4133_v40 = vadd.f32 0.5, %v4130_v49  ;;  %v9603_v10 = vld [vmem:[#allocation7 + $0xe8] ss:$16 sps:$4 sm:$0xff]   ;;  %v12186_v14 = vld [vmem:[#allocation32_spill] sm:$0xff]  ;;  %v12194_v49 = vld [vmem:[#allocation38_spill] sm:$0xff] }
 0xdb8   :  { %v9596_v56 = vadd.f32 %v4136_v62, %v4135_v13  ;;  %v12190_v13 = vld [vmem:[#allocation80_spill] sm:$0xff]  ;;  %v12191_v62 = vld [vmem:[#allocation33_spill] sm:$0xff] }
 0xdba   :  { %6694 = vtanh.f32 %v9596_v56 }
 0xdbd   :  { %v9599_v1 = vpop.f32.mrf.mxu0 }
 0xdbf   :  { %v9601_v7 = vpop.f32.mrf.mxu0 }
 0xdc1   :  { %v4220_v58 = vpop.f32.mrf.mxu0 }
 0xdc2   :  { %v12193_v58 = vld [vmem:[#allocation36_spill] sm:$0xff] }
 0xdc3   :  { %v4221_v48 = vpop.f32.mrf.mxu0 }
 0xdc4   :  { %v12195_v48 = vld [vmem:[#allocation40_spill] sm:$0xff] }
 0xdc7   :  { %v6695_v8 = vpop.eup %6694 }
 0xdc8   :  { %v4139_v60 = vmul.f32 %v6695_v8, %v4133_v40  ;;  %v12196_v40 = vld [vmem:[#allocation41_spill] sm:$0xff]  ;;  %v12197_v8 = vld [vmem:[#allocation18_spill] sm:$0xff] }
 0xdca   :  { %v4140_v45 = vpack.c.bf16 %v4139_v60, %v4139_v60  ;;  %v12198_v60 = vld [vmem:[#allocation21_spill] sm:$0xff] }
 0xdcc   :  { %6015 = vmatmul.mubr.bf16.vlgmr.msra.gmra.mxu1 %v4140_v45  ;;  %4319 = vmatprep.mubr.bf16.mxu0 %v4140_v45 }
 0xdcd   :  { %4224 = vmatpush1.bf16.msra.mxu1 %v9603_v10  ;;  %4255 = vmatprep.mubr.bf16.mxu1 %v11600_v57 }
 0xdce   :  { %4225 = vmatprep.subr.bf16.mxu1 %v9607_v47 }
 0xdd1   :  { %4226 = vmatpush1.bf16.msra.mxu1 %v9610_v41 }
 0xdd2   :  { %4227 = vmatprep.subr.bf16.mxu1 %v9613_v5 }
 0xdd5   :  { %4228 = vmatpush1.bf16.msra.mxu1 %v9616_v59 }
 0xdd6   :  { %4229 = vmatprep.subr.bf16.mxu1 %v9619_v19 }
 0xdd9   :  { %4230 = vmatpush1.bf16.msra.mxu1 %v9622_v25 }
 0xdda   :  { %4231 = vmatprep.subr.bf16.mxu1 %v9625_v51 }
 0xddd   :  { %4232 = vmatpush1.bf16.msra.mxu1 %v9628_v30 }
 0xdde   :  { %4233 = vmatprep.subr.bf16.mxu1 %v9631_v44 }
 0xde1   :  { %4234 = vmatpush1.bf16.msra.mxu1 %v9634_v29 }
 0xde2   :  { %4235 = vmatprep.subr.bf16.mxu1 %v9637_v50 }
 0xde5   :  { %4236 = vmatpush1.bf16.msra.mxu1 %v9640_v22 }
 0xde6   :  { %4237 = vmatprep.subr.bf16.mxu1 %v9643_v21 }
 0xde9   :  { %4238 = vmatpush1.bf16.msra.mxu1 %v9646_v36 }
 0xdea   :  { %4328 = vmatprep.subr.bf16.mxu1 %v9649_v28 }
 0xdec   :  { %4256 = vmatmul.mubr.bf16.vlgmr.msra.gmra.mxu1 %v9517_v16  ;;  %v12178_v16 = vld [vmem:[#allocation16_spill] sm:$0xff] }
 0xded   :  { %4360 = vmatprep.mubr.bf16.mxu1 %v4140_v45  ;;  %4329 = vmatpush1.bf16.msra.mxu1 %v9653_v11  ;;  %v12199_v45 = vld [vmem:[#allocation83_spill] sm:$0xff] }
 0xdee   :  { %4330 = vmatprep.subr.bf16.mxu1 %v9656_v27 }
 0xdf1   :  { %4331 = vmatpush1.bf16.msra.mxu1 %v9659_v32 }
 0xdf2   :  { %4332 = vmatprep.subr.bf16.mxu1 %v9662_v39 }
 0xdf5   :  { %4333 = vmatpush1.bf16.msra.mxu1 %v9665_v52 }
 0xdf6   :  { %4334 = vmatprep.subr.bf16.mxu1 %v12128_v0  ;;  %v12187_v0 = vld [vmem:[#allocation74_spill] sm:$0xff] }
 0xdf9   :  { %4335 = vmatpush1.bf16.msra.mxu1 %v12129_v31  ;;  %v12188_v31 = vld [vmem:[#allocation76_spill] sm:$0xff] }
 0xdfa   :  { %4336 = vmatprep.subr.bf16.mxu1 %v12178_v16  ;;  %v12200_v16 = vld [vmem:[#allocation85_spill] sm:$0xff] }
 0xdfd   :  { %4337 = vmatpush1.bf16.msra.mxu1 %v12179_v9  ;;  %v12201_v9 = vld [vmem:[#allocation87_spill] sm:$0xff] }
 0xdfe   :  { %4338 = vmatprep.subr.bf16.mxu1 %v12180_v15  ;;  %v9694_v15 = vld [vmem:[#allocation7 + $0xe4] ss:$16 sps:$4 sm:$0xff]  }
 0xdff   :  { %12202 = vst [vmem:[#allocation70_spill] sm:$0xff] %v9694_v15 }
 0xe01   :  { %4339 = vmatpush1.bf16.msra.mxu1 %v12181_v61 }
 0xe02   :  { %4340 = vmatprep.subr.bf16.mxu1 %v12182_v53  ;;  %v12203_v53 = vld [vmem:[#allocation68_spill] sm:$0xff] }
 0xe05   :  { %4341 = vmatpush1.bf16.msra.mxu1 %v12183_v37 }
 0xe06   :  { %4342 = vmatprep.subr.bf16.mxu1 %v12184_v63 }
 0xe09   :  { %4343 = vmatpush1.bf16.msra.mxu1 %v12185_v4 }
 0xe0a   :  { %4344 = vmatprep.subr.bf16.mxu1 %v12186_v14 }
 0xe0d   :  { %4345 = vmatpush2.bf16.msra.mxu1 %v12187_v0  ;;  %v12204_v0 = vld [vmem:[#allocation89_spill] sm:$0xff] }
 0xe0e   :  { %4346 = vmatprep.subr.bf16.mxu1 %v12188_v31  ;;  %v4265_v31 = vadd.f32 %v9601_v7, %v12204_v0 }
 0xe11   :  { %4347 = vmatpush2.bf16.msra.mxu1 %v12189_v20  ;;  %v4264_v20 = vadd.f32 %v9599_v1, %v9317_v54 }
 0xe12   :  { %4348 = vmatprep.subr.bf16.mxu1 %v12190_v13  ;;  %v4269_v13 = vmul.f32 0.5, %v4265_v31 }
 0xe14   :  { %6696 = vtanh.f32 %v4269_v13 }
 0xe15   :  { %4349 = vmatpush2.bf16.msra.mxu1 %v12191_v62  ;;  %v4268_v62 = vmul.f32 0.5, %v4264_v20 }
 0xe16   :  { %4350 = vmatprep.subr.bf16.mxu1 %v12192_v35 }
 0xe17   :  { %6698 = vtanh.f32 %v4268_v62 }
 0xe19   :  { %4351 = vmatpush2.bf16.msra.mxu1 %v12193_v58 }
 0xe1a   :  { %4352 = vmatprep.subr.bf16.mxu1 %v12194_v49 }
 0xe1d   :  { %4353 = vmatpush2.bf16.msra.mxu1 %v12195_v48 }
 0xe1e   :  { %4354 = vmatprep.subr.bf16.mxu1 %v12196_v40 }
 0xe21   :  { %4355 = vmatpush2.bf16.msra.mxu1 %v12197_v8  ;;  %v12205_v8 = vld [vmem:[#allocation72_spill] sm:$0xff] }
 0xe22   :  { %4356 = vmatprep.subr.bf16.mxu1 %v12198_v60 }
 0xe25   :  { %4357 = vmatpush2.bf16.msra.mxu1 %v12199_v45  ;;  %v6697_v45 = vpop.eup %6696 }
 0xe26   :  { %4358 = vmatprep.subr.bf16.mxu1 %v12200_v16  ;;  %v6699_v16 = vpop.eup %6698 }
 0xe29   :  { %4359 = vmatpush2.bf16.msra.mxu1 %v12201_v9  ;;  %v4275_v9 = vmul.f32 0.5, %v6697_v45  ;;  %v9734_v45 = vld [vmem:[#allocation7 + $0xa0] ss:$16 sps:$4 sm:$0xff]  }
 0xe2a   :  { %4429 = vmatprep.subr.bf16.mxu1 %v9694_v15 }
 0xe8c   :  { %v4175_v61 = vpop.f32.mrf.mxu1 }
 0xe8d   :  { %v4176_v37 = vadd.f32 %v4175_v61, %v12203_v53  ;;  %v4274_v61 = vmul.f32 0.5, %v6699_v16  ;;  %v9742_v16 = vld [vmem:[#allocation7 + $0x80] ss:$16 sps:$4 sm:$0xff]  }
 0xe8e   :  { %v6016_v63 = vpop.f32.mrf.mxu1 }
 0xe8f   :  { %4181 = vst [vmem:[%s10866_s13 + $0x1] sm:$0x1] %v4176_v37  ;;  %v4278_v37 = vadd.f32 0.5, %v4275_v9  ;;  %v4277_v1 = vadd.f32 0.5, %v4274_v61  ;;  %v9745_v9 = vld [vmem:[#allocation7 + $0x64] ss:$16 sps:$4 sm:$0xff]  }
 0xe90   :  { %v4178_v4 = vpop.f32.mrf.mxu1  ;;  %12206 = vst [vmem:[#allocation46_spill] sm:$0xff] %v9745_v9  ;;  %v9761_v61 = vld [vmem:[#allocation7 + $0x24] ss:$16 sps:$4 sm:$0xff]  }
 0xe91   :  { %v4281_v4 = vmul.f32 %v4278_v37, %v9514_v12  ;;  %v9719_v12 = vld [vmem:[#allocation7 + $0xc4] ss:$16 sps:$4 sm:$0xff]   ;;  %12210 = vst [vmem:[#allocation50_spill] sm:$0xff] %v9761_v61 }
 0xe92   :  { %v6017_v14 = vpop.f32.mrf.mxu1  ;;  %v9769_v37 = vld [vmem:[#allocation7 + $0x4] ss:$16 sps:$4 sm:$0xff]  }
 0xe93   :  { %12212 = vst [vmem:[#allocation52_spill] sm:$0xff] %v9769_v37 }
 0xeac   :  { %v4257_v35 = vpop.f32.mrf.mxu1 }
 0xead   :  { %v4266_v60 = vadd.f32 %v4257_v35, %v12205_v8 }
 0xeae   :  { %v4259_v58 = vpop.f32.mrf.mxu1 }
 0xeaf   :  { %v4267_v49 = vadd.f32 %v4259_v58, %v9324_v3  ;;  %v4270_v7 = vmul.f32 0.5, %v4266_v60  ;;  %v9729_v60 = vld [vmem:[#allocation7 + $0xa4] ss:$16 sps:$4 sm:$0xff]  }
 0xeb0   :  { %v4261_v48 = vpop.f32.mrf.mxu1 }
 0xeb1   :  { %6700 = vtanh.f32 %v4267_v49  ;;  %v9715_v48 = vld [vmem:[#allocation7 + $0xe0] ss:$16 sps:$4 sm:$0xff]  }
 0xeb2   :  { %v4262_v40 = vpop.f32.mrf.mxu1  ;;  %6702 = vtanh.f32 %v4270_v7  ;;  %v9753_v7 = vld [vmem:[#allocation7 + $0x44] ss:$16 sps:$4 sm:$0xff]  }
 0xeb3   :  { %v9726_v40 = vld [vmem:[#allocation7 + $0xc0] ss:$16 sps:$4 sm:$0xff]   ;;  %12208 = vst [vmem:[#allocation48_spill] sm:$0xff] %v9753_v7 }
 0xebe   :  { %v6701_v63 = vpop.eup %6700 }
 0xebf   :  { %v4282_v14 = vmul.f32 %v6701_v63, %v4277_v1  ;;  %v6703_v20 = vpop.eup %6702  ;;  %v9783_v1 = vld [vmem:[#allocation9 + $0xe0] ss:$16 sps:$4 sm:$0xff]  }
 0xec0   :  { %v4276_v13 = vmul.f32 0.5, %v6703_v20  ;;  %12215 = vst [vmem:[#allocation55_spill] sm:$0xff] %v9783_v1  ;;  %v9789_v63 = vld [vmem:[#allocation9 + $0xc0] ss:$16 sps:$4 sm:$0xff]  }
 0xec1   :  { %v9708_v31 = vadd.f32 %v4282_v14, %v4281_v4  ;;  %12217 = vst [vmem:[#allocation57_spill] sm:$0xff] %v9789_v63  ;;  %v9795_v4 = vld [vmem:[#allocation9 + $0xa0] ss:$16 sps:$4 sm:$0xff]   ;;  %v9798_v14 = vld [vmem:[#allocation9 + $0x84] ss:$16 sps:$4 sm:$0xff]  }
 0xec2   :  { %v4279_v62 = vadd.f32 0.5, %v4276_v13  ;;  %12219 = vst [vmem:[#allocation59_spill] sm:$0xff] %v9795_v4  ;;  %12220 = vst [vmem:[#allocation60_spill] sm:$0xff] %v9798_v14  ;;  %v9801_v20 = vld [vmem:[#allocation9 + $0x80] ss:$16 sps:$4 sm:$0xff]  }
 0xec3   :  { %6704 = vtanh.f32 %v9708_v31  ;;  %12221 = vst [vmem:[#allocation61_spill] sm:$0xff] %v9801_v20  ;;  %v9804_v13 = vld [vmem:[#allocation9 + $0x64] ss:$16 sps:$4 sm:$0xff]  }
 0xec4   :  { %12222 = vst [vmem:[#allocation62_spill] sm:$0xff] %v9804_v13 }
 0xed0   :  { %v6705_v35 = vpop.eup %6704 }
 0xed1   :  { %v4285_v58 = vmul.f32 %v6705_v35, %v4279_v62  ;;  %v9807_v62 = vld [vmem:[#allocation9 + $0x60] ss:$16 sps:$4 sm:$0xff]   ;;  %v9810_v35 = vld [vmem:[#allocation9 + $0x44] ss:$16 sps:$4 sm:$0xff]  }
 0xed2   :  { %12223 = vst [vmem:[#allocation82_spill] sm:$0xff] %v9807_v62  ;;  %12224 = vst [vmem:[#allocation63_spill] sm:$0xff] %v9810_v35 }
 0xed3   :  { %v9711_v49 = vpack.c.bf16 %v4285_v58, %v4285_v58  ;;  %v9813_v58 = vld [vmem:[#allocation9 + $0x40] ss:$16 sps:$4 sm:$0xff]  }
 0xed4   :  { %12225 = vst [vmem:[#allocation64_spill] sm:$0xff] %v9813_v58 }
 0xed5   :  { %4320 = vmatmul.mubr.bf16.vlgmr.msra.gmra.mxu0 %v9711_v49  ;;  %4361 = vmatmul.mubr.bf16.vlgmr.msra.gmra.mxu1 %v9711_v49 }
 0xed6   :  { %4430 = vmatpush1.bf16.msra.mxu1 %v9715_v48  ;;  %4461 = vmatprep.mubr.bf16.mxu1 %v11600_v57 }
 0xed7   :  { %4431 = vmatprep.subr.bf16.mxu1 %v9719_v12  ;;  %6019 = vmatpush3.bf16.msra.mxu0 %v9380_v26  ;;  %v9737_v26 = vld [vmem:[#allocation7 + $0x84] ss:$16 sps:$4 sm:$0xff]  }
 0xed8   :  { %6020 = vmatprep.subr.bf16.mxu0 %v12096_v38  ;;  %6034 = vmatprep.mubr.msk.bf16.mxu0 %vm7359_vm1, %v12096_v38 }
 0xeda   :  { %4432 = vmatpush1.bf16.msra.mxu1 %v9726_v40 }
 0xedb   :  { %4433 = vmatprep.subr.bf16.mxu1 %v9729_v60  ;;  %6021 = vmatpush3.bf16.msra.mxu0 %v9386_v42  ;;  %v9750_v42 = vld [vmem:[#allocation7 + $0x60] ss:$16 sps:$4 sm:$0xff]  }
 0xedc   :  { %6022 = vmatprep.subr.bf16.mxu0 %v12096_v38  ;;  %12207 = vst [vmem:[#allocation47_spill] sm:$0xff] %v9750_v42 }
 0xede   :  { %4434 = vmatpush1.bf16.msra.mxu1 %v9734_v45 }
 0xedf   :  { %4435 = vmatprep.subr.bf16.mxu1 %v9737_v26  ;;  %6023 = vmatpush3.bf16.msra.mxu0 %v9392_v18  ;;  %v9758_v18 = vld [vmem:[#allocation7 + $0x40] ss:$16 sps:$4 sm:$0xff]  }
 0xee0   :  { %6024 = vmatprep.subr.bf16.mxu0 %v12096_v38  ;;  %12209 = vst [vmem:[#allocation49_spill] sm:$0xff] %v9758_v18 }
 0xee2   :  { %4436 = vmatpush1.bf16.msra.mxu1 %v9742_v16 }
 0xee3   :  { %4437 = vmatprep.subr.bf16.mxu1 %v9745_v9  ;;  %6025 = vmatpush3.bf16.msra.mxu0 %v9398_v43  ;;  %v9766_v43 = vld [vmem:[#allocation7 + $0x20] ss:$16 sps:$4 sm:$0xff]  }
 0xee4   :  { %6026 = vmatprep.subr.bf16.mxu0 %v12096_v38  ;;  %12211 = vst [vmem:[#allocation51_spill] sm:$0xff] %v9766_v43 }
 0xee6   :  { %4438 = vmatpush1.bf16.msra.mxu1 %v9750_v42 }
 0xee7   :  { %4439 = vmatprep.subr.bf16.mxu1 %v9753_v7  ;;  %6027 = vmatpush3.bf16.msra.mxu0 %v9402_v2  ;;  %v9774_v2 = vld [vmem:[#allocation7] ss:$16 sps:$4 sm:$0xff]  }
 0xee8   :  { %6028 = vmatprep.subr.bf16.mxu0 %v12096_v38  ;;  %12213 = vst [vmem:[#allocation53_spill] sm:$0xff] %v9774_v2 }
 0xeea   :  { %4440 = vmatpush1.bf16.msra.mxu1 %v9758_v18 }
 0xeeb   :  { %4441 = vmatprep.subr.bf16.mxu1 %v9761_v61  ;;  %6029 = vmatpush3.bf16.msra.mxu0 %v9408_v34  ;;  %v9778_v34 = vld [vmem:[#allocation9 + $0xe4] ss:$16 sps:$4 sm:$0xff]  }
 0xeec   :  { %6030 = vmatprep.subr.bf16.mxu0 %v12096_v38  ;;  %12214 = vst [vmem:[#allocation54_spill] sm:$0xff] %v9778_v34 }
 0xeee   :  { %4442 = vmatpush1.bf16.msra.mxu1 %v9766_v43 }
 0xeef   :  { %4443 = vmatprep.subr.bf16.mxu1 %v9769_v37  ;;  %6031 = vmatpush3.bf16.msra.mxu0 %v9412_v33  ;;  %v9786_v33 = vld [vmem:[#allocation9 + $0xc4] ss:$16 sps:$4 sm:$0xff]  }
 0xef0   :  { %6032 = vmatprep.subr.bf16.mxu0 %v12096_v38  ;;  %12216 = vst [vmem:[#allocation56_spill] sm:$0xff] %v9786_v33 }
 0xef2   :  { %4444 = vmatpush1.bf16.msra.mxu1 %v9774_v2 }
 0xef3   :  { %6033 = vmatpush3.bf16.msra.mxu0 %v9416_v6  ;;  %4534 = vmatprep.subr.bf16.mxu1 %v9778_v34  ;;  %v9792_v6 = vld [vmem:[#allocation9 + $0xa4] ss:$16 sps:$4 sm:$0xff]  }
 0xef4   :  { %4470 = vmatprep.subr.bf16.mxu0 %v9555_v23  ;;  %12218 = vst [vmem:[#allocation58_spill] sm:$0xff] %v9792_v6 }
 0xef5   :  { %4462 = vmatmul.mubr.bf16.vlgmr.msra.gmra.mxu1 %v9711_v49 }
 0xef6   :  { %4535 = vmatpush1.bf16.msra.mxu1 %v9783_v1 }
 0xef7   :  { %4536 = vmatprep.subr.bf16.mxu1 %v9786_v33 }
 0xefa   :  { %4537 = vmatpush1.bf16.msra.mxu1 %v9789_v63 }
 0xefb   :  { %4538 = vmatprep.subr.bf16.mxu1 %v9792_v6 }
 0xefe   :  { %4539 = vmatpush1.bf16.msra.mxu1 %v9795_v4 }
 0xeff   :  { %4540 = vmatprep.subr.bf16.mxu1 %v9798_v14  ;;  %v9816_v14 = vld [vmem:[#allocation9 + $0x24] ss:$16 sps:$4 sm:$0xff]  }
 0xf00   :  { %12226 = vst [vmem:[#allocation65_spill] sm:$0xff] %v9816_v14 }
 0xf02   :  { %4541 = vmatpush1.bf16.msra.mxu1 %v9801_v20  ;;  %v9819_v20 = vld [vmem:[#allocation9 + $0x20] ss:$16 sps:$4 sm:$0xff]  }
 0xf03   :  { %4542 = vmatprep.subr.bf16.mxu1 %v9804_v13  ;;  %12227 = vst [vmem:[#allocation66_spill] sm:$0xff] %v9819_v20  ;;  %v9822_v13 = vld [vmem:[#allocation9 + $0x4] ss:$16 sps:$4 sm:$0xff]  }
 0xf04   :  { %12228 = vst [vmem:[#allocation67_spill] sm:$0xff] %v9822_v13 }
 0xf06   :  { %4543 = vmatpush1.bf16.msra.mxu1 %v9807_v62  ;;  %v9825_v62 = vld [vmem:[#allocation9] ss:$16 sps:$4 sm:$0xff]  }
 0xf07   :  { %4544 = vmatprep.subr.bf16.mxu1 %v9810_v35  ;;  %12229 = vst [vmem:[#allocation44_spill] sm:$0xff] %v9825_v62  ;;  %v9828_v35 = vld [vmem:[#allocation9 + $0x1e4] ss:$16 sps:$4 sm:$0xff]  }
 0xf08   :  { %12230 = vst [vmem:[#allocation25_spill] sm:$0xff] %v9828_v35 }
 0xf0a   :  { %4545 = vmatpush1.bf16.msra.mxu1 %v9813_v58  ;;  %v9831_v58 = vld [vmem:[#allocation9 + $0x1e0] ss:$16 sps:$4 sm:$0xff]  }
 0xf0b   :  { %4546 = vmatprep.subr.bf16.mxu1 %v9816_v14  ;;  %12231 = vst [vmem:[#allocation27_spill] sm:$0xff] %v9831_v58  ;;  %v9834_v14 = vld [vmem:[#allocation9 + $0x1c4] ss:$16 sps:$4 sm:$0xff]  }
 0xf0c   :  { %12232 = vst [vmem:[#allocation29_spill] sm:$0xff] %v9834_v14 }
 0xf0e   :  { %4547 = vmatpush1.bf16.msra.mxu1 %v9819_v20  ;;  %v9837_v20 = vld [vmem:[#allocation9 + $0x1c0] ss:$16 sps:$4 sm:$0xff]  }
 0xf0f   :  { %4548 = vmatprep.subr.bf16.mxu1 %v9822_v13  ;;  %12233 = vst [vmem:[#allocation31_spill] sm:$0xff] %v9837_v20  ;;  %v9840_v13 = vld [vmem:[#allocation9 + $0x1a4] ss:$16 sps:$4 sm:$0xff]  }
 0xf10   :  { %12234 = vst [vmem:[#allocation73_spill] sm:$0xff] %v9840_v13 }
 0xf12   :  { %4549 = vmatpush1.bf16.msra.mxu1 %v9825_v62  ;;  %v9843_v62 = vld [vmem:[#allocation9 + $0x1a0] ss:$16 sps:$4 sm:$0xff]  }
 0xf13   :  { %4550 = vmatprep.subr.bf16.mxu1 %v9828_v35  ;;  %12235 = vst [vmem:[#allocation75_spill] sm:$0xff] %v9843_v62  ;;  %v9846_v35 = vld [vmem:[#allocation9 + $0x184] ss:$16 sps:$4 sm:$0xff]  }
 0xf14   :  { %12236 = vst [vmem:[#allocation77_spill] sm:$0xff] %v9846_v35 }
 0xf16   :  { %4551 = vmatpush2.bf16.msra.mxu1 %v9831_v58  ;;  %v9849_v58 = vld [vmem:[#allocation9 + $0x180] ss:$16 sps:$4 sm:$0xff]  }
 0xf17   :  { %4552 = vmatprep.subr.bf16.mxu1 %v9834_v14  ;;  %12237 = vst [vmem:[#allocation79_spill] sm:$0xff] %v9849_v58  ;;  %v9852_v14 = vld [vmem:[#allocation9 + $0x164] ss:$16 sps:$4 sm:$0xff]  }
 0xf18   :  { %12238 = vst [vmem:[#allocation81_spill] sm:$0xff] %v9852_v14 }
 0xf1a   :  { %4553 = vmatpush2.bf16.msra.mxu1 %v9837_v20  ;;  %v9855_v20 = vld [vmem:[#allocation9 + $0x160] ss:$16 sps:$4 sm:$0xff]  }
 0xf1b   :  { %4554 = vmatprep.subr.bf16.mxu1 %v9840_v13  ;;  %12239 = vst [vmem:[#allocation34_spill] sm:$0xff] %v9855_v20  ;;  %v9858_v13 = vld [vmem:[#allocation9 + $0x144] ss:$16 sps:$4 sm:$0xff]  }
 0xf1c   :  { %12240 = vst [vmem:[#allocation35_spill] sm:$0xff] %v9858_v13 }
 0xf1e   :  { %4555 = vmatpush2.bf16.msra.mxu1 %v9843_v62  ;;  %v9861_v62 = vld [vmem:[#allocation9 + $0x140] ss:$16 sps:$4 sm:$0xff]  }
 0xf1f   :  { %4556 = vmatprep.subr.bf16.mxu1 %v9846_v35  ;;  %12241 = vst [vmem:[#allocation37_spill] sm:$0xff] %v9861_v62  ;;  %v9864_v35 = vld [vmem:[#allocation9 + $0x124] ss:$16 sps:$4 sm:$0xff]  }
 0xf20   :  { %12242 = vst [vmem:[#allocation39_spill] sm:$0xff] %v9864_v35 }
 0xf22   :  { %4557 = vmatpush2.bf16.msra.mxu1 %v9849_v58  ;;  %v9867_v58 = vld [vmem:[#allocation9 + $0x120] ss:$16 sps:$4 sm:$0xff]  }
 0xf23   :  { %4558 = vmatprep.subr.bf16.mxu1 %v9852_v14  ;;  %12243 = vst [vmem:[#allocation71_spill] sm:$0xff] %v9867_v58  ;;  %v9870_v14 = vld [vmem:[#allocation9 + $0x104] ss:$16 sps:$4 sm:$0xff]  }
 0xf24   :  { %12244 = vst [vmem:[#allocation42_spill] sm:$0xff] %v9870_v14 }
 0xf26   :  { %4559 = vmatpush2.bf16.msra.mxu1 %v9855_v20  ;;  %v9873_v20 = vld [vmem:[#allocation9 + $0x100] ss:$16 sps:$4 sm:$0xff]  }
 0xf27   :  { %4560 = vmatprep.subr.bf16.mxu1 %v9858_v13  ;;  %12245 = vst [vmem:[#allocation20_spill] sm:$0xff] %v9873_v20 }
 0xf2a   :  { %4561 = vmatpush2.bf16.msra.mxu1 %v9861_v62 }
 0xf2b   :  { %4562 = vmatprep.subr.bf16.mxu1 %v9864_v35 }
 0xf2e   :  { %4563 = vmatpush2.bf16.msra.mxu1 %v9867_v58 }
 0xf2f   :  { %4564 = vmatprep.subr.bf16.mxu1 %v9870_v14 }
 0xf32   :  { %4565 = vmatpush2.bf16.msra.mxu1 %v9873_v20 }
 0xf33   :  { %6038 = vmatprep.subr.bf16.mxu1 %v12096_v38 }
 0xf95   :  { %v4321_v13 = vpop.f32.mrf.mxu0  ;;  %v4362_v62 = vpop.f32.mrf.mxu1 }
 0xf96   :  { %v4322_v4 = vadd.f32 %v4321_v13, %v12177_v24  ;;  %v4363_v2 = vadd.f32 %v4362_v62, %v9438_v46 }
 0xf97   :  { %v4323_v6 = vpop.f32.mrf.mxu0  ;;  %v4364_v35 = vpop.f32.mrf.mxu1 }
 0xf98   :  { %v4369_v63 = vmul.f32 0.5, %v4322_v4  ;;  %v4324_v33 = vadd.f32 %v4323_v6, %v9429_v55  ;;  %v4365_v20 = vadd.f32 %v4364_v35, %v9433_v17  ;;  %v4371_v37 = vmul.f32 0.5, %v4363_v2 }
 0xf99   :  { %v4325_v58 = vpop.f32.mrf.mxu0  ;;  %v4366_v1 = vpop.f32.mrf.mxu1 }
 0xf9a   :  { %6706 = vtanh.f32 %v4369_v63  ;;  %v4370_v23 = vmul.f32 0.5, %v4324_v33 }
 0xf9b   :  { %v4326_v14 = vpop.f32.mrf.mxu0  ;;  %v4367_v34 = vpop.f32.mrf.mxu1 }
 0xf9c   :  { %6708 = vtanh.f32 %v4370_v23 }
 0xf9d   :  { %6710 = vtanh.f32 %v4365_v20 }
 0xf9e   :  { %6712 = vtanh.f32 %v4371_v37 }
 0xfa7   :  { %v6707_v43 = vpop.eup %6706 }
 0xfa8   :  { %v4375_v13 = vmul.f32 0.5, %v6707_v43 }
 0xfa9   :  { %v6709_v24 = vpop.eup %6708 }
 0xfaa   :  { %v4378_v61 = vadd.f32 0.5, %v4375_v13  ;;  %v4376_v4 = vmul.f32 0.5, %v6709_v24  ;;  %v6711_v58 = vpop.eup %6710  ;;  %v9921_v13 = vld [vmem:[#allocation9 + $0x68] ss:$16 sps:$4 sm:$0xff]  }
 0xfab   :  { %v6713_v34 = vpop.eup %6712 }
 0xfac   :  { %v4379_v6 = vadd.f32 0.5, %v4376_v4  ;;  %v4383_v33 = vmul.f32 %v6711_v58, %v4378_v61  ;;  %v4377_v43 = vmul.f32 0.5, %v6713_v34  ;;  %v9915_v61 = vld [vmem:[#allocation9 + $0x88] ss:$16 sps:$4 sm:$0xff]   ;;  %v9924_v4 = vld [vmem:[#allocation9 + $0x4c] ss:$16 sps:$4 sm:$0xff]  }
 0xfad   :  { %v9930_v58 = vld [vmem:[#allocation9 + $0x2c] ss:$16 sps:$4 sm:$0xff]   ;;  %v9939_v34 = vld [vmem:[#allocation9 + $0x8] ss:$16 sps:$4 sm:$0xff]  }
 0xfae   :  { %v4382_v1 = vmul.f32 %v4379_v6, %v9596_v56  ;;  %v4380_v62 = vadd.f32 0.5, %v4377_v43  ;;  %v9912_v56 = vld [vmem:[#allocation9 + $0x8c] ss:$16 sps:$4 sm:$0xff]   ;;  %v9927_v6 = vld [vmem:[#allocation9 + $0x48] ss:$16 sps:$4 sm:$0xff]   ;;  %12247 = vst [vmem:[#allocation84_spill] sm:$0xff] %v9930_v58 }
 0xfaf   :  { %12246 = vst [vmem:[#allocation43_spill] sm:$0xff] %v9927_v6  ;;  %12250 = vst [vmem:[#allocation16_spill] sm:$0xff] %v9939_v34  ;;  %v9945_v43 = vld [vmem:[#allocation9 + $0x1e8] ss:$16 sps:$4 sm:$0xff]  }
 0xfb0   :  { %v9882_v63 = vadd.f32 %v4383_v33, %v4382_v1  ;;  %v9933_v1 = vld [vmem:[#allocation9 + $0x28] ss:$16 sps:$4 sm:$0xff]   ;;  %v9936_v33 = vld [vmem:[#allocation9 + $0xc] ss:$16 sps:$4 sm:$0xff]   ;;  %12252 = vst [vmem:[#allocation22_spill] sm:$0xff] %v9945_v43 }
 0xfb1   :  { %12248 = vst [vmem:[#allocation86_spill] sm:$0xff] %v9933_v1  ;;  %12249 = vst [vmem:[#allocation88_spill] sm:$0xff] %v9936_v33 }
 0xfb2   :  { %6714 = vtanh.f32 %v9882_v63 }
 0xfb5   :  { %v9885_v23 = vpop.f32.mrf.mxu1 }
 0xfb7   :  { %v9887_v14 = vpop.f32.mrf.mxu1 }
 0xfb9   :  { %v4467_v2 = vpop.f32.mrf.mxu1 }
 0xfba   :  { %v9942_v2 = vld [vmem:[#allocation9 + $0x1ec] ss:$16 sps:$4 sm:$0xff]  }
 0xfbb   :  { %v4468_v20 = vpop.f32.mrf.mxu1  ;;  %12251 = vst [vmem:[#allocation17_spill] sm:$0xff] %v9942_v2 }
 0xfbc   :  { %v9948_v20 = vld [vmem:[#allocation9 + $0x1cc] ss:$16 sps:$4 sm:$0xff]  }
 0xfbd   :  { %12253 = vst [vmem:[#allocation23_spill] sm:$0xff] %v9948_v20 }
 0xfbf   :  { %v6715_v37 = vpop.eup %6714 }
 0xfc0   :  { %v4386_v24 = vmul.f32 %v6715_v37, %v4380_v62  ;;  %v9951_v62 = vld [vmem:[#allocation9 + $0x1c8] ss:$16 sps:$4 sm:$0xff]   ;;  %v9954_v37 = vld [vmem:[#allocation9 + $0x1ac] ss:$16 sps:$4 sm:$0xff]  }
 0xfc1   :  { %12254 = vst [vmem:[#allocation24_spill] sm:$0xff] %v9951_v62  ;;  %12255 = vst [vmem:[#allocation26_spill] sm:$0xff] %v9954_v37 }
 0xfc2   :  { %v4387_v35 = vpack.c.bf16 %v4386_v24, %v4386_v24  ;;  %v9957_v24 = vld [vmem:[#allocation9 + $0x1a8] ss:$16 sps:$4 sm:$0xff]  }
 0xfc3   :  { %12256 = vst [vmem:[#allocation28_spill] sm:$0xff] %v9957_v24 }
 0xfc4   :  { %6035 = vmatmul.mubr.bf16.vlgmr.msra.gmra.mxu0 %v4387_v35  ;;  %4566 = vmatprep.mubr.bf16.mxu1 %v4387_v35 }
 0xfc5   :  { %4471 = vmatpush1.bf16.msra.mxu0 %v9603_v10  ;;  %4502 = vmatprep.mubr.bf16.mxu0 %v11600_v57 }
 0xfc6   :  { %4472 = vmatprep.subr.bf16.mxu0 %v9607_v47 }
 0xfc9   :  { %4473 = vmatpush1.bf16.msra.mxu0 %v9610_v41 }
 0xfca   :  { %4474 = vmatprep.subr.bf16.mxu0 %v9613_v5 }
 0xfcd   :  { %4475 = vmatpush1.bf16.msra.mxu0 %v9616_v59 }
 0xfce   :  { %4476 = vmatprep.subr.bf16.mxu0 %v9619_v19 }
 0xfd1   :  { %4477 = vmatpush1.bf16.msra.mxu0 %v9622_v25 }
 0xfd2   :  { %4478 = vmatprep.subr.bf16.mxu0 %v9625_v51 }
 0xfd5   :  { %4479 = vmatpush1.bf16.msra.mxu0 %v9628_v30 }
 0xfd6   :  { %4480 = vmatprep.subr.bf16.mxu0 %v9631_v44 }
 0xfd9   :  { %4481 = vmatpush1.bf16.msra.mxu0 %v9634_v29 }
 0xfda   :  { %4482 = vmatprep.subr.bf16.mxu0 %v9637_v50 }
 0xfdd   :  { %4483 = vmatpush1.bf16.msra.mxu0 %v9640_v22 }
 0xfde   :  { %4484 = vmatprep.subr.bf16.mxu0 %v9643_v21 }
 0xfe1   :  { %4485 = vmatpush1.bf16.msra.mxu0 %v9646_v36 }
 0xfe2   :  { %4575 = vmatprep.subr.bf16.mxu0 %v9649_v28 }
 0xfe4   :  { %4503 = vmatmul.mubr.bf16.vlgmr.msra.gmra.mxu0 %v9711_v49  ;;  %v9918_v49 = vld [vmem:[#allocation9 + $0x6c] ss:$16 sps:$4 sm:$0xff]  }
 0xfe5   :  { %4607 = vmatprep.mubr.bf16.mxu0 %v4387_v35  ;;  %4576 = vmatpush1.bf16.msra.mxu0 %v9653_v11  ;;  %v9960_v35 = vld [vmem:[#allocation9 + $0x18c] ss:$16 sps:$4 sm:$0xff]  }
 0xfe6   :  { %4577 = vmatprep.subr.bf16.mxu0 %v9656_v27  ;;  %12257 = vst [vmem:[#allocation30_spill] sm:$0xff] %v9960_v35 }
 0xfe9   :  { %4578 = vmatpush1.bf16.msra.mxu0 %v9659_v32 }
 0xfea   :  { %4579 = vmatprep.subr.bf16.mxu0 %v9662_v39 }
 0xfed   :  { %4580 = vmatpush1.bf16.msra.mxu0 %v9665_v52 }
 0xfee   :  { %4581 = vmatprep.subr.bf16.mxu0 %v9912_v56 }
 0xff1   :  { %4582 = vmatpush1.bf16.msra.mxu0 %v9915_v61 }
 0xff2   :  { %4583 = vmatprep.subr.bf16.mxu0 %v9918_v49 }
 0xff5   :  { %4584 = vmatpush1.bf16.msra.mxu0 %v9921_v13 }
 0xff6   :  { %4585 = vmatprep.subr.bf16.mxu0 %v9924_v4 }
 0xff9   :  { %4586 = vmatpush1.bf16.msra.mxu0 %v9927_v6 }
 0xffa   :  { %4587 = vmatprep.subr.bf16.mxu0 %v9930_v58 }
 0xffd   :  { %4588 = vmatpush1.bf16.msra.mxu0 %v9933_v1 }
 0xffe   :  { %4589 = vmatprep.subr.bf16.mxu0 %v9936_v33 }
0x1001   :  { %4590 = vmatpush1.bf16.msra.mxu0 %v9939_v34  ;;  %v4512_v34 = vadd.f32 %v9887_v14, %v12204_v0 }
0x1002   :  { %4591 = vmatprep.subr.bf16.mxu0 %v9942_v2 }
0x1003   :  { %v4516_v33 = vmul.f32 0.5, %v4512_v34 }
0x1005   :  { %4592 = vmatpush2.bf16.msra.mxu0 %v9945_v43  ;;  %v9963_v43 = vld [vmem:[#allocation9 + $0x188] ss:$16 sps:$4 sm:$0xff]   ;;  %6716 = vtanh.f32 %v4516_v33 }
0x1006   :  { %4593 = vmatprep.subr.bf16.mxu0 %v9948_v20  ;;  %12258 = vst [vmem:[#allocation32_spill] sm:$0xff] %v9963_v43  ;;  %v9966_v20 = vld [vmem:[#allocation9 + $0x16c] ss:$16 sps:$4 sm:$0xff]  }
0x1007   :  { %12259 = vst [vmem:[#allocation74_spill] sm:$0xff] %v9966_v20 }
0x1009   :  { %4594 = vmatpush2.bf16.msra.mxu0 %v9951_v62  ;;  %v9969_v62 = vld [vmem:[#allocation9 + $0x168] ss:$16 sps:$4 sm:$0xff]  }
0x100a   :  { %4595 = vmatprep.subr.bf16.mxu0 %v9954_v37  ;;  %12260 = vst [vmem:[#allocation76_spill] sm:$0xff] %v9969_v62  ;;  %v9972_v37 = vld [vmem:[#allocation9 + $0x14c] ss:$16 sps:$4 sm:$0xff]  }
0x100b   :  { %12261 = vst [vmem:[#allocation78_spill] sm:$0xff] %v9972_v37 }
0x100d   :  { %4596 = vmatpush2.bf16.msra.mxu0 %v9957_v24  ;;  %v9975_v24 = vld [vmem:[#allocation9 + $0x148] ss:$16 sps:$4 sm:$0xff]  }
0x100e   :  { %4597 = vmatprep.subr.bf16.mxu0 %v9960_v35  ;;  %12262 = vst [vmem:[#allocation80_spill] sm:$0xff] %v9975_v24  ;;  %v9978_v35 = vld [vmem:[#allocation9 + $0x12c] ss:$16 sps:$4 sm:$0xff]  }
0x100f   :  { %12263 = vst [vmem:[#allocation33_spill] sm:$0xff] %v9978_v35 }
0x1011   :  { %4598 = vmatpush2.bf16.msra.mxu0 %v9963_v43  ;;  %v9981_v43 = vld [vmem:[#allocation9 + $0x128] ss:$16 sps:$4 sm:$0xff]  }
0x1012   :  { %4599 = vmatprep.subr.bf16.mxu0 %v9966_v20  ;;  %12264 = vst [vmem:[#allocation19_spill] sm:$0xff] %v9981_v43  ;;  %v9984_v20 = vld [vmem:[#allocation9 + $0x10c] ss:$16 sps:$4 sm:$0xff]  }
0x1013   :  { %12265 = vst [vmem:[#allocation36_spill] sm:$0xff] %v9984_v20 }
0x1015   :  { %4600 = vmatpush2.bf16.msra.mxu0 %v9969_v62  ;;  %v9987_v62 = vld [vmem:[#allocation9 + $0x108] ss:$16 sps:$4 sm:$0xff]  }
0x1016   :  { %4601 = vmatprep.subr.bf16.mxu0 %v9972_v37  ;;  %12266 = vst [vmem:[#allocation38_spill] sm:$0xff] %v9987_v62 }
0x1019   :  { %4602 = vmatpush2.bf16.msra.mxu0 %v9975_v24 }
0x101a   :  { %4603 = vmatprep.subr.bf16.mxu0 %v9978_v35 }
0x101d   :  { %4604 = vmatpush2.bf16.msra.mxu0 %v9981_v43 }
0x101e   :  { %4605 = vmatprep.subr.bf16.mxu0 %v9984_v20  ;;  %v4511_v20 = vadd.f32 %v9885_v23, %v9317_v54 }
0x1021   :  { %4606 = vmatpush2.bf16.msra.mxu0 %v9987_v62  ;;  %v4515_v62 = vmul.f32 0.5, %v4511_v20 }
0x1022   :  { %4676 = vmatprep.subr.bf16.mxu0 %v9694_v15 }
0x1023   :  { %6718 = vtanh.f32 %v4515_v62 }
0x1084   :  { %v4422_v37 = vpop.f32.mrf.mxu0 }
0x1085   :  { %v4423_v24 = vadd.f32 %v4422_v37, %v12203_v53 }
0x1086   :  { %v6036_v2 = vpop.f32.mrf.mxu0 }
0x1087   :  { %4428 = vst [vmem:[%s10866_s13 + $0x2] sm:$0x1] %v4423_v24 }
0x1088   :  { %v4425_v35 = vpop.f32.mrf.mxu0 }
0x108a   :  { %v6037_v43 = vpop.f32.mrf.mxu0 }
0x108b   :  { %v6717_v43 = vpop.eup %6716 }
0x108c   :  { %v6719_v35 = vpop.eup %6718  ;;  %v4522_v58 = vmul.f32 0.5, %v6717_v43  ;;  %v12269_v43 = vld [vmem:[#allocation50_spill] sm:$0xff] }
0x108d   :  { %v4521_v0 = vmul.f32 0.5, %v6719_v35  ;;  %v10044_v35 = vld [vmem:[#allocation10 + $0x10] sm:$0xff]  }
0x108e   :  { %v4525_v6 = vadd.f32 0.5, %v4522_v58  ;;  %v10032_v58 = vld [vmem:[#allocation10 + $0x20] sm:$0xff]   ;;  %12270 = vst [vmem:[#allocation18_spill] sm:$0xff] %v10044_v35 }
0x108f   :  { %v4524_v23 = vadd.f32 0.5, %v4521_v0  ;;  %v10012_v0 = vld [vmem:[#allocation10 + $0x38] sm:$0xff]   ;;  %12267 = vst [vmem:[#allocation40_spill] sm:$0xff] %v10032_v58 }
0x1090   :  { %v4528_v33 = vmul.f32 %v4525_v6, %v9708_v31  ;;  %v10020_v31 = vld [vmem:[#allocation10 + $0x30] sm:$0xff]   ;;  %v10026_v6 = vld [vmem:[#allocation10 + $0x28] sm:$0xff]  }
0x10a4   :  { %v4504_v15 = vpop.f32.mrf.mxu0 }
0x10a5   :  { %v4513_v24 = vadd.f32 %v4504_v15, %v12205_v8 }
0x10a6   :  { %v4506_v1 = vpop.f32.mrf.mxu0 }
0x10a7   :  { %v4514_v53 = vadd.f32 %v4506_v1, %v9324_v3  ;;  %v4517_v14 = vmul.f32 0.5, %v4513_v24  ;;  %v10038_v24 = vld [vmem:[#allocation10 + $0x18] sm:$0xff]  }
0x10a8   :  { %v4508_v2 = vpop.f32.mrf.mxu0  ;;  %12268 = vst [vmem:[#allocation41_spill] sm:$0xff] %v10038_v24 }
0x10a9   :  { %6720 = vtanh.f32 %v4514_v53 }
0x10aa   :  { %v4509_v37 = vpop.f32.mrf.mxu0  ;;  %6722 = vtanh.f32 %v4517_v14  ;;  %v12271_v14 = vld [vmem:[#allocation51_spill] sm:$0xff] }
0x10b6   :  { %v6721_v34 = vpop.eup %6720 }
0x10b7   :  { %v4529_v20 = vmul.f32 %v6721_v34, %v4524_v23  ;;  %v6723_v1 = vpop.eup %6722  ;;  %v12272_v23 = vld [vmem:[#allocation52_spill] sm:$0xff]  ;;  %v10050_v34 = vld [vmem:[#allocation10 + $0x8] sm:$0xff]  }
0x10b8   :  { %v4523_v53 = vmul.f32 0.5, %v6723_v1  ;;  %12273 = vst [vmem:[#allocation21_spill] sm:$0xff] %v10050_v34  ;;  %v12276_v1 = vld [vmem:[#allocation54_spill] sm:$0xff] }
0x10b9   :  { %v10002_v62 = vadd.f32 %v4529_v20, %v4528_v33  ;;  %v12274_v33 = vld [vmem:[#allocation53_spill] sm:$0xff]  ;;  %v10055_v20 = vld [vmem:[#allocation10] sm:$0xff]  }
0x10ba   :  { %v4526_v2 = vadd.f32 0.5, %v4523_v53  ;;  %12275 = vst [vmem:[#allocation83_spill] sm:$0xff] %v10055_v20  ;;  %v12277_v53 = vld [vmem:[#allocation69_spill] sm:$0xff] }
0x10bb   :  { %6724 = vtanh.f32 %v10002_v62 }
0x10c8   :  { %v6725_v15 = vpop.eup %6724 }
0x10c9   :  { %v4532_v37 = vmul.f32 %v6725_v15, %v4526_v2  ;;  %v12278_v2 = vld [vmem:[#allocation55_spill] sm:$0xff]  ;;  %v12279_v15 = vld [vmem:[#allocation56_spill] sm:$0xff] }
0x10cb   :  { %v10005_v8 = vpack.c.bf16 %v4532_v37, %v4532_v37  ;;  %v12280_v37 = vld [vmem:[#allocation57_spill] sm:$0xff] }
0x10cd   :  { %4567 = vmatmul.mubr.bf16.vlgmr.msra.gmra.mxu1 %v10005_v8  ;;  %4608 = vmatmul.mubr.bf16.vlgmr.msra.gmra.mxu0 %v10005_v8 }
0x10ce   :  { %4677 = vmatpush1.bf16.msra.mxu0 %v9715_v48  ;;  %4708 = vmatprep.mubr.bf16.mxu0 %v11600_v57 }
0x10cf   :  { %4678 = vmatprep.subr.bf16.mxu0 %v9719_v12  ;;  %6039 = vmatpush3.bf16.msra.mxu1 %v10012_v0 }
0x10d0   :  { %6040 = vmatprep.subr.bf16.mxu1 %v12096_v38  ;;  %6054 = vmatprep.mubr.msk.bf16.mxu1 %vm7359_vm1, %v12096_v38 }
0x10d2   :  { %4679 = vmatpush1.bf16.msra.mxu0 %v9726_v40 }
0x10d3   :  { %4680 = vmatprep.subr.bf16.mxu0 %v9729_v60  ;;  %6041 = vmatpush3.bf16.msra.mxu1 %v10020_v31 }
0x10d4   :  { %6042 = vmatprep.subr.bf16.mxu1 %v12096_v38 }
0x10d6   :  { %4681 = vmatpush1.bf16.msra.mxu0 %v9734_v45 }
0x10d7   :  { %4682 = vmatprep.subr.bf16.mxu0 %v9737_v26  ;;  %6043 = vmatpush3.bf16.msra.mxu1 %v10026_v6 }
0x10d8   :  { %6044 = vmatprep.subr.bf16.mxu1 %v12096_v38 }
0x10da   :  { %4683 = vmatpush1.bf16.msra.mxu0 %v9742_v16 }
0x10db   :  { %4684 = vmatprep.subr.bf16.mxu0 %v9745_v9  ;;  %6045 = vmatpush3.bf16.msra.mxu1 %v10032_v58 }
0x10dc   :  { %6046 = vmatprep.subr.bf16.mxu1 %v12096_v38 }
0x10de   :  { %4685 = vmatpush1.bf16.msra.mxu0 %v9750_v42 }
0x10df   :  { %4686 = vmatprep.subr.bf16.mxu0 %v9753_v7  ;;  %6047 = vmatpush3.bf16.msra.mxu1 %v10038_v24 }
0x10e0   :  { %6048 = vmatprep.subr.bf16.mxu1 %v12096_v38 }
0x10e2   :  { %4687 = vmatpush1.bf16.msra.mxu0 %v9758_v18 }
0x10e3   :  { %4688 = vmatprep.subr.bf16.mxu0 %v12269_v43  ;;  %6049 = vmatpush3.bf16.msra.mxu1 %v10044_v35  ;;  %v12288_v35 = vld [vmem:[#allocation64_spill] sm:$0xff] }
0x10e4   :  { %6050 = vmatprep.subr.bf16.mxu1 %v12096_v38 }
0x10e6   :  { %4689 = vmatpush1.bf16.msra.mxu0 %v12271_v14  ;;  %v12284_v14 = vld [vmem:[#allocation61_spill] sm:$0xff] }
0x10e7   :  { %4690 = vmatprep.subr.bf16.mxu0 %v12272_v23  ;;  %6051 = vmatpush3.bf16.msra.mxu1 %v10050_v34  ;;  %v12281_v34 = vld [vmem:[#allocation58_spill] sm:$0xff]  ;;  %v12282_v23 = vld [vmem:[#allocation59_spill] sm:$0xff] }
0x10e8   :  { %6052 = vmatprep.subr.bf16.mxu1 %v12096_v38 }
0x10ea   :  { %4691 = vmatpush1.bf16.msra.mxu0 %v12274_v33  ;;  %v12283_v33 = vld [vmem:[#allocation60_spill] sm:$0xff] }
0x10eb   :  { %6053 = vmatpush3.bf16.msra.mxu1 %v10055_v20  ;;  %4781 = vmatprep.subr.bf16.mxu0 %v12276_v1  ;;  %v12285_v20 = vld [vmem:[#allocation62_spill] sm:$0xff] }
0x10ec   :  { %4717 = vmatprep.subr.bf16.mxu1 %v12277_v53  ;;  %v12286_v1 = vld [vmem:[#allocation82_spill] sm:$0xff]  ;;  %v12287_v53 = vld [vmem:[#allocation63_spill] sm:$0xff] }
0x10ed   :  { %4709 = vmatmul.mubr.bf16.vlgmr.msra.gmra.mxu0 %v10005_v8 }
0x10ee   :  { %4782 = vmatpush1.bf16.msra.mxu0 %v12278_v2  ;;  %v12289_v2 = vld [vmem:[#allocation65_spill] sm:$0xff] }
0x10ef   :  { %4783 = vmatprep.subr.bf16.mxu0 %v12279_v15  ;;  %v12290_v15 = vld [vmem:[#allocation66_spill] sm:$0xff] }
0x10f2   :  { %4784 = vmatpush1.bf16.msra.mxu0 %v12280_v37  ;;  %v12291_v37 = vld [vmem:[#allocation67_spill] sm:$0xff] }
0x10f3   :  { %4785 = vmatprep.subr.bf16.mxu0 %v12281_v34  ;;  %v12292_v34 = vld [vmem:[#allocation44_spill] sm:$0xff] }
0x10f6   :  { %4786 = vmatpush1.bf16.msra.mxu0 %v12282_v23  ;;  %v12293_v23 = vld [vmem:[#allocation25_spill] sm:$0xff] }
0x10f7   :  { %4787 = vmatprep.subr.bf16.mxu0 %v12283_v33  ;;  %v12294_v33 = vld [vmem:[#allocation27_spill] sm:$0xff] }
0x10fa   :  { %4788 = vmatpush1.bf16.msra.mxu0 %v12284_v14  ;;  %v12295_v14 = vld [vmem:[#allocation29_spill] sm:$0xff] }
0x10fb   :  { %4789 = vmatprep.subr.bf16.mxu0 %v12285_v20  ;;  %v12296_v20 = vld [vmem:[#allocation31_spill] sm:$0xff] }
0x10fe   :  { %4790 = vmatpush1.bf16.msra.mxu0 %v12286_v1  ;;  %v12297_v1 = vld [vmem:[#allocation73_spill] sm:$0xff] }
0x10ff   :  { %4791 = vmatprep.subr.bf16.mxu0 %v12287_v53  ;;  %v12298_v53 = vld [vmem:[#allocation75_spill] sm:$0xff] }
0x1102   :  { %4792 = vmatpush1.bf16.msra.mxu0 %v12288_v35  ;;  %v12299_v35 = vld [vmem:[#allocation77_spill] sm:$0xff] }
0x1103   :  { %4793 = vmatprep.subr.bf16.mxu0 %v12289_v2  ;;  %v12300_v2 = vld [vmem:[#allocation79_spill] sm:$0xff] }
0x1106   :  { %4794 = vmatpush1.bf16.msra.mxu0 %v12290_v15  ;;  %v12301_v15 = vld [vmem:[#allocation81_spill] sm:$0xff] }
0x1107   :  { %4795 = vmatprep.subr.bf16.mxu0 %v12291_v37  ;;  %v12302_v37 = vld [vmem:[#allocation34_spill] sm:$0xff] }
0x110a   :  { %4796 = vmatpush1.bf16.msra.mxu0 %v12292_v34  ;;  %v12303_v34 = vld [vmem:[#allocation35_spill] sm:$0xff] }
0x110b   :  { %4797 = vmatprep.subr.bf16.mxu0 %v12293_v23  ;;  %v12304_v23 = vld [vmem:[#allocation37_spill] sm:$0xff] }
0x110e   :  { %4798 = vmatpush2.bf16.msra.mxu0 %v12294_v33  ;;  %v12305_v33 = vld [vmem:[#allocation39_spill] sm:$0xff] }
0x110f   :  { %4799 = vmatprep.subr.bf16.mxu0 %v12295_v14  ;;  %v12306_v14 = vld [vmem:[#allocation71_spill] sm:$0xff] }
0x1112   :  { %4800 = vmatpush2.bf16.msra.mxu0 %v12296_v20  ;;  %v12307_v20 = vld [vmem:[#allocation42_spill] sm:$0xff] }
0x1113   :  { %4801 = vmatprep.subr.bf16.mxu0 %v12297_v1  ;;  %v12308_v1 = vld [vmem:[#allocation20_spill] sm:$0xff] }
0x1116   :  { %4802 = vmatpush2.bf16.msra.mxu0 %v12298_v53  ;;  %v12309_v53 = vld [vmem:[#allocation45_spill] sm:$0xff] }
0x1117   :  { %4803 = vmatprep.subr.bf16.mxu0 %v12299_v35 }
0x111a   :  { %4804 = vmatpush2.bf16.msra.mxu0 %v12300_v2 }
0x111b   :  { %4805 = vmatprep.subr.bf16.mxu0 %v12301_v15 }
0x111e   :  { %4806 = vmatpush2.bf16.msra.mxu0 %v12302_v37 }
0x111f   :  { %4807 = vmatprep.subr.bf16.mxu0 %v12303_v34 }
0x1122   :  { %4808 = vmatpush2.bf16.msra.mxu0 %v12304_v23 }
0x1123   :  { %4809 = vmatprep.subr.bf16.mxu0 %v12305_v33 }
0x1126   :  { %4810 = vmatpush2.bf16.msra.mxu0 %v12306_v14 }
0x1127   :  { %4811 = vmatprep.subr.bf16.mxu0 %v12307_v20 }
0x112a   :  { %4812 = vmatpush2.bf16.msra.mxu0 %v12308_v1 }
0x112b   :  { %6058 = vmatprep.subr.bf16.mxu0 %v12096_v38 }
0x118d   :  { %v4568_v35 = vpop.f32.mrf.mxu1  ;;  %v4609_v2 = vpop.f32.mrf.mxu0 }
0x118e   :  { %v4569_v15 = vadd.f32 %v4568_v35, %v12309_v53  ;;  %v4610_v20 = vadd.f32 %v4609_v2, %v9438_v46 }
0x118f   :  { %v4570_v43 = vpop.f32.mrf.mxu1  ;;  %v4611_v37 = vpop.f32.mrf.mxu0 }
0x1190   :  { %v4616_v18 = vmul.f32 0.5, %v4569_v15  ;;  %v4571_v34 = vadd.f32 %v4570_v43, %v9429_v55  ;;  %v4612_v1 = vadd.f32 %v4611_v37, %v9433_v17  ;;  %v4618_v42 = vmul.f32 0.5, %v4610_v20 }
0x1191   :  { %v4572_v23 = vpop.f32.mrf.mxu1  ;;  %v4613_v24 = vpop.f32.mrf.mxu0 }
0x1192   :  { %6726 = vtanh.f32 %v4616_v18  ;;  %v4617_v33 = vmul.f32 0.5, %v4571_v34 }
0x1193   :  { %v4573_v14 = vpop.f32.mrf.mxu1  ;;  %v4614_v7 = vpop.f32.mrf.mxu0 }
0x1194   :  { %6728 = vtanh.f32 %v4617_v33 }
0x1195   :  { %6730 = vtanh.f32 %v4612_v1 }
0x1196   :  { %6732 = vtanh.f32 %v4618_v42 }
0x119f   :  { %v6727_v58 = vpop.eup %6726 }
0x11a0   :  { %v4622_v35 = vmul.f32 0.5, %v6727_v58 }
0x11a1   :  { %v6729_v53 = vpop.eup %6728 }
0x11a2   :  { %v4625_v9 = vadd.f32 0.5, %v4622_v35  ;;  %v4623_v15 = vmul.f32 0.5, %v6729_v53  ;;  %v6731_v23 = vpop.eup %6730 }
0x11a3   :  { %v6733_v34 = vpop.eup %6732 }
0x11a4   :  { %v4626_v43 = vadd.f32 0.5, %v4623_v15  ;;  %v4630_v24 = vmul.f32 %v6731_v23, %v4625_v9  ;;  %v4624_v58 = vmul.f32 0.5, %v6733_v34 }
0x11a6   :  { %v4629_v18 = vmul.f32 %v4626_v43, %v9882_v63  ;;  %v4627_v2 = vadd.f32 0.5, %v4624_v58  ;;  %v10158_v63 = vld [vmem:[%s10865_s12] sm:$0x1] }
0x11a8   :  { %v10098_v14 = vadd.f32 %v4630_v24, %v4629_v18  ;;  %v12332_v18 = vld [vmem:[#allocation89_spill] sm:$0xff] }
0x11aa   :  { %6734 = vtanh.f32 %v10098_v14 }
0x11ad   :  { %v10101_v7 = vpop.f32.mrf.mxu0 }
0x11ae   :  { %v4758_v34 = vadd.f32 %v10101_v7, %v9317_v54 }
0x11af   :  { %v10103_v33 = vpop.f32.mrf.mxu0 }
0x11b0   :  { %v4759_v24 = vadd.f32 %v10103_v33, %v12332_v18  ;;  %v4762_v58 = vmul.f32 0.5, %v4758_v34 }
0x11b1   :  { %v4714_v20 = vpop.f32.mrf.mxu0 }
0x11b2   :  { %v4763_v20 = vmul.f32 0.5, %v4759_v24 }
0x11b3   :  { %v4715_v1 = vpop.f32.mrf.mxu0 }
0x11b4   :  { %6736 = vtanh.f32 %v4763_v20 }
0x11b5   :  { %6738 = vtanh.f32 %v4762_v58 }
0x11b7   :  { %v6735_v42 = vpop.eup %6734 }
0x11b8   :  { %v4633_v37 = vmul.f32 %v6735_v42, %v4627_v2 }
0x11ba   :  { %v4634_v53 = vpack.c.bf16 %v4633_v37, %v4633_v37 }
0x11bc   :  { %6055 = vmatmul.mubr.bf16.vlgmr.msra.gmra.mxu1 %v4634_v53  ;;  %4813 = vmatprep.mubr.bf16.mxu0 %v4634_v53 }
0x11bd   :  { %4718 = vmatpush1.bf16.msra.mxu1 %v9603_v10  ;;  %4749 = vmatprep.mubr.bf16.mxu1 %v11600_v57  ;;  %v12310_v10 = vld [vmem:[#allocation43_spill] sm:$0xff] }
0x11be   :  { %4719 = vmatprep.subr.bf16.mxu1 %v9607_v47  ;;  %v12311_v47 = vld [vmem:[#allocation84_spill] sm:$0xff] }
0x11c1   :  { %4720 = vmatpush1.bf16.msra.mxu1 %v9610_v41  ;;  %v12312_v41 = vld [vmem:[#allocation86_spill] sm:$0xff] }
0x11c2   :  { %4721 = vmatprep.subr.bf16.mxu1 %v9613_v5  ;;  %v12313_v5 = vld [vmem:[#allocation88_spill] sm:$0xff] }
0x11c5   :  { %4722 = vmatpush1.bf16.msra.mxu1 %v9616_v59  ;;  %v12314_v59 = vld [vmem:[#allocation16_spill] sm:$0xff] }
0x11c6   :  { %4723 = vmatprep.subr.bf16.mxu1 %v9619_v19  ;;  %v12315_v19 = vld [vmem:[#allocation17_spill] sm:$0xff] }
0x11c9   :  { %4724 = vmatpush1.bf16.msra.mxu1 %v9622_v25  ;;  %v12316_v25 = vld [vmem:[#allocation22_spill] sm:$0xff] }
0x11ca   :  { %4725 = vmatprep.subr.bf16.mxu1 %v9625_v51  ;;  %v12317_v51 = vld [vmem:[#allocation23_spill] sm:$0xff] }
0x11cd   :  { %4726 = vmatpush1.bf16.msra.mxu1 %v9628_v30  ;;  %v12318_v30 = vld [vmem:[#allocation24_spill] sm:$0xff] }
0x11ce   :  { %4727 = vmatprep.subr.bf16.mxu1 %v9631_v44  ;;  %v12319_v44 = vld [vmem:[#allocation26_spill] sm:$0xff] }
0x11d1   :  { %4728 = vmatpush1.bf16.msra.mxu1 %v9634_v29  ;;  %v12320_v29 = vld [vmem:[#allocation28_spill] sm:$0xff] }
0x11d2   :  { %4729 = vmatprep.subr.bf16.mxu1 %v9637_v50  ;;  %v12321_v50 = vld [vmem:[#allocation30_spill] sm:$0xff] }
0x11d5   :  { %4730 = vmatpush1.bf16.msra.mxu1 %v9640_v22  ;;  %v12322_v22 = vld [vmem:[#allocation32_spill] sm:$0xff] }
0x11d6   :  { %4731 = vmatprep.subr.bf16.mxu1 %v9643_v21  ;;  %v12323_v21 = vld [vmem:[#allocation74_spill] sm:$0xff] }
0x11d9   :  { %4732 = vmatpush1.bf16.msra.mxu1 %v9646_v36  ;;  %v12324_v36 = vld [vmem:[#allocation76_spill] sm:$0xff] }
0x11da   :  { %4822 = vmatprep.subr.bf16.mxu1 %v9649_v28  ;;  %v12325_v28 = vld [vmem:[#allocation78_spill] sm:$0xff] }
0x11dc   :  { %4750 = vmatmul.mubr.bf16.vlgmr.msra.gmra.mxu1 %v10005_v8  ;;  %v12331_v8 = vld [vmem:[#allocation70_spill] sm:$0xff] }
0x11dd   :  { %4854 = vmatprep.mubr.bf16.mxu1 %v4634_v53  ;;  %4823 = vmatpush1.bf16.msra.mxu1 %v9653_v11  ;;  %v12326_v11 = vld [vmem:[#allocation80_spill] sm:$0xff] }
0x11de   :  { %4824 = vmatprep.subr.bf16.mxu1 %v9656_v27  ;;  %v12327_v27 = vld [vmem:[#allocation33_spill] sm:$0xff] }
0x11e1   :  { %4825 = vmatpush1.bf16.msra.mxu1 %v9659_v32  ;;  %v12328_v32 = vld [vmem:[#allocation19_spill] sm:$0xff] }
0x11e2   :  { %4826 = vmatprep.subr.bf16.mxu1 %v9662_v39  ;;  %v12329_v39 = vld [vmem:[#allocation36_spill] sm:$0xff] }
0x11e5   :  { %4827 = vmatpush1.bf16.msra.mxu1 %v9665_v52  ;;  %v12330_v52 = vld [vmem:[#allocation38_spill] sm:$0xff] }
0x11e6   :  { %4828 = vmatprep.subr.bf16.mxu1 %v9912_v56 }
0x11e9   :  { %4829 = vmatpush1.bf16.msra.mxu1 %v9915_v61 }
0x11ea   :  { %4830 = vmatprep.subr.bf16.mxu1 %v9918_v49 }
0x11ed   :  { %4831 = vmatpush1.bf16.msra.mxu1 %v9921_v13 }
0x11ee   :  { %4832 = vmatprep.subr.bf16.mxu1 %v9924_v4 }
0x11f1   :  { %4833 = vmatpush1.bf16.msra.mxu1 %v12310_v10 }
0x11f2   :  { %4834 = vmatprep.subr.bf16.mxu1 %v12311_v47 }
0x11f5   :  { %4835 = vmatpush1.bf16.msra.mxu1 %v12312_v41 }
0x11f6   :  { %4836 = vmatprep.subr.bf16.mxu1 %v12313_v5 }
0x11f9   :  { %4837 = vmatpush1.bf16.msra.mxu1 %v12314_v59 }
0x11fa   :  { %4838 = vmatprep.subr.bf16.mxu1 %v12315_v19 }
0x11fd   :  { %4839 = vmatpush2.bf16.msra.mxu1 %v12316_v25 }
0x11fe   :  { %4840 = vmatprep.subr.bf16.mxu1 %v12317_v51 }
0x1201   :  { %4841 = vmatpush2.bf16.msra.mxu1 %v12318_v30 }
0x1202   :  { %4842 = vmatprep.subr.bf16.mxu1 %v12319_v44 }
0x1205   :  { %4843 = vmatpush2.bf16.msra.mxu1 %v12320_v29 }
0x1206   :  { %4844 = vmatprep.subr.bf16.mxu1 %v12321_v50 }
0x1209   :  { %4845 = vmatpush2.bf16.msra.mxu1 %v12322_v22 }
0x120a   :  { %4846 = vmatprep.subr.bf16.mxu1 %v12323_v21 }
0x120d   :  { %4847 = vmatpush2.bf16.msra.mxu1 %v12324_v36 }
0x120e   :  { %4848 = vmatprep.subr.bf16.mxu1 %v12325_v28 }
0x1211   :  { %4849 = vmatpush2.bf16.msra.mxu1 %v12326_v11 }
0x1212   :  { %4850 = vmatprep.subr.bf16.mxu1 %v12327_v27 }
0x1215   :  { %4851 = vmatpush2.bf16.msra.mxu1 %v12328_v32 }
0x1216   :  { %4852 = vmatprep.subr.bf16.mxu1 %v12329_v39 }
0x1219   :  { %4853 = vmatpush2.bf16.msra.mxu1 %v12330_v52 }
0x121a   :  { %4923 = vmatprep.subr.bf16.mxu1 %v12331_v8  ;;  %v12333_v8 = vld [vmem:[#allocation72_spill] sm:$0xff] }
0x127c   :  { %v4669_v9 = vpop.f32.mrf.mxu1 }
0x127d   :  { %v4670_v35 = vadd.f32 %v10158_v63, %v4669_v9 }
0x127e   :  { %v6056_v15 = vpop.f32.mrf.mxu1 }
0x127f   :  { %4675 = vst [vmem:[%s10866_s13 + $0x3] sm:$0x1] %v4670_v35  ;;  %v6737_v35 = vpop.eup %6736 }
0x1280   :  { %v4672_v43 = vpop.f32.mrf.mxu1  ;;  %v6739_v15 = vpop.eup %6738 }
0x1281   :  { %v4769_v43 = vmul.f32 0.5, %v6737_v35  ;;  %v12344_v35 = vld [vmem:[#allocation21_spill] sm:$0xff] }
0x1282   :  { %v6057_v23 = vpop.f32.mrf.mxu1 }
0x1283   :  { %v4768_v23 = vmul.f32 0.5, %v6739_v15  ;;  %v4772_v18 = vadd.f32 0.5, %v4769_v43  ;;  %v12345_v15 = vld [vmem:[#allocation53_spill] sm:$0xff]  ;;  %v12346_v43 = vld [vmem:[#allocation83_spill] sm:$0xff] }
0x1285   :  { %v4771_v7 = vadd.f32 0.5, %v4768_v23  ;;  %v4775_v34 = vmul.f32 %v4772_v18, %v10002_v62  ;;  %v12338_v62 = vld [vmem:[#allocation41_spill] sm:$0xff]  ;;  %v12341_v18 = vld [vmem:[#allocation18_spill] sm:$0xff] }
0x1286   :  { %v10212_v23 = vld [vmem:[#allocation7 + $0xec] ss:$16 sps:$4 sm:$0xff]  }
0x129c   :  { %v4751_v1 = vpop.f32.mrf.mxu1 }
0x129d   :  { %v4760_v9 = vadd.f32 %v4751_v1, %v12333_v8 }
0x129e   :  { %v4753_v2 = vpop.f32.mrf.mxu1 }
0x129f   :  { %v4761_v42 = vadd.f32 %v4753_v2, %v9324_v3  ;;  %v4764_v33 = vmul.f32 0.5, %v4760_v9  ;;  %v12343_v9 = vld [vmem:[#allocation52_spill] sm:$0xff] }
0x12a0   :  { %v4755_v37 = vpop.f32.mrf.mxu1 }
0x12a1   :  { %6740 = vtanh.f32 %v4761_v42 }
0x12a2   :  { %v4756_v53 = vpop.f32.mrf.mxu1  ;;  %6742 = vtanh.f32 %v4764_v33  ;;  %v12347_v33 = vld [vmem:[#allocation54_spill] sm:$0xff] }
0x12ae   :  { %v6741_v24 = vpop.eup %6740 }
0x12af   :  { %v4776_v20 = vmul.f32 %v6741_v24, %v4771_v7  ;;  %v6743_v2 = vpop.eup %6742  ;;  %v12348_v7 = vld [vmem:[#allocation55_spill] sm:$0xff]  ;;  %v12349_v24 = vld [vmem:[#allocation56_spill] sm:$0xff] }
0x12b0   :  { %v4770_v42 = vmul.f32 0.5, %v6743_v2  ;;  %v12352_v2 = vld [vmem:[#allocation59_spill] sm:$0xff] }
0x12b1   :  { %v10171_v58 = vadd.f32 %v4776_v20, %v4775_v34  ;;  %v12350_v34 = vld [vmem:[#allocation57_spill] sm:$0xff]  ;;  %v12351_v20 = vld [vmem:[#allocation58_spill] sm:$0xff] }
0x12b2   :  { %v4773_v37 = vadd.f32 0.5, %v4770_v42  ;;  %v12353_v42 = vld [vmem:[#allocation60_spill] sm:$0xff] }
0x12b3   :  { %6744 = vtanh.f32 %v10171_v58 }
0x12c0   :  { %v6745_v1 = vpop.eup %6744 }
0x12c1   :  { %v4779_v53 = vmul.f32 %v6745_v1, %v4773_v37  ;;  %v12354_v37 = vld [vmem:[#allocation61_spill] sm:$0xff]  ;;  %v12355_v1 = vld [vmem:[#allocation62_spill] sm:$0xff] }
0x12c3   :  { %v10174_v8 = vpack.c.bf16 %v4779_v53, %v4779_v53  ;;  %v12356_v53 = vld [vmem:[#allocation82_spill] sm:$0xff] }
0x12c5   :  { %4814 = vmatmul.mubr.bf16.vlgmr.msra.gmra.mxu0 %v10174_v8  ;;  %4855 = vmatmul.mubr.bf16.vlgmr.msra.gmra.mxu1 %v10174_v8 }
0x12c6   :  { %4924 = vmatpush1.bf16.msra.mxu1 %v9715_v48  ;;  %4955 = vmatprep.mubr.bf16.mxu1 %v11600_v57  ;;  %v12334_v48 = vld [vmem:[#allocation46_spill] sm:$0xff] }
0x12c7   :  { %4925 = vmatprep.subr.bf16.mxu1 %v9719_v12  ;;  %6059 = vmatpush3.bf16.msra.mxu0 %v10012_v0  ;;  %v12335_v12 = vld [vmem:[#allocation40_spill] sm:$0xff] }
0x12c8   :  { %6060 = vmatprep.subr.bf16.mxu0 %v12096_v38  ;;  %6074 = vmatprep.mubr.msk.bf16.mxu0 %vm7359_vm1, %v12096_v38 }
0x12ca   :  { %4926 = vmatpush1.bf16.msra.mxu1 %v9726_v40  ;;  %v12336_v40 = vld [vmem:[#allocation47_spill] sm:$0xff] }
0x12cb   :  { %4927 = vmatprep.subr.bf16.mxu1 %v9729_v60  ;;  %6061 = vmatpush3.bf16.msra.mxu0 %v10020_v31  ;;  %v12337_v60 = vld [vmem:[#allocation48_spill] sm:$0xff] }
0x12cc   :  { %6062 = vmatprep.subr.bf16.mxu0 %v12096_v38 }
0x12ce   :  { %4928 = vmatpush1.bf16.msra.mxu1 %v9734_v45  ;;  %v12339_v45 = vld [vmem:[#allocation49_spill] sm:$0xff] }
0x12cf   :  { %4929 = vmatprep.subr.bf16.mxu1 %v9737_v26  ;;  %6063 = vmatpush3.bf16.msra.mxu0 %v10026_v6  ;;  %v12340_v26 = vld [vmem:[#allocation50_spill] sm:$0xff] }
0x12d0   :  { %6064 = vmatprep.subr.bf16.mxu0 %v12096_v38 }
0x12d2   :  { %4930 = vmatpush1.bf16.msra.mxu1 %v9742_v16  ;;  %v12342_v16 = vld [vmem:[#allocation51_spill] sm:$0xff] }
0x12d3   :  { %4931 = vmatprep.subr.bf16.mxu1 %v12334_v48  ;;  %6065 = vmatpush3.bf16.msra.mxu0 %v12335_v12  ;;  %v12357_v48 = vld [vmem:[#allocation63_spill] sm:$0xff] }
0x12d4   :  { %6066 = vmatprep.subr.bf16.mxu0 %v12096_v38 }
0x12d6   :  { %4932 = vmatpush1.bf16.msra.mxu1 %v12336_v40  ;;  %v12358_v40 = vld [vmem:[#allocation64_spill] sm:$0xff] }
0x12d7   :  { %4933 = vmatprep.subr.bf16.mxu1 %v12337_v60  ;;  %6067 = vmatpush3.bf16.msra.mxu0 %v12338_v62  ;;  %v12359_v60 = vld [vmem:[#allocation65_spill] sm:$0xff] }
0x12d8   :  { %6068 = vmatprep.subr.bf16.mxu0 %v12096_v38 }
0x12da   :  { %4934 = vmatpush1.bf16.msra.mxu1 %v12339_v45  ;;  %v12360_v45 = vld [vmem:[#allocation66_spill] sm:$0xff] }
0x12db   :  { %4935 = vmatprep.subr.bf16.mxu1 %v12340_v26  ;;  %6069 = vmatpush3.bf16.msra.mxu0 %v12341_v18  ;;  %v12361_v26 = vld [vmem:[#allocation67_spill] sm:$0xff] }
0x12dc   :  { %6070 = vmatprep.subr.bf16.mxu0 %v12096_v38 }
0x12de   :  { %4936 = vmatpush1.bf16.msra.mxu1 %v12342_v16  ;;  %v12362_v16 = vld [vmem:[#allocation44_spill] sm:$0xff] }
0x12df   :  { %4937 = vmatprep.subr.bf16.mxu1 %v12343_v9  ;;  %6071 = vmatpush3.bf16.msra.mxu0 %v12344_v35  ;;  %v12363_v9 = vld [vmem:[#allocation25_spill] sm:$0xff] }
0x12e0   :  { %6072 = vmatprep.subr.bf16.mxu0 %v12096_v38 }
0x12e2   :  { %4938 = vmatpush1.bf16.msra.mxu1 %v12345_v15  ;;  %v12364_v15 = vld [vmem:[#allocation27_spill] sm:$0xff] }
0x12e3   :  { %6073 = vmatpush3.bf16.msra.mxu0 %v12346_v43  ;;  %5028 = vmatprep.subr.bf16.mxu1 %v12347_v33  ;;  %v12365_v33 = vld [vmem:[#allocation29_spill] sm:$0xff] }
0x12e4   :  { %4964 = vmatprep.subr.bf16.mxu0 %v10212_v23 }
0x12e5   :  { %4956 = vmatmul.mubr.bf16.vlgmr.msra.gmra.mxu1 %v10174_v8 }
0x12e6   :  { %5029 = vmatpush1.bf16.msra.mxu1 %v12348_v7  ;;  %v12366_v7 = vld [vmem:[#allocation31_spill] sm:$0xff] }
0x12e7   :  { %5030 = vmatprep.subr.bf16.mxu1 %v12349_v24  ;;  %v12367_v24 = vld [vmem:[#allocation73_spill] sm:$0xff] }
0x12ea   :  { %5031 = vmatpush1.bf16.msra.mxu1 %v12350_v34  ;;  %v12368_v34 = vld [vmem:[#allocation75_spill] sm:$0xff] }
0x12eb   :  { %5032 = vmatprep.subr.bf16.mxu1 %v12351_v20  ;;  %v12369_v20 = vld [vmem:[#allocation77_spill] sm:$0xff] }
0x12ee   :  { %5033 = vmatpush1.bf16.msra.mxu1 %v12352_v2  ;;  %v12370_v2 = vld [vmem:[#allocation79_spill] sm:$0xff] }
0x12ef   :  { %5034 = vmatprep.subr.bf16.mxu1 %v12353_v42  ;;  %v12371_v42 = vld [vmem:[#allocation81_spill] sm:$0xff] }
0x12f2   :  { %5035 = vmatpush1.bf16.msra.mxu1 %v12354_v37  ;;  %v12372_v37 = vld [vmem:[#allocation34_spill] sm:$0xff] }
0x12f3   :  { %5036 = vmatprep.subr.bf16.mxu1 %v12355_v1  ;;  %v12373_v1 = vld [vmem:[#allocation35_spill] sm:$0xff] }
0x12f6   :  { %5037 = vmatpush1.bf16.msra.mxu1 %v12356_v53  ;;  %v12374_v53 = vld [vmem:[#allocation37_spill] sm:$0xff] }
0x12f7   :  { %5038 = vmatprep.subr.bf16.mxu1 %v12357_v48  ;;  %v12375_v48 = vld [vmem:[#allocation39_spill] sm:$0xff] }
0x12fa   :  { %5039 = vmatpush1.bf16.msra.mxu1 %v12358_v40  ;;  %v12376_v40 = vld [vmem:[#allocation71_spill] sm:$0xff] }
0x12fb   :  { %5040 = vmatprep.subr.bf16.mxu1 %v12359_v60  ;;  %v12377_v60 = vld [vmem:[#allocation42_spill] sm:$0xff] }
0x12fe   :  { %5041 = vmatpush1.bf16.msra.mxu1 %v12360_v45  ;;  %v12378_v45 = vld [vmem:[#allocation20_spill] sm:$0xff] }
0x12ff   :  { %5042 = vmatprep.subr.bf16.mxu1 %v12361_v26 }
0x1302   :  { %5043 = vmatpush1.bf16.msra.mxu1 %v12362_v16 }
0x1303   :  { %5044 = vmatprep.subr.bf16.mxu1 %v12363_v9  ;;  %v12379_v9 = vld [vmem:[#allocation45_spill] sm:$0xff] }
0x1306   :  { %5045 = vmatpush2.bf16.msra.mxu1 %v12364_v15 }
0x1307   :  { %5046 = vmatprep.subr.bf16.mxu1 %v12365_v33 }
0x130a   :  { %5047 = vmatpush2.bf16.msra.mxu1 %v12366_v7 }
0x130b   :  { %5048 = vmatprep.subr.bf16.mxu1 %v12367_v24 }
0x130e   :  { %5049 = vmatpush2.bf16.msra.mxu1 %v12368_v34 }
0x130f   :  { %5050 = vmatprep.subr.bf16.mxu1 %v12369_v20 }
0x1312   :  { %5051 = vmatpush2.bf16.msra.mxu1 %v12370_v2 }
0x1313   :  { %5052 = vmatprep.subr.bf16.mxu1 %v12371_v42 }
0x1316   :  { %5053 = vmatpush2.bf16.msra.mxu1 %v12372_v37 }
0x1317   :  { %5054 = vmatprep.subr.bf16.mxu1 %v12373_v1 }
0x131a   :  { %5055 = vmatpush2.bf16.msra.mxu1 %v12374_v53 }
0x131b   :  { %5056 = vmatprep.subr.bf16.mxu1 %v12375_v48 }
0x131e   :  { %5057 = vmatpush2.bf16.msra.mxu1 %v12376_v40 }
0x131f   :  { %5058 = vmatprep.subr.bf16.mxu1 %v12377_v60 }
0x1322   :  { %5059 = vmatpush2.bf16.msra.mxu1 %v12378_v45 }
0x1323   :  { %6078 = vmatprep.subr.bf16.mxu1 %v12096_v38 }
0x1385   :  { %v4815_v26 = vpop.f32.mrf.mxu0  ;;  %v4856_v16 = vpop.f32.mrf.mxu1 }
0x1386   :  { %v4816_v15 = vadd.f32 %v4815_v26, %v12379_v9  ;;  %v4857_v48 = vadd.f32 %v4856_v16, %v9438_v46 }
0x1387   :  { %v4817_v33 = vpop.f32.mrf.mxu0  ;;  %v4858_v7 = vpop.f32.mrf.mxu1 }
0x1388   :  { %v4863_v24 = vmul.f32 0.5, %v4816_v15  ;;  %v4818_v34 = vadd.f32 %v4817_v33, %v9429_v55  ;;  %v4859_v53 = vadd.f32 %v4858_v7, %v9433_v17  ;;  %v4865_v40 = vmul.f32 0.5, %v4857_v48 }
0x1389   :  { %v4819_v20 = vpop.f32.mrf.mxu0  ;;  %v4860_v2 = vpop.f32.mrf.mxu1 }
0x138a   :  { %6746 = vtanh.f32 %v4863_v24  ;;  %v4864_v42 = vmul.f32 0.5, %v4818_v34 }
0x138b   :  { %v4820_v37 = vpop.f32.mrf.mxu0  ;;  %v4861_v1 = vpop.f32.mrf.mxu1 }
0x138c   :  { %6748 = vtanh.f32 %v4864_v42 }
0x138d   :  { %6750 = vtanh.f32 %v4859_v53 }
0x138e   :  { %6752 = vtanh.f32 %v4865_v40 }
0x1397   :  { %v6747_v60 = vpop.eup %6746 }
0x1398   :  { %v4869_v45 = vmul.f32 0.5, %v6747_v60 }
0x1399   :  { %v6749_v26 = vpop.eup %6748 }
0x139a   :  { %v4872_v9 = vadd.f32 0.5, %v4869_v45  ;;  %v4870_v15 = vmul.f32 0.5, %v6749_v26  ;;  %v6751_v20 = vpop.eup %6750  ;;  %v10267_v26 = vld [vmem:[#allocation7 + $0xc8] ss:$16 sps:$4 sm:$0xff]  }
0x139b   :  { %v6753_v42 = vpop.eup %6752 }
0x139c   :  { %v4873_v33 = vadd.f32 0.5, %v4870_v15  ;;  %v4877_v34 = vmul.f32 %v6751_v20, %v4872_v9  ;;  %v4871_v1 = vmul.f32 0.5, %v6753_v42  ;;  %v10264_v9 = vld [vmem:[#allocation7 + $0xcc] ss:$16 sps:$4 sm:$0xff]   ;;  %v10285_v42 = vld [vmem:[#allocation7 + $0x68] ss:$16 sps:$4 sm:$0xff]  }
0x139d   :  { %v10270_v15 = vld [vmem:[#allocation7 + $0xac] ss:$16 sps:$4 sm:$0xff]  }
0x139e   :  { %v4876_v24 = vmul.f32 %v4873_v33, %v10098_v14  ;;  %v4874_v48 = vadd.f32 0.5, %v4871_v1  ;;  %v10260_v14 = vld [vmem:[#allocation7 + $0xe8] ss:$16 sps:$4 sm:$0xff]   ;;  %v10276_v20 = vld [vmem:[#allocation7 + $0x8c] ss:$16 sps:$4 sm:$0xff]  }
0x139f   :  { %v10273_v33 = vld [vmem:[#allocation7 + $0xa8] ss:$16 sps:$4 sm:$0xff]  }
0x13a0   :  { %v10253_v2 = vadd.f32 %v4877_v34, %v4876_v24  ;;  %v10279_v24 = vld [vmem:[#allocation7 + $0x88] ss:$16 sps:$4 sm:$0xff]   ;;  %v10282_v34 = vld [vmem:[#allocation7 + $0x6c] ss:$16 sps:$4 sm:$0xff]  }
0x13a1   :  { %v10291_v1 = vld [vmem:[#allocation7 + $0x48] ss:$16 sps:$4 sm:$0xff]  }
0x13a2   :  { %6754 = vtanh.f32 %v10253_v2 }
0x13a5   :  { %v10256_v7 = vpop.f32.mrf.mxu1 }
0x13a7   :  { %v10258_v16 = vpop.f32.mrf.mxu1 }
0x13a9   :  { %v4961_v37 = vpop.f32.mrf.mxu1 }
0x13aa   :  { %v10288_v37 = vld [vmem:[#allocation7 + $0x4c] ss:$16 sps:$4 sm:$0xff]  }
0x13ab   :  { %v4962_v53 = vpop.f32.mrf.mxu1  ;;  %12380 = vst [vmem:[#allocation85_spill] sm:$0xff] %v10288_v37 }
0x13ac   :  { %v10294_v53 = vld [vmem:[#allocation7 + $0x2c] ss:$16 sps:$4 sm:$0xff]  }
0x13ad   :  { %12381 = vst [vmem:[#allocation87_spill] sm:$0xff] %v10294_v53 }
0x13af   :  { %v6755_v40 = vpop.eup %6754 }
0x13b0   :  { %v4880_v60 = vmul.f32 %v6755_v40, %v4874_v48  ;;  %v10297_v48 = vld [vmem:[#allocation7 + $0x28] ss:$16 sps:$4 sm:$0xff]   ;;  %v10300_v40 = vld [vmem:[#allocation7 + $0xc] ss:$16 sps:$4 sm:$0xff]  }
0x13b1   :  { %12382 = vst [vmem:[#allocation68_spill] sm:$0xff] %v10297_v48  ;;  %12383 = vst [vmem:[#allocation69_spill] sm:$0xff] %v10300_v40 }
0x13b2   :  { %v4881_v45 = vpack.c.bf16 %v4880_v60, %v4880_v60  ;;  %v10303_v60 = vld [vmem:[#allocation7 + $0x8] ss:$16 sps:$4 sm:$0xff]  }
0x13b3   :  { %12384 = vst [vmem:[#allocation43_spill] sm:$0xff] %v10303_v60 }
0x13b4   :  { %6075 = vmatmul.mubr.bf16.vlgmr.msra.gmra.mxu0 %v4881_v45  ;;  %5060 = vmatprep.mubr.bf16.mxu1 %v4881_v45 }
0x13b5   :  { %4965 = vmatpush1.bf16.msra.mxu0 %v10260_v14  ;;  %4996 = vmatprep.mubr.bf16.mxu0 %v11600_v57 }
0x13b6   :  { %4966 = vmatprep.subr.bf16.mxu0 %v10264_v9 }
0x13b9   :  { %4967 = vmatpush1.bf16.msra.mxu0 %v10267_v26 }
0x13ba   :  { %4968 = vmatprep.subr.bf16.mxu0 %v10270_v15 }
0x13bd   :  { %4969 = vmatpush1.bf16.msra.mxu0 %v10273_v33 }
0x13be   :  { %4970 = vmatprep.subr.bf16.mxu0 %v10276_v20 }
0x13c1   :  { %4971 = vmatpush1.bf16.msra.mxu0 %v10279_v24 }
0x13c2   :  { %4972 = vmatprep.subr.bf16.mxu0 %v10282_v34 }
0x13c5   :  { %4973 = vmatpush1.bf16.msra.mxu0 %v10285_v42 }
0x13c6   :  { %4974 = vmatprep.subr.bf16.mxu0 %v10288_v37  ;;  %v10306_v37 = vld [vmem:[#allocation9 + $0xec] ss:$16 sps:$4 sm:$0xff]  }
0x13c7   :  { %12385 = vst [vmem:[#allocation84_spill] sm:$0xff] %v10306_v37 }
0x13c9   :  { %4975 = vmatpush1.bf16.msra.mxu0 %v10291_v1 }
0x13ca   :  { %4976 = vmatprep.subr.bf16.mxu0 %v10294_v53  ;;  %v10310_v53 = vld [vmem:[#allocation9 + $0xe8] ss:$16 sps:$4 sm:$0xff]  }
0x13cd   :  { %4977 = vmatpush1.bf16.msra.mxu0 %v10297_v48  ;;  %v10313_v48 = vld [vmem:[#allocation9 + $0xcc] ss:$16 sps:$4 sm:$0xff]  }
0x13ce   :  { %4978 = vmatprep.subr.bf16.mxu0 %v10300_v40  ;;  %v10316_v40 = vld [vmem:[#allocation9 + $0xc8] ss:$16 sps:$4 sm:$0xff]  }
0x13d1   :  { %4979 = vmatpush1.bf16.msra.mxu0 %v10303_v60  ;;  %v10319_v60 = vld [vmem:[#allocation9 + $0xac] ss:$16 sps:$4 sm:$0xff]  }
0x13d2   :  { %5069 = vmatprep.subr.bf16.mxu0 %v10306_v37  ;;  %v10322_v37 = vld [vmem:[#allocation9 + $0xa8] ss:$16 sps:$4 sm:$0xff]  }
0x13d3   :  { %12386 = vst [vmem:[#allocation86_spill] sm:$0xff] %v10322_v37 }
0x13d4   :  { %4997 = vmatmul.mubr.bf16.vlgmr.msra.gmra.mxu0 %v10174_v8 }
0x13d5   :  { %5101 = vmatprep.mubr.bf16.mxu0 %v4881_v45  ;;  %5070 = vmatpush1.bf16.msra.mxu0 %v10310_v53 }
0x13d6   :  { %5071 = vmatprep.subr.bf16.mxu0 %v10313_v48 }
0x13d9   :  { %5072 = vmatpush1.bf16.msra.mxu0 %v10316_v40 }
0x13da   :  { %5073 = vmatprep.subr.bf16.mxu0 %v10319_v60 }
0x13dd   :  { %5074 = vmatpush1.bf16.msra.mxu0 %v10322_v37 }
0x13de   :  { %5075 = vmatprep.subr.bf16.mxu0 %v9912_v56  ;;  %v10351_v56 = vld [vmem:[#allocation7 + $0xe4] ss:$16 sps:$4 sm:$0xff]  }
0x13e1   :  { %5076 = vmatpush1.bf16.msra.mxu0 %v9915_v61 }
0x13e2   :  { %5077 = vmatprep.subr.bf16.mxu0 %v9918_v49 }
0x13e5   :  { %5078 = vmatpush1.bf16.msra.mxu0 %v9921_v13 }
0x13e6   :  { %5079 = vmatprep.subr.bf16.mxu0 %v9924_v4 }
0x13e9   :  { %5080 = vmatpush1.bf16.msra.mxu0 %v12310_v10 }
0x13ea   :  { %5081 = vmatprep.subr.bf16.mxu0 %v12311_v47  ;;  %v12387_v47 = vld [vmem:[#allocation89_spill] sm:$0xff] }
0x13ed   :  { %5082 = vmatpush1.bf16.msra.mxu0 %v12312_v41  ;;  %v5006_v41 = vadd.f32 %v10258_v16, %v12387_v47 }
0x13ee   :  { %5083 = vmatprep.subr.bf16.mxu0 %v12313_v5  ;;  %v5005_v5 = vadd.f32 %v10256_v7, %v9317_v54 }
0x13f1   :  { %5084 = vmatpush1.bf16.msra.mxu0 %v12314_v59  ;;  %v5010_v59 = vmul.f32 0.5, %v5006_v41  ;;  %v10372_v41 = vld [vmem:[#allocation7 + $0xe0] ss:$16 sps:$4 sm:$0xff]  }
0x13f2   :  { %5085 = vmatprep.subr.bf16.mxu0 %v12315_v19  ;;  %v5009_v19 = vmul.f32 0.5, %v5005_v5  ;;  %v10383_v5 = vld [vmem:[#allocation7 + $0xc0] ss:$16 sps:$4 sm:$0xff]  }
0x13f3   :  { %6756 = vtanh.f32 %v5010_v59  ;;  %v10386_v59 = vld [vmem:[#allocation7 + $0xa4] ss:$16 sps:$4 sm:$0xff]  }
0x13f4   :  { %6758 = vtanh.f32 %v5009_v19  ;;  %v10391_v19 = vld [vmem:[#allocation7 + $0xa0] ss:$16 sps:$4 sm:$0xff]  }
0x13f5   :  { %5086 = vmatpush2.bf16.msra.mxu0 %v12316_v25 }
0x13f6   :  { %5087 = vmatprep.subr.bf16.mxu0 %v12317_v51 }
0x13f9   :  { %5088 = vmatpush2.bf16.msra.mxu0 %v12318_v30 }
0x13fa   :  { %5089 = vmatprep.subr.bf16.mxu0 %v12319_v44 }
0x13fd   :  { %5090 = vmatpush2.bf16.msra.mxu0 %v12320_v29 }
0x13fe   :  { %5091 = vmatprep.subr.bf16.mxu0 %v12321_v50  ;;  %v12388_v50 = vld [vmem:[#allocation72_spill] sm:$0xff] }
0x1401   :  { %5092 = vmatpush2.bf16.msra.mxu0 %v12322_v22 }
0x1402   :  { %5093 = vmatprep.subr.bf16.mxu0 %v12323_v21  ;;  %v6757_v21 = vpop.eup %6756 }
0x1405   :  { %5094 = vmatpush2.bf16.msra.mxu0 %v12324_v36  ;;  %v6759_v36 = vpop.eup %6758 }
0x1406   :  { %5095 = vmatprep.subr.bf16.mxu0 %v12325_v28  ;;  %v5016_v28 = vmul.f32 0.5, %v6757_v21  ;;  %v10446_v21 = vld [vmem:[#allocation9 + $0xc0] ss:$16 sps:$4 sm:$0xff]  }
0x1407   :  { %12391 = vst [vmem:[#allocation17_spill] sm:$0xff] %v10446_v21 }
0x1409   :  { %5096 = vmatpush2.bf16.msra.mxu0 %v12326_v11 }
0x140a   :  { %5097 = vmatprep.subr.bf16.mxu0 %v12327_v27  ;;  %v5015_v27 = vmul.f32 0.5, %v6759_v36  ;;  %v10452_v36 = vld [vmem:[#allocation9 + $0xa0] ss:$16 sps:$4 sm:$0xff]  }
0x140b   :  { %12393 = vst [vmem:[#allocation23_spill] sm:$0xff] %v10452_v36 }
0x140d   :  { %5098 = vmatpush2.bf16.msra.mxu0 %v12328_v32  ;;  %v5019_v32 = vadd.f32 0.5, %v5016_v28  ;;  %v10455_v28 = vld [vmem:[#allocation9 + $0x84] ss:$16 sps:$4 sm:$0xff]  }
0x140e   :  { %5099 = vmatprep.subr.bf16.mxu0 %v12329_v39  ;;  %v5018_v39 = vadd.f32 0.5, %v5015_v27  ;;  %12394 = vst [vmem:[#allocation24_spill] sm:$0xff] %v10455_v28  ;;  %v10461_v27 = vld [vmem:[#allocation9 + $0x64] ss:$16 sps:$4 sm:$0xff]  }
0x140f   :  { %v5022_v8 = vmul.f32 %v5019_v32, %v10171_v58  ;;  %v10376_v58 = vld [vmem:[#allocation7 + $0xc4] ss:$16 sps:$4 sm:$0xff]   ;;  %12396 = vst [vmem:[#allocation28_spill] sm:$0xff] %v10461_v27  ;;  %v10464_v32 = vld [vmem:[#allocation9 + $0x60] ss:$16 sps:$4 sm:$0xff]  }
0x1410   :  { %12397 = vst [vmem:[#allocation30_spill] sm:$0xff] %v10464_v32 }
0x1411   :  { %5100 = vmatpush2.bf16.msra.mxu0 %v12330_v52 }
0x1412   :  { %5170 = vmatprep.subr.bf16.mxu0 %v10351_v56 }
0x1474   :  { %v4916_v61 = vpop.f32.mrf.mxu0 }
0x1475   :  { %v4917_v49 = vadd.f32 %v10158_v63, %v4916_v61 }
0x1476   :  { %v6076_v13 = vpop.f32.mrf.mxu0 }
0x1477   :  { %4922 = vst [vmem:[%s10866_s13 + $0x4] sm:$0x1] %v4917_v49 }
0x1478   :  { %v4919_v4 = vpop.f32.mrf.mxu0 }
0x147a   :  { %v6077_v10 = vpop.f32.mrf.mxu0 }
0x1494   :  { %v4998_v25 = vpop.f32.mrf.mxu0 }
0x1495   :  { %v5007_v22 = vadd.f32 %v4998_v25, %v12388_v50  ;;  %v10399_v25 = vld [vmem:[#allocation7 + $0x80] ss:$16 sps:$4 sm:$0xff]  }
0x1496   :  { %v5000_v51 = vpop.f32.mrf.mxu0 }
0x1497   :  { %v5008_v30 = vadd.f32 %v5000_v51, %v9324_v3  ;;  %v5011_v11 = vmul.f32 0.5, %v5007_v22  ;;  %v10402_v51 = vld [vmem:[#allocation7 + $0x64] ss:$16 sps:$4 sm:$0xff]   ;;  %v10440_v22 = vld [vmem:[#allocation9 + $0xe0] ss:$16 sps:$4 sm:$0xff]  }
0x1498   :  { %v5002_v44 = vpop.f32.mrf.mxu0  ;;  %12389 = vst [vmem:[#allocation88_spill] sm:$0xff] %v10440_v22 }
0x1499   :  { %6760 = vtanh.f32 %v5008_v30  ;;  %v10410_v30 = vld [vmem:[#allocation7 + $0x44] ss:$16 sps:$4 sm:$0xff]  }
0x149a   :  { %v5003_v29 = vpop.f32.mrf.mxu0  ;;  %6762 = vtanh.f32 %v5011_v11  ;;  %v10418_v44 = vld [vmem:[#allocation7 + $0x24] ss:$16 sps:$4 sm:$0xff]   ;;  %v10458_v11 = vld [vmem:[#allocation9 + $0x80] ss:$16 sps:$4 sm:$0xff]  }
0x149b   :  { %v10426_v29 = vld [vmem:[#allocation7 + $0x4] ss:$16 sps:$4 sm:$0xff]   ;;  %12395 = vst [vmem:[#allocation26_spill] sm:$0xff] %v10458_v11 }
0x14a6   :  { %v6761_v52 = vpop.eup %6760 }
0x14a7   :  { %v5023_v7 = vmul.f32 %v6761_v52, %v5018_v39  ;;  %v6763_v45 = vpop.eup %6762  ;;  %v10467_v39 = vld [vmem:[#allocation9 + $0x44] ss:$16 sps:$4 sm:$0xff]   ;;  %v10470_v52 = vld [vmem:[#allocation9 + $0x40] ss:$16 sps:$4 sm:$0xff]  }
0x14a8   :  { %v5017_v61 = vmul.f32 0.5, %v6763_v45  ;;  %12398 = vst [vmem:[#allocation32_spill] sm:$0xff] %v10467_v39  ;;  %12399 = vst [vmem:[#allocation74_spill] sm:$0xff] %v10470_v52  ;;  %v10479_v45 = vld [vmem:[#allocation9 + $0x4] ss:$16 sps:$4 sm:$0xff]  }
0x14a9   :  { %v10365_v16 = vadd.f32 %v5023_v7, %v5022_v8  ;;  %v10473_v8 = vld [vmem:[#allocation9 + $0x24] ss:$16 sps:$4 sm:$0xff]   ;;  %v10476_v7 = vld [vmem:[#allocation9 + $0x20] ss:$16 sps:$4 sm:$0xff]   ;;  %12402 = vst [vmem:[#allocation80_spill] sm:$0xff] %v10479_v45 }
0x14aa   :  { %v5020_v49 = vadd.f32 0.5, %v5017_v61  ;;  %12400 = vst [vmem:[#allocation76_spill] sm:$0xff] %v10473_v8  ;;  %12401 = vst [vmem:[#allocation78_spill] sm:$0xff] %v10476_v7  ;;  %v10482_v61 = vld [vmem:[#allocation9] ss:$16 sps:$4 sm:$0xff]  }
0x14ab   :  { %6764 = vtanh.f32 %v10365_v16  ;;  %12403 = vst [vmem:[#allocation33_spill] sm:$0xff] %v10482_v61 }
0x14b8   :  { %v6765_v13 = vpop.eup %6764 }
0x14b9   :  { %v5026_v4 = vmul.f32 %v6765_v13, %v5020_v49  ;;  %v10485_v49 = vld [vmem:[#allocation9 + $0x1e4] ss:$16 sps:$4 sm:$0xff]   ;;  %v10488_v13 = vld [vmem:[#allocation9 + $0x1e0] ss:$16 sps:$4 sm:$0xff]  }
0x14ba   :  { %12404 = vst [vmem:[#allocation19_spill] sm:$0xff] %v10485_v49  ;;  %12405 = vst [vmem:[#allocation36_spill] sm:$0xff] %v10488_v13 }
0x14bb   :  { %v10368_v10 = vpack.c.bf16 %v5026_v4, %v5026_v4  ;;  %v10491_v4 = vld [vmem:[#allocation9 + $0x1c4] ss:$16 sps:$4 sm:$0xff]  }
0x14bc   :  { %12406 = vst [vmem:[#allocation38_spill] sm:$0xff] %v10491_v4 }
0x14bd   :  { %5061 = vmatmul.mubr.bf16.vlgmr.msra.gmra.mxu1 %v10368_v10  ;;  %5102 = vmatmul.mubr.bf16.vlgmr.msra.gmra.mxu0 %v10368_v10 }
0x14be   :  { %5171 = vmatpush1.bf16.msra.mxu0 %v10372_v41  ;;  %5202 = vmatprep.mubr.bf16.mxu0 %v11600_v57 }
0x14bf   :  { %5172 = vmatprep.subr.bf16.mxu0 %v10376_v58  ;;  %6079 = vmatpush3.bf16.msra.mxu1 %v10012_v0  ;;  %v10394_v0 = vld [vmem:[#allocation7 + $0x84] ss:$16 sps:$4 sm:$0xff]  }
0x14c0   :  { %6080 = vmatprep.subr.bf16.mxu1 %v12096_v38  ;;  %6094 = vmatprep.mubr.msk.bf16.mxu1 %vm7359_vm1, %v12096_v38 }
0x14c2   :  { %5173 = vmatpush1.bf16.msra.mxu0 %v10383_v5 }
0x14c3   :  { %5174 = vmatprep.subr.bf16.mxu0 %v10386_v59  ;;  %6081 = vmatpush3.bf16.msra.mxu1 %v10020_v31  ;;  %v10407_v31 = vld [vmem:[#allocation7 + $0x60] ss:$16 sps:$4 sm:$0xff]  }
0x14c4   :  { %6082 = vmatprep.subr.bf16.mxu1 %v12096_v38 }
0x14c6   :  { %5175 = vmatpush1.bf16.msra.mxu0 %v10391_v19 }
0x14c7   :  { %5176 = vmatprep.subr.bf16.mxu0 %v10394_v0  ;;  %6083 = vmatpush3.bf16.msra.mxu1 %v10026_v6  ;;  %v10415_v6 = vld [vmem:[#allocation7 + $0x40] ss:$16 sps:$4 sm:$0xff]  }
0x14c8   :  { %6084 = vmatprep.subr.bf16.mxu1 %v12096_v38 }
0x14ca   :  { %5177 = vmatpush1.bf16.msra.mxu0 %v10399_v25 }
0x14cb   :  { %5178 = vmatprep.subr.bf16.mxu0 %v10402_v51  ;;  %6085 = vmatpush3.bf16.msra.mxu1 %v12335_v12  ;;  %v10423_v12 = vld [vmem:[#allocation7 + $0x20] ss:$16 sps:$4 sm:$0xff]  }
0x14cc   :  { %6086 = vmatprep.subr.bf16.mxu1 %v12096_v38 }
0x14ce   :  { %5179 = vmatpush1.bf16.msra.mxu0 %v10407_v31 }
0x14cf   :  { %5180 = vmatprep.subr.bf16.mxu0 %v10410_v30  ;;  %6087 = vmatpush3.bf16.msra.mxu1 %v12338_v62  ;;  %v10431_v62 = vld [vmem:[#allocation7] ss:$16 sps:$4 sm:$0xff]  }
0x14d0   :  { %6088 = vmatprep.subr.bf16.mxu1 %v12096_v38 }
0x14d2   :  { %5181 = vmatpush1.bf16.msra.mxu0 %v10415_v6 }
0x14d3   :  { %5182 = vmatprep.subr.bf16.mxu0 %v10418_v44  ;;  %6089 = vmatpush3.bf16.msra.mxu1 %v12341_v18  ;;  %v10435_v18 = vld [vmem:[#allocation9 + $0xe4] ss:$16 sps:$4 sm:$0xff]  }
0x14d4   :  { %6090 = vmatprep.subr.bf16.mxu1 %v12096_v38 }
0x14d6   :  { %5183 = vmatpush1.bf16.msra.mxu0 %v10423_v12 }
0x14d7   :  { %5184 = vmatprep.subr.bf16.mxu0 %v10426_v29  ;;  %6091 = vmatpush3.bf16.msra.mxu1 %v12344_v35  ;;  %v10443_v35 = vld [vmem:[#allocation9 + $0xc4] ss:$16 sps:$4 sm:$0xff]  }
0x14d8   :  { %6092 = vmatprep.subr.bf16.mxu1 %v12096_v38  ;;  %12390 = vst [vmem:[#allocation16_spill] sm:$0xff] %v10443_v35 }
0x14da   :  { %5185 = vmatpush1.bf16.msra.mxu0 %v10431_v62 }
0x14db   :  { %6093 = vmatpush3.bf16.msra.mxu1 %v12346_v43  ;;  %5275 = vmatprep.subr.bf16.mxu0 %v10435_v18  ;;  %v10449_v43 = vld [vmem:[#allocation9 + $0xa4] ss:$16 sps:$4 sm:$0xff]  }
0x14dc   :  { %5211 = vmatprep.subr.bf16.mxu1 %v10212_v23  ;;  %12392 = vst [vmem:[#allocation22_spill] sm:$0xff] %v10449_v43 }
0x14dd   :  { %5203 = vmatmul.mubr.bf16.vlgmr.msra.gmra.mxu0 %v10368_v10 }
0x14de   :  { %5276 = vmatpush1.bf16.msra.mxu0 %v10440_v22 }
0x14df   :  { %5277 = vmatprep.subr.bf16.mxu0 %v10443_v35 }
0x14e2   :  { %5278 = vmatpush1.bf16.msra.mxu0 %v10446_v21 }
0x14e3   :  { %5279 = vmatprep.subr.bf16.mxu0 %v10449_v43 }
0x14e6   :  { %5280 = vmatpush1.bf16.msra.mxu0 %v10452_v36 }
0x14e7   :  { %5281 = vmatprep.subr.bf16.mxu0 %v10455_v28 }
0x14ea   :  { %5282 = vmatpush1.bf16.msra.mxu0 %v10458_v11 }
0x14eb   :  { %5283 = vmatprep.subr.bf16.mxu0 %v10461_v27 }
0x14ee   :  { %5284 = vmatpush1.bf16.msra.mxu0 %v10464_v32 }
0x14ef   :  { %5285 = vmatprep.subr.bf16.mxu0 %v10467_v39 }
0x14f2   :  { %5286 = vmatpush1.bf16.msra.mxu0 %v10470_v52 }
0x14f3   :  { %5287 = vmatprep.subr.bf16.mxu0 %v10473_v8  ;;  %v12420_v8 = vld [vmem:[#allocation45_spill] sm:$0xff] }
0x14f6   :  { %5288 = vmatpush1.bf16.msra.mxu0 %v10476_v7  ;;  %v10494_v7 = vld [vmem:[#allocation9 + $0x1c0] ss:$16 sps:$4 sm:$0xff]  }
0x14f7   :  { %5289 = vmatprep.subr.bf16.mxu0 %v10479_v45  ;;  %12407 = vst [vmem:[#allocation70_spill] sm:$0xff] %v10494_v7  ;;  %v10497_v45 = vld [vmem:[#allocation9 + $0x1a4] ss:$16 sps:$4 sm:$0xff]  }
0x14f8   :  { %12408 = vst [vmem:[#allocation46_spill] sm:$0xff] %v10497_v45 }
0x14fa   :  { %5290 = vmatpush1.bf16.msra.mxu0 %v10482_v61  ;;  %v10500_v61 = vld [vmem:[#allocation9 + $0x1a0] ss:$16 sps:$4 sm:$0xff]  }
0x14fb   :  { %5291 = vmatprep.subr.bf16.mxu0 %v10485_v49  ;;  %12409 = vst [vmem:[#allocation40_spill] sm:$0xff] %v10500_v61  ;;  %v10503_v49 = vld [vmem:[#allocation9 + $0x184] ss:$16 sps:$4 sm:$0xff]  }
0x14fc   :  { %12410 = vst [vmem:[#allocation47_spill] sm:$0xff] %v10503_v49 }
0x14fe   :  { %5292 = vmatpush2.bf16.msra.mxu0 %v10488_v13  ;;  %v10506_v13 = vld [vmem:[#allocation9 + $0x180] ss:$16 sps:$4 sm:$0xff]  }
0x14ff   :  { %5293 = vmatprep.subr.bf16.mxu0 %v10491_v4  ;;  %12411 = vst [vmem:[#allocation48_spill] sm:$0xff] %v10506_v13  ;;  %v10509_v4 = vld [vmem:[#allocation9 + $0x164] ss:$16 sps:$4 sm:$0xff]  }
0x1500   :  { %12412 = vst [vmem:[#allocation41_spill] sm:$0xff] %v10509_v4 }
0x1502   :  { %5294 = vmatpush2.bf16.msra.mxu0 %v10494_v7  ;;  %v10512_v7 = vld [vmem:[#allocation9 + $0x160] ss:$16 sps:$4 sm:$0xff]  }
0x1503   :  { %5295 = vmatprep.subr.bf16.mxu0 %v10497_v45  ;;  %12413 = vst [vmem:[#allocation49_spill] sm:$0xff] %v10512_v7  ;;  %v10515_v45 = vld [vmem:[#allocation9 + $0x144] ss:$16 sps:$4 sm:$0xff]  }
0x1504   :  { %12414 = vst [vmem:[#allocation50_spill] sm:$0xff] %v10515_v45 }
0x1506   :  { %5296 = vmatpush2.bf16.msra.mxu0 %v10500_v61  ;;  %v10518_v61 = vld [vmem:[#allocation9 + $0x140] ss:$16 sps:$4 sm:$0xff]  }
0x1507   :  { %5297 = vmatprep.subr.bf16.mxu0 %v10503_v49  ;;  %12415 = vst [vmem:[#allocation18_spill] sm:$0xff] %v10518_v61  ;;  %v10521_v49 = vld [vmem:[#allocation9 + $0x124] ss:$16 sps:$4 sm:$0xff]  }
0x1508   :  { %12416 = vst [vmem:[#allocation51_spill] sm:$0xff] %v10521_v49 }
0x150a   :  { %5298 = vmatpush2.bf16.msra.mxu0 %v10506_v13  ;;  %v10524_v13 = vld [vmem:[#allocation9 + $0x120] ss:$16 sps:$4 sm:$0xff]  }
0x150b   :  { %5299 = vmatprep.subr.bf16.mxu0 %v10509_v4  ;;  %12417 = vst [vmem:[#allocation52_spill] sm:$0xff] %v10524_v13  ;;  %v10527_v4 = vld [vmem:[#allocation9 + $0x104] ss:$16 sps:$4 sm:$0xff]  }
0x150c   :  { %12418 = vst [vmem:[#allocation21_spill] sm:$0xff] %v10527_v4 }
0x150e   :  { %5300 = vmatpush2.bf16.msra.mxu0 %v10512_v7  ;;  %v10530_v7 = vld [vmem:[#allocation9 + $0x100] ss:$16 sps:$4 sm:$0xff]  }
0x150f   :  { %5301 = vmatprep.subr.bf16.mxu0 %v10515_v45  ;;  %12419 = vst [vmem:[#allocation53_spill] sm:$0xff] %v10530_v7 }
0x1512   :  { %5302 = vmatpush2.bf16.msra.mxu0 %v10518_v61 }
0x1513   :  { %5303 = vmatprep.subr.bf16.mxu0 %v10521_v49 }
0x1516   :  { %5304 = vmatpush2.bf16.msra.mxu0 %v10524_v13 }
0x1517   :  { %5305 = vmatprep.subr.bf16.mxu0 %v10527_v4 }
0x151a   :  { %5306 = vmatpush2.bf16.msra.mxu0 %v10530_v7 }
0x151b   :  { %6098 = vmatprep.subr.bf16.mxu0 %v12096_v38 }
0x157d   :  { %v5062_v45 = vpop.f32.mrf.mxu1  ;;  %v5103_v61 = vpop.f32.mrf.mxu0 }
0x157e   :  { %v5063_v52 = vadd.f32 %v5062_v45, %v12420_v8  ;;  %v5104_v43 = vadd.f32 %v5103_v61, %v9438_v46 }
0x157f   :  { %v5064_v39 = vpop.f32.mrf.mxu1  ;;  %v5105_v49 = vpop.f32.mrf.mxu0 }
0x1580   :  { %v5110_v32 = vmul.f32 0.5, %v5063_v52  ;;  %v5065_v27 = vadd.f32 %v5064_v39, %v9429_v55  ;;  %v5106_v7 = vadd.f32 %v5105_v49, %v9433_v17  ;;  %v5112_v21 = vmul.f32 0.5, %v5104_v43 }
0x1581   :  { %v5066_v13 = vpop.f32.mrf.mxu1  ;;  %v5107_v11 = vpop.f32.mrf.mxu0 }
0x1582   :  { %6766 = vtanh.f32 %v5110_v32  ;;  %v5111_v28 = vmul.f32 0.5, %v5065_v27 }
0x1583   :  { %v5067_v4 = vpop.f32.mrf.mxu1  ;;  %v5108_v36 = vpop.f32.mrf.mxu0 }
0x1584   :  { %6768 = vtanh.f32 %v5111_v28 }
0x1585   :  { %6770 = vtanh.f32 %v5106_v7 }
0x1586   :  { %6772 = vtanh.f32 %v5112_v21 }
0x158f   :  { %v6767_v35 = vpop.eup %6766 }
0x1590   :  { %v5116_v45 = vmul.f32 0.5, %v6767_v35 }
0x1591   :  { %v6769_v8 = vpop.eup %6768 }
0x1592   :  { %v5119_v22 = vadd.f32 0.5, %v5116_v45  ;;  %v5117_v52 = vmul.f32 0.5, %v6769_v8  ;;  %v6771_v13 = vpop.eup %6770  ;;  %v12423_v45 = vld [vmem:[#allocation68_spill] sm:$0xff] }
0x1593   :  { %v6773_v28 = vpop.eup %6772 }
0x1594   :  { %v5120_v39 = vadd.f32 0.5, %v5117_v52  ;;  %v5124_v27 = vmul.f32 %v6771_v13, %v5119_v22  ;;  %v5118_v35 = vmul.f32 0.5, %v6773_v28  ;;  %v12422_v22 = vld [vmem:[#allocation87_spill] sm:$0xff]  ;;  %v12424_v52 = vld [vmem:[#allocation69_spill] sm:$0xff]  ;;  %v12426_v13 = vld [vmem:[#allocation84_spill] sm:$0xff] }
0x1595   :  { %v10578_v28 = vld [vmem:[#allocation9 + $0x68] ss:$16 sps:$4 sm:$0xff]  }
0x1596   :  { %v5123_v11 = vmul.f32 %v5120_v39, %v10253_v2  ;;  %v5121_v49 = vadd.f32 0.5, %v5118_v35  ;;  %v12421_v2 = vld [vmem:[#allocation85_spill] sm:$0xff]  ;;  %v12425_v39 = vld [vmem:[#allocation43_spill] sm:$0xff]  ;;  %12430 = vst [vmem:[#allocation56_spill] sm:$0xff] %v10578_v28 }
0x1597   :  { %v10584_v35 = vld [vmem:[#allocation9 + $0x48] ss:$16 sps:$4 sm:$0xff]  }
0x1598   :  { %v10539_v32 = vadd.f32 %v5124_v27, %v5123_v11  ;;  %v10569_v11 = vld [vmem:[#allocation9 + $0x8c] ss:$16 sps:$4 sm:$0xff]   ;;  %v10572_v27 = vld [vmem:[#allocation9 + $0x88] ss:$16 sps:$4 sm:$0xff]   ;;  %12432 = vst [vmem:[#allocation58_spill] sm:$0xff] %v10584_v35 }
0x1599   :  { %12427 = vst [vmem:[#allocation83_spill] sm:$0xff] %v10569_v11  ;;  %12428 = vst [vmem:[#allocation54_spill] sm:$0xff] %v10572_v27 }
0x159a   :  { %6774 = vtanh.f32 %v10539_v32 }
0x159d   :  { %v10542_v36 = vpop.f32.mrf.mxu0 }
0x159f   :  { %v10544_v7 = vpop.f32.mrf.mxu0 }
0x15a1   :  { %v5208_v43 = vpop.f32.mrf.mxu0 }
0x15a2   :  { %v10581_v43 = vld [vmem:[#allocation9 + $0x4c] ss:$16 sps:$4 sm:$0xff]  }
0x15a3   :  { %v5209_v61 = vpop.f32.mrf.mxu0  ;;  %12431 = vst [vmem:[#allocation57_spill] sm:$0xff] %v10581_v43 }
0x15a4   :  { %v10587_v61 = vld [vmem:[#allocation9 + $0x2c] ss:$16 sps:$4 sm:$0xff]  }
0x15a5   :  { %12433 = vst [vmem:[#allocation59_spill] sm:$0xff] %v10587_v61 }
0x15a7   :  { %v6775_v21 = vpop.eup %6774 }
0x15a8   :  { %v5127_v8 = vmul.f32 %v6775_v21, %v5121_v49  ;;  %v10590_v49 = vld [vmem:[#allocation9 + $0x28] ss:$16 sps:$4 sm:$0xff]   ;;  %v10593_v21 = vld [vmem:[#allocation9 + $0xc] ss:$16 sps:$4 sm:$0xff]  }
0x15a9   :  { %12434 = vst [vmem:[#allocation60_spill] sm:$0xff] %v10590_v49  ;;  %12435 = vst [vmem:[#allocation61_spill] sm:$0xff] %v10593_v21 }
0x15aa   :  { %v5128_v4 = vpack.c.bf16 %v5127_v8, %v5127_v8  ;;  %v10596_v8 = vld [vmem:[#allocation9 + $0x8] ss:$16 sps:$4 sm:$0xff]  }
0x15ab   :  { %12436 = vst [vmem:[#allocation62_spill] sm:$0xff] %v10596_v8 }
0x15ac   :  { %6095 = vmatmul.mubr.bf16.vlgmr.msra.gmra.mxu1 %v5128_v4  ;;  %5307 = vmatprep.mubr.bf16.mxu0 %v5128_v4 }
0x15ad   :  { %5212 = vmatpush1.bf16.msra.mxu1 %v10260_v14  ;;  %5243 = vmatprep.mubr.bf16.mxu1 %v11600_v57 }
0x15ae   :  { %5213 = vmatprep.subr.bf16.mxu1 %v10264_v9 }
0x15b1   :  { %5214 = vmatpush1.bf16.msra.mxu1 %v10267_v26 }
0x15b2   :  { %5215 = vmatprep.subr.bf16.mxu1 %v10270_v15 }
0x15b5   :  { %5216 = vmatpush1.bf16.msra.mxu1 %v10273_v33 }
0x15b6   :  { %5217 = vmatprep.subr.bf16.mxu1 %v10276_v20 }
0x15b9   :  { %5218 = vmatpush1.bf16.msra.mxu1 %v10279_v24 }
0x15ba   :  { %5219 = vmatprep.subr.bf16.mxu1 %v10282_v34 }
0x15bd   :  { %5220 = vmatpush1.bf16.msra.mxu1 %v10285_v42 }
0x15be   :  { %5221 = vmatprep.subr.bf16.mxu1 %v12421_v2 }
0x15c1   :  { %5222 = vmatpush1.bf16.msra.mxu1 %v10291_v1 }
0x15c2   :  { %5223 = vmatprep.subr.bf16.mxu1 %v12422_v22 }
0x15c5   :  { %5224 = vmatpush1.bf16.msra.mxu1 %v12423_v45 }
0x15c6   :  { %5225 = vmatprep.subr.bf16.mxu1 %v12424_v52 }
0x15c9   :  { %5226 = vmatpush1.bf16.msra.mxu1 %v12425_v39 }
0x15ca   :  { %5316 = vmatprep.subr.bf16.mxu1 %v12426_v13 }
0x15cc   :  { %5244 = vmatmul.mubr.bf16.vlgmr.msra.gmra.mxu1 %v10368_v10  ;;  %v10575_v10 = vld [vmem:[#allocation9 + $0x6c] ss:$16 sps:$4 sm:$0xff]  }
0x15cd   :  { %5348 = vmatprep.mubr.bf16.mxu1 %v5128_v4  ;;  %5317 = vmatpush1.bf16.msra.mxu1 %v10310_v53  ;;  %12429 = vst [vmem:[#allocation55_spill] sm:$0xff] %v10575_v10  ;;  %v10599_v4 = vld [vmem:[#allocation9 + $0x1ec] ss:$16 sps:$4 sm:$0xff]  }
0x15ce   :  { %5318 = vmatprep.subr.bf16.mxu1 %v10313_v48  ;;  %12437 = vst [vmem:[#allocation82_spill] sm:$0xff] %v10599_v4 }
0x15d1   :  { %5319 = vmatpush1.bf16.msra.mxu1 %v10316_v40 }
0x15d2   :  { %5320 = vmatprep.subr.bf16.mxu1 %v10319_v60 }
0x15d5   :  { %5321 = vmatpush1.bf16.msra.mxu1 %v10322_v37 }
0x15d6   :  { %5322 = vmatprep.subr.bf16.mxu1 %v10569_v11 }
0x15d9   :  { %5323 = vmatpush1.bf16.msra.mxu1 %v10572_v27 }
0x15da   :  { %5324 = vmatprep.subr.bf16.mxu1 %v10575_v10 }
0x15dd   :  { %5325 = vmatpush1.bf16.msra.mxu1 %v10578_v28  ;;  %v5253_v28 = vadd.f32 %v10544_v7, %v12387_v47 }
0x15de   :  { %5326 = vmatprep.subr.bf16.mxu1 %v10581_v43 }
0x15df   :  { %v5257_v10 = vmul.f32 0.5, %v5253_v28 }
0x15e1   :  { %5327 = vmatpush1.bf16.msra.mxu1 %v10584_v35  ;;  %v10602_v35 = vld [vmem:[#allocation9 + $0x1e8] ss:$16 sps:$4 sm:$0xff]   ;;  %6776 = vtanh.f32 %v5257_v10 }
0x15e2   :  { %5328 = vmatprep.subr.bf16.mxu1 %v10587_v61  ;;  %12438 = vst [vmem:[#allocation63_spill] sm:$0xff] %v10602_v35  ;;  %v10605_v61 = vld [vmem:[#allocation9 + $0x1cc] ss:$16 sps:$4 sm:$0xff]  }
0x15e3   :  { %12439 = vst [vmem:[#allocation64_spill] sm:$0xff] %v10605_v61 }
0x15e5   :  { %5329 = vmatpush1.bf16.msra.mxu1 %v10590_v49  ;;  %v10608_v49 = vld [vmem:[#allocation9 + $0x1c8] ss:$16 sps:$4 sm:$0xff]  }
0x15e6   :  { %5330 = vmatprep.subr.bf16.mxu1 %v10593_v21  ;;  %12440 = vst [vmem:[#allocation65_spill] sm:$0xff] %v10608_v49  ;;  %v10611_v21 = vld [vmem:[#allocation9 + $0x1ac] ss:$16 sps:$4 sm:$0xff]  }
0x15e7   :  { %12441 = vst [vmem:[#allocation66_spill] sm:$0xff] %v10611_v21 }
0x15e9   :  { %5331 = vmatpush1.bf16.msra.mxu1 %v10596_v8  ;;  %v10614_v8 = vld [vmem:[#allocation9 + $0x1a8] ss:$16 sps:$4 sm:$0xff]  }
0x15ea   :  { %5332 = vmatprep.subr.bf16.mxu1 %v10599_v4  ;;  %12442 = vst [vmem:[#allocation67_spill] sm:$0xff] %v10614_v8  ;;  %v10617_v4 = vld [vmem:[#allocation9 + $0x18c] ss:$16 sps:$4 sm:$0xff]  }
0x15eb   :  { %12443 = vst [vmem:[#allocation44_spill] sm:$0xff] %v10617_v4 }
0x15ed   :  { %5333 = vmatpush2.bf16.msra.mxu1 %v10602_v35  ;;  %v10620_v35 = vld [vmem:[#allocation9 + $0x188] ss:$16 sps:$4 sm:$0xff]  }
0x15ee   :  { %5334 = vmatprep.subr.bf16.mxu1 %v10605_v61  ;;  %12444 = vst [vmem:[#allocation25_spill] sm:$0xff] %v10620_v35  ;;  %v10623_v61 = vld [vmem:[#allocation9 + $0x16c] ss:$16 sps:$4 sm:$0xff]  }
0x15ef   :  { %12445 = vst [vmem:[#allocation27_spill] sm:$0xff] %v10623_v61 }
0x15f1   :  { %5335 = vmatpush2.bf16.msra.mxu1 %v10608_v49  ;;  %v10626_v49 = vld [vmem:[#allocation9 + $0x168] ss:$16 sps:$4 sm:$0xff]  }
0x15f2   :  { %5336 = vmatprep.subr.bf16.mxu1 %v10611_v21  ;;  %12446 = vst [vmem:[#allocation29_spill] sm:$0xff] %v10626_v49  ;;  %v10629_v21 = vld [vmem:[#allocation9 + $0x14c] ss:$16 sps:$4 sm:$0xff]  }
0x15f3   :  { %12447 = vst [vmem:[#allocation31_spill] sm:$0xff] %v10629_v21 }
0x15f5   :  { %5337 = vmatpush2.bf16.msra.mxu1 %v10614_v8  ;;  %v10632_v8 = vld [vmem:[#allocation9 + $0x148] ss:$16 sps:$4 sm:$0xff]  }
0x15f6   :  { %5338 = vmatprep.subr.bf16.mxu1 %v10617_v4  ;;  %12448 = vst [vmem:[#allocation73_spill] sm:$0xff] %v10632_v8  ;;  %v10635_v4 = vld [vmem:[#allocation9 + $0x12c] ss:$16 sps:$4 sm:$0xff]  }
0x15f7   :  { %12449 = vst [vmem:[#allocation75_spill] sm:$0xff] %v10635_v4 }
0x15f9   :  { %5339 = vmatpush2.bf16.msra.mxu1 %v10620_v35  ;;  %v10638_v35 = vld [vmem:[#allocation9 + $0x128] ss:$16 sps:$4 sm:$0xff]  }
0x15fa   :  { %5340 = vmatprep.subr.bf16.mxu1 %v10623_v61  ;;  %12450 = vst [vmem:[#allocation77_spill] sm:$0xff] %v10638_v35  ;;  %v10641_v61 = vld [vmem:[#allocation9 + $0x10c] ss:$16 sps:$4 sm:$0xff]  }
0x15fb   :  { %12451 = vst [vmem:[#allocation79_spill] sm:$0xff] %v10641_v61 }
0x15fd   :  { %5341 = vmatpush2.bf16.msra.mxu1 %v10626_v49  ;;  %v10644_v49 = vld [vmem:[#allocation9 + $0x108] ss:$16 sps:$4 sm:$0xff]  }
0x15fe   :  { %5342 = vmatprep.subr.bf16.mxu1 %v10629_v21  ;;  %12452 = vst [vmem:[#allocation81_spill] sm:$0xff] %v10644_v49 }
0x1601   :  { %5343 = vmatpush2.bf16.msra.mxu1 %v10632_v8 }
0x1602   :  { %5344 = vmatprep.subr.bf16.mxu1 %v10635_v4 }
0x1605   :  { %5345 = vmatpush2.bf16.msra.mxu1 %v10638_v35 }
0x1606   :  { %5346 = vmatprep.subr.bf16.mxu1 %v10641_v61  ;;  %v5252_v61 = vadd.f32 %v10542_v36, %v9317_v54 }
0x1609   :  { %5347 = vmatpush2.bf16.msra.mxu1 %v10644_v49  ;;  %v5256_v49 = vmul.f32 0.5, %v5252_v61 }
0x160a   :  { %5417 = vmatprep.subr.bf16.mxu1 %v10351_v56 }
0x160b   :  { %6778 = vtanh.f32 %v5256_v49 }
0x166c   :  { %v5163_v21 = vpop.f32.mrf.mxu1 }
0x166d   :  { %v5164_v8 = vadd.f32 %v10158_v63, %v5163_v21 }
0x166e   :  { %v6096_v43 = vpop.f32.mrf.mxu1 }
0x166f   :  { %5169 = vst [vmem:[%s10866_s13 + $0x5] sm:$0x1] %v5164_v8 }
0x1670   :  { %v5166_v4 = vpop.f32.mrf.mxu1 }
0x1672   :  { %v6097_v35 = vpop.f32.mrf.mxu1 }
0x1673   :  { %v6777_v35 = vpop.eup %6776 }
0x1674   :  { %v6779_v4 = vpop.eup %6778  ;;  %v5263_v11 = vmul.f32 0.5, %v6777_v35  ;;  %v12467_v35 = vld [vmem:[#allocation33_spill] sm:$0xff] }
0x1675   :  { %v5262_v47 = vmul.f32 0.5, %v6779_v4  ;;  %v12468_v4 = vld [vmem:[#allocation19_spill] sm:$0xff] }
0x1676   :  { %v5266_v37 = vadd.f32 0.5, %v5263_v11  ;;  %v12465_v11 = vld [vmem:[#allocation78_spill] sm:$0xff] }
0x1677   :  { %v5265_v36 = vadd.f32 0.5, %v5262_v47  ;;  %v10677_v47 = vld [vmem:[#allocation10 + $0x30] sm:$0xff]  }
0x1678   :  { %v5269_v10 = vmul.f32 %v5266_v37, %v10365_v16  ;;  %v10669_v37 = vld [vmem:[#allocation10 + $0x38] sm:$0xff]   ;;  %v10683_v16 = vld [vmem:[#allocation10 + $0x28] sm:$0xff]  }
0x168c   :  { %v5245_v56 = vpop.f32.mrf.mxu1 }
0x168d   :  { %v5254_v8 = vadd.f32 %v5245_v56, %v12388_v50 }
0x168e   :  { %v5247_v27 = vpop.f32.mrf.mxu1 }
0x168f   :  { %v5255_v63 = vadd.f32 %v5247_v27, %v9324_v3  ;;  %v5258_v7 = vmul.f32 0.5, %v5254_v8  ;;  %v12466_v8 = vld [vmem:[#allocation80_spill] sm:$0xff] }
0x1690   :  { %v5249_v43 = vpop.f32.mrf.mxu1 }
0x1691   :  { %6780 = vtanh.f32 %v5255_v63 }
0x1692   :  { %v5250_v21 = vpop.f32.mrf.mxu1  ;;  %6782 = vtanh.f32 %v5258_v7  ;;  %v12469_v7 = vld [vmem:[#allocation36_spill] sm:$0xff] }
0x169e   :  { %v6781_v28 = vpop.eup %6780 }
0x169f   :  { %v5270_v61 = vmul.f32 %v6781_v28, %v5265_v36  ;;  %v6783_v27 = vpop.eup %6782  ;;  %v12470_v36 = vld [vmem:[#allocation38_spill] sm:$0xff] }
0x16a0   :  { %v5264_v63 = vmul.f32 0.5, %v6783_v27  ;;  %v12471_v28 = vld [vmem:[#allocation70_spill] sm:$0xff]  ;;  %v12474_v27 = vld [vmem:[#allocation47_spill] sm:$0xff] }
0x16a1   :  { %v10659_v49 = vadd.f32 %v5270_v61, %v5269_v10  ;;  %v12472_v10 = vld [vmem:[#allocation46_spill] sm:$0xff]  ;;  %v12473_v61 = vld [vmem:[#allocation40_spill] sm:$0xff] }
0x16a2   :  { %v5267_v43 = vadd.f32 0.5, %v5264_v63  ;;  %v12475_v63 = vld [vmem:[#allocation48_spill] sm:$0xff] }
0x16a3   :  { %6784 = vtanh.f32 %v10659_v49 }
0x16b0   :  { %v6785_v56 = vpop.eup %6784 }
0x16b1   :  { %v5273_v21 = vmul.f32 %v6785_v56, %v5267_v43  ;;  %v12476_v43 = vld [vmem:[#allocation41_spill] sm:$0xff] }
0x16b2   :  { %v12477_v56 = vld [vmem:[#allocation49_spill] sm:$0xff] }
0x16b3   :  { %v10662_v50 = vpack.c.bf16 %v5273_v21, %v5273_v21  ;;  %v12478_v21 = vld [vmem:[#allocation50_spill] sm:$0xff] }
0x16b5   :  { %5308 = vmatmul.mubr.bf16.vlgmr.msra.gmra.mxu0 %v10662_v50  ;;  %5349 = vmatmul.mubr.bf16.vlgmr.msra.gmra.mxu1 %v10662_v50 }
0x16b6   :  { %5418 = vmatpush1.bf16.msra.mxu1 %v10372_v41  ;;  %5449 = vmatprep.mubr.bf16.mxu1 %v11600_v57  ;;  %v10689_v41 = vld [vmem:[#allocation10 + $0x20] sm:$0xff]  }
0x16b7   :  { %5419 = vmatprep.subr.bf16.mxu1 %v10376_v58  ;;  %6099 = vmatpush3.bf16.msra.mxu0 %v10669_v37  ;;  %v10695_v58 = vld [vmem:[#allocation10 + $0x18] sm:$0xff]  }
0x16b8   :  { %6100 = vmatprep.subr.bf16.mxu0 %v12096_v38  ;;  %6114 = vmatprep.mubr.msk.bf16.mxu0 %vm7359_vm1, %v12096_v38 }
0x16ba   :  { %5420 = vmatpush1.bf16.msra.mxu1 %v10383_v5  ;;  %v10701_v5 = vld [vmem:[#allocation10 + $0x10] sm:$0xff]  }
0x16bb   :  { %5421 = vmatprep.subr.bf16.mxu1 %v10386_v59  ;;  %6101 = vmatpush3.bf16.msra.mxu0 %v10677_v47  ;;  %v10707_v59 = vld [vmem:[#allocation10 + $0x8] sm:$0xff]  }
0x16bc   :  { %6102 = vmatprep.subr.bf16.mxu0 %v12096_v38 }
0x16be   :  { %5422 = vmatpush1.bf16.msra.mxu1 %v10391_v19  ;;  %v10712_v19 = vld [vmem:[#allocation10] sm:$0xff]  }
0x16bf   :  { %5423 = vmatprep.subr.bf16.mxu1 %v10394_v0  ;;  %6103 = vmatpush3.bf16.msra.mxu0 %v10683_v16  ;;  %v12453_v0 = vld [vmem:[#allocation88_spill] sm:$0xff] }
0x16c0   :  { %6104 = vmatprep.subr.bf16.mxu0 %v12096_v38 }
0x16c2   :  { %5424 = vmatpush1.bf16.msra.mxu1 %v10399_v25  ;;  %v12454_v25 = vld [vmem:[#allocation16_spill] sm:$0xff] }
0x16c3   :  { %5425 = vmatprep.subr.bf16.mxu1 %v10402_v51  ;;  %6105 = vmatpush3.bf16.msra.mxu0 %v10689_v41  ;;  %v12455_v51 = vld [vmem:[#allocation17_spill] sm:$0xff] }
0x16c4   :  { %6106 = vmatprep.subr.bf16.mxu0 %v12096_v38 }
0x16c6   :  { %5426 = vmatpush1.bf16.msra.mxu1 %v10407_v31  ;;  %v12456_v31 = vld [vmem:[#allocation22_spill] sm:$0xff] }
0x16c7   :  { %5427 = vmatprep.subr.bf16.mxu1 %v10410_v30  ;;  %6107 = vmatpush3.bf16.msra.mxu0 %v10695_v58  ;;  %v12457_v30 = vld [vmem:[#allocation23_spill] sm:$0xff] }
0x16c8   :  { %6108 = vmatprep.subr.bf16.mxu0 %v12096_v38 }
0x16ca   :  { %5428 = vmatpush1.bf16.msra.mxu1 %v10415_v6  ;;  %v12458_v6 = vld [vmem:[#allocation24_spill] sm:$0xff] }
0x16cb   :  { %5429 = vmatprep.subr.bf16.mxu1 %v10418_v44  ;;  %6109 = vmatpush3.bf16.msra.mxu0 %v10701_v5  ;;  %v12459_v44 = vld [vmem:[#allocation26_spill] sm:$0xff] }
0x16cc   :  { %6110 = vmatprep.subr.bf16.mxu0 %v12096_v38 }
0x16ce   :  { %5430 = vmatpush1.bf16.msra.mxu1 %v10423_v12  ;;  %v12460_v12 = vld [vmem:[#allocation28_spill] sm:$0xff] }
0x16cf   :  { %5431 = vmatprep.subr.bf16.mxu1 %v10426_v29  ;;  %6111 = vmatpush3.bf16.msra.mxu0 %v10707_v59  ;;  %v12461_v29 = vld [vmem:[#allocation30_spill] sm:$0xff] }
0x16d0   :  { %6112 = vmatprep.subr.bf16.mxu0 %v12096_v38 }
0x16d2   :  { %5432 = vmatpush1.bf16.msra.mxu1 %v10431_v62  ;;  %v12463_v62 = vld [vmem:[#allocation74_spill] sm:$0xff] }
0x16d3   :  { %6113 = vmatpush3.bf16.msra.mxu0 %v10712_v19  ;;  %5522 = vmatprep.subr.bf16.mxu1 %v10435_v18  ;;  %v12464_v18 = vld [vmem:[#allocation76_spill] sm:$0xff] }
0x16d4   :  { %5458 = vmatprep.subr.bf16.mxu0 %v10212_v23  ;;  %v12462_v23 = vld [vmem:[#allocation32_spill] sm:$0xff] }
0x16d5   :  { %5450 = vmatmul.mubr.bf16.vlgmr.msra.gmra.mxu1 %v10662_v50 }
0x16d6   :  { %5523 = vmatpush1.bf16.msra.mxu1 %v12453_v0  ;;  %v12479_v0 = vld [vmem:[#allocation18_spill] sm:$0xff] }
0x16d7   :  { %5524 = vmatprep.subr.bf16.mxu1 %v12454_v25  ;;  %v12480_v25 = vld [vmem:[#allocation51_spill] sm:$0xff] }
0x16da   :  { %5525 = vmatpush1.bf16.msra.mxu1 %v12455_v51  ;;  %v12481_v51 = vld [vmem:[#allocation52_spill] sm:$0xff] }
0x16db   :  { %5526 = vmatprep.subr.bf16.mxu1 %v12456_v31  ;;  %v12482_v31 = vld [vmem:[#allocation21_spill] sm:$0xff] }
0x16de   :  { %5527 = vmatpush1.bf16.msra.mxu1 %v12457_v30  ;;  %v12483_v30 = vld [vmem:[#allocation53_spill] sm:$0xff] }
0x16df   :  { %5528 = vmatprep.subr.bf16.mxu1 %v12458_v6 }
0x16e2   :  { %5529 = vmatpush1.bf16.msra.mxu1 %v12459_v44 }
0x16e3   :  { %5530 = vmatprep.subr.bf16.mxu1 %v12460_v12  ;;  %v12484_v12 = vld [vmem:[#allocation45_spill] sm:$0xff] }
0x16e6   :  { %5531 = vmatpush1.bf16.msra.mxu1 %v12461_v29 }
0x16e7   :  { %5532 = vmatprep.subr.bf16.mxu1 %v12462_v23 }
0x16ea   :  { %5533 = vmatpush1.bf16.msra.mxu1 %v12463_v62 }
0x16eb   :  { %5534 = vmatprep.subr.bf16.mxu1 %v12464_v18 }
0x16ee   :  { %5535 = vmatpush1.bf16.msra.mxu1 %v12465_v11 }
0x16ef   :  { %5536 = vmatprep.subr.bf16.mxu1 %v12466_v8 }
0x16f2   :  { %5537 = vmatpush1.bf16.msra.mxu1 %v12467_v35 }
0x16f3   :  { %5538 = vmatprep.subr.bf16.mxu1 %v12468_v4 }
0x16f6   :  { %5539 = vmatpush2.bf16.msra.mxu1 %v12469_v7 }
0x16f7   :  { %5540 = vmatprep.subr.bf16.mxu1 %v12470_v36 }
0x16fa   :  { %5541 = vmatpush2.bf16.msra.mxu1 %v12471_v28 }
0x16fb   :  { %5542 = vmatprep.subr.bf16.mxu1 %v12472_v10 }
0x16fe   :  { %5543 = vmatpush2.bf16.msra.mxu1 %v12473_v61 }
0x16ff   :  { %5544 = vmatprep.subr.bf16.mxu1 %v12474_v27 }
0x1702   :  { %5545 = vmatpush2.bf16.msra.mxu1 %v12475_v63 }
0x1703   :  { %5546 = vmatprep.subr.bf16.mxu1 %v12476_v43 }
0x1706   :  { %5547 = vmatpush2.bf16.msra.mxu1 %v12477_v56 }
0x1707   :  { %5548 = vmatprep.subr.bf16.mxu1 %v12478_v21 }
0x170a   :  { %5549 = vmatpush2.bf16.msra.mxu1 %v12479_v0 }
0x170b   :  { %5550 = vmatprep.subr.bf16.mxu1 %v12480_v25 }
0x170e   :  { %5551 = vmatpush2.bf16.msra.mxu1 %v12481_v51 }
0x170f   :  { %5552 = vmatprep.subr.bf16.mxu1 %v12482_v31 }
0x1712   :  { %5553 = vmatpush2.bf16.msra.mxu1 %v12483_v30 }
0x1713   :  { %6118 = vmatprep.subr.bf16.mxu1 %v12096_v38 }
0x1775   :  { %v5309_v6 = vpop.f32.mrf.mxu0  ;;  %v5350_v44 = vpop.f32.mrf.mxu1 }
0x1776   :  { %v5310_v29 = vadd.f32 %v5309_v6, %v12484_v12  ;;  %v5351_v10 = vadd.f32 %v5350_v44, %v9438_v46 }
0x1777   :  { %v5311_v23 = vpop.f32.mrf.mxu0  ;;  %v5352_v62 = vpop.f32.mrf.mxu1 }
0x1778   :  { %v5357_v18 = vmul.f32 0.5, %v5310_v29  ;;  %v5312_v11 = vadd.f32 %v5311_v23, %v9429_v55  ;;  %v5353_v28 = vadd.f32 %v5352_v62, %v9433_v17  ;;  %v5359_v61 = vmul.f32 0.5, %v5351_v10  ;;  %v12511_v10 = vld [vmem:[#allocation81_spill] sm:$0xff] }
0x1779   :  { %v5313_v8 = vpop.f32.mrf.mxu0  ;;  %v5354_v35 = vpop.f32.mrf.mxu1 }
0x177a   :  { %6786 = vtanh.f32 %v5357_v18  ;;  %v5358_v4 = vmul.f32 0.5, %v5312_v11 }
0x177b   :  { %v5314_v7 = vpop.f32.mrf.mxu0  ;;  %v5355_v36 = vpop.f32.mrf.mxu1 }
0x177c   :  { %6788 = vtanh.f32 %v5358_v4  ;;  %v12508_v7 = vld [vmem:[#allocation75_spill] sm:$0xff]  ;;  %v12509_v36 = vld [vmem:[#allocation77_spill] sm:$0xff] }
0x177d   :  { %6790 = vtanh.f32 %v5353_v28  ;;  %v12510_v28 = vld [vmem:[#allocation79_spill] sm:$0xff] }
0x177e   :  { %6792 = vtanh.f32 %v5359_v61 }
0x1787   :  { %v6787_v27 = vpop.eup %6786 }
0x1788   :  { %v5363_v63 = vmul.f32 0.5, %v6787_v27  ;;  %v10814_v27 = vld [vmem:[%s10865_s12] sm:$0x1] }
0x1789   :  { %v6789_v43 = vpop.eup %6788 }
0x178a   :  { %v5366_v56 = vadd.f32 0.5, %v5363_v63  ;;  %v5364_v21 = vmul.f32 0.5, %v6789_v43  ;;  %v6791_v25 = vpop.eup %6790 }
0x178b   :  { %v6793_v29 = vpop.eup %6792 }
0x178c   :  { %v5367_v0 = vadd.f32 0.5, %v5364_v21  ;;  %v5371_v31 = vmul.f32 %v6791_v25, %v5366_v56  ;;  %v5365_v62 = vmul.f32 0.5, %v6793_v29 }
0x178e   :  { %v5370_v51 = vmul.f32 %v5367_v0, %v10539_v32  ;;  %v5368_v11 = vadd.f32 0.5, %v5365_v62  ;;  %v12501_v32 = vld [vmem:[#allocation67_spill] sm:$0xff]  ;;  %v12512_v0 = vld [vmem:[#allocation89_spill] sm:$0xff] }
0x1790   :  { %v10755_v30 = vadd.f32 %v5371_v31, %v5370_v51 }
0x1792   :  { %6794 = vtanh.f32 %v10755_v30 }
0x1795   :  { %v10758_v6 = vpop.f32.mrf.mxu1 }
0x1796   :  { %v5499_v51 = vadd.f32 %v10758_v6, %v9317_v54 }
0x1797   :  { %v10760_v44 = vpop.f32.mrf.mxu1 }
0x1798   :  { %v5500_v25 = vadd.f32 %v10760_v44, %v12512_v0  ;;  %v5503_v29 = vmul.f32 0.5, %v5499_v51 }
0x1799   :  { %v5455_v23 = vpop.f32.mrf.mxu1 }
0x179a   :  { %v5504_v31 = vmul.f32 0.5, %v5500_v25 }
0x179b   :  { %v5456_v18 = vpop.f32.mrf.mxu1 }
0x179c   :  { %6796 = vtanh.f32 %v5504_v31 }
0x179d   :  { %6798 = vtanh.f32 %v5503_v29 }
0x179f   :  { %v6795_v8 = vpop.eup %6794 }
0x17a0   :  { %v5374_v35 = vmul.f32 %v6795_v8, %v5368_v11 }
0x17a2   :  { %v5375_v4 = vpack.c.bf16 %v5374_v35, %v5374_v35  ;;  %v12513_v35 = vld [vmem:[#allocation72_spill] sm:$0xff] }
0x17a4   :  { %6115 = vmatmul.mubr.bf16.vlgmr.msra.gmra.mxu0 %v5375_v4  ;;  %5554 = vmatprep.mubr.bf16.mxu1 %v5375_v4 }
0x17a5   :  { %5459 = vmatpush1.bf16.msra.mxu0 %v10260_v14  ;;  %5490 = vmatprep.mubr.bf16.mxu0 %v11600_v57  ;;  %v12485_v57 = vld [vmem:[#allocation86_spill] sm:$0xff]  ;;  %v12486_v14 = vld [vmem:[#allocation83_spill] sm:$0xff] }
0x17a6   :  { %5460 = vmatprep.subr.bf16.mxu0 %v10264_v9  ;;  %v12487_v9 = vld [vmem:[#allocation54_spill] sm:$0xff] }
0x17a9   :  { %5461 = vmatpush1.bf16.msra.mxu0 %v10267_v26  ;;  %v12488_v26 = vld [vmem:[#allocation55_spill] sm:$0xff] }
0x17aa   :  { %5462 = vmatprep.subr.bf16.mxu0 %v10270_v15  ;;  %v12489_v15 = vld [vmem:[#allocation56_spill] sm:$0xff] }
0x17ad   :  { %5463 = vmatpush1.bf16.msra.mxu0 %v10273_v33  ;;  %v12490_v33 = vld [vmem:[#allocation57_spill] sm:$0xff] }
0x17ae   :  { %5464 = vmatprep.subr.bf16.mxu0 %v10276_v20  ;;  %v12491_v20 = vld [vmem:[#allocation58_spill] sm:$0xff] }
0x17b1   :  { %5465 = vmatpush1.bf16.msra.mxu0 %v10279_v24  ;;  %v12492_v24 = vld [vmem:[#allocation59_spill] sm:$0xff] }
0x17b2   :  { %5466 = vmatprep.subr.bf16.mxu0 %v10282_v34  ;;  %v12493_v34 = vld [vmem:[#allocation60_spill] sm:$0xff] }
0x17b5   :  { %5467 = vmatpush1.bf16.msra.mxu0 %v10285_v42  ;;  %v12494_v42 = vld [vmem:[#allocation61_spill] sm:$0xff] }
0x17b6   :  { %5468 = vmatprep.subr.bf16.mxu0 %v12421_v2  ;;  %v12502_v2 = vld [vmem:[#allocation44_spill] sm:$0xff] }
0x17b9   :  { %5469 = vmatpush1.bf16.msra.mxu0 %v10291_v1  ;;  %v12495_v1 = vld [vmem:[#allocation62_spill] sm:$0xff] }
0x17ba   :  { %5470 = vmatprep.subr.bf16.mxu0 %v12422_v22  ;;  %v12503_v22 = vld [vmem:[#allocation25_spill] sm:$0xff] }
0x17bd   :  { %5471 = vmatpush1.bf16.msra.mxu0 %v12423_v45  ;;  %v12504_v45 = vld [vmem:[#allocation27_spill] sm:$0xff] }
0x17be   :  { %5472 = vmatprep.subr.bf16.mxu0 %v12424_v52  ;;  %v12505_v52 = vld [vmem:[#allocation29_spill] sm:$0xff] }
0x17c1   :  { %5473 = vmatpush1.bf16.msra.mxu0 %v12425_v39  ;;  %v12506_v39 = vld [vmem:[#allocation31_spill] sm:$0xff] }
0x17c2   :  { %5563 = vmatprep.subr.bf16.mxu0 %v12426_v13  ;;  %v12507_v13 = vld [vmem:[#allocation73_spill] sm:$0xff] }
0x17c4   :  { %5491 = vmatmul.mubr.bf16.vlgmr.msra.gmra.mxu0 %v10662_v50  ;;  %v12500_v50 = vld [vmem:[#allocation66_spill] sm:$0xff] }
0x17c5   :  { %5595 = vmatprep.mubr.bf16.mxu0 %v5375_v4  ;;  %5564 = vmatpush1.bf16.msra.mxu0 %v10310_v53  ;;  %v12496_v53 = vld [vmem:[#allocation82_spill] sm:$0xff] }
0x17c6   :  { %5565 = vmatprep.subr.bf16.mxu0 %v10313_v48  ;;  %v12497_v48 = vld [vmem:[#allocation63_spill] sm:$0xff] }
0x17c9   :  { %5566 = vmatpush1.bf16.msra.mxu0 %v10316_v40  ;;  %v12498_v40 = vld [vmem:[#allocation64_spill] sm:$0xff] }
0x17ca   :  { %5567 = vmatprep.subr.bf16.mxu0 %v10319_v60  ;;  %v12499_v60 = vld [vmem:[#allocation65_spill] sm:$0xff] }
0x17cd   :  { %5568 = vmatpush1.bf16.msra.mxu0 %v12485_v57  ;;  %v6797_v57 = vpop.eup %6796 }
0x17ce   :  { %5569 = vmatprep.subr.bf16.mxu0 %v12486_v14  ;;  %v6799_v14 = vpop.eup %6798 }
0x17d1   :  { %5570 = vmatpush1.bf16.msra.mxu0 %v12487_v9  ;;  %v5510_v9 = vmul.f32 0.5, %v6797_v57 }
0x17d2   :  { %5571 = vmatprep.subr.bf16.mxu0 %v12488_v26  ;;  %v5509_v26 = vmul.f32 0.5, %v6799_v14 }
0x17d4   :  { %v5512_v54 = vadd.f32 0.5, %v5509_v26 }
0x17d5   :  { %5572 = vmatpush1.bf16.msra.mxu0 %v12489_v15  ;;  %v5513_v15 = vadd.f32 0.5, %v5510_v9 }
0x17d6   :  { %5573 = vmatprep.subr.bf16.mxu0 %v12490_v33 }
0x17d7   :  { %v5516_v33 = vmul.f32 %v5513_v15, %v10659_v49 }
0x17d9   :  { %5574 = vmatpush1.bf16.msra.mxu0 %v12491_v20 }
0x17da   :  { %5575 = vmatprep.subr.bf16.mxu0 %v12492_v24 }
0x17dd   :  { %5576 = vmatpush1.bf16.msra.mxu0 %v12493_v34 }
0x17de   :  { %5577 = vmatprep.subr.bf16.mxu0 %v12494_v42 }
0x17e1   :  { %5578 = vmatpush1.bf16.msra.mxu0 %v12495_v1 }
0x17e2   :  { %5579 = vmatprep.subr.bf16.mxu0 %v12496_v53 }
0x17e5   :  { %5580 = vmatpush2.bf16.msra.mxu0 %v12497_v48 }
0x17e6   :  { %5581 = vmatprep.subr.bf16.mxu0 %v12498_v40 }
0x17e9   :  { %5582 = vmatpush2.bf16.msra.mxu0 %v12499_v60 }
0x17ea   :  { %5583 = vmatprep.subr.bf16.mxu0 %v12500_v50 }
0x17ed   :  { %5584 = vmatpush2.bf16.msra.mxu0 %v12501_v32 }
0x17ee   :  { %5585 = vmatprep.subr.bf16.mxu0 %v12502_v2 }
0x17f1   :  { %5586 = vmatpush2.bf16.msra.mxu0 %v12503_v22 }
0x17f2   :  { %5587 = vmatprep.subr.bf16.mxu0 %v12504_v45 }
0x17f5   :  { %5588 = vmatpush2.bf16.msra.mxu0 %v12505_v52 }
0x17f6   :  { %5589 = vmatprep.subr.bf16.mxu0 %v12506_v39 }
0x17f9   :  { %5590 = vmatpush2.bf16.msra.mxu0 %v12507_v13 }
0x17fa   :  { %5591 = vmatprep.subr.bf16.mxu0 %v12508_v7 }
0x17fd   :  { %5592 = vmatpush2.bf16.msra.mxu0 %v12509_v36 }
0x17fe   :  { %5593 = vmatprep.subr.bf16.mxu0 %v12510_v28 }
0x1801   :  { %5594 = vmatpush2.bf16.msra.mxu0 %v12511_v10 }
0x1864   :  { %v5410_v61 = vpop.f32.mrf.mxu0 }
0x1865   :  { %v5411_v63 = vadd.f32 %v10814_v27, %v5410_v61 }
0x1866   :  { %v6116_v43 = vpop.f32.mrf.mxu0 }
0x1867   :  { %5416 = vst [vmem:[%s10866_s13 + $0x6] sm:$0x1] %v5411_v63 }
0x1868   :  { %v5413_v56 = vpop.f32.mrf.mxu0 }
0x186a   :  { %v6117_v21 = vpop.f32.mrf.mxu0 }
0x1884   :  { %v5492_v23 = vpop.f32.mrf.mxu0 }
0x1885   :  { %v5501_v4 = vadd.f32 %v5492_v23, %v12513_v35 }
0x1886   :  { %v5494_v62 = vpop.f32.mrf.mxu0 }
0x1887   :  { %v5502_v18 = vadd.f32 %v5494_v62, %v9324_v3  ;;  %v5505_v44 = vmul.f32 0.5, %v5501_v4 }
0x1888   :  { %v5496_v11 = vpop.f32.mrf.mxu0 }
0x1889   :  { %6800 = vtanh.f32 %v5502_v18 }
0x188a   :  { %v5497_v8 = vpop.f32.mrf.mxu0  ;;  %6802 = vtanh.f32 %v5505_v44 }
0x1896   :  { %v6801_v6 = vpop.eup %6800 }
0x1897   :  { %v5517_v20 = vmul.f32 %v6801_v6, %v5512_v54  ;;  %v6803_v3 = vpop.eup %6802 }
0x1898   :  { %v5511_v34 = vmul.f32 0.5, %v6803_v3 }
0x1899   :  { %v5518_v24 = vadd.f32 %v5517_v20, %v5516_v33 }
0x189a   :  { %v5514_v42 = vadd.f32 0.5, %v5511_v34 }
0x189b   :  { %6804 = vtanh.f32 %v5518_v24 }
0x18a8   :  { %v6805_v1 = vpop.eup %6804 }
0x18a9   :  { %v5520_v53 = vmul.f32 %v6805_v1, %v5514_v42 }
0x18ab   :  { %v5521_v48 = vpack.c.bf16 %v5520_v53, %v5520_v53 }
0x18ad   :  { %5555 = vmatmul.mubr.bf16.vlgmr.msra.gmra.mxu1 %v5521_v48  ;;  %5596 = vmatmul.mubr.bf16.vlgmr.msra.gmra.mxu0 %v5521_v48 }
0x18ae   :  { %6119 = vmatpush3.bf16.msra.mxu1 %v10669_v37  ;;  %6134 = vmatprep.mubr.msk.bf16.mxu1 %vm7359_vm1, %v12096_v38 }
0x18af   :  { %6120 = vmatprep.subr.bf16.mxu1 %v12096_v38 }
0x18b2   :  { %6121 = vmatpush3.bf16.msra.mxu1 %v10677_v47 }
0x18b3   :  { %6122 = vmatprep.subr.bf16.mxu1 %v12096_v38 }
0x18b6   :  { %6123 = vmatpush3.bf16.msra.mxu1 %v10683_v16 }
0x18b7   :  { %6124 = vmatprep.subr.bf16.mxu1 %v12096_v38 }
0x18ba   :  { %6125 = vmatpush3.bf16.msra.mxu1 %v10689_v41 }
0x18bb   :  { %6126 = vmatprep.subr.bf16.mxu1 %v12096_v38 }
0x18be   :  { %6127 = vmatpush3.bf16.msra.mxu1 %v10695_v58 }
0x18bf   :  { %6128 = vmatprep.subr.bf16.mxu1 %v12096_v38 }
0x18c2   :  { %6129 = vmatpush3.bf16.msra.mxu1 %v10701_v5 }
0x18c3   :  { %6130 = vmatprep.subr.bf16.mxu1 %v12096_v38 }
0x18c6   :  { %6131 = vmatpush3.bf16.msra.mxu1 %v10707_v59 }
0x18c7   :  { %6132 = vmatprep.subr.bf16.mxu1 %v12096_v38 }
0x18ca   :  { %6133 = vmatpush3.bf16.msra.mxu1 %v10712_v19 }
0x196d   :  { %v5556_v49 = vpop.f32.mrf.mxu1  ;;  %v5597_v37 = vpop.f32.mrf.mxu0 }
0x196e   :  { %v5557_v47 = vadd.f32 %v5556_v49, %v12484_v12  ;;  %v5598_v59 = vadd.f32 %v5597_v37, %v9438_v46 }
0x196f   :  { %v5558_v16 = vpop.f32.mrf.mxu1  ;;  %v5599_v41 = vpop.f32.mrf.mxu0 }
0x1970   :  { %v5604_v40 = vmul.f32 0.5, %v5557_v47  ;;  %v5559_v58 = vadd.f32 %v5558_v16, %v9429_v55  ;;  %v5600_v38 = vadd.f32 %v5599_v41, %v9433_v17  ;;  %v5606_v19 = vmul.f32 0.5, %v5598_v59 }
0x1971   :  { %v5560_v60 = vpop.f32.mrf.mxu1  ;;  %v5601_v50 = vpop.f32.mrf.mxu0 }
0x1972   :  { %6806 = vtanh.f32 %v5604_v40  ;;  %v5605_v5 = vmul.f32 0.5, %v5559_v58 }
0x1973   :  { %v5561_v32 = vpop.f32.mrf.mxu1  ;;  %v5602_v2 = vpop.f32.mrf.mxu0 }
0x1974   :  { %6808 = vtanh.f32 %v5605_v5 }
0x1975   :  { %6810 = vtanh.f32 %v5600_v38 }
0x1976   :  { %6812 = vtanh.f32 %v5606_v19 }
0x197f   :  { %v6807_v22 = vpop.eup %6806 }
0x1980   :  { %v5610_v12 = vmul.f32 0.5, %v6807_v22 }
0x1981   :  { %v6809_v45 = vpop.eup %6808 }
0x1982   :  { %v5613_v52 = vadd.f32 0.5, %v5610_v12  ;;  %v5611_v39 = vmul.f32 0.5, %v6809_v45  ;;  %v6811_v13 = vpop.eup %6810 }
0x1983   :  { %v6813_v10 = vpop.eup %6812 }
0x1984   :  { %v5614_v55 = vadd.f32 0.5, %v5611_v39  ;;  %v5618_v36 = vmul.f32 %v6811_v13, %v5613_v52  ;;  %v5612_v61 = vmul.f32 0.5, %v6813_v10 }
0x1986   :  { %v5617_v7 = vmul.f32 %v5614_v55, %v10755_v30  ;;  %v5615_v17 = vadd.f32 0.5, %v5612_v61 }
0x1988   :  { %v5619_v28 = vadd.f32 %v5618_v36, %v5617_v7 }
0x198a   :  { %6814 = vtanh.f32 %v5619_v28 }
0x1997   :  { %v6815_v63 = vpop.eup %6814 }
0x1998   :  { %v5621_v43 = vmul.f32 %v6815_v63, %v5615_v17 }
0x199a   :  { %v5622_v46 = vpack.c.bf16 %v5621_v43, %v5621_v43 }
0x199c   :  { %6135 = vmatmul.mubr.bf16.vlgmr.msra.gmra.mxu1 %v5622_v46 }
0x1a5c   :  { %v5657_v56 = vpop.f32.mrf.mxu1 }
0x1a5d   :  { %v5658_v21 = vadd.f32 %v10814_v27, %v5657_v56 }
0x1a5e   :  { %v6136_v0 = vpop.f32.mrf.mxu1 }
0x1a5f   :  { %5663 = vst [vmem:[%s10866_s13 + $0x7] sm:$0x1] %v5658_v21 }
0x1a60   :  { %v5660_v25 = vpop.f32.mrf.mxu1 }
0x1a62   :  { %v6137_v30 = vpop.f32.mrf.mxu1 }
0x1a63   :  { %5668 = vsyncpa [#allocation3], 1 }
0x1a64   :  { %5669 = vsyncpa [#allocation5], 1 }
0x1a65   :  { %5670 = vsyncpa [#allocation8], 1 }
0x1a66   :  { %5671 = vsyncpa [#allocation11], 1 }

</bundles_post_ra>
